<compile_context>
chip_gen: v7x
topology: tpu7x:2x2x1
jax: 0.10.0
libtpu: 0.0.40
codegen_flags: <defaults>
</compile_context>

<pallas_src>
import numpy as np

import jax
import jax.numpy as jnp
from jax.experimental import pallas as pl
from jax.experimental.pallas import tpu as pltpu


# ----------------------------------------------------------------------------
# Layer configuration (matches Generator.__init__)
# ----------------------------------------------------------------------------
_LAYER_CFGS = (
    dict(cin=38,  cout=512, k=2, s=1, p=0, bias=True,  bn=True),
    dict(cin=512, cout=256, k=4, s=2, p=1, bias=False, bn=True),
    dict(cin=256, cout=128, k=4, s=2, p=1, bias=False, bn=True),
    dict(cin=128, cout=28,  k=4, s=2, p=1, bias=False, bn=True),
    dict(cin=28,  cout=1,   k=2, s=2, p=2, bias=False, bn=False),
)


# ----------------------------------------------------------------------------
# Pallas kernel: whole generator forward, fully resident in VMEM.
# ----------------------------------------------------------------------------
def _generator_kernel(x_ref,
                      w1_ref, b1_ref,
                      w2_ref, s2_ref, b2_ref,
                      w3_hbm, s3_ref, b3_ref,
                      w4_ref, s4_hbm, b4_ref,
                      w5_ref,
                      o_ref,
                      w3_vmem, s4_vmem, dma_sems):
    # Prefetch the two large late-layer constants (w3: 1 MB, s4T: 2 MB) so
    # their HBM->VMEM DMA overlaps layer-1/2 compute instead of serializing
    # in front of the kernel.
    cp_w3 = pltpu.make_async_copy(w3_hbm, w3_vmem, dma_sems.at[0])
    cp_s4 = pltpu.make_async_copy(s4_hbm, s4_vmem, dma_sems.at[1])
    cp_w3.start()
    cp_s4.start()

    # ---- Layer 1: ConvT(38->512, k=2, s=1, p=0) + BN + ReLU   (1x1 -> 2x2) ----
    # One wide matmul over all 4 taps; each tap is a distinct output pixel.
    h0 = x_ref[...]                                                    # [N, 38]
    p1 = jnp.dot(h0, w1_ref[...], preferred_element_type=jnp.float32)  # [N, 4*512]
    p1 = jnp.maximum(p1 + b1_ref[...], 0.0)
    # Rows of h1 are ordered (tap, n); the layer-2 scatter matrix is built on
    # the host against exactly this ordering.
    h1 = jnp.concatenate([p1[:, t * 512:(t + 1) * 512] for t in range(4)],
                         axis=0).astype(jnp.bfloat16)                  # [4N, 512]

    # ---- Layer 2: ConvT(512->256, k=4, s=2, p=1) + BN + ReLU  (2x2 -> 4x4) ----
    p2 = jnp.dot(h1, w2_ref[...], preferred_element_type=jnp.float32)  # [4N, 16*256]
    z2 = jnp.concatenate([p2[:, t * 256:(t + 1) * 256] for t in range(16)],
                         axis=0).astype(jnp.bfloat16)                  # [64N, 256]
    o2 = jnp.dot(s2_ref[...], z2, preferred_element_type=jnp.float32)  # [16N, 256]
    h2 = jnp.maximum(o2 + b2_ref[...], 0.0).astype(jnp.bfloat16)

    # ---- Layer 3: ConvT(256->128, k=4, s=2, p=1) + BN + ReLU  (4x4 -> 8x8) ----
    cp_w3.wait()
    p3 = jnp.dot(h2, w3_vmem[...], preferred_element_type=jnp.float32)  # [16N, 16*128]
    z3 = jnp.concatenate([p3[:, t * 128:(t + 1) * 128] for t in range(16)],
                         axis=0).astype(jnp.bfloat16)                  # [256N, 128]
    o3 = jnp.dot(s3_ref[...], z3, preferred_element_type=jnp.float32)  # [64N, 128]
    o3 = jnp.maximum(o3 + b3_ref[...], 0.0)                            # f32

    # ---- Layer 4 (transposed: channels in sublanes, pixels in lanes) ----------
    #      ConvT(128->28, k=4, s=2, p=1) + BN + ReLU            (8x8 -> 16x16)
    h3t = o3.T.astype(jnp.bfloat16)                                    # [128, 64N]
    r4 = jnp.dot(w4_ref[...], h3t, preferred_element_type=jnp.float32)  # [16*32, 64N]
    q4 = jnp.concatenate([r4[t * 32:(t + 1) * 32, :] for t in range(16)],
                         axis=1).astype(jnp.bfloat16)                  # [32, 16*64N]
    cp_s4.wait()
    o4t = jnp.dot(q4, s4_vmem[...], preferred_element_type=jnp.float32)  # [32, 256N]
    h4t = jnp.maximum(o4t + b4_ref[...], 0.0).astype(jnp.bfloat16)

    # ---- Layer 5: ConvT(28->1, k=2, s=2, p=2) + Tanh         (16x16 -> 28x28) --
    # k == s: pure pixel shuffle.  Output rows = the 4 taps, lanes = (n, y, x)
    # input pixels -> lane-dense unmasked stores; wrapper does the shuffle/crop.
    o_ref[...] = jnp.tanh(
        jnp.dot(w5_ref[...], h4t, preferred_element_type=jnp.float32))  # [4, 256N]


# ----------------------------------------------------------------------------
# Host-side parameter construction / packing
# ----------------------------------------------------------------------------
def init_params(key):
    """Deterministic parameters matching the PyTorch Generator's shapes."""
    params = []
    for cfg in _LAYER_CFGS:
        key, kw, kb, kg, kbt, km, kv = jax.random.split(key, 7)
        w = 0.02 * jax.random.normal(
            kw, (cfg["cin"], cfg["cout"], cfg["k"], cfg["k"]), jnp.float32)
        bias = (0.01 * jax.random.normal(kb, (cfg["cout"],), jnp.float32)
                if cfg["bias"] else jnp.zeros((cfg["cout"],), jnp.float32))
        if cfg["bn"]:
            gamma = 1.0 + 0.1 * jax.random.normal(kg, (cfg["cout"],), jnp.float32)
            beta = 0.1 * jax.random.normal(kbt, (cfg["cout"],), jnp.float32)
            rmean = 0.1 * jax.random.normal(km, (cfg["cout"],), jnp.float32)
            rvar = 1.0 + 0.1 * jnp.abs(jax.random.normal(kv, (cfg["cout"],), jnp.float32))
            inv = gamma / jnp.sqrt(rvar + 1e-5)
            scale = inv                                   # folded into weights
            shift = beta + (bias - rmean) * inv           # folded bias + BN shift
        else:
            scale = jnp.ones((cfg["cout"],), jnp.float32)
            shift = bias
        params.append(dict(w=w, scale=scale, shift=shift, cfg=cfg))
    return params


def pack_params(params, n_batch):
    """Precompute all kernel constants (batch-size specific scatter matrices)."""
    W = [np.asarray(p["w"], np.float32) for p in params]
    scales = [np.asarray(p["scale"], np.float32) for p in params]
    shifts = [np.asarray(p["shift"], np.float32) for p in params]

    def wide_weight(w, scale):
        # [Cin, Cout, k, k] -> [Cin, T*Cout], col = t*Cout + co, BN scale folded.
        cin, cout, k, _ = w.shape
        ws = w * scale[None, :, None, None]
        return ws.transpose(0, 2, 3, 1).reshape(cin, k * k * cout)

    def scatter(in_rowmap, ho, wo, k, s, pad):
        # S[mo, t*Mi + r] = 1 iff output pixel mo = (n, y, x) (canonical order)
        # receives tap t from input row r = (n, i, j) of `in_rowmap`.
        mi = len(in_rowmap)
        mo = n_batch * ho * wo
        S = np.zeros((mo, k * k * mi), np.float32)
        for r, (n, i, j) in enumerate(in_rowmap):
            for ky in range(k):
                y = i * s - pad + ky
                if not 0 <= y < ho:
                    continue
                for kx in range(k):
                    x = j * s - pad + kx
                    if not 0 <= x < wo:
                        continue
                    t = ky * k + kx
                    S[(n * ho + y) * wo + x, t * mi + r] = 1.0
        return S

    # Activation row orderings per layer input.
    rowmap1 = [(n, t // 2, t % 2) for t in range(4) for n in range(n_batch)]   # layer-2 in
    rowmap2 = [(n, i, j) for n in range(n_batch) for i in range(4) for j in range(4)]
    rowmap3 = [(n, i, j) for n in range(n_batch) for i in range(8) for j in range(8)]

    consts = []
    # Layer 1
    consts.append(jnp.asarray(wide_weight(W[0], scales[0]), jnp.bfloat16))      # [38, 2048]
    consts.append(jnp.asarray(np.tile(shifts[0], 4)[None, :], jnp.float32))     # [1, 2048]
    # Layer 2
    consts.append(jnp.asarray(wide_weight(W[1], scales[1]), jnp.bfloat16))      # [512, 4096]
    consts.append(jnp.asarray(scatter(rowmap1, 4, 4, 4, 2, 1), jnp.bfloat16))   # [16N, 64N]
    consts.append(jnp.asarray(shifts[1][None, :], jnp.float32))                 # [1, 256]
    # Layer 3
    consts.append(jnp.asarray(wide_weight(W[2], scales[2]), jnp.bfloat16))      # [256, 2048]
    consts.append(jnp.asarray(scatter(rowmap2, 8, 8, 4, 2, 1), jnp.bfloat16))   # [64N, 256N]
    consts.append(jnp.asarray(shifts[2][None, :], jnp.float32))                 # [1, 128]
    # Layer 4 (transposed layout): W4v [16*32, 128], S4T [16*64N, 256N], shift [32, 1]
    w4s = W[3] * scales[3][None, :, None, None]                                 # [128, 28, 4, 4]
    w4v = np.zeros((16, 32, 128), np.float32)
    w4v[:, :28, :] = w4s.transpose(2, 3, 1, 0).reshape(16, 28, 128)
    consts.append(jnp.asarray(w4v.reshape(16 * 32, 128), jnp.bfloat16))
    s4 = scatter(rowmap3, 16, 16, 4, 2, 1)                                      # [256N, 16*64N]
    consts.append(jnp.asarray(s4.T, jnp.bfloat16))                              # [1024N, 256N]
    b4 = np.zeros((32, 1), np.float32)
    b4[:28, 0] = shifts[3]
    consts.append(jnp.asarray(b4, jnp.float32))
    # Layer 5: W5m [4, 32] (rows = taps, cols = Cin padded 28->32)
    w5m = np.zeros((4, 32), np.float32)
    w5m[:, :28] = W[4][:, 0, :, :].reshape(28, 4).T
    consts.append(jnp.asarray(w5m, jnp.bfloat16))
    return n_batch, consts


# ----------------------------------------------------------------------------
# Forward pass
# ----------------------------------------------------------------------------
def _full_block(arr):
    idx = (0,) * arr.ndim
    return pl.BlockSpec(arr.shape, lambda idx=idx: idx)


def generator_forward(consts, x, class_vec):
    n = x.shape[0]
    # Scatter matrices are baked for a specific batch size: tie it to the input.
    n_packed = consts[3].shape[0] // 16
    assert n == n_packed, "consts were packed for a different batch size"

    h0 = jnp.concatenate([x.reshape(n, 28), class_vec.reshape(n, 10)],
                         axis=1).astype(jnp.bfloat16)                  # [N, 38]
    ops = [h0] + list(consts)

    # w3 (index 6) and s4T (index 10) stay in HBM and are manually prefetched.
    in_specs = []
    for idx, a in enumerate(ops):
        if idx in (6, 10):
            in_specs.append(pl.BlockSpec(memory_space=pl.ANY))
        else:
            in_specs.append(_full_block(a))

    mo = n * 256
    y = pl.pallas_call(
        _generator_kernel,
        out_shape=jax.ShapeDtypeStruct((4, mo), jnp.float32),
        in_specs=in_specs,
        out_specs=pl.BlockSpec((4, mo), lambda: (0, 0)),
        scratch_shapes=[
            pltpu.VMEM((256, 2048), jnp.bfloat16),       # w3 prefetch buffer
            pltpu.VMEM((16 * 64 * n, mo), jnp.bfloat16),  # s4T prefetch buffer
            pltpu.SemaphoreType.DMA((2,)),
        ],
        compiler_params=pltpu.CompilerParams(
            vmem_limit_bytes=32 * 1024 * 1024),          # safe on v5e/v6e/v7x
    )(*ops)

    # Pixel-shuffle + crop for ConvTranspose2d(28, 1, k=2, s=2, p=2):
    # y[t=(ky,kx), (n, i, j)] -> full[n, 2i+ky, 2j+kx], crop 2 per side.
    full = y.reshape(2, 2, n, 16, 16).transpose(2, 3, 0, 4, 1).reshape(n, 32, 32)
    return full[:, 2:30, 2:30].reshape(n, 1, 28, 28)


generator_forward = jax.jit(generator_forward)


# ----------------------------------------------------------------------------
# Pure numpy reference (f32) for validation
# ----------------------------------------------------------------------------
def _reference_forward(params, x, class_vec):
    h = np.concatenate([np.asarray(x, np.float32),
                        np.asarray(class_vec, np.float32)], axis=1)
    for li, p in enumerate(params):
        cfg = p["cfg"]
        w = np.asarray(p["w"], np.float32)
        scale = np.asarray(p["scale"], np.float32)
        shift = np.asarray(p["shift"], np.float32)
        k, s, pad = cfg["k"], cfg["s"], cfg["p"]
        n, _, hi, wi = h.shape
        cout = w.shape[1]
        ho = (hi - 1) * s - 2 * pad + k
        wo = (wi - 1) * s - 2 * pad + k
        full = np.zeros((n, cout, (hi - 1) * s + k, (wi - 1) * s + k), np.float32)
        for i in range(hi):
            for j in range(wi):
                contrib = np.einsum('nc,cokl->nokl', h[:, :, i, j], w)
                full[:, :, i * s:i * s + k, j * s:j * s + k] += contrib
        out = full[:, :, pad:pad + ho, pad:pad + wo]
        out = out * scale[None, :, None, None] + shift[None, :, None, None]
        h = np.maximum(out, 0.0) if li < 4 else np.tanh(out)
    return h


# ----------------------------------------------------------------------------
if __name__ == "__main__":
    key = jax.random.PRNGKey(0)
    kx, kp = jax.random.split(key, 2)

    N = 2
    x = jax.random.normal(kx, (N, 28, 1, 1), jnp.float32)            # latent
    class_vec = jax.nn.one_hot(jnp.arange(N) % 10, 10)                # labels
    class_vec = class_vec.reshape(N, 10, 1, 1).astype(jnp.float32)

    params = init_params(kp)
    _, consts = pack_params(params, N)

    out = generator_forward(consts, x, class_vec)
    out = jax.block_until_ready(out)

    assert out.shape == (N, 1, 28, 28), out.shape
    assert out.dtype == jnp.float32
    out_np = np.asarray(out)
    assert np.all(np.isfinite(out_np))
    assert np.all(np.abs(out_np) <= 1.0)                 # tanh range

    # Validate against the f32 reference (bf16 weights/activations in kernel).
    ref = _reference_forward(params, x, class_vec)
    err = float(np.max(np.abs(out_np - ref)))
    ref_scale = float(np.max(np.abs(ref)))
    assert err <= 0.08 * ref_scale + 5e-3, (err, ref_scale)

    print("KERNEL_OK")
</pallas_src>

<mosaic_0001>
module attributes {stable_mosaic.version = 11 : i64} {
  func.func @_generator_kernel(%arg0: memref<2x38xbf16, #tpu.memory_space<vmem>>, %arg1: memref<38x2048xbf16, #tpu.memory_space<vmem>>, %arg2: memref<1x2048xf32, #tpu.memory_space<vmem>>, %arg3: memref<512x4096xbf16, #tpu.memory_space<vmem>>, %arg4: memref<32x128xbf16, #tpu.memory_space<vmem>>, %arg5: memref<1x256xf32, #tpu.memory_space<vmem>>, %arg6: memref<256x2048xbf16, #tpu.memory_space<any>>, %arg7: memref<128x512xbf16, #tpu.memory_space<vmem>>, %arg8: memref<1x128xf32, #tpu.memory_space<vmem>>, %arg9: memref<512x128xbf16, #tpu.memory_space<vmem>>, %arg10: memref<2048x512xbf16, #tpu.memory_space<any>>, %arg11: memref<32x1xf32, #tpu.memory_space<vmem>>, %arg12: memref<4x32xbf16, #tpu.memory_space<vmem>>, %arg13: memref<4x512xf32, #tpu.memory_space<vmem>>, %arg14: memref<256x2048xbf16, #tpu.memory_space<vmem>>, %arg15: memref<2048x512xbf16, #tpu.memory_space<vmem>>, %arg16: memref<2x!tpu.dma_semaphore, #tpu.memory_space<semaphore_mem>>) attributes {dimension_semantics = [], scalar_prefetch = 0 : i64, scratch_operands = 3 : i64, tpu.core_type = #tpu.core_type<tc>} {
    %c0_i32 = arith.constant 0 : i32
    %0 = tpu.memref_slice %arg16[%c0_i32] : memref<2x!tpu.dma_semaphore, #tpu.memory_space<semaphore_mem>> -> memref<1x!tpu.dma_semaphore, #tpu.memory_space<semaphore_mem>>
    %1 = tpu.memref_squeeze %0 : memref<1x!tpu.dma_semaphore, #tpu.memory_space<semaphore_mem>> -> memref<!tpu.dma_semaphore, #tpu.memory_space<semaphore_mem>>
    tpu.enqueue_dma source(%arg6 : memref<256x2048xbf16, #tpu.memory_space<any>>) target(%arg14 : memref<256x2048xbf16, #tpu.memory_space<vmem>>) target_semaphore(%1 : memref<!tpu.dma_semaphore, #tpu.memory_space<semaphore_mem>>)
    %c1_i32 = arith.constant 1 : i32
    %2 = tpu.memref_slice %arg16[%c1_i32] : memref<2x!tpu.dma_semaphore, #tpu.memory_space<semaphore_mem>> -> memref<1x!tpu.dma_semaphore, #tpu.memory_space<semaphore_mem>>
    %3 = tpu.memref_squeeze %2 : memref<1x!tpu.dma_semaphore, #tpu.memory_space<semaphore_mem>> -> memref<!tpu.dma_semaphore, #tpu.memory_space<semaphore_mem>>
    tpu.enqueue_dma source(%arg10 : memref<2048x512xbf16, #tpu.memory_space<any>>) target(%arg15 : memref<2048x512xbf16, #tpu.memory_space<vmem>>) target_semaphore(%3 : memref<!tpu.dma_semaphore, #tpu.memory_space<semaphore_mem>>)
    %c0 = arith.constant 0 : index
    %c0_0 = arith.constant 0 : index
    %4 = vector.load %arg0[%c0, %c0_0] : memref<2x38xbf16, #tpu.memory_space<vmem>>, vector<2x38xbf16>
    %c0_1 = arith.constant 0 : index
    %c0_2 = arith.constant 0 : index
    %5 = vector.load %arg1[%c0_1, %c0_2] : memref<38x2048xbf16, #tpu.memory_space<vmem>>, vector<38x2048xbf16>
    %cst = arith.constant dense<0.000000e+00> : vector<2x2048xf32>
    %6 = tpu.matmul %4, %5, %cst {dimension_numbers = #tpu.dot_dimension_numbers<[1], [0], [0], [1], [0, 0, 1, 1], [], []>} : vector<2x38xbf16>, vector<38x2048xbf16>, vector<2x2048xf32> -> vector<2x2048xf32>
    %c0_3 = arith.constant 0 : index
    %c0_4 = arith.constant 0 : index
    %7 = vector.load %arg2[%c0_3, %c0_4] : memref<1x2048xf32, #tpu.memory_space<vmem>>, vector<1x2048xf32>
    %8 = vector.broadcast %7 : vector<1x2048xf32> to vector<2x2048xf32>
    %9 = arith.addf %6, %8 : vector<2x2048xf32>
    %cst_5 = arith.constant 0.000000e+00 : f32
    %10 = vector.broadcast %cst_5 : f32 to vector<2x2048xf32>
    %11 = arith.maximumf %9, %10 : vector<2x2048xf32>
    %12 = vector.extract_strided_slice %11 {offsets = [0, 0], sizes = [2, 512], strides = [1, 1]} : vector<2x2048xf32> to vector<2x512xf32>
    %13 = vector.extract_strided_slice %11 {offsets = [0, 512], sizes = [2, 512], strides = [1, 1]} : vector<2x2048xf32> to vector<2x512xf32>
    %14 = vector.extract_strided_slice %11 {offsets = [0, 1024], sizes = [2, 512], strides = [1, 1]} : vector<2x2048xf32> to vector<2x512xf32>
    %15 = vector.extract_strided_slice %11 {offsets = [0, 1536], sizes = [2, 512], strides = [1, 1]} : vector<2x2048xf32> to vector<2x512xf32>
    %16 = tpu.concatenate %12, %13, %14, %15 in 0 : vector<2x512xf32>, vector<2x512xf32>, vector<2x512xf32>, vector<2x512xf32> -> vector<8x512xf32>
    %17 = arith.truncf %16 : vector<8x512xf32> to vector<8x512xbf16>
    %c0_6 = arith.constant 0 : index
    %c0_7 = arith.constant 0 : index
    %18 = vector.load %arg3[%c0_6, %c0_7] : memref<512x4096xbf16, #tpu.memory_space<vmem>>, vector<512x4096xbf16>
    %cst_8 = arith.constant dense<0.000000e+00> : vector<8x4096xf32>
    %19 = tpu.matmul %17, %18, %cst_8 {dimension_numbers = #tpu.dot_dimension_numbers<[1], [0], [0], [1], [0, 0, 1, 1], [], []>} : vector<8x512xbf16>, vector<512x4096xbf16>, vector<8x4096xf32> -> vector<8x4096xf32>
    %20 = vector.extract_strided_slice %19 {offsets = [0, 0], sizes = [8, 256], strides = [1, 1]} : vector<8x4096xf32> to vector<8x256xf32>
    %21 = vector.extract_strided_slice %19 {offsets = [0, 256], sizes = [8, 256], strides = [1, 1]} : vector<8x4096xf32> to vector<8x256xf32>
    %22 = vector.extract_strided_slice %19 {offsets = [0, 512], sizes = [8, 256], strides = [1, 1]} : vector<8x4096xf32> to vector<8x256xf32>
    %23 = vector.extract_strided_slice %19 {offsets = [0, 768], sizes = [8, 256], strides = [1, 1]} : vector<8x4096xf32> to vector<8x256xf32>
    %24 = vector.extract_strided_slice %19 {offsets = [0, 1024], sizes = [8, 256], strides = [1, 1]} : vector<8x4096xf32> to vector<8x256xf32>
    %25 = vector.extract_strided_slice %19 {offsets = [0, 1280], sizes = [8, 256], strides = [1, 1]} : vector<8x4096xf32> to vector<8x256xf32>
    %26 = vector.extract_strided_slice %19 {offsets = [0, 1536], sizes = [8, 256], strides = [1, 1]} : vector<8x4096xf32> to vector<8x256xf32>
    %27 = vector.extract_strided_slice %19 {offsets = [0, 1792], sizes = [8, 256], strides = [1, 1]} : vector<8x4096xf32> to vector<8x256xf32>
    %28 = vector.extract_strided_slice %19 {offsets = [0, 2048], sizes = [8, 256], strides = [1, 1]} : vector<8x4096xf32> to vector<8x256xf32>
    %29 = vector.extract_strided_slice %19 {offsets = [0, 2304], sizes = [8, 256], strides = [1, 1]} : vector<8x4096xf32> to vector<8x256xf32>
    %30 = vector.extract_strided_slice %19 {offsets = [0, 2560], sizes = [8, 256], strides = [1, 1]} : vector<8x4096xf32> to vector<8x256xf32>
    %31 = vector.extract_strided_slice %19 {offsets = [0, 2816], sizes = [8, 256], strides = [1, 1]} : vector<8x4096xf32> to vector<8x256xf32>
    %32 = vector.extract_strided_slice %19 {offsets = [0, 3072], sizes = [8, 256], strides = [1, 1]} : vector<8x4096xf32> to vector<8x256xf32>
    %33 = vector.extract_strided_slice %19 {offsets = [0, 3328], sizes = [8, 256], strides = [1, 1]} : vector<8x4096xf32> to vector<8x256xf32>
    %34 = vector.extract_strided_slice %19 {offsets = [0, 3584], sizes = [8, 256], strides = [1, 1]} : vector<8x4096xf32> to vector<8x256xf32>
    %35 = vector.extract_strided_slice %19 {offsets = [0, 3840], sizes = [8, 256], strides = [1, 1]} : vector<8x4096xf32> to vector<8x256xf32>
    %36 = tpu.concatenate %20, %21, %22, %23, %24, %25, %26, %27, %28, %29, %30, %31, %32, %33, %34, %35 in 0 : vector<8x256xf32>, vector<8x256xf32>, vector<8x256xf32>, vector<8x256xf32>, vector<8x256xf32>, vector<8x256xf32>, vector<8x256xf32>, vector<8x256xf32>, vector<8x256xf32>, vector<8x256xf32>, vector<8x256xf32>, vector<8x256xf32>, vector<8x256xf32>, vector<8x256xf32>, vector<8x256xf32>, vector<8x256xf32> -> vector<128x256xf32>
    %37 = arith.truncf %36 : vector<128x256xf32> to vector<128x256xbf16>
    %c0_9 = arith.constant 0 : index
    %c0_10 = arith.constant 0 : index
    %38 = vector.load %arg4[%c0_9, %c0_10] : memref<32x128xbf16, #tpu.memory_space<vmem>>, vector<32x128xbf16>
    %cst_11 = arith.constant dense<0.000000e+00> : vector<32x256xf32>
    %39 = tpu.matmul %38, %37, %cst_11 {dimension_numbers = #tpu.dot_dimension_numbers<[1], [0], [0], [1], [0, 0, 1, 1], [], []>} : vector<32x128xbf16>, vector<128x256xbf16>, vector<32x256xf32> -> vector<32x256xf32>
    %c0_12 = arith.constant 0 : index
    %c0_13 = arith.constant 0 : index
    %40 = vector.load %arg5[%c0_12, %c0_13] : memref<1x256xf32, #tpu.memory_space<vmem>>, vector<1x256xf32>
    %41 = vector.broadcast %40 : vector<1x256xf32> to vector<32x256xf32>
    %42 = arith.addf %39, %41 : vector<32x256xf32>
    %cst_14 = arith.constant 0.000000e+00 : f32
    %43 = vector.broadcast %cst_14 : f32 to vector<32x256xf32>
    %44 = arith.maximumf %42, %43 : vector<32x256xf32>
    %45 = arith.truncf %44 : vector<32x256xf32> to vector<32x256xbf16>
    %c0_i32_15 = arith.constant 0 : i32
    %46 = tpu.memref_slice %arg16[%c0_i32_15] : memref<2x!tpu.dma_semaphore, #tpu.memory_space<semaphore_mem>> -> memref<1x!tpu.dma_semaphore, #tpu.memory_space<semaphore_mem>>
    %47 = tpu.memref_squeeze %46 : memref<1x!tpu.dma_semaphore, #tpu.memory_space<semaphore_mem>> -> memref<!tpu.dma_semaphore, #tpu.memory_space<semaphore_mem>>
    tpu.wait_dma2 semaphore(%47 : memref<!tpu.dma_semaphore, #tpu.memory_space<semaphore_mem>>) src(%arg6 : memref<256x2048xbf16, #tpu.memory_space<any>>) dst(%arg14 : memref<256x2048xbf16, #tpu.memory_space<vmem>>)
    %c0_16 = arith.constant 0 : index
    %c0_17 = arith.constant 0 : index
    %48 = vector.load %arg14[%c0_16, %c0_17] : memref<256x2048xbf16, #tpu.memory_space<vmem>>, vector<256x2048xbf16>
    %cst_18 = arith.constant dense<0.000000e+00> : vector<32x2048xf32>
    %49 = tpu.matmul %45, %48, %cst_18 {dimension_numbers = #tpu.dot_dimension_numbers<[1], [0], [0], [1], [0, 0, 1, 1], [], []>} : vector<32x256xbf16>, vector<256x2048xbf16>, vector<32x2048xf32> -> vector<32x2048xf32>
    %50 = vector.extract_strided_slice %49 {offsets = [0, 0], sizes = [32, 128], strides = [1, 1]} : vector<32x2048xf32> to vector<32x128xf32>
    %51 = vector.extract_strided_slice %49 {offsets = [0, 128], sizes = [32, 128], strides = [1, 1]} : vector<32x2048xf32> to vector<32x128xf32>
    %52 = vector.extract_strided_slice %49 {offsets = [0, 256], sizes = [32, 128], strides = [1, 1]} : vector<32x2048xf32> to vector<32x128xf32>
    %53 = vector.extract_strided_slice %49 {offsets = [0, 384], sizes = [32, 128], strides = [1, 1]} : vector<32x2048xf32> to vector<32x128xf32>
    %54 = vector.extract_strided_slice %49 {offsets = [0, 512], sizes = [32, 128], strides = [1, 1]} : vector<32x2048xf32> to vector<32x128xf32>
    %55 = vector.extract_strided_slice %49 {offsets = [0, 640], sizes = [32, 128], strides = [1, 1]} : vector<32x2048xf32> to vector<32x128xf32>
    %56 = vector.extract_strided_slice %49 {offsets = [0, 768], sizes = [32, 128], strides = [1, 1]} : vector<32x2048xf32> to vector<32x128xf32>
    %57 = vector.extract_strided_slice %49 {offsets = [0, 896], sizes = [32, 128], strides = [1, 1]} : vector<32x2048xf32> to vector<32x128xf32>
    %58 = vector.extract_strided_slice %49 {offsets = [0, 1024], sizes = [32, 128], strides = [1, 1]} : vector<32x2048xf32> to vector<32x128xf32>
    %59 = vector.extract_strided_slice %49 {offsets = [0, 1152], sizes = [32, 128], strides = [1, 1]} : vector<32x2048xf32> to vector<32x128xf32>
    %60 = vector.extract_strided_slice %49 {offsets = [0, 1280], sizes = [32, 128], strides = [1, 1]} : vector<32x2048xf32> to vector<32x128xf32>
    %61 = vector.extract_strided_slice %49 {offsets = [0, 1408], sizes = [32, 128], strides = [1, 1]} : vector<32x2048xf32> to vector<32x128xf32>
    %62 = vector.extract_strided_slice %49 {offsets = [0, 1536], sizes = [32, 128], strides = [1, 1]} : vector<32x2048xf32> to vector<32x128xf32>
    %63 = vector.extract_strided_slice %49 {offsets = [0, 1664], sizes = [32, 128], strides = [1, 1]} : vector<32x2048xf32> to vector<32x128xf32>
    %64 = vector.extract_strided_slice %49 {offsets = [0, 1792], sizes = [32, 128], strides = [1, 1]} : vector<32x2048xf32> to vector<32x128xf32>
    %65 = vector.extract_strided_slice %49 {offsets = [0, 1920], sizes = [32, 128], strides = [1, 1]} : vector<32x2048xf32> to vector<32x128xf32>
    %66 = tpu.concatenate %50, %51, %52, %53, %54, %55, %56, %57, %58, %59, %60, %61, %62, %63, %64, %65 in 0 : vector<32x128xf32>, vector<32x128xf32>, vector<32x128xf32>, vector<32x128xf32>, vector<32x128xf32>, vector<32x128xf32>, vector<32x128xf32>, vector<32x128xf32>, vector<32x128xf32>, vector<32x128xf32>, vector<32x128xf32>, vector<32x128xf32>, vector<32x128xf32>, vector<32x128xf32>, vector<32x128xf32>, vector<32x128xf32> -> vector<512x128xf32>
    %67 = arith.truncf %66 : vector<512x128xf32> to vector<512x128xbf16>
    %c0_19 = arith.constant 0 : index
    %c0_20 = arith.constant 0 : index
    %68 = vector.load %arg7[%c0_19, %c0_20] : memref<128x512xbf16, #tpu.memory_space<vmem>>, vector<128x512xbf16>
    %cst_21 = arith.constant dense<0.000000e+00> : vector<128x128xf32>
    %69 = tpu.matmul %68, %67, %cst_21 {dimension_numbers = #tpu.dot_dimension_numbers<[1], [0], [0], [1], [0, 0, 1, 1], [], []>} : vector<128x512xbf16>, vector<512x128xbf16>, vector<128x128xf32> -> vector<128x128xf32>
    %c0_22 = arith.constant 0 : index
    %c0_23 = arith.constant 0 : index
    %70 = vector.load %arg8[%c0_22, %c0_23] : memref<1x128xf32, #tpu.memory_space<vmem>>, vector<1x128xf32>
    %71 = vector.broadcast %70 : vector<1x128xf32> to vector<128x128xf32>
    %72 = arith.addf %69, %71 : vector<128x128xf32>
    %cst_24 = arith.constant 0.000000e+00 : f32
    %73 = vector.broadcast %cst_24 : f32 to vector<128x128xf32>
    %74 = arith.maximumf %72, %73 : vector<128x128xf32>
    %75 = tpu.transpose %74, [1, 0] : vector<128x128xf32> -> vector<128x128xf32>
    %76 = arith.truncf %75 : vector<128x128xf32> to vector<128x128xbf16>
    %c0_25 = arith.constant 0 : index
    %c0_26 = arith.constant 0 : index
    %77 = vector.load %arg9[%c0_25, %c0_26] : memref<512x128xbf16, #tpu.memory_space<vmem>>, vector<512x128xbf16>
    %cst_27 = arith.constant dense<0.000000e+00> : vector<512x128xf32>
    %78 = tpu.matmul %77, %76, %cst_27 {dimension_numbers = #tpu.dot_dimension_numbers<[1], [0], [0], [1], [0, 0, 1, 1], [], []>} : vector<512x128xbf16>, vector<128x128xbf16>, vector<512x128xf32> -> vector<512x128xf32>
    %79 = vector.extract_strided_slice %78 {offsets = [0, 0], sizes = [32, 128], strides = [1, 1]} : vector<512x128xf32> to vector<32x128xf32>
    %80 = vector.extract_strided_slice %78 {offsets = [32, 0], sizes = [32, 128], strides = [1, 1]} : vector<512x128xf32> to vector<32x128xf32>
    %81 = vector.extract_strided_slice %78 {offsets = [64, 0], sizes = [32, 128], strides = [1, 1]} : vector<512x128xf32> to vector<32x128xf32>
    %82 = vector.extract_strided_slice %78 {offsets = [96, 0], sizes = [32, 128], strides = [1, 1]} : vector<512x128xf32> to vector<32x128xf32>
    %83 = vector.extract_strided_slice %78 {offsets = [128, 0], sizes = [32, 128], strides = [1, 1]} : vector<512x128xf32> to vector<32x128xf32>
    %84 = vector.extract_strided_slice %78 {offsets = [160, 0], sizes = [32, 128], strides = [1, 1]} : vector<512x128xf32> to vector<32x128xf32>
    %85 = vector.extract_strided_slice %78 {offsets = [192, 0], sizes = [32, 128], strides = [1, 1]} : vector<512x128xf32> to vector<32x128xf32>
    %86 = vector.extract_strided_slice %78 {offsets = [224, 0], sizes = [32, 128], strides = [1, 1]} : vector<512x128xf32> to vector<32x128xf32>
    %87 = vector.extract_strided_slice %78 {offsets = [256, 0], sizes = [32, 128], strides = [1, 1]} : vector<512x128xf32> to vector<32x128xf32>
    %88 = vector.extract_strided_slice %78 {offsets = [288, 0], sizes = [32, 128], strides = [1, 1]} : vector<512x128xf32> to vector<32x128xf32>
    %89 = vector.extract_strided_slice %78 {offsets = [320, 0], sizes = [32, 128], strides = [1, 1]} : vector<512x128xf32> to vector<32x128xf32>
    %90 = vector.extract_strided_slice %78 {offsets = [352, 0], sizes = [32, 128], strides = [1, 1]} : vector<512x128xf32> to vector<32x128xf32>
    %91 = vector.extract_strided_slice %78 {offsets = [384, 0], sizes = [32, 128], strides = [1, 1]} : vector<512x128xf32> to vector<32x128xf32>
    %92 = vector.extract_strided_slice %78 {offsets = [416, 0], sizes = [32, 128], strides = [1, 1]} : vector<512x128xf32> to vector<32x128xf32>
    %93 = vector.extract_strided_slice %78 {offsets = [448, 0], sizes = [32, 128], strides = [1, 1]} : vector<512x128xf32> to vector<32x128xf32>
    %94 = vector.extract_strided_slice %78 {offsets = [480, 0], sizes = [32, 128], strides = [1, 1]} : vector<512x128xf32> to vector<32x128xf32>
    %95 = tpu.concatenate %79, %80, %81, %82, %83, %84, %85, %86, %87, %88, %89, %90, %91, %92, %93, %94 in 1 : vector<32x128xf32>, vector<32x128xf32>, vector<32x128xf32>, vector<32x128xf32>, vector<32x128xf32>, vector<32x128xf32>, vector<32x128xf32>, vector<32x128xf32>, vector<32x128xf32>, vector<32x128xf32>, vector<32x128xf32>, vector<32x128xf32>, vector<32x128xf32>, vector<32x128xf32>, vector<32x128xf32>, vector<32x128xf32> -> vector<32x2048xf32>
    %96 = arith.truncf %95 : vector<32x2048xf32> to vector<32x2048xbf16>
    %c1_i32_28 = arith.constant 1 : i32
    %97 = tpu.memref_slice %arg16[%c1_i32_28] : memref<2x!tpu.dma_semaphore, #tpu.memory_space<semaphore_mem>> -> memref<1x!tpu.dma_semaphore, #tpu.memory_space<semaphore_mem>>
    %98 = tpu.memref_squeeze %97 : memref<1x!tpu.dma_semaphore, #tpu.memory_space<semaphore_mem>> -> memref<!tpu.dma_semaphore, #tpu.memory_space<semaphore_mem>>
    tpu.wait_dma2 semaphore(%98 : memref<!tpu.dma_semaphore, #tpu.memory_space<semaphore_mem>>) src(%arg10 : memref<2048x512xbf16, #tpu.memory_space<any>>) dst(%arg15 : memref<2048x512xbf16, #tpu.memory_space<vmem>>)
    %c0_29 = arith.constant 0 : index
    %c0_30 = arith.constant 0 : index
    %99 = vector.load %arg15[%c0_29, %c0_30] : memref<2048x512xbf16, #tpu.memory_space<vmem>>, vector<2048x512xbf16>
    %cst_31 = arith.constant dense<0.000000e+00> : vector<32x512xf32>
    %100 = tpu.matmul %96, %99, %cst_31 {dimension_numbers = #tpu.dot_dimension_numbers<[1], [0], [0], [1], [0, 0, 1, 1], [], []>} : vector<32x2048xbf16>, vector<2048x512xbf16>, vector<32x512xf32> -> vector<32x512xf32>
    %c0_32 = arith.constant 0 : index
    %c0_33 = arith.constant 0 : index
    %101 = vector.load %arg11[%c0_32, %c0_33] : memref<32x1xf32, #tpu.memory_space<vmem>>, vector<32x1xf32>
    %102 = vector.broadcast %101 : vector<32x1xf32> to vector<32x512xf32>
    %103 = arith.addf %100, %102 : vector<32x512xf32>
    %cst_34 = arith.constant 0.000000e+00 : f32
    %104 = vector.broadcast %cst_34 : f32 to vector<32x512xf32>
    %105 = arith.maximumf %103, %104 : vector<32x512xf32>
    %106 = arith.truncf %105 : vector<32x512xf32> to vector<32x512xbf16>
    %c0_35 = arith.constant 0 : index
    %c0_36 = arith.constant 0 : index
    %107 = vector.load %arg12[%c0_35, %c0_36] : memref<4x32xbf16, #tpu.memory_space<vmem>>, vector<4x32xbf16>
    %cst_37 = arith.constant dense<0.000000e+00> : vector<4x512xf32>
    %108 = tpu.matmul %107, %106, %cst_37 {dimension_numbers = #tpu.dot_dimension_numbers<[1], [0], [0], [1], [0, 0, 1, 1], [], []>} : vector<4x32xbf16>, vector<32x512xbf16>, vector<4x512xf32> -> vector<4x512xf32>
    %109 = math.tanh %108 : vector<4x512xf32>
    %c0_38 = arith.constant 0 : index
    %c0_39 = arith.constant 0 : index
    %110 = vector.load %arg13[%c0_38, %c0_39] : memref<4x512xf32, #tpu.memory_space<vmem>>, vector<4x512xf32>
    tpu.vector_store %arg13[%c0_38, %c0_39], %109 {strides = array<i32>} : memref<4x512xf32, #tpu.memory_space<vmem>>, vector<4x512xf32>,
    return
  }
}

</mosaic_0001>

<bundles_post_ra>
// kernel: generator_forward.1
= control target key start
LH: loop header
LB: loop body
LE: loop exit
PB: predicated region body
PF: predicated region fallthrough
CT: control target
= control target key end

     0   :  { %18 = vsyncpa [#allocation6], 0  ;;  %s14611_s0 = inlined_call_operand.vmem [shape: bf16[2,38], index: 0, kind: input, shape index: {}]   ;;  %s14612_s1 = inlined_call_operand.hbm [shape: bf16[38,2048], index: 1, kind: input, shape index: {}]   ;;  %s14613_s2 = inlined_call_operand.hbm [shape: f32[1,2048], index: 2, kind: input, shape index: {}]   ;;  %s14614_s3 = inlined_call_operand.hbm [shape: bf16[512,4096], index: 3, kind: input, shape index: {}]   ;;  %s14615_s4 = inlined_call_operand.hbm [shape: bf16[32,128], index: 4, kind: input, shape index: {}]   ;;  %s14616_s5 = inlined_call_operand.hbm [shape: f32[1,256], index: 5, kind: input, shape index: {}]   ;;  %s14617_s6 = inlined_call_operand.hbm [shape: bf16[256,2048], index: 6, kind: input, shape index: {}]   ;;  %s14618_s7 = inlined_call_operand.hbm [shape: bf16[128,512], index: 7, kind: input, shape index: {}]   ;;  %s14619_s8 = inlined_call_operand.hbm [shape: f32[1,128], index: 8, kind: input, shape index: {}]   ;;  %s14620_s9 = inlined_call_operand.hbm [shape: bf16[512,128], index: 9, kind: input, shape index: {}]   ;;  %s14621_s10 = inlined_call_operand.hbm [shape: bf16[2048,512], index: 10, kind: input, shape index: {}]   ;;  %s14622_s11 = inlined_call_operand.vmem [shape: f32[32,1], index: 11, kind: input, shape index: {}]   ;;  %s14623_s12 = inlined_call_operand.hbm [shape: bf16[4,32], index: 12, kind: input, shape index: {}]   ;;  %s14624_s13 = inlined_call_operand.vmem [shape: f32[4,512], index: 13, kind: output, shape index: {}]  }
   0x1   :  { %19 = vsyncpa [#allocation8], 0 }
   0x2   :  { %20 = vsyncpa [#allocation11], 0 }
   0x3   :  { %21 = vsyncpa [#allocation14], 0 }
   0x4   :  { %22 = vsyncpa [#allocation17], 0  ;;  %s13808_s25 = smov [#allocation7]   ;;  %s13809_s27 = smov [#allocation10]  }
   0x5   :  { %s43_s26 = sshll.u32 %s13808_s25, 4  ;;  %s64_s28 = sshll.u32 %s13809_s27, 4  ;;  %s44_s26 = int_to_ptr.vmem [resolvable:$true] %s43_s26  ;;  %s65_s28 = int_to_ptr.vmem [resolvable:$true] %s64_s28 }
   0x6   :  { %s13596_s14 = scalar_lea.hbm %s14613_s2, 256 }
   0x7   :  { %p13597_p0 = scmp.ne.s32.totalorder %s14613_s2, %s13596_s14  ;;  %p13600_p1 = scmp.lt.u32.totalorder %s13596_s14, %s14613_s2 }
   0x9   :  { %p13602_p2 = pnand %p13600_p1, %p13597_p0 }
   0xb   :  { %13605 = shalt.err (!%p13602_p2)
}
   0xc   :  { %s13606_s19 = scalar_lea.vmem %s44_s26, 256  ;;  %p13611_p4 = scmp.lt.s32.totalorder %s44_s26, %s44_s26 }
   0xd   :  { %p13607_p3 = scmp.ne.s32.totalorder %s44_s26, %s13606_s19  ;;  %p13612_p5 = scmp.lt.s32.totalorder %s13606_s19, %s13606_s19 }
   0xf   :  { %p13613_p6 = por %p13612_p5, %p13611_p4 }
  0x11   :  { %p13614_p7 = pnand %p13613_p6, %p13607_p3 }
  0x13   :  { %13617 = shalt.err (!%p13614_p7)
}
  0x14   :  { %46 = dma.hbm_to_vmem [thread:$0]  %s14613_s2, 256, %s44_s26, [#allocation8]  }
  0x15   :  { %s13618_s24 = scalar_lea.hbm %s14615_s4, 256 }
  0x16   :  { %p13619_p8 = scmp.ne.s32.totalorder %s14615_s4, %s13618_s24  ;;  %p13622_p9 = scmp.lt.u32.totalorder %s13618_s24, %s14615_s4 }
  0x18   :  { %p13624_p10 = pnand %p13622_p9, %p13619_p8 }
  0x1a   :  { %13627 = shalt.err (!%p13624_p10)
}
  0x1b   :  { %s13628_s14 = scalar_lea.vmem %s65_s28, 256  ;;  %p13633_p12 = scmp.lt.s32.totalorder %s65_s28, %s65_s28 }
  0x1c   :  { %p13629_p11 = scmp.ne.s32.totalorder %s65_s28, %s13628_s14  ;;  %p13634_p13 = scmp.lt.s32.totalorder %s13628_s14, %s13628_s14 }
  0x1e   :  { %p13635_p0 = por %p13634_p13, %p13633_p12 }
  0x20   :  { %p13636_p1 = pnand %p13635_p0, %p13629_p11 }
  0x22   :  { %13639 = shalt.err (!%p13636_p1)
}
  0x23   :  { %s13810_s2 = smov 64   ;;  %s13811_s26 = smov 4  }
  0x24   :  { %70 = dma.hbm_to_vmem [thread:$0]  %s14615_s4, 256, %s65_s28, [#allocation11], %s13810_s2, %s13810_s2, %s13811_s26  }
  0x25   :  { %s13812_s17 = smov [#allocation13]   ;;  %s13640_s21 = scalar_lea.hbm %s14618_s7, 4096 }
  0x26   :  { %s86_s18 = sshll.u32 %s13812_s17, 4  ;;  %p13641_p2 = scmp.ne.s32.totalorder %s14618_s7, %s13640_s21  ;;  %s87_s18 = int_to_ptr.vmem [resolvable:$true] %s86_s18 }
  0x27   :  { %p13644_p3 = scmp.lt.u32.totalorder %s13640_s21, %s14618_s7 }
  0x29   :  { %p13646_p4 = pnand %p13644_p3, %p13641_p2 }
  0x2b   :  { %13649 = shalt.err (!%p13646_p4)
}
  0x2c   :  { %s13650_s27 = scalar_lea.vmem %s87_s18, 4096  ;;  %p13655_p6 = scmp.lt.s32.totalorder %s87_s18, %s87_s18 }
  0x2d   :  { %p13651_p5 = scmp.ne.s32.totalorder %s87_s18, %s13650_s27  ;;  %p13656_p7 = scmp.lt.s32.totalorder %s13650_s27, %s13650_s27 }
  0x2f   :  { %p13657_p8 = por %p13656_p7, %p13655_p6 }
  0x31   :  { %p13658_p9 = pnand %p13657_p8, %p13651_p5 }
  0x33   :  { %13661 = shalt.err (!%p13658_p9)
}
  0x34   :  { %s13813_s4 = smov 256   ;;  %s13814_s28 = smov 16  }
  0x35   :  { %92 = dma.hbm_to_vmem [thread:$0]  %s14618_s7, 4096, %s87_s18, [#allocation14], %s13813_s4, %s13813_s4, %s13814_s28  }
  0x36   :  { %s13815_s14 = smov [#allocation16]   ;;  %s13816_s16 = smov [#allocation5]  }
  0x37   :  { %s108_s15 = sshll.u32 %s13815_s14, 4  ;;  %s30_s17 = sshll.u32 %s13816_s16, 4  ;;  %s109_s15 = int_to_ptr.vmem [resolvable:$true] %s108_s15  ;;  %s31_s17 = int_to_ptr.vmem [resolvable:$true] %s30_s17 }
  0x38   :  { %s13662_s21 = scalar_lea.hbm %s14620_s9, 4096 }
  0x39   :  { %p13663_p10 = scmp.ne.s32.totalorder %s14620_s9, %s13662_s21  ;;  %p13666_p11 = scmp.lt.u32.totalorder %s13662_s21, %s14620_s9 }
  0x3b   :  { %p13668_p12 = pnand %p13666_p11, %p13663_p10 }
  0x3d   :  { %13671 = shalt.err (!%p13668_p12)
}
  0x3e   :  { %s13672_s7 = scalar_lea.vmem %s109_s15, 4096  ;;  %p13677_p0 = scmp.lt.s32.totalorder %s109_s15, %s109_s15 }
  0x3f   :  { %p13673_p13 = scmp.ne.s32.totalorder %s109_s15, %s13672_s7  ;;  %p13678_p1 = scmp.lt.s32.totalorder %s13672_s7, %s13672_s7 }
  0x41   :  { %p13679_p2 = por %p13678_p1, %p13677_p0 }
  0x43   :  { %p13680_p3 = pnand %p13679_p2, %p13673_p13 }
  0x45   :  { %13683 = shalt.err (!%p13680_p3)
}
  0x46   :  { %114 = dma.hbm_to_vmem [thread:$0]  %s14620_s9, 4096, %s109_s15, [#allocation17], %s13810_s2, %s13810_s2, %s13811_s26  }
  0x47   :  { %s13684_s14 = scalar_lea.hbm %s14612_s1, 5120 }
  0x48   :  { %p13685_p4 = scmp.ne.s32.totalorder %s14612_s1, %s13684_s14  ;;  %p13688_p5 = scmp.lt.u32.totalorder %s13684_s14, %s14612_s1 }
  0x4a   :  { %p13690_p6 = pnand %p13688_p5, %p13685_p4 }
  0x4c   :  { %13693 = shalt.err (!%p13690_p6)
}
  0x4d   :  { %s13694_s22 = scalar_lea.vmem %s31_s17, 5120  ;;  %p13699_p8 = scmp.lt.s32.totalorder %s31_s17, %s31_s17 }
  0x4e   :  { %p13695_p7 = scmp.ne.s32.totalorder %s31_s17, %s13694_s22  ;;  %p13700_p9 = scmp.lt.s32.totalorder %s13694_s22, %s13694_s22 }
  0x50   :  { %p13701_p10 = por %p13700_p9, %p13699_p8 }
  0x52   :  { %p13702_p11 = pnand %p13701_p10, %p13695_p7 }
  0x54   :  { %13705 = shalt.err (!%p13702_p11)
}
  0x55   :  { %s13817_s9 = smov 1024   ;;  %s13818_s24 = smov [#allocation9]  }
  0x56   :  { %36 = dma.hbm_to_vmem [thread:$0]  %s14612_s1, 5120, %s31_s17, [#allocation6], %s13817_s9, %s13817_s9, %s13810_s2  }
  0x57   :  { %s52_s25 = sshll.u32 %s13818_s24, 4  ;;  %s13706_s27 = scalar_lea.hbm %s14614_s3, 131072  ;;  %s53_s25 = int_to_ptr.vmem [resolvable:$true] %s52_s25 }
  0x58   :  { %p13707_p12 = scmp.ne.s32.totalorder %s14614_s3, %s13706_s27  ;;  %p13710_p13 = scmp.lt.u32.totalorder %s13706_s27, %s14614_s3 }
  0x5a   :  { %p13712_p0 = pnand %p13710_p13, %p13707_p12 }
  0x5c   :  { %13715 = shalt.err (!%p13712_p0)
}
  0x5d   :  { %s13716_s19 = scalar_lea.vmem %s53_s25, 131072  ;;  %p13721_p2 = scmp.lt.s32.totalorder %s53_s25, %s53_s25 }
  0x5e   :  { %p13717_p1 = scmp.ne.s32.totalorder %s53_s25, %s13716_s19  ;;  %p13722_p3 = scmp.lt.s32.totalorder %s13716_s19, %s13716_s19 }
  0x60   :  { %p13723_p4 = por %p13722_p3, %p13721_p2 }
  0x62   :  { %p13724_p5 = pnand %p13723_p4, %p13717_p1 }
  0x64   :  { %13727 = shalt.err (!%p13724_p5)
}
  0x65   :  { %s13819_s1 = smov 2048   ;;  %s13820_s17 = smov 128  }
  0x66   :  { %58 = dma.hbm_to_vmem [thread:$0]  %s14614_s3, 131072, %s53_s25, [#allocation8], %s13819_s1, %s13819_s1, %s13820_s17  }
  0x67   :  { %s13821_s22 = smov [#allocation12]   ;;  %s13822_s23 = smov [#allocation15]  }
  0x68   :  { %s77_s15 = sshll.u32 %s13821_s22, 4  ;;  %s99_s24 = sshll.u32 %s13822_s23, 4  ;;  %s78_s15 = int_to_ptr.vmem [resolvable:$true] %s77_s15  ;;  %s100_s24 = int_to_ptr.vmem [resolvable:$true] %s99_s24 }
  0x69   :  { %s13728_s27 = scalar_lea.hbm %s14616_s5, 32 }
  0x6a   :  { %p13729_p6 = scmp.ne.s32.totalorder %s14616_s5, %s13728_s27  ;;  %p13732_p7 = scmp.lt.u32.totalorder %s13728_s27, %s14616_s5 }
  0x6c   :  { %p13734_p8 = pnand %p13732_p7, %p13729_p6 }
  0x6e   :  { %13737 = shalt.err (!%p13734_p8)
}
  0x6f   :  { %s13738_s3 = scalar_lea.vmem %s78_s15, 32  ;;  %p13743_p10 = scmp.lt.s32.totalorder %s78_s15, %s78_s15 }
  0x70   :  { %p13739_p9 = scmp.ne.s32.totalorder %s78_s15, %s13738_s3  ;;  %p13744_p11 = scmp.lt.s32.totalorder %s13738_s3, %s13738_s3 }
  0x72   :  { %p13745_p12 = por %p13744_p11, %p13743_p10 }
  0x74   :  { %p13746_p13 = pnand %p13745_p12, %p13739_p9 }
  0x76   :  { %13749 = shalt.err (!%p13746_p13)
}
  0x77   :  { %80 = dma.hbm_to_vmem [thread:$0]  %s14616_s5, 32, %s78_s15, [#allocation11]  }
  0x78   :  { %s13750_s22 = scalar_lea.hbm %s14619_s8, 16 }
  0x79   :  { %p13751_p0 = scmp.ne.s32.totalorder %s14619_s8, %s13750_s22  ;;  %p13754_p1 = scmp.lt.u32.totalorder %s13750_s22, %s14619_s8 }
  0x7b   :  { %p13756_p2 = pnand %p13754_p1, %p13751_p0 }
  0x7d   :  { %13759 = shalt.err (!%p13756_p2)
}
  0x7e   :  { %s13760_s29 = scalar_lea.vmem %s100_s24, 16  ;;  %s13764_s30 = scalar_lea.vmem %s100_s24, 32 }
  0x7f   :  { %p13761_p3 = scmp.ne.s32.totalorder %s100_s24, %s13760_s29  ;;  %p13765_p4 = scmp.lt.s32.totalorder %s100_s24, %s100_s24 }
  0x80   :  { %p13766_p5 = scmp.lt.s32.totalorder %s13764_s30, %s13760_s29 }
  0x82   :  { %p13767_p6 = por %p13766_p5, %p13765_p4 }
  0x84   :  { %p13768_p7 = pnand %p13767_p6, %p13761_p3 }
  0x86   :  { %13771 = shalt.err (!%p13768_p7)
}
  0x87   :  { %102 = dma.hbm_to_vmem [thread:$0]  %s14619_s8, 16, %s100_s24, [#allocation14]  }
  0x88   :  { %s13823_s14 = smov [#allocation18]   ;;  %s13772_s19 = scalar_lea.hbm %s14623_s12, 32 }
  0x89   :  { %s123_s16 = sshll.u32 %s13823_s14, 4  ;;  %p13773_p8 = scmp.ne.s32.totalorder %s14623_s12, %s13772_s19  ;;  %s124_s16 = int_to_ptr.vmem [resolvable:$true] %s123_s16 }
  0x8a   :  { %p13776_p9 = scmp.lt.u32.totalorder %s13772_s19, %s14623_s12 }
  0x8c   :  { %p13778_p10 = pnand %p13776_p9, %p13773_p8 }
  0x8e   :  { %13781 = shalt.err (!%p13778_p10)
}
  0x8f   :  { %s13782_s7 = scalar_lea.vmem %s124_s16, 32  ;;  %p13787_p12 = scmp.lt.s32.totalorder %s124_s16, %s124_s16 }
  0x90   :  { %p13783_p11 = scmp.ne.s32.totalorder %s124_s16, %s13782_s7  ;;  %p13788_p13 = scmp.lt.s32.totalorder %s13782_s7, %s13782_s7 }
  0x92   :  { %p13789_p0 = por %p13788_p13, %p13787_p12 }
  0x94   :  { %p13790_p1 = pnand %p13789_p0, %p13783_p11 }
  0x96   :  { %13793 = shalt.err (!%p13790_p1)
}
  0x97   :  { %126 = dma.hbm_to_vmem [thread:$0]  %s14623_s12, 32, %s124_s16, [#allocation17]  }
  0x98   :  { %13794 = dma.done.wait [#allocation6], 5120  }
  0x99   :  { %13795 = vsyncadd [#allocation6], 4294962176 }
  0x9a   :  { %13796 = dma.done.wait [#allocation8], 131328  }
  0x9b   :  { %13797 = vsyncadd [#allocation8], 4294835968 }
  0x9c   :  { %13798 = dma.done.wait [#allocation11], 288  }
  0x9d   :  { %13799 = vsyncadd [#allocation11], 4294967008 }
  0x9e   :  { %13800 = dma.done.wait [#allocation14], 4112  }
  0x9f   :  { %13801 = vsyncadd [#allocation14], 4294963184 }
  0xa0   :  { %13802 = dma.done.wait [#allocation17], 4128  }
  0xa1   :  { %13803 = vsyncadd [#allocation17], 4294963168  ;;  %s159_s18 = sld [smem:[#allocation0]]   ;;  %171 = sst [smem:[#allocation20]] %s13819_s1  ;;  %v13824_v0 = vmov 0   ;;  %vm554_vm0 = vcmask 1042432  }
  0xa2   :  { %635 = vmatprep.mubr.bf16.mxu0 %v13824_v0  ;;  %758 = vmatprep.mubr.bf16.mxu1 %v13824_v0  ;;  %173 = sst [smem:[#allocation20 + $0x1]] %s13819_s1  ;;  %s13825_s12 = smov [#allocation2]   ;;  %vm550_vm1 = vcmask 310272   ;;  %vm983_vm2 = vcmask 1041408   ;;  %vm988_vm3 = vcmask 1043456   ;;  %vm993_vm4 = vcmask 1045504  }
  0xa3   :  { %s167_s27 = sshll.u32 %s13825_s12, 4  ;;  %175 = sst [smem:[#allocation20 + $0x2]] %s13814_s28  ;;  %s168_s27 = int_to_ptr.vmem [resolvable:$true] %s167_s27 }
  0xa4   :  { %177 = sst [smem:[#allocation20 + $0x3]] %s13810_s2  ;;  %s13826_s5 = smov 2  }
  0xa5   :  { %179 = sst [smem:[#allocation20 + $0x4]] %s13820_s17  ;;  %s13827_s1 = smov [#allocation4]  }
  0xa6   :  { %183 = sst [smem:[#allocation20 + $0x6]] %s13817_s9  ;;  %s13828_s15 = smov [#allocation19]  }
  0xa7   :  { %s11844_s29 = sshll.u32 %s159_s18, 26  ;;  %185 = sst [smem:[#allocation20 + $0x7]] %s13810_s2 }
  0xa8   :  { %s11845_s30 = sadd.s32 134217728, %s11844_s29  ;;  %187 = sst [smem:[#allocation20 + $0x8]] %s13811_s26 }
  0xa9   :  { %181 = sst [smem:[#allocation20 + $0x5]] %s13826_s5  ;;  %s13829_s28 = smov 512  }
  0xaa   :  { %189 = dma.general %s14617_s6, 32768, %s168_s27, %s13827_s1, %s13828_s15, [#allocation20], %s11845_s30, 0  }
  0xab   :  { %206 = sst [smem:[#allocation22]] %s13829_s28  ;;  %s13830_s3 = smov [#allocation3]  }
  0xac   :  { %208 = sst [smem:[#allocation22 + $0x1]] %s13829_s28  ;;  %s202_s25 = sshll.u32 %s13830_s3, 4  ;;  %s203_s25 = int_to_ptr.vmem [resolvable:$true] %s202_s25 }
  0xad   :  { %210 = sst [smem:[#allocation22 + $0x2]] %s13811_s26  ;;  %s13831_s6 = smov [#allocation4 + $0x1]  }
  0xae   :  { %212 = sst [smem:[#allocation22 + $0x3]] %s13810_s2  ;;  %s13832_s9 = smov [#allocation21]  }
  0xaf   :  { %214 = sst [smem:[#allocation22 + $0x4]] %s13820_s17 }
  0xb0   :  { %216 = sst [smem:[#allocation22 + $0x5]] %s13826_s5 }
  0xb1   :  { %218 = sst [smem:[#allocation22 + $0x6]] %s13813_s4 }
  0xb2   :  { %220 = sst [smem:[#allocation22 + $0x7]] %s13810_s2 }
  0xb3   :  { %222 = sst [smem:[#allocation22 + $0x8]] %s13811_s26 }
  0xb4   :  { %224 = dma.general %s14621_s10, 65536, %s203_s25, %s13831_s6, %s13832_s9, [#allocation22], %s11845_s30, 0  }
  0xb5   :  { %v226_v1 = vld [vmem:[#allocation5] sm:$0xff]  ;;  %v229_v3 = vld [vmem:[#allocation5 + $0x18] sm:$0xff]  ;;  %v227_v23 = vld [vmem:[#allocation5 + $0x8] sm:$0xff] }
  0xb6   :  { %v234_v2 = vld [vmem:[#allocation5 + $0x40] sm:$0xff]  ;;  %v237_v5 = vld [vmem:[#allocation5 + $0x58] sm:$0xff]  ;;  %v235_v24 = vld [vmem:[#allocation5 + $0x48] sm:$0xff] }
  0xb7   :  { %v11849_v4 = vcombine.high %v226_v1, %v234_v2  ;;  %v11848_v6 = vcombine.low %v226_v1, %v234_v2  ;;  %v242_v7 = vld [vmem:[#allocation5 + $0x80] sm:$0xff]  ;;  %v11855_v9 = vcombine.high %v229_v3, %v237_v5  ;;  %v11854_v10 = vcombine.low %v229_v3, %v237_v5  ;;  %v245_v12 = vld [vmem:[#allocation5 + $0x98] sm:$0xff]  ;;  %v231_v25 = vld [vmem:[#allocation5 + $0x28] sm:$0xff] }
  0xb8   :  { %v250_v8 = vld [vmem:[#allocation5 + $0xc0] sm:$0xff]  ;;  %v253_v13 = vld [vmem:[#allocation5 + $0xd8] sm:$0xff]  ;;  %v239_v26 = vld [vmem:[#allocation5 + $0x68] sm:$0xff]  ;;  %v11851_v28 = vcombine.high %v227_v23, %v235_v24  ;;  %v11850_v36 = vcombine.low %v227_v23, %v235_v24 }
  0xb9   :  { %v11865_v11 = vcombine.high %v242_v7, %v250_v8  ;;  %v258_v14 = vld [vmem:[#allocation5 + $0x100] sm:$0x77]  ;;  %603 = vmatprep.subr.bf16.mxu0 %v11849_v4  ;;  %v11871_v15 = vcombine.high %v245_v12, %v253_v13  ;;  %v261_v16 = vld [vmem:[#allocation5 + $0x118] sm:$0x77]  ;;  %726 = vmatprep.subr.bf16.mxu1 %v11855_v9  ;;  %v11864_v17 = vcombine.low %v242_v7, %v250_v8  ;;  %v243_v31 = vld [vmem:[#allocation5 + $0x88] sm:$0xff] }
  0xba   :  { %604 = vmatpush1.bf16.msra.mxu0 %v11848_v6  ;;  %727 = vmatpush1.bf16.msra.mxu1 %v11854_v10  ;;  %v11870_v18 = vcombine.low %v245_v12, %v253_v13  ;;  %v11881_v19 = vcombine.high %v258_v14, %v258_v14  ;;  %v11880_v20 = vcombine.low %v258_v14, %v258_v14  ;;  %v251_v32 = vld [vmem:[#allocation5 + $0xc8] sm:$0xff]  ;;  %v14055_v35 = vld [vmem:[%s14611_s0] sm:$0x1]  ;;  %v228_v48 = vld [vmem:[#allocation5 + $0x10] sm:$0xff] }
  0xbb   :  { %605 = vmatprep.subr.bf16.mxu0 %v11865_v11  ;;  %728 = vmatprep.subr.bf16.mxu1 %v11871_v15  ;;  %v11887_v21 = vcombine.high %v261_v16, %v261_v16  ;;  %v11886_v22 = vcombine.low %v261_v16, %v261_v16  ;;  %v11859_v30 = vcombine.high %v231_v25, %v239_v26  ;;  %v247_v33 = vld [vmem:[#allocation5 + $0xa8] sm:$0xff]  ;;  %v236_v49 = vld [vmem:[#allocation5 + $0x50] sm:$0xff]  ;;  %v233_v50 = vld [vmem:[#allocation5 + $0x38] sm:$0xff] }
  0xbc   :  { %v556_v27 = vsel %vm554_vm0, %v11880_v20, 0  ;;  %v255_v34 = vld [vmem:[#allocation5 + $0xe8] sm:$0xff]  ;;  %v11858_v37 = vcombine.low %v231_v25, %v239_v26  ;;  %v11867_v38 = vcombine.high %v243_v31, %v251_v32  ;;  %v11866_v42 = vcombine.low %v243_v31, %v251_v32  ;;  %v241_v51 = vld [vmem:[#allocation5 + $0x78] sm:$0xff]  ;;  %v244_v56 = vld [vmem:[#allocation5 + $0x90] sm:$0xff] }
  0xbd   :  { %v574_v29 = vsel %vm554_vm0, %v11886_v22, 0  ;;  %v11875_v39 = vcombine.high %v247_v33, %v255_v34  ;;  %v259_v40 = vld [vmem:[#allocation5 + $0x108] sm:$0x77]  ;;  %v11874_v43 = vcombine.low %v247_v33, %v255_v34  ;;  %v11853_v53 = vcombine.high %v228_v48, %v236_v49  ;;  %v252_v57 = vld [vmem:[#allocation5 + $0xd0] sm:$0xff]  ;;  %v249_v58 = vld [vmem:[#allocation5 + $0xb8] sm:$0xff] }
  0xbe   :  { %606 = vmatpush1.bf16.msra.mxu0 %v11864_v17  ;;  %729 = vmatpush1.bf16.msra.mxu1 %v11870_v18  ;;  %v263_v41 = vld [vmem:[#allocation5 + $0x128] sm:$0x77]  ;;  %v11883_v44 = vcombine.high %v259_v40, %v259_v40  ;;  %v11882_v45 = vcombine.low %v259_v40, %v259_v40  ;;  %v11863_v55 = vcombine.high %v233_v50, %v241_v51  ;;  %v257_v59 = vld [vmem:[#allocation5 + $0xf8] sm:$0xff]  ;;  %v260_v1 = vld [vmem:[#allocation5 + $0x110] sm:$0x77] }
  0xbf   :  { %11896 = vmatprep.subr.msk.bf16.mxu0 %vm554_vm0, %v11881_v19  ;;  %11902 = vmatprep.subr.msk.bf16.mxu1 %vm554_vm0, %v11887_v21  ;;  %v11891_v46 = vcombine.high %v263_v41, %v263_v41  ;;  %v11890_v47 = vcombine.low %v263_v41, %v263_v41  ;;  %v11852_v60 = vcombine.low %v228_v48, %v236_v49  ;;  %v265_v2 = vld [vmem:[#allocation5 + $0x138] sm:$0x77]  ;;  %v230_v9 = vld [vmem:[#allocation5 + $0x20] sm:$0xff]  ;;  %v248_v34 = vld [vmem:[#allocation5 + $0xb0] sm:$0xff] }
  0xc0   :  { %v562_v52 = vsel %vm554_vm0, %v11882_v45, 0  ;;  %v11862_v61 = vcombine.low %v233_v50, %v241_v51  ;;  %v11869_v62 = vcombine.high %v244_v56, %v252_v57  ;;  %v11879_v63 = vcombine.high %v249_v58, %v257_v59  ;;  %v238_v10 = vld [vmem:[#allocation5 + $0x60] sm:$0xff]  ;;  %v1003_v11 = vld [vmem:[#allocation9 + $0x8] sm:$0xff]  ;;  %v1050_v48 = vld [vmem:[#allocation9 + $0x180] sm:$0xff] }
  0xc1   :  { %v586_v54 = vsel %vm554_vm0, %v11890_v47, 0  ;;  %v11868_v3 = vcombine.low %v244_v56, %v252_v57  ;;  %v11878_v4 = vcombine.low %v249_v58, %v257_v59  ;;  %v11885_v5 = vcombine.high %v260_v1, %v260_v1  ;;  %v1019_v12 = vld [vmem:[#allocation9 + $0x88] sm:$0xff]  ;;  %v246_v16 = vld [vmem:[#allocation5 + $0xa0] sm:$0xff]  ;;  %v1034_v47 = vld [vmem:[#allocation9 + $0x100] sm:$0xff] }
  0xc2   :  { %608 = vmatpush1.bf16.msra.mxu0 %v556_v27  ;;  %731 = vmatpush1.bf16.msra.mxu1 %v574_v29  ;;  %v11884_v6 = vcombine.low %v260_v1, %v260_v1  ;;  %v11895_v7 = vcombine.high %v265_v2, %v265_v2  ;;  %v11894_v8 = vcombine.low %v265_v2, %v265_v2  ;;  %v254_v17 = vld [vmem:[#allocation5 + $0xe0] sm:$0xff]  ;;  %v1035_v20 = vld [vmem:[#allocation9 + $0x108] sm:$0xff]  ;;  %v232_v29 = vld [vmem:[#allocation5 + $0x30] sm:$0xff] }
  0xc3   :  { %644 = vmatprep.subr.bf16.mxu0 %v11851_v28  ;;  %808 = vmatprep.subr.bf16.mxu1 %v11859_v30  ;;  %v11857_v14 = vcombine.high %v230_v9, %v238_v10  ;;  %v11915_v18 = vcombine.high %v1003_v11, %v1019_v12  ;;  %v11856_v19 = vcombine.low %v230_v9, %v238_v10  ;;  %v1051_v21 = vld [vmem:[#allocation9 + $0x188] sm:$0xff]  ;;  %v262_v23 = vld [vmem:[#allocation5 + $0x120] sm:$0x77]  ;;  %v240_v30 = vld [vmem:[#allocation5 + $0x70] sm:$0xff] }
  0xc4   :  { %v568_v13 = vsel %vm554_vm0, %v11884_v6, 0  ;;  %v598_v15 = vsel %vm554_vm0, %v11894_v8, 0  ;;  %v11873_v22 = vcombine.high %v246_v16, %v254_v17  ;;  %v11914_v24 = vcombine.low %v1003_v11, %v1019_v12  ;;  %v1083_v56 = vld [vmem:[#allocation9 + $0x288] sm:$0xff]  ;;  %v1162_v12 = vld [vmem:[#allocation9 + $0x500] sm:$0xff] }
  0xc5   :  { %11897 = vmatmul.mubr.msk.bf16.vlgmr.msra.gmra.mrb[0].mxu0 %vm550_vm1, %v14055_v35  ;;  %11903 = vmatmul.mubr.msk.bf16.vlgmr.msra.gmra.mrb[0].mxu1 %vm550_vm1, %v14055_v35  ;;  %v11947_v25 = vcombine.high %v1035_v20, %v1051_v21  ;;  %v11872_v26 = vcombine.low %v246_v16, %v254_v17  ;;  %v11889_v27 = vcombine.high %v262_v23, %v262_v23  ;;  %v1115_v1 = vld [vmem:[#allocation9 + $0x388] sm:$0xff] }
  0xc6   :  { %645 = vmatpush1.bf16.msra.mxu0 %v11850_v36  ;;  %809 = vmatpush1.bf16.msra.mxu1 %v11858_v37  ;;  %v11888_v28 = vcombine.low %v262_v23, %v262_v23  ;;  %v11946_v31 = vcombine.low %v1035_v20, %v1051_v21  ;;  %v11861_v33 = vcombine.high %v232_v29, %v240_v30  ;;  %v256_v36 = vld [vmem:[#allocation5 + $0xf0] sm:$0xff]  ;;  %v1131_v6 = vld [vmem:[#allocation9 + $0x408] sm:$0xff] }
  0xc7   :  { %646 = vmatprep.subr.bf16.mxu0 %v11867_v38  ;;  %810 = vmatprep.subr.bf16.mxu1 %v11875_v39  ;;  %v11860_v37 = vcombine.low %v232_v29, %v240_v30  ;;  %v11877_v38 = vcombine.high %v248_v34, %v256_v36  ;;  %v264_v39 = vld [vmem:[#allocation5 + $0x130] sm:$0x77]  ;;  %v11876_v40 = vcombine.low %v248_v34, %v256_v36  ;;  %v1147_v8 = vld [vmem:[#allocation9 + $0x488] sm:$0xff] }
  0xc8   :  { %676 = vmatprep.mubr.bf16.mxu0 %v13824_v0  ;;  %840 = vmatprep.mubr.bf16.mxu1 %v13824_v0  ;;  %v580_v32 = vsel %vm554_vm0, %v11888_v28, 0  ;;  %v11893_v41 = vcombine.high %v264_v39, %v264_v39  ;;  %v11945_v50 = vcombine.high %v1034_v47, %v1050_v48  ;;  %v11944_v51 = vcombine.low %v1034_v47, %v1050_v48  ;;  %v1179_v16 = vld [vmem:[#allocation9 + $0x588] sm:$0xff]  ;;  %v1194_v20 = vld [vmem:[#allocation9 + $0x600] sm:$0xff] }
  0xc9   :  { %v12043_v10 = vcombine.high %v1131_v6, %v1147_v8  ;;  %v12042_v11 = vcombine.low %v1131_v6, %v1147_v8  ;;  %v1210_v21 = vld [vmem:[#allocation9 + $0x680] sm:$0xff]  ;;  %v1227_v30 = vld [vmem:[#allocation9 + $0x708] sm:$0xff] }
  0xca   :  { %647 = vmatpush1.bf16.msra.mxu0 %v11866_v42  ;;  %811 = vmatpush1.bf16.msra.mxu1 %v11874_v43  ;;  %v11892_v42 = vcombine.low %v264_v39, %v264_v39  ;;  %v1002_v43 = vld [vmem:[#allocation9] sm:$0xff]  ;;  %v12105_v23 = vcombine.high %v1194_v20, %v1210_v21  ;;  %v1259_v39 = vld [vmem:[#allocation9 + $0x808] sm:$0xff] }
  0xcb   :  { %11898 = vmatprep.subr.msk.bf16.mxu0 %vm554_vm0, %v11883_v44  ;;  %11906 = vmatprep.subr.msk.bf16.mxu1 %vm554_vm0, %v11891_v46  ;;  %v1018_v44 = vld [vmem:[#allocation9 + $0x80] sm:$0xff]  ;;  %v1291_v47 = vld [vmem:[#allocation9 + $0x908] sm:$0xff] }
  0xcc   :  { %v592_v45 = vsel %vm554_vm0, %v11892_v42, 0  ;;  %v11913_v46 = vcombine.high %v1002_v43, %v1018_v44  ;;  %v11912_v49 = vcombine.low %v1002_v43, %v1018_v44  ;;  %v1226_v28 = vld [vmem:[#allocation9 + $0x700] sm:$0xff] }
  0xcd   :  { %v1242_v29 = vld [vmem:[#allocation9 + $0x780] sm:$0xff] }
  0xce   :  { %649 = vmatpush1.bf16.msra.mxu0 %v562_v52  ;;  %813 = vmatpush1.bf16.msra.mxu1 %v586_v54  ;;  %v1066_v52 = vld [vmem:[#allocation9 + $0x200] sm:$0xff]  ;;  %v1067_v54 = vld [vmem:[#allocation9 + $0x208] sm:$0xff] }
  0xcf   :  { %685 = vmatprep.subr.bf16.mxu0 %v11853_v53  ;;  %890 = vmatprep.subr.bf16.mxu1 %v11863_v55  ;;  %v1082_v53 = vld [vmem:[#allocation9 + $0x280] sm:$0xff]  ;;  %v11978_v58 = vcombine.low %v1067_v54, %v1083_v56  ;;  %v11979_v59 = vcombine.high %v1067_v54, %v1083_v56 }
  0xd0   :  { %v11977_v55 = vcombine.high %v1066_v52, %v1082_v53  ;;  %v11976_v57 = vcombine.low %v1066_v52, %v1082_v53  ;;  %v1322_v53 = vld [vmem:[#allocation9 + $0xa00] sm:$0xff] }
  0xd1   :  { %11899 = vmatmul.mubr.msk.bf16.vlgmr.msra.gmra.mrb[4].mxu0 %vm550_vm1, %v14055_v35  ;;  %11907 = vmatmul.mubr.msk.bf16.vlgmr.msra.gmra.mrb[4].mxu1 %vm550_vm1, %v14055_v35  ;;  %v1338_v54 = vld [vmem:[#allocation9 + $0xa80] sm:$0xff] }
  0xd2   :  { %686 = vmatpush1.bf16.msra.mxu0 %v11852_v60  ;;  %891 = vmatpush1.bf16.msra.mxu1 %v11862_v61  ;;  %v1098_v60 = vld [vmem:[#allocation9 + $0x300] sm:$0xff]  ;;  %v12232_v56 = vcombine.low %v1322_v53, %v1338_v54 }
  0xd3   :  { %687 = vmatprep.subr.bf16.mxu0 %v11869_v62  ;;  %892 = vmatprep.subr.bf16.mxu1 %v11879_v63  ;;  %v1114_v61 = vld [vmem:[#allocation9 + $0x380] sm:$0xff]  ;;  %v1099_v62 = vld [vmem:[#allocation9 + $0x308] sm:$0xff] }
  0xd4   :  { %717 = vmatprep.mubr.bf16.mxu0 %v13824_v0  ;;  %922 = vmatprep.mubr.bf16.mxu1 %v13824_v0  ;;  %v12008_v63 = vcombine.low %v1098_v60, %v1114_v61  ;;  %v12010_v2 = vcombine.low %v1099_v62, %v1115_v1  ;;  %v1402_v6 = vld [vmem:[#allocation9 + $0xc80] sm:$0xff] }
  0xd6   :  { %688 = vmatpush1.bf16.msra.mxu0 %v11868_v3  ;;  %893 = vmatpush1.bf16.msra.mxu1 %v11878_v4  ;;  %v12011_v3 = vcombine.high %v1099_v62, %v1115_v1  ;;  %v1130_v4 = vld [vmem:[#allocation9 + $0x400] sm:$0xff]  ;;  %v1371_v1 = vld [vmem:[#allocation9 + $0xb88] sm:$0xff] }
  0xd7   :  { %11900 = vmatprep.subr.msk.bf16.mxu0 %vm554_vm0, %v11885_v5  ;;  %11910 = vmatprep.subr.msk.bf16.mxu1 %vm554_vm0, %v11895_v7  ;;  %v1146_v5 = vld [vmem:[#allocation9 + $0x480] sm:$0xff] }
  0xd8   :  { %v12041_v7 = vcombine.high %v1130_v4, %v1146_v5  ;;  %v12040_v9 = vcombine.low %v1130_v4, %v1146_v5  ;;  %v1370_v62 = vld [vmem:[#allocation9 + $0xb80] sm:$0xff] }
  0xd9   :  { %v1386_v5 = vld [vmem:[#allocation9 + $0xc00] sm:$0xff] }
  0xda   :  { %690 = vmatpush1.bf16.msra.mxu0 %v568_v13  ;;  %895 = vmatpush1.bf16.msra.mxu1 %v598_v15  ;;  %v1178_v13 = vld [vmem:[#allocation9 + $0x580] sm:$0xff]  ;;  %v12297_v8 = vcombine.high %v1386_v5, %v1402_v6 }
  0xdb   :  { %767 = vmatprep.subr.bf16.mxu0 %v11857_v14  ;;  %7228 = vmatprep.subr.bf16.mxu1 %v11915_v18  ;;  %v1163_v14 = vld [vmem:[#allocation9 + $0x508] sm:$0xff]  ;;  %v12073_v15 = vcombine.high %v1162_v12, %v1178_v13  ;;  %v12072_v17 = vcombine.low %v1162_v12, %v1178_v13  ;;  %v1418_v13 = vld [vmem:[#allocation9 + $0xd00] sm:$0xff] }
  0xdc   :  { %v12074_v18 = vcombine.low %v1163_v14, %v1179_v16 }
  0xdd   :  { %11901 = vmatmul.mubr.msk.bf16.vlgmr.msra.gmra.mrb[8].mxu0 %vm550_vm1, %v14055_v35  ;;  %11911 = vmatmul.mubr.msk.bf16.vlgmr.msra.gmra.mrb[8].mxu1 %vm550_vm1, %v14055_v35 }
  0xde   :  { %768 = vmatpush1.bf16.msra.mxu0 %v11856_v19  ;;  %799 = vmatprep.mubr.bf16.mxu0 %v13824_v0  ;;  %v12075_v19 = vcombine.high %v1163_v14, %v1179_v16  ;;  %v1434_v14 = vld [vmem:[#allocation9 + $0xd80] sm:$0xff] }
  0xdf   :  { %769 = vmatprep.subr.bf16.mxu0 %v11873_v22  ;;  %7229 = vmatpush1.bf16.msra.mxu1 %v11914_v24  ;;  %v1195_v22 = vld [vmem:[#allocation9 + $0x608] sm:$0xff]  ;;  %v12328_v16 = vcombine.low %v1418_v13, %v1434_v14 }
  0xe0   :  { %7230 = vmatprep.subr.bf16.mxu1 %v11947_v25  ;;  %v1211_v24 = vld [vmem:[#allocation9 + $0x688] sm:$0xff]  ;;  %v12104_v25 = vcombine.low %v1194_v20, %v1210_v21  ;;  %v1450_v21 = vld [vmem:[#allocation9 + $0xe00] sm:$0xff] }
  0xe2   :  { %770 = vmatpush1.bf16.msra.mxu0 %v11872_v26  ;;  %v12106_v26 = vcombine.low %v1195_v22, %v1211_v24 }
  0xe3   :  { %11904 = vmatprep.subr.msk.bf16.mxu0 %vm554_vm0, %v11889_v27  ;;  %7231 = vmatpush1.bf16.msra.mxu1 %v11946_v31  ;;  %v12107_v27 = vcombine.high %v1195_v22, %v1211_v24  ;;  %v12136_v31 = vcombine.low %v1226_v28, %v1242_v29  ;;  %v1466_v22 = vld [vmem:[#allocation9 + $0xe80] sm:$0xff] }
  0xe4   :  { %7232 = vmatprep.subr.bf16.mxu1 %v11979_v59  ;;  %v12361_v24 = vcombine.high %v1450_v21, %v1466_v22 }
  0xe6   :  { %772 = vmatpush1.bf16.msra.mxu0 %v580_v32  ;;  %v12137_v32 = vcombine.high %v1226_v28, %v1242_v29  ;;  %v1482_v29 = vld [vmem:[#allocation9 + $0xf00] sm:$0xff] }
  0xe7   :  { %849 = vmatprep.subr.bf16.mxu0 %v11861_v33  ;;  %7233 = vmatpush1.bf16.msra.mxu1 %v11978_v58  ;;  %v1243_v33 = vld [vmem:[#allocation9 + $0x788] sm:$0xff] }
  0xe8   :  { %7234 = vmatprep.subr.bf16.mxu1 %v12011_v3  ;;  %v12138_v34 = vcombine.low %v1227_v30, %v1243_v33  ;;  %v12139_v36 = vcombine.high %v1227_v30, %v1243_v33  ;;  %v1339_v58 = vld [vmem:[#allocation9 + $0xa88] sm:$0xff]  ;;  %v1498_v30 = vld [vmem:[#allocation9 + $0xf80] sm:$0xff] }
  0xe9   :  { %11905 = vmatmul.mubr.msk.bf16.vlgmr.msra.gmra.mrb[12].mxu0 %vm550_vm1, %v14055_v35  ;;  %v1499_v33 = vld [vmem:[#allocation9 + $0xf88] sm:$0xff] }
  0xea   :  { %850 = vmatpush1.bf16.msra.mxu0 %v11860_v37  ;;  %881 = vmatprep.mubr.bf16.mxu0 %v13824_v0  ;;  %v1258_v37 = vld [vmem:[#allocation9 + $0x800] sm:$0xff] }
  0xeb   :  { %851 = vmatprep.subr.bf16.mxu0 %v11877_v38  ;;  %7235 = vmatpush1.bf16.msra.mxu1 %v12010_v2  ;;  %v1274_v38 = vld [vmem:[#allocation9 + $0x880] sm:$0xff] }
  0xec   :  { %7236 = vmatprep.subr.bf16.mxu1 %v12043_v10  ;;  %v12168_v42 = vcombine.low %v1258_v37, %v1274_v38  ;;  %v12296_v10 = vcombine.low %v1386_v5, %v1402_v6 }
  0xee   :  { %852 = vmatpush1.bf16.msra.mxu0 %v11876_v40  ;;  %v12169_v40 = vcombine.high %v1258_v37, %v1274_v38  ;;  %v14091_v38 = vld [vmem:[#allocation9 + $0x1000] sm:$0xff] }
  0xef   :  { %11908 = vmatprep.subr.msk.bf16.mxu0 %vm554_vm0, %v11893_v41  ;;  %7237 = vmatpush1.bf16.msra.mxu1 %v12042_v11  ;;  %v1275_v41 = vld [vmem:[#allocation9 + $0x888] sm:$0xff] }
  0xf0   :  { %7238 = vmatprep.subr.bf16.mxu1 %v12075_v19  ;;  %v12170_v43 = vcombine.low %v1259_v39, %v1275_v41  ;;  %v12171_v44 = vcombine.high %v1259_v39, %v1275_v41  ;;  %v14093_v39 = vld [vmem:[#allocation9 + $0x1080] sm:$0xff] }
  0xf1   :  { %v12425_v41 = vcombine.high %v14091_v38, %v14093_v39 }
  0xf2   :  { %854 = vmatpush1.bf16.msra.mxu0 %v592_v45  ;;  %v1290_v45 = vld [vmem:[#allocation9 + $0x900] sm:$0xff] }
  0xf3   :  { %7146 = vmatprep.subr.bf16.mxu0 %v11913_v46  ;;  %7239 = vmatpush1.bf16.msra.mxu1 %v12074_v18  ;;  %v1306_v46 = vld [vmem:[#allocation9 + $0x980] sm:$0xff]  ;;  %v1435_v18 = vld [vmem:[#allocation9 + $0xd88] sm:$0xff] }
  0xf4   :  { %7240 = vmatprep.subr.bf16.mxu1 %v12107_v27  ;;  %v12201_v48 = vcombine.high %v1290_v45, %v1306_v46 }
  0xf5   :  { %11909 = vmatmul.mubr.msk.bf16.vlgmr.msra.gmra.mrb[16].mxu0 %vm550_vm1, %v14055_v35  ;;  %v12009_v35 = vcombine.high %v1098_v60, %v1114_v61  ;;  %v1354_v61 = vld [vmem:[#allocation9 + $0xb00] sm:$0xff] }
  0xf6   :  { %7147 = vmatpush1.bf16.msra.mxu0 %v11912_v49  ;;  %v1307_v49 = vld [vmem:[#allocation9 + $0x988] sm:$0xff]  ;;  %v12264_v2 = vcombine.low %v1354_v61, %v1370_v62 }
  0xf7   :  { %7148 = vmatprep.subr.bf16.mxu0 %v11945_v50  ;;  %7241 = vmatpush1.bf16.msra.mxu1 %v12106_v26  ;;  %v12200_v50 = vcombine.low %v1290_v45, %v1306_v46  ;;  %v12203_v52 = vcombine.high %v1291_v47, %v1307_v49  ;;  %v12360_v26 = vcombine.low %v1450_v21, %v1466_v22  ;;  %v270_v46 = vlaneseq }
  0xf8   :  { %7242 = vmatprep.subr.bf16.mxu1 %v12139_v36 }
  0xfa   :  { %7149 = vmatpush1.bf16.msra.mxu0 %v11944_v51  ;;  %v12202_v51 = vcombine.low %v1291_v47, %v1307_v49  ;;  %v14107_v47 = vshrl.u32 %v270_v46, 7 }
  0xfb   :  { %7150 = vmatprep.subr.bf16.mxu0 %v11977_v55  ;;  %7243 = vmatpush1.bf16.msra.mxu1 %v12138_v34  ;;  %v1323_v55 = vld [vmem:[#allocation9 + $0xa08] sm:$0xff]  ;;  %v12392_v34 = vcombine.low %v1482_v29, %v1498_v30 }
  0xfc   :  { %7244 = vmatprep.subr.bf16.mxu1 %v12171_v44  ;;  %v12234_v59 = vcombine.low %v1323_v55, %v1339_v58  ;;  %v12235_v60 = vcombine.high %v1323_v55, %v1339_v58  ;;  %v300_v49 = vsub.s32 7, %v14107_v47  ;;  %v14124_v22 = vsub.s32 0, %v14107_v47 }
  0xfe   :  { %7151 = vmatpush1.bf16.msra.mxu0 %v11976_v57  ;;  %v12233_v57 = vcombine.high %v1322_v53, %v1338_v54 }
  0xff   :  { %7152 = vmatprep.subr.bf16.mxu0 %v12009_v35  ;;  %7245 = vmatpush1.bf16.msra.mxu1 %v12170_v43  ;;  %v12265_v35 = vcombine.high %v1354_v61, %v1370_v62  ;;  %v12424_v43 = vcombine.low %v14091_v38, %v14093_v39  ;;  %v280_v62 = vsub.s32 2, %v14107_v47 }
 0x100   :  { %7246 = vmatprep.subr.bf16.mxu1 %v12203_v52 }
 0x102   :  { %7153 = vmatpush1.bf16.msra.mxu0 %v12008_v63  ;;  %v1355_v63 = vld [vmem:[#allocation9 + $0xb08] sm:$0xff] }
 0x103   :  { %7154 = vmatprep.subr.bf16.mxu0 %v12041_v7  ;;  %7247 = vmatpush1.bf16.msra.mxu1 %v12202_v51  ;;  %v12266_v3 = vcombine.low %v1355_v63, %v1371_v1  ;;  %v12267_v4 = vcombine.high %v1355_v63, %v1371_v1  ;;  %v1387_v7 = vld [vmem:[#allocation9 + $0xc08] sm:$0xff]  ;;  %v14117_v1 = vld [vmem:[#allocation7 + $0x8] sm:$0xff] }
 0x104   :  { %7248 = vmatprep.subr.bf16.mxu1 %v12235_v60  ;;  %v313_v5 = vrot.slane %v14117_v1, %v280_v62 }
 0x106   :  { %7155 = vmatpush1.bf16.msra.mxu0 %v12040_v9  ;;  %v1403_v9 = vld [vmem:[#allocation9 + $0xc88] sm:$0xff] }
 0x107   :  { %7156 = vmatprep.subr.bf16.mxu0 %v12073_v15  ;;  %7249 = vmatpush1.bf16.msra.mxu1 %v12234_v59  ;;  %v12298_v11 = vcombine.low %v1387_v7, %v1403_v9  ;;  %v12299_v12 = vcombine.high %v1387_v7, %v1403_v9  ;;  %v1419_v15 = vld [vmem:[#allocation9 + $0xd08] sm:$0xff] }
 0x108   :  { %7250 = vmatprep.subr.bf16.mxu1 %v12267_v4  ;;  %v12330_v19 = vcombine.low %v1419_v15, %v1435_v18  ;;  %v12331_v20 = vcombine.high %v1419_v15, %v1435_v18 }
 0x10a   :  { %7157 = vmatpush1.bf16.msra.mxu0 %v12072_v17  ;;  %v12329_v17 = vcombine.high %v1418_v13, %v1434_v14 }
 0x10b   :  { %7158 = vmatprep.subr.bf16.mxu0 %v12105_v23  ;;  %7251 = vmatpush1.bf16.msra.mxu1 %v12266_v3  ;;  %v1451_v23 = vld [vmem:[#allocation9 + $0xe08] sm:$0xff] }
 0x10c   :  { %7252 = vmatprep.subr.bf16.mxu1 %v12299_v12 }
 0x10e   :  { %7159 = vmatpush1.bf16.msra.mxu0 %v12104_v25  ;;  %v1467_v25 = vld [vmem:[#allocation9 + $0xe88] sm:$0xff] }
 0x10f   :  { %7160 = vmatprep.subr.bf16.mxu0 %v12137_v32  ;;  %7253 = vmatpush1.bf16.msra.mxu1 %v12298_v11  ;;  %v12362_v27 = vcombine.low %v1451_v23, %v1467_v25  ;;  %v12363_v28 = vcombine.high %v1451_v23, %v1467_v25  ;;  %v12393_v32 = vcombine.high %v1482_v29, %v1498_v30  ;;  %v14129_v29 = vsub.s32 1, %v14107_v47 }
 0x110   :  { %7254 = vmatprep.subr.bf16.mxu1 %v12331_v20 }
 0x112   :  { %7161 = vmatpush1.bf16.msra.mxu0 %v12136_v31  ;;  %v1483_v31 = vld [vmem:[#allocation9 + $0xf08] sm:$0xff] }
 0x113   :  { %7162 = vmatprep.subr.bf16.mxu0 %v12169_v40  ;;  %7255 = vmatpush1.bf16.msra.mxu1 %v12330_v19  ;;  %v12394_v36 = vcombine.low %v1483_v31, %v1499_v33  ;;  %v12395_v37 = vcombine.high %v1483_v31, %v1499_v33  ;;  %v14095_v40 = vld [vmem:[#allocation9 + $0x1008] sm:$0xff] }
 0x114   :  { %7256 = vmatprep.subr.bf16.mxu1 %v12363_v28  ;;  %v288_v28 = vsub.s32 4, %v14107_v47 }
 0x116   :  { %7163 = vmatpush1.bf16.msra.mxu0 %v12168_v42  ;;  %v14099_v42 = vld [vmem:[#allocation9 + $0x1088] sm:$0xff] }
 0x117   :  { %7164 = vmatprep.subr.bf16.mxu0 %v12201_v48  ;;  %7257 = vmatpush1.bf16.msra.mxu1 %v12362_v27  ;;  %v12426_v44 = vcombine.low %v14095_v40, %v14099_v42  ;;  %v12427_v45 = vcombine.high %v14095_v40, %v14099_v42  ;;  %v296_v48 = vsub.s32 6, %v14107_v47 }
 0x118   :  { %7258 = vmatprep.subr.bf16.mxu1 %v12395_v37 }
 0x119   :  { %v329_v46 = vrot.slane %v14117_v1, %v296_v48 }
 0x11a   :  { %7165 = vmatpush1.bf16.msra.mxu0 %v12200_v50  ;;  %v14111_v50 = vld [vmem:[#allocation7] sm:$0xff] }
 0x11b   :  { %7166 = vmatprep.subr.bf16.mxu0 %v12233_v57  ;;  %7259 = vmatpush1.bf16.msra.mxu1 %v12394_v36  ;;  %v297_v53 = vrot.slane %v14111_v50, %v296_v48  ;;  %v281_v3 = vrot.slane %v14111_v50, %v280_v62  ;;  %v273_v36 = vrot.slane %v14111_v50, %v14124_v22 }
 0x11c   :  { %7269 = vmatprep.subr.bf16.mxu1 %v12427_v45  ;;  %v277_v45 = vrot.slane %v14111_v50, %v14129_v29 }
 0x11e   :  { %7167 = vmatpush1.bf16.msra.mxu0 %v12232_v56  ;;  %v301_v56 = vrot.slane %v14111_v50, %v300_v49 }
 0x11f   :  { %7168 = vmatprep.subr.bf16.mxu0 %v12265_v35  ;;  %v284_v35 = vsub.s32 3, %v14107_v47 }
 0x121   :  { %v285_v6 = vrot.slane %v14111_v50, %v284_v35  ;;  %v317_v7 = vrot.slane %v14117_v1, %v284_v35 }
 0x122   :  { %7169 = vmatpush1.bf16.msra.mxu0 %v12264_v2 }
 0x123   :  { %7170 = vmatprep.subr.bf16.mxu0 %v12297_v8 }
 0x126   :  { %7171 = vmatpush1.bf16.msra.mxu0 %v12296_v10 }
 0x127   :  { %7172 = vmatprep.subr.bf16.mxu0 %v12329_v17 }
 0x12a   :  { %7173 = vmatpush1.bf16.msra.mxu0 %v12328_v16 }
 0x12b   :  { %7174 = vmatprep.subr.bf16.mxu0 %v12361_v24 }
 0x12e   :  { %7175 = vmatpush1.bf16.msra.mxu0 %v12360_v26 }
 0x12f   :  { %7176 = vmatprep.subr.bf16.mxu0 %v12393_v32  ;;  %v292_v32 = vsub.s32 5, %v14107_v47 }
 0x132   :  { %7177 = vmatpush1.bf16.msra.mxu0 %v12392_v34 }
 0x133   :  { %7187 = vmatprep.subr.bf16.mxu0 %v12425_v41  ;;  %v289_v41 = vrot.slane %v14111_v50, %v288_v28 }
 0x198   :  { %v637_v51 = vpop.f32.mrb[0].mxu0  ;;  %v760_v54 = vpop.f32.mrb[0].mxu1 }
 0x199   :  { %v639_v52 = vpop.f32.mrb[1].mxu0  ;;  %v762_v57 = vpop.f32.mrb[1].mxu1  ;;  %v761_v61 = vadd.f32 %v760_v54, %v297_v53  ;;  %v293_v53 = vrot.slane %v14111_v50, %v292_v32  ;;  %v333_v54 = vrot.slane %v14117_v1, %v300_v49 }
 0x19a   :  { %v641_v55 = vpop.f32.mrb[2].mxu0  ;;  %v764_v59 = vpop.f32.mrb[2].mxu1  ;;  %v763_v63 = vadd.f32 %v762_v57, %v301_v56 }
 0x19b   :  { %v642_v58 = vpop.f32.mrb[3].mxu0  ;;  %v765_v60 = vpop.f32.mrb[3].mxu1  ;;  %v937_v2 = vmax.f32 %v761_v61, 0.0  ;;  %v638_v55 = vadd.f32 %v637_v51, %v273_v36  ;;  %v640_v59 = vadd.f32 %v639_v52, %v277_v45 }
 0x19c   :  { %v938_v4 = vmax.f32 %v763_v63, 0.0 }
 0x19d   :  { %v953_v9 = vrot.slane %v937_v2, 6  ;;  %v931_v50 = vmax.f32 %v638_v55, 0.0  ;;  %v932_v51 = vmax.f32 %v640_v59, 0.0  ;;  %v1562_v59 = vld [vmem:[#allocation9 + $0x1180] sm:$0xff] }
 0x19e   :  { %v954_v13 = vrot.slane %v938_v4, 6 }
 0x1a4   :  { %v678_v8 = vpop.f32.mrb[4].mxu0  ;;  %v842_v11 = vpop.f32.mrb[4].mxu1 }
 0x1a5   :  { %v679_v10 = vadd.f32 %v678_v8, %v281_v3  ;;  %v680_v12 = vpop.f32.mrb[5].mxu0  ;;  %v843_v14 = vadd.f32 %v842_v11, %v313_v5  ;;  %v844_v16 = vpop.f32.mrb[5].mxu1 }
 0x1a6   :  { %v681_v15 = vadd.f32 %v680_v12, %v285_v6  ;;  %v682_v17 = vpop.f32.mrb[6].mxu0  ;;  %v845_v19 = vadd.f32 %v844_v16, %v317_v7  ;;  %v846_v21 = vpop.f32.mrb[6].mxu1 }
 0x1a7   :  { %v933_v18 = vmax.f32 %v679_v10, 0.0  ;;  %v683_v20 = vpop.f32.mrb[7].mxu0  ;;  %v941_v23 = vmax.f32 %v843_v14, 0.0  ;;  %v847_v25 = vpop.f32.mrb[7].mxu1  ;;  %v305_v14 = vrot.slane %v14117_v1, %v14124_v22 }
 0x1a8   :  { %v934_v24 = vmax.f32 %v681_v15, 0.0  ;;  %v942_v27 = vmax.f32 %v845_v19, 0.0  ;;  %v309_v15 = vrot.slane %v14117_v1, %v14129_v29 }
 0x1a9   :  { %v986_v26 = vsel %vm983_vm2, %v933_v18, %v953_v9  ;;  %v965_v30 = vrot.slane %v941_v23, 4 }
 0x1aa   :  { %v987_v31 = vsel %vm983_vm2, %v934_v24, %v954_v13  ;;  %v966_v33 = vrot.slane %v942_v27, 4 }
 0x1ab   :  { %v991_v34 = vsel %vm988_vm3, %v986_v26, %v965_v30 }
 0x1ac   :  { %v992_v37 = vsel %vm988_vm3, %v987_v31, %v966_v33  ;;  %v321_v31 = vrot.slane %v14117_v1, %v288_v28  ;;  %v325_v33 = vrot.slane %v14117_v1, %v292_v32  ;;  %v1563_v28 = vld [vmem:[#allocation9 + $0x1188] sm:$0xff]  ;;  %v1578_v32 = vld [vmem:[#allocation9 + $0x1200] sm:$0xff] }
 0x1b0   :  { %v719_v47 = vpop.f32.mrb[8].mxu0  ;;  %v924_v57 = vpop.f32.mrb[8].mxu1 }
 0x1b1   :  { %v720_v56 = vadd.f32 %v719_v47, %v289_v41  ;;  %v721_v58 = vpop.f32.mrb[9].mxu0  ;;  %v925_v60 = vadd.f32 %v924_v57, %v329_v46  ;;  %v926_v62 = vpop.f32.mrb[9].mxu1  ;;  %v1546_v57 = vld [vmem:[#allocation9 + $0x1100] sm:$0xff] }
 0x1b2   :  { %v722_v61 = vadd.f32 %v721_v58, %v293_v53  ;;  %v723_v63 = vpop.f32.mrb[10].mxu0  ;;  %v927_v2 = vadd.f32 %v926_v62, %v333_v54  ;;  %v928_v4 = vpop.f32.mrb[10].mxu1  ;;  %v12457_v62 = vcombine.high %v1546_v57, %v1562_v59 }
 0x1b3   :  { %v935_v35 = vmax.f32 %v720_v56, 0.0  ;;  %v724_v3 = vpop.f32.mrb[11].mxu0  ;;  %v945_v5 = vmax.f32 %v925_v60, 0.0  ;;  %v929_v6 = vpop.f32.mrb[11].mxu1  ;;  %v1547_v60 = vld [vmem:[#allocation9 + $0x1108] sm:$0xff] }
 0x1b4   :  { %v936_v48 = vmax.f32 %v722_v61, 0.0  ;;  %v946_v49 = vmax.f32 %v927_v2, 0.0  ;;  %v12459_v63 = vcombine.high %v1547_v60, %v1563_v28  ;;  %v1579_v2 = vld [vmem:[#allocation9 + $0x1208] sm:$0xff] }
 0x1b5   :  { %v951_v7 = vrot.slane %v935_v35, 6  ;;  %v977_v8 = vrot.slane %v945_v5, 2  ;;  %v1594_v35 = vld [vmem:[#allocation9 + $0x1280] sm:$0xff]  ;;  %v1595_v3 = vld [vmem:[#allocation9 + $0x1288] sm:$0xff]  ;;  %v12456_v5 = vcombine.low %v1546_v57, %v1562_v59 }
 0x1b6   :  { %v952_v9 = vrot.slane %v936_v48, 6  ;;  %v978_v10 = vrot.slane %v946_v49, 2  ;;  %v12458_v48 = vcombine.low %v1547_v60, %v1563_v28  ;;  %v12489_v6 = vcombine.high %v1578_v32, %v1594_v35  ;;  %v1626_v49 = vld [vmem:[#allocation9 + $0x1380] sm:$0xff]  ;;  %v1771_v57 = vld [vmem:[#allocation9 + $0x1808] sm:$0xff] }
 0x1b7   :  { %v984_v52 = vsel %vm983_vm2, %v931_v50, %v951_v7  ;;  %v14145_v11 = vsel %vm993_vm4, %v991_v34, %v977_v8  ;;  %v12491_v50 = vcombine.high %v1579_v2, %v1595_v3  ;;  %v1610_v7 = vld [vmem:[#allocation9 + $0x1300] sm:$0xff]  ;;  %v1627_v8 = vld [vmem:[#allocation9 + $0x1388] sm:$0xff]  ;;  %v12488_v38 = vcombine.low %v1578_v32, %v1594_v35 }
 0x1b8   :  { %v985_v12 = vsel %vm983_vm2, %v932_v51, %v952_v9  ;;  %v997_v13 = vsel %vm993_vm4, %v992_v37, %v978_v10  ;;  %v1611_v51 = vld [vmem:[#allocation9 + $0x1308] sm:$0xff]  ;;  %v12490_v39 = vcombine.low %v1579_v2, %v1595_v3  ;;  %v12521_v40 = vcombine.high %v1610_v7, %v1626_v49 }
 0x1b9   :  { %v14165_v4 = vpack.c.bf16 %v997_v13, %v997_v13  ;;  %v12523_v42 = vcombine.high %v1611_v51, %v1627_v8  ;;  %v1643_v9 = vld [vmem:[#allocation9 + $0x1408] sm:$0xff]  ;;  %v12520_v10 = vcombine.low %v1610_v7, %v1626_v49  ;;  %v1850_v7 = vld [vmem:[#allocation9 + $0x1a80] sm:$0xff] }
 0x1ba   :  { %v1803_v35 = vld [vmem:[#allocation9 + $0x1908] sm:$0xff] }
 0x1bb   :  { %v1819_v2 = vld [vmem:[#allocation9 + $0x1988] sm:$0xff] }
 0x1bc   :  { %v801_v16 = vpop.f32.mrb[12].mxu0  ;;  %v1835_v49 = vld [vmem:[#allocation9 + $0x1a08] sm:$0xff] }
 0x1bd   :  { %v802_v17 = vadd.f32 %v801_v16, %v305_v14  ;;  %v803_v18 = vpop.f32.mrb[13].mxu0  ;;  %v1690_v16 = vld [vmem:[#allocation9 + $0x1580] sm:$0xff] }
 0x1be   :  { %v804_v19 = vadd.f32 %v803_v18, %v309_v15  ;;  %v805_v20 = vpop.f32.mrb[14].mxu0  ;;  %v1674_v15 = vld [vmem:[#allocation9 + $0x1500] sm:$0xff]  ;;  %v1691_v18 = vld [vmem:[#allocation9 + $0x1588] sm:$0xff] }
 0x1bf   :  { %v939_v21 = vmax.f32 %v802_v17, 0.0  ;;  %v806_v23 = vpop.f32.mrb[15].mxu0  ;;  %v1675_v17 = vld [vmem:[#allocation9 + $0x1508] sm:$0xff] }
 0x1c0   :  { %v940_v24 = vmax.f32 %v804_v19, 0.0  ;;  %v12587_v23 = vcombine.high %v1675_v17, %v1691_v18 }
 0x1c1   :  { %v963_v25 = vrot.slane %v939_v21, 4  ;;  %v12585_v21 = vcombine.high %v1674_v15, %v1690_v16 }
 0x1c2   :  { %v964_v26 = vrot.slane %v940_v24, 4  ;;  %v1706_v24 = vld [vmem:[#allocation9 + $0x1600] sm:$0xff] }
 0x1c3   :  { %v989_v27 = vsel %vm988_vm3, %v984_v52, %v963_v25  ;;  %v1659_v52 = vld [vmem:[#allocation9 + $0x1488] sm:$0xff]  ;;  %v1722_v25 = vld [vmem:[#allocation9 + $0x1680] sm:$0xff] }
 0x1c4   :  { %v990_v30 = vsel %vm988_vm3, %v985_v12, %v964_v26  ;;  %v12522_v12 = vcombine.low %v1611_v51, %v1627_v8  ;;  %v12555_v14 = vcombine.high %v1643_v9, %v1659_v52  ;;  %v12554_v20 = vcombine.low %v1643_v9, %v1659_v52  ;;  %v1707_v26 = vld [vmem:[#allocation9 + $0x1608] sm:$0xff] }
 0x1c5   :  { %v1851_v51 = vld [vmem:[#allocation9 + $0x1a88] sm:$0xff] }
 0x1c6   :  { %v1883_v9 = vld [vmem:[#allocation9 + $0x1b88] sm:$0xff] }
 0x1c8   :  { %v883_v34 = vpop.f32.mrb[16].mxu0 }
 0x1c9   :  { %v884_v36 = vadd.f32 %v883_v34, %v321_v31  ;;  %v885_v37 = vpop.f32.mrb[17].mxu0  ;;  %v12586_v31 = vcombine.low %v1675_v17, %v1691_v18  ;;  %v1915_v17 = vld [vmem:[#allocation9 + $0x1c88] sm:$0xff] }
 0x1ca   :  { %v886_v41 = vadd.f32 %v885_v37, %v325_v33  ;;  %v887_v45 = vpop.f32.mrb[18].mxu0  ;;  %v12617_v33 = vcombine.high %v1706_v24, %v1722_v25  ;;  %v1754_v37 = vld [vmem:[#allocation9 + $0x1780] sm:$0xff] }
 0x1cb   :  { %v943_v46 = vmax.f32 %v884_v36, 0.0  ;;  %v888_v53 = vpop.f32.mrb[19].mxu0  ;;  %v1738_v36 = vld [vmem:[#allocation9 + $0x1700] sm:$0xff]  ;;  %v1755_v45 = vld [vmem:[#allocation9 + $0x1788] sm:$0xff] }
 0x1cc   :  { %v944_v54 = vmax.f32 %v886_v41, 0.0  ;;  %v1739_v41 = vld [vmem:[#allocation9 + $0x1708] sm:$0xff]  ;;  %v12648_v59 = vcombine.low %v1738_v36, %v1754_v37 }
 0x1cd   :  { %v975_v47 = vrot.slane %v943_v46, 2  ;;  %v12616_v46 = vcombine.low %v1706_v24, %v1722_v25  ;;  %v12650_v60 = vcombine.low %v1739_v41, %v1755_v45  ;;  %v1946_v24 = vld [vmem:[#allocation9 + $0x1d80] sm:$0xff]  ;;  %v1931_v25 = vld [vmem:[#allocation9 + $0x1d08] sm:$0xff] }
 0x1ce   :  { %v976_v55 = vrot.slane %v944_v54, 2  ;;  %v12649_v54 = vcombine.high %v1738_v36, %v1754_v37  ;;  %v1978_v36 = vld [vmem:[#allocation9 + $0x1e80] sm:$0xff]  ;;  %v1963_v37 = vld [vmem:[#allocation9 + $0x1e08] sm:$0xff] }
 0x1cf   :  { %v994_v56 = vsel %vm993_vm4, %v989_v27, %v975_v47  ;;  %v1723_v27 = vld [vmem:[#allocation9 + $0x1688] sm:$0xff]  ;;  %v12651_v47 = vcombine.high %v1739_v41, %v1755_v45 }
 0x1d0   :  { %v995_v58 = vsel %vm993_vm4, %v990_v30, %v976_v55  ;;  %v14161_v1 = vpack.c.bf16 %v994_v56, %v994_v56  ;;  %v12584_v30 = vcombine.low %v1674_v15, %v1690_v16  ;;  %v12619_v34 = vcombine.high %v1707_v26, %v1723_v27  ;;  %v1770_v55 = vld [vmem:[#allocation9 + $0x1800] sm:$0xff]  ;;  %v1899_v16 = vld [vmem:[#allocation9 + $0x1c08] sm:$0xff] }
 0x1d1   :  { %v14159_v61 = vpack.c.bf16 %v995_v58, %v995_v58  ;;  %v12618_v53 = vcombine.low %v1707_v26, %v1723_v27  ;;  %v1786_v56 = vld [vmem:[#allocation9 + $0x1880] sm:$0xff]  ;;  %v1787_v58 = vld [vmem:[#allocation9 + $0x1888] sm:$0xff] }
 0x1d2   :  { %v12681_v28 = vcombine.high %v1770_v55, %v1786_v56  ;;  %v12683_v32 = vcombine.high %v1771_v57, %v1787_v58  ;;  %v12680_v3 = vcombine.low %v1770_v55, %v1786_v56  ;;  %v1914_v15 = vld [vmem:[#allocation9 + $0x1c80] sm:$0xff]  ;;  %v1947_v26 = vld [vmem:[#allocation9 + $0x1d88] sm:$0xff] }
 0x1d3   :  { %7178 = vmatprep.mubr.bf16.mxu0 %v14159_v61  ;;  %7260 = vmatprep.mubr.bf16.mxu1 %v14159_v61  ;;  %v1979_v41 = vld [vmem:[#allocation9 + $0x1e88] sm:$0xff]  ;;  %v2010_v55 = vld [vmem:[#allocation9 + $0x1f80] sm:$0xff] }
 0x1d4   :  { %7179 = vmatmul.mubr.bf16.vlgmr.msra.gmra.mrb[20].mxu0 %v14161_v1  ;;  %7261 = vmatmul.mubr.bf16.vlgmr.msra.gmra.mrb[12].mxu1 %v14161_v1  ;;  %v1995_v56 = vld [vmem:[#allocation9 + $0x1f08] sm:$0xff] }
 0x1d5   :  { %7188 = vmatpush1.bf16.msra.mxu0 %v12424_v43  ;;  %7270 = vmatpush1.bf16.msra.mxu1 %v12426_v44  ;;  %v1642_v43 = vld [vmem:[#allocation9 + $0x1400] sm:$0xff] }
 0x1d6   :  { %7219 = vmatprep.mubr.bf16.mxu0 %v14165_v4  ;;  %7301 = vmatprep.mubr.bf16.mxu1 %v14165_v4  ;;  %v1658_v44 = vld [vmem:[#allocation9 + $0x1480] sm:$0xff] }
 0x1d7   :  { %7189 = vmatprep.subr.bf16.mxu0 %v12457_v62  ;;  %7271 = vmatprep.subr.bf16.mxu1 %v12459_v63  ;;  %v12553_v13 = vcombine.high %v1642_v43, %v1658_v44  ;;  %v12552_v19 = vcombine.low %v1642_v43, %v1658_v44  ;;  %v1802_v62 = vld [vmem:[#allocation9 + $0x1900] sm:$0xff]  ;;  %v1867_v44 = vld [vmem:[#allocation9 + $0x1b08] sm:$0xff] }
 0x1d8   :  { %v1818_v63 = vld [vmem:[#allocation9 + $0x1980] sm:$0xff] }
 0x1d9   :  { %7190 = vmatpush1.bf16.msra.mxu0 %v12456_v5  ;;  %7272 = vmatpush1.bf16.msra.mxu1 %v12458_v48  ;;  %v12682_v5 = vcombine.low %v1771_v57, %v1787_v58  ;;  %v12713_v48 = vcombine.high %v1802_v62, %v1818_v63  ;;  %v12712_v8 = vcombine.low %v1802_v62, %v1818_v63  ;;  %v1882_v43 = vld [vmem:[#allocation9 + $0x1b80] sm:$0xff]  ;;  %v2011_v57 = vld [vmem:[#allocation9 + $0x1f88] sm:$0xff]  ;;  %v1020_v62 = vld [vmem:[#allocation9 + $0x90] sm:$0xff] }
 0x1da   :  { %7191 = vmatprep.subr.bf16.mxu0 %v12489_v6  ;;  %7273 = vmatprep.subr.bf16.mxu1 %v12491_v50  ;;  %v12715_v6 = vcombine.high %v1803_v35, %v1819_v2  ;;  %v1834_v50 = vld [vmem:[#allocation9 + $0x1a00] sm:$0xff]  ;;  %v1005_v63 = vld [vmem:[#allocation9 + $0x18] sm:$0xff] }
 0x1db   :  { %v12744_v52 = vcombine.low %v1834_v50, %v1850_v7 }
 0x1dd   :  { %7192 = vmatpush1.bf16.msra.mxu0 %v12488_v38  ;;  %7274 = vmatpush1.bf16.msra.mxu1 %v12490_v39  ;;  %v12714_v38 = vcombine.low %v1803_v35, %v1819_v2  ;;  %v12745_v39 = vcombine.high %v1834_v50, %v1850_v7  ;;  %v1021_v35 = vld [vmem:[#allocation9 + $0x98] sm:$0xff]  ;;  %v1052_v50 = vld [vmem:[#allocation9 + $0x190] sm:$0xff] }
 0x1de   :  { %7193 = vmatprep.subr.bf16.mxu0 %v12521_v40  ;;  %7275 = vmatprep.subr.bf16.mxu1 %v12523_v42  ;;  %v12747_v40 = vcombine.high %v1835_v49, %v1851_v51  ;;  %v1866_v42 = vld [vmem:[#allocation9 + $0x1b00] sm:$0xff]  ;;  %v1037_v7 = vld [vmem:[#allocation9 + $0x118] sm:$0xff] }
 0x1df   :  { %v12776_v18 = vcombine.low %v1866_v42, %v1882_v43 }
 0x1e1   :  { %7194 = vmatpush1.bf16.msra.mxu0 %v12520_v10  ;;  %7276 = vmatpush1.bf16.msra.mxu1 %v12522_v12  ;;  %v12746_v10 = vcombine.low %v1835_v49, %v1851_v51  ;;  %v12777_v12 = vcombine.high %v1866_v42, %v1882_v43  ;;  %v1053_v49 = vld [vmem:[#allocation9 + $0x198] sm:$0xff]  ;;  %v1068_v42 = vld [vmem:[#allocation9 + $0x210] sm:$0xff] }
 0x1e2   :  { %7195 = vmatprep.subr.bf16.mxu0 %v12553_v13  ;;  %7277 = vmatprep.subr.bf16.mxu1 %v12555_v14  ;;  %v12779_v13 = vcombine.high %v1867_v44, %v1883_v9  ;;  %v1898_v14 = vld [vmem:[#allocation9 + $0x1c00] sm:$0xff]  ;;  %v1084_v43 = vld [vmem:[#allocation9 + $0x290] sm:$0xff] }
 0x1e3   :  { %v12808_v27 = vcombine.low %v1898_v14, %v1914_v15 }
 0x1e5   :  { %7196 = vmatpush1.bf16.msra.mxu0 %v12552_v19  ;;  %7278 = vmatpush1.bf16.msra.mxu1 %v12554_v20  ;;  %v12778_v19 = vcombine.low %v1867_v44, %v1883_v9  ;;  %v12809_v20 = vcombine.high %v1898_v14, %v1914_v15  ;;  %v1069_v44 = vld [vmem:[#allocation9 + $0x218] sm:$0xff]  ;;  %v1116_v14 = vld [vmem:[#allocation9 + $0x390] sm:$0xff] }
 0x1e6   :  { %7197 = vmatprep.subr.bf16.mxu0 %v12585_v21  ;;  %7279 = vmatprep.subr.bf16.mxu1 %v12587_v23  ;;  %v12811_v21 = vcombine.high %v1899_v16, %v1915_v17  ;;  %v1930_v23 = vld [vmem:[#allocation9 + $0x1d00] sm:$0xff]  ;;  %v1085_v9 = vld [vmem:[#allocation9 + $0x298] sm:$0xff] }
 0x1e7   :  { %v12840_v45 = vcombine.low %v1930_v23, %v1946_v24  ;;  %v1101_v15 = vld [vmem:[#allocation9 + $0x318] sm:$0xff] }
 0x1e9   :  { %7198 = vmatpush1.bf16.msra.mxu0 %v12584_v30  ;;  %7280 = vmatpush1.bf16.msra.mxu1 %v12586_v31  ;;  %v12810_v30 = vcombine.low %v1899_v16, %v1915_v17  ;;  %v12841_v31 = vcombine.high %v1930_v23, %v1946_v24  ;;  %v1117_v16 = vld [vmem:[#allocation9 + $0x398] sm:$0xff]  ;;  %v11980_v17 = vcombine.low %v1068_v42, %v1084_v43  ;;  %v1148_v23 = vld [vmem:[#allocation9 + $0x490] sm:$0xff] }
 0x1ea   :  { %7199 = vmatprep.subr.bf16.mxu0 %v12617_v33  ;;  %7281 = vmatprep.subr.bf16.mxu1 %v12619_v34  ;;  %v12843_v33 = vcombine.high %v1931_v25, %v1947_v26  ;;  %v1962_v34 = vld [vmem:[#allocation9 + $0x1e00] sm:$0xff]  ;;  %v1133_v24 = vld [vmem:[#allocation9 + $0x418] sm:$0xff] }
 0x1eb   :  { %v12872_v58 = vcombine.low %v1962_v34, %v1978_v36 }
 0x1ed   :  { %7200 = vmatpush1.bf16.msra.mxu0 %v12616_v46  ;;  %7282 = vmatpush1.bf16.msra.mxu1 %v12618_v53  ;;  %v12842_v46 = vcombine.low %v1931_v25, %v1947_v26  ;;  %v12873_v53 = vcombine.high %v1962_v34, %v1978_v36  ;;  %v1149_v25 = vld [vmem:[#allocation9 + $0x498] sm:$0xff]  ;;  %v1180_v34 = vld [vmem:[#allocation9 + $0x590] sm:$0xff] }
 0x1ee   :  { %7201 = vmatprep.subr.bf16.mxu0 %v12649_v54  ;;  %7283 = vmatprep.subr.bf16.mxu1 %v12651_v47  ;;  %v12875_v54 = vcombine.high %v1963_v37, %v1979_v41  ;;  %v1994_v47 = vld [vmem:[#allocation9 + $0x1f00] sm:$0xff]  ;;  %v1165_v36 = vld [vmem:[#allocation9 + $0x518] sm:$0xff] }
 0x1ef   :  { %v12904_v2 = vcombine.low %v1994_v47, %v2010_v55 }
 0x1f1   :  { %7202 = vmatpush1.bf16.msra.mxu0 %v12648_v59  ;;  %7284 = vmatpush1.bf16.msra.mxu1 %v12650_v60  ;;  %v12874_v59 = vcombine.low %v1963_v37, %v1979_v41  ;;  %v12905_v60 = vcombine.high %v1994_v47, %v2010_v55  ;;  %v1181_v37 = vld [vmem:[#allocation9 + $0x598] sm:$0xff]  ;;  %v1212_v47 = vld [vmem:[#allocation9 + $0x690] sm:$0xff] }
 0x1f2   :  { %7203 = vmatprep.subr.bf16.mxu0 %v12681_v28  ;;  %7285 = vmatprep.subr.bf16.mxu1 %v12683_v32  ;;  %v12907_v28 = vcombine.high %v1995_v56, %v2011_v57  ;;  %v1004_v32 = vld [vmem:[#allocation9 + $0x10] sm:$0xff]  ;;  %v1197_v55 = vld [vmem:[#allocation9 + $0x618] sm:$0xff] }
 0x1f3   :  { %v11916_v51 = vcombine.low %v1004_v32, %v1020_v62 }
 0x1f5   :  { %7204 = vmatpush1.bf16.msra.mxu0 %v12680_v3  ;;  %7286 = vmatpush1.bf16.msra.mxu1 %v12682_v5  ;;  %v12906_v3 = vcombine.low %v1995_v56, %v2011_v57  ;;  %v11917_v5 = vcombine.high %v1004_v32, %v1020_v62  ;;  %v1213_v56 = vld [vmem:[#allocation9 + $0x698] sm:$0xff]  ;;  %v1244_v32 = vld [vmem:[#allocation9 + $0x790] sm:$0xff] }
 0x1f6   :  { %7205 = vmatprep.subr.bf16.mxu0 %v12713_v48  ;;  %7287 = vmatprep.subr.bf16.mxu1 %v12715_v6  ;;  %v11919_v48 = vcombine.high %v1005_v63, %v1021_v35  ;;  %v1036_v6 = vld [vmem:[#allocation9 + $0x110] sm:$0xff]  ;;  %v1229_v62 = vld [vmem:[#allocation9 + $0x718] sm:$0xff] }
 0x1f9   :  { %7206 = vmatpush1.bf16.msra.mxu0 %v12712_v8  ;;  %7288 = vmatpush1.bf16.msra.mxu1 %v12714_v38  ;;  %v14179_v8 = vpack.c.bf16 %v14145_v11, %v14145_v11  ;;  %v11918_v38 = vcombine.low %v1005_v63, %v1021_v35  ;;  %v11950_v11 = vcombine.low %v1037_v7, %v1053_v49  ;;  %v1245_v63 = vld [vmem:[#allocation9 + $0x798] sm:$0xff] }
 0x1fa   :  { %7207 = vmatprep.subr.bf16.mxu0 %v12745_v39  ;;  %7289 = vmatprep.subr.bf16.mxu1 %v12747_v40  ;;  %v11949_v39 = vcombine.high %v1036_v6, %v1052_v50  ;;  %v11951_v40 = vcombine.high %v1037_v7, %v1053_v49  ;;  %v1277_v7 = vld [vmem:[#allocation9 + $0x898] sm:$0xff] }
 0x1fd   :  { %7208 = vmatpush1.bf16.msra.mxu0 %v12744_v52  ;;  %7290 = vmatpush1.bf16.msra.mxu1 %v12746_v10  ;;  %v11948_v52 = vcombine.low %v1036_v6, %v1052_v50  ;;  %v11981_v10 = vcombine.high %v1068_v42, %v1084_v43  ;;  %v1276_v6 = vld [vmem:[#allocation9 + $0x890] sm:$0xff]  ;;  %v1261_v50 = vld [vmem:[#allocation9 + $0x818] sm:$0xff] }
 0x1fe   :  { %7209 = vmatprep.subr.bf16.mxu0 %v12777_v12  ;;  %7291 = vmatprep.subr.bf16.mxu1 %v12779_v13  ;;  %v11983_v12 = vcombine.high %v1069_v44, %v1085_v9  ;;  %v1100_v13 = vld [vmem:[#allocation9 + $0x310] sm:$0xff]  ;;  %v1293_v43 = vld [vmem:[#allocation9 + $0x918] sm:$0xff] }
 0x1ff   :  { %v12012_v26 = vcombine.low %v1100_v13, %v1116_v14  ;;  %v1308_v42 = vld [vmem:[#allocation9 + $0x990] sm:$0xff] }
 0x201   :  { %7210 = vmatpush1.bf16.msra.mxu0 %v12776_v18  ;;  %7292 = vmatpush1.bf16.msra.mxu1 %v12778_v19  ;;  %v11982_v18 = vcombine.low %v1069_v44, %v1085_v9  ;;  %v12013_v19 = vcombine.high %v1100_v13, %v1116_v14  ;;  %v1309_v44 = vld [vmem:[#allocation9 + $0x998] sm:$0xff]  ;;  %v1340_v13 = vld [vmem:[#allocation9 + $0xa90] sm:$0xff] }
 0x202   :  { %7211 = vmatprep.subr.bf16.mxu0 %v12809_v20  ;;  %7293 = vmatprep.subr.bf16.mxu1 %v12811_v21  ;;  %v12015_v20 = vcombine.high %v1101_v15, %v1117_v16  ;;  %v1132_v21 = vld [vmem:[#allocation9 + $0x410] sm:$0xff]  ;;  %v1325_v14 = vld [vmem:[#allocation9 + $0xa18] sm:$0xff] }
 0x203   :  { %v12044_v41 = vcombine.low %v1132_v21, %v1148_v23 }
 0x205   :  { %7212 = vmatpush1.bf16.msra.mxu0 %v12808_v27  ;;  %7294 = vmatpush1.bf16.msra.mxu1 %v12810_v30  ;;  %v12014_v27 = vcombine.low %v1101_v15, %v1117_v16  ;;  %v12045_v30 = vcombine.high %v1132_v21, %v1148_v23  ;;  %v1341_v15 = vld [vmem:[#allocation9 + $0xa98] sm:$0xff]  ;;  %v1372_v21 = vld [vmem:[#allocation9 + $0xb90] sm:$0xff] }
 0x206   :  { %7213 = vmatprep.subr.bf16.mxu0 %v12841_v31  ;;  %7295 = vmatprep.subr.bf16.mxu1 %v12843_v33  ;;  %v12047_v31 = vcombine.high %v1133_v24, %v1149_v25  ;;  %v1164_v33 = vld [vmem:[#allocation9 + $0x510] sm:$0xff]  ;;  %v1357_v23 = vld [vmem:[#allocation9 + $0xb18] sm:$0xff] }
 0x207   :  { %v12076_v57 = vcombine.low %v1164_v33, %v1180_v34 }
 0x209   :  { %7214 = vmatpush1.bf16.msra.mxu0 %v12840_v45  ;;  %7296 = vmatpush1.bf16.msra.mxu1 %v12842_v46  ;;  %v12046_v45 = vcombine.low %v1133_v24, %v1149_v25  ;;  %v12077_v46 = vcombine.high %v1164_v33, %v1180_v34  ;;  %v1373_v24 = vld [vmem:[#allocation9 + $0xb98] sm:$0xff]  ;;  %v1404_v33 = vld [vmem:[#allocation9 + $0xc90] sm:$0xff] }
 0x20a   :  { %7215 = vmatprep.subr.bf16.mxu0 %v12873_v53  ;;  %7297 = vmatprep.subr.bf16.mxu1 %v12875_v54  ;;  %v12079_v53 = vcombine.high %v1165_v36, %v1181_v37  ;;  %v1196_v54 = vld [vmem:[#allocation9 + $0x610] sm:$0xff]  ;;  %v1389_v34 = vld [vmem:[#allocation9 + $0xc18] sm:$0xff] }
 0x20b   :  { %v12108_v35 = vcombine.low %v1196_v54, %v1212_v47 }
 0x20d   :  { %7216 = vmatpush1.bf16.msra.mxu0 %v12872_v58  ;;  %7298 = vmatpush1.bf16.msra.mxu1 %v12874_v59  ;;  %v12078_v58 = vcombine.low %v1165_v36, %v1181_v37  ;;  %v12109_v59 = vcombine.high %v1196_v54, %v1212_v47  ;;  %v1405_v36 = vld [vmem:[#allocation9 + $0xc98] sm:$0xff]  ;;  %v1436_v54 = vld [vmem:[#allocation9 + $0xd90] sm:$0xff] }
 0x20e   :  { %7217 = vmatprep.subr.bf16.mxu0 %v12905_v60  ;;  %7299 = vmatprep.subr.bf16.mxu1 %v12907_v28  ;;  %v12111_v60 = vcombine.high %v1197_v55, %v1213_v56  ;;  %v1228_v28 = vld [vmem:[#allocation9 + $0x710] sm:$0xff]  ;;  %v1421_v47 = vld [vmem:[#allocation9 + $0xd18] sm:$0xff] }
 0x20f   :  { %v12140_v49 = vcombine.low %v1228_v28, %v1244_v32 }
 0x211   :  { %7218 = vmatpush1.bf16.msra.mxu0 %v12904_v2  ;;  %7300 = vmatpush1.bf16.msra.mxu1 %v12906_v3  ;;  %v12110_v2 = vcombine.low %v1197_v55, %v1213_v56  ;;  %v12141_v3 = vcombine.high %v1228_v28, %v1244_v32  ;;  %v1437_v55 = vld [vmem:[#allocation9 + $0xd98] sm:$0xff]  ;;  %v1468_v28 = vld [vmem:[#allocation9 + $0xe90] sm:$0xff] }
 0x212   :  { %7310 = vmatprep.subr.bf16.mxu0 %v11917_v5  ;;  %7392 = vmatprep.subr.bf16.mxu1 %v11919_v48  ;;  %v12143_v5 = vcombine.high %v1229_v62, %v1245_v63  ;;  %v1260_v48 = vld [vmem:[#allocation9 + $0x810] sm:$0xff]  ;;  %v1453_v32 = vld [vmem:[#allocation9 + $0xe18] sm:$0xff] }
 0x213   :  { %v12172_v9 = vcombine.low %v1260_v48, %v1276_v6 }
 0x214   :  { %7220 = vmatmul.mubr.bf16.vlgmr.msra.gmra.mrb[20].mxu0 %v14179_v8  ;;  %7302 = vmatmul.mubr.bf16.vlgmr.msra.gmra.mrb[12].mxu1 %v14179_v8 }
 0x215   :  { %7311 = vmatpush1.bf16.msra.mxu0 %v11916_v51  ;;  %7342 = vmatprep.mubr.bf16.mxu0 %v14159_v61  ;;  %v12142_v51 = vcombine.low %v1229_v62, %v1245_v63  ;;  %v1469_v62 = vld [vmem:[#allocation9 + $0xe98] sm:$0xff] }
 0x216   :  { %7393 = vmatpush1.bf16.msra.mxu1 %v11918_v38  ;;  %7424 = vmatprep.mubr.bf16.mxu1 %v14159_v61  ;;  %v12173_v38 = vcombine.high %v1260_v48, %v1276_v6  ;;  %v1500_v48 = vld [vmem:[#allocation9 + $0xf90] sm:$0xff]  ;;  %v1485_v6 = vld [vmem:[#allocation9 + $0xf18] sm:$0xff] }
 0x217   :  { %7312 = vmatprep.subr.bf16.mxu0 %v11949_v39  ;;  %7394 = vmatprep.subr.bf16.mxu1 %v11951_v40  ;;  %v12175_v39 = vcombine.high %v1261_v50, %v1277_v7  ;;  %v1292_v40 = vld [vmem:[#allocation9 + $0x910] sm:$0xff] }
 0x218   :  { %v12204_v16 = vcombine.low %v1292_v40, %v1308_v42 }
 0x219   :  { %7313 = vmatpush1.bf16.msra.mxu0 %v11948_v52  ;;  %v12174_v52 = vcombine.low %v1261_v50, %v1277_v7  ;;  %v1501_v50 = vld [vmem:[#allocation9 + $0xf98] sm:$0xff] }
 0x21a   :  { %7395 = vmatpush1.bf16.msra.mxu1 %v11950_v11  ;;  %7314 = vmatprep.subr.bf16.mxu0 %v11981_v10  ;;  %v12205_v11 = vcombine.high %v1292_v40, %v1308_v42  ;;  %v12207_v10 = vcombine.high %v1293_v43, %v1309_v44  ;;  %v1532_v40 = vld [vmem:[#allocation9 + $0x1090] sm:$0xff]  ;;  %v1517_v42 = vld [vmem:[#allocation9 + $0x1018] sm:$0xff] }
 0x21b   :  { %7396 = vmatprep.subr.bf16.mxu1 %v11983_v12  ;;  %v1324_v12 = vld [vmem:[#allocation9 + $0xa10] sm:$0xff] }
 0x21c   :  { %v12236_v25 = vcombine.low %v1324_v12, %v1340_v13 }
 0x21d   :  { %7315 = vmatpush1.bf16.msra.mxu0 %v11980_v17  ;;  %v12206_v17 = vcombine.low %v1293_v43, %v1309_v44  ;;  %v1533_v43 = vld [vmem:[#allocation9 + $0x1098] sm:$0xff] }
 0x21e   :  { %7397 = vmatpush1.bf16.msra.mxu1 %v11982_v18  ;;  %7316 = vmatprep.subr.bf16.mxu0 %v12013_v19  ;;  %v12237_v18 = vcombine.high %v1324_v12, %v1340_v13  ;;  %v12239_v19 = vcombine.high %v1325_v14, %v1341_v15  ;;  %v1564_v12 = vld [vmem:[#allocation9 + $0x1190] sm:$0xff] }
 0x21f   :  { %7398 = vmatprep.subr.bf16.mxu1 %v12015_v20  ;;  %v1356_v20 = vld [vmem:[#allocation9 + $0xb10] sm:$0xff] }
 0x220   :  { %v12268_v37 = vcombine.low %v1356_v20, %v1372_v21 }
 0x221   :  { %7317 = vmatpush1.bf16.msra.mxu0 %v12012_v26  ;;  %v12238_v26 = vcombine.low %v1325_v14, %v1341_v15  ;;  %v1549_v14 = vld [vmem:[#allocation9 + $0x1118] sm:$0xff] }
 0x222   :  { %7399 = vmatpush1.bf16.msra.mxu1 %v12014_v27  ;;  %7318 = vmatprep.subr.bf16.mxu0 %v12045_v30  ;;  %v12269_v27 = vcombine.high %v1356_v20, %v1372_v21  ;;  %v12271_v30 = vcombine.high %v1357_v23, %v1373_v24  ;;  %v1565_v15 = vld [vmem:[#allocation9 + $0x1198] sm:$0xff] }
 0x223   :  { %7400 = vmatprep.subr.bf16.mxu1 %v12047_v31  ;;  %v1388_v31 = vld [vmem:[#allocation9 + $0xc10] sm:$0xff]  ;;  %v12463_v20 = vcombine.high %v1549_v14, %v1565_v15  ;;  %v1581_v21 = vld [vmem:[#allocation9 + $0x1218] sm:$0xff] }
 0x224   :  { %v12300_v56 = vcombine.low %v1388_v31, %v1404_v33 }
 0x225   :  { %7319 = vmatpush1.bf16.msra.mxu0 %v12044_v41  ;;  %v12270_v41 = vcombine.low %v1357_v23, %v1373_v24  ;;  %v1597_v23 = vld [vmem:[#allocation9 + $0x1298] sm:$0xff] }
 0x226   :  { %7401 = vmatpush1.bf16.msra.mxu1 %v12046_v45  ;;  %7320 = vmatprep.subr.bf16.mxu0 %v12077_v46  ;;  %v12301_v45 = vcombine.high %v1388_v31, %v1404_v33  ;;  %v12303_v46 = vcombine.high %v1389_v34, %v1405_v36  ;;  %v1628_v31 = vld [vmem:[#allocation9 + $0x1390] sm:$0xff]  ;;  %v1613_v33 = vld [vmem:[#allocation9 + $0x1318] sm:$0xff] }
 0x227   :  { %7402 = vmatprep.subr.bf16.mxu1 %v12079_v53  ;;  %v1420_v53 = vld [vmem:[#allocation9 + $0xd10] sm:$0xff] }
 0x228   :  { %v12332_v63 = vcombine.low %v1420_v53, %v1436_v54 }
 0x229   :  { %7321 = vmatpush1.bf16.msra.mxu0 %v12076_v57  ;;  %v12302_v57 = vcombine.low %v1389_v34, %v1405_v36  ;;  %v1629_v34 = vld [vmem:[#allocation9 + $0x1398] sm:$0xff] }
 0x22a   :  { %7403 = vmatpush1.bf16.msra.mxu1 %v12078_v58  ;;  %7322 = vmatprep.subr.bf16.mxu0 %v12109_v59  ;;  %v12333_v58 = vcombine.high %v1420_v53, %v1436_v54  ;;  %v12335_v59 = vcombine.high %v1421_v47, %v1437_v55  ;;  %v1660_v53 = vld [vmem:[#allocation9 + $0x1490] sm:$0xff]  ;;  %v1645_v54 = vld [vmem:[#allocation9 + $0x1418] sm:$0xff] }
 0x22b   :  { %7404 = vmatprep.subr.bf16.mxu1 %v12111_v60  ;;  %v1452_v60 = vld [vmem:[#allocation9 + $0xe10] sm:$0xff] }
 0x22c   :  { %v12364_v7 = vcombine.low %v1452_v60, %v1468_v28 }
 0x22d   :  { %7323 = vmatpush1.bf16.msra.mxu0 %v12108_v35  ;;  %v12334_v35 = vcombine.low %v1421_v47, %v1437_v55  ;;  %v1661_v47 = vld [vmem:[#allocation9 + $0x1498] sm:$0xff] }
 0x22e   :  { %7405 = vmatpush1.bf16.msra.mxu1 %v12110_v2  ;;  %7324 = vmatprep.subr.bf16.mxu0 %v12141_v3  ;;  %v12365_v2 = vcombine.high %v1452_v60, %v1468_v28  ;;  %v12367_v3 = vcombine.high %v1453_v32, %v1469_v62  ;;  %v1692_v60 = vld [vmem:[#allocation9 + $0x1590] sm:$0xff]  ;;  %v1677_v28 = vld [vmem:[#allocation9 + $0x1518] sm:$0xff] }
 0x22f   :  { %7406 = vmatprep.subr.bf16.mxu1 %v12143_v5  ;;  %v1484_v5 = vld [vmem:[#allocation9 + $0xf10] sm:$0xff] }
 0x230   :  { %v12396_v44 = vcombine.low %v1484_v5, %v1500_v48 }
 0x231   :  { %7325 = vmatpush1.bf16.msra.mxu0 %v12140_v49  ;;  %v12366_v49 = vcombine.low %v1453_v32, %v1469_v62  ;;  %v1693_v32 = vld [vmem:[#allocation9 + $0x1598] sm:$0xff] }
 0x232   :  { %7407 = vmatpush1.bf16.msra.mxu1 %v12142_v51  ;;  %7326 = vmatprep.subr.bf16.mxu0 %v12173_v38  ;;  %v12397_v51 = vcombine.high %v1484_v5, %v1500_v48  ;;  %v12399_v38 = vcombine.high %v1485_v6, %v1501_v50  ;;  %v1724_v5 = vld [vmem:[#allocation9 + $0x1690] sm:$0xff]  ;;  %v1709_v48 = vld [vmem:[#allocation9 + $0x1618] sm:$0xff] }
 0x233   :  { %7408 = vmatprep.subr.bf16.mxu1 %v12175_v39  ;;  %v1516_v39 = vld [vmem:[#allocation9 + $0x1010] sm:$0xff] }
 0x234   :  { %v12428_v13 = vcombine.low %v1516_v39, %v1532_v40 }
 0x235   :  { %7327 = vmatpush1.bf16.msra.mxu0 %v12172_v9  ;;  %v12398_v9 = vcombine.low %v1485_v6, %v1501_v50  ;;  %v1725_v6 = vld [vmem:[#allocation9 + $0x1698] sm:$0xff] }
 0x236   :  { %7409 = vmatpush1.bf16.msra.mxu1 %v12174_v52  ;;  %7328 = vmatprep.subr.bf16.mxu0 %v12205_v11  ;;  %v12429_v52 = vcombine.high %v1516_v39, %v1532_v40  ;;  %v12431_v11 = vcombine.high %v1517_v42, %v1533_v43  ;;  %v1756_v39 = vld [vmem:[#allocation9 + $0x1790] sm:$0xff]  ;;  %v1741_v40 = vld [vmem:[#allocation9 + $0x1718] sm:$0xff] }
 0x237   :  { %7410 = vmatprep.subr.bf16.mxu1 %v12207_v10  ;;  %v1548_v10 = vld [vmem:[#allocation9 + $0x1110] sm:$0xff] }
 0x238   :  { %v12460_v24 = vcombine.low %v1548_v10, %v1564_v12 }
 0x239   :  { %7329 = vmatpush1.bf16.msra.mxu0 %v12204_v16  ;;  %v12430_v16 = vcombine.low %v1517_v42, %v1533_v43  ;;  %v1757_v42 = vld [vmem:[#allocation9 + $0x1798] sm:$0xff] }
 0x23a   :  { %7411 = vmatpush1.bf16.msra.mxu1 %v12206_v17  ;;  %7330 = vmatprep.subr.bf16.mxu0 %v12237_v18  ;;  %v12461_v17 = vcombine.high %v1548_v10, %v1564_v12  ;;  %v1580_v18 = vld [vmem:[#allocation9 + $0x1210] sm:$0xff]  ;;  %v1773_v12 = vld [vmem:[#allocation9 + $0x1818] sm:$0xff] }
 0x23b   :  { %7412 = vmatprep.subr.bf16.mxu1 %v12239_v19  ;;  %v1596_v19 = vld [vmem:[#allocation9 + $0x1290] sm:$0xff] }
 0x23c   :  { %v12492_v36 = vcombine.low %v1580_v18, %v1596_v19  ;;  %v1788_v10 = vld [vmem:[#allocation9 + $0x1890] sm:$0xff] }
 0x23d   :  { %7331 = vmatpush1.bf16.msra.mxu0 %v12236_v25  ;;  %v12462_v25 = vcombine.low %v1549_v14, %v1565_v15  ;;  %v12654_v15 = vcombine.low %v1741_v40, %v1757_v42 }
 0x23e   :  { %7413 = vmatpush1.bf16.msra.mxu1 %v12238_v26  ;;  %7332 = vmatprep.subr.bf16.mxu0 %v12269_v27  ;;  %v12493_v26 = vcombine.high %v1580_v18, %v1596_v19  ;;  %v12495_v27 = vcombine.high %v1581_v21, %v1597_v23  ;;  %v1804_v18 = vld [vmem:[#allocation9 + $0x1910] sm:$0xff] }
 0x23f   :  { %7414 = vmatprep.subr.bf16.mxu1 %v12271_v30  ;;  %v1612_v30 = vld [vmem:[#allocation9 + $0x1310] sm:$0xff] }
 0x240   :  { %v12524_v55 = vcombine.low %v1612_v30, %v1628_v31  ;;  %v1820_v19 = vld [vmem:[#allocation9 + $0x1990] sm:$0xff] }
 0x241   :  { %7333 = vmatpush1.bf16.msra.mxu0 %v12268_v37  ;;  %v12494_v37 = vcombine.low %v1581_v21, %v1597_v23  ;;  %v1821_v21 = vld [vmem:[#allocation9 + $0x1998] sm:$0xff] }
 0x242   :  { %7415 = vmatpush1.bf16.msra.mxu1 %v12270_v41  ;;  %7334 = vmatprep.subr.bf16.mxu0 %v12301_v45  ;;  %v12525_v41 = vcombine.high %v1612_v30, %v1628_v31  ;;  %v12527_v45 = vcombine.high %v1613_v33, %v1629_v34  ;;  %v1852_v30 = vld [vmem:[#allocation9 + $0x1a90] sm:$0xff]  ;;  %v1837_v31 = vld [vmem:[#allocation9 + $0x1a18] sm:$0xff] }
 0x243   :  { %7416 = vmatprep.subr.bf16.mxu1 %v12303_v46  ;;  %v1644_v46 = vld [vmem:[#allocation9 + $0x1410] sm:$0xff] }
 0x244   :  { %v12556_v62 = vcombine.low %v1644_v46, %v1660_v53 }
 0x245   :  { %7335 = vmatpush1.bf16.msra.mxu0 %v12300_v56  ;;  %v12526_v56 = vcombine.low %v1613_v33, %v1629_v34  ;;  %v1853_v33 = vld [vmem:[#allocation9 + $0x1a98] sm:$0xff]  ;;  %v12716_v34 = vcombine.low %v1804_v18, %v1820_v19 }
 0x246   :  { %7417 = vmatpush1.bf16.msra.mxu1 %v12302_v57  ;;  %7336 = vmatprep.subr.bf16.mxu0 %v12333_v58  ;;  %v12557_v57 = vcombine.high %v1644_v46, %v1660_v53  ;;  %v12559_v58 = vcombine.high %v1645_v54, %v1661_v47  ;;  %v1884_v46 = vld [vmem:[#allocation9 + $0x1b90] sm:$0xff]  ;;  %v1869_v53 = vld [vmem:[#allocation9 + $0x1b18] sm:$0xff] }
 0x247   :  { %7418 = vmatprep.subr.bf16.mxu1 %v12335_v59  ;;  %v1676_v59 = vld [vmem:[#allocation9 + $0x1510] sm:$0xff] }
 0x248   :  { %v12588_v50 = vcombine.low %v1676_v59, %v1692_v60 }
 0x249   :  { %7337 = vmatpush1.bf16.msra.mxu0 %v12332_v63  ;;  %v12558_v63 = vcombine.low %v1645_v54, %v1661_v47  ;;  %v1885_v54 = vld [vmem:[#allocation9 + $0x1b98] sm:$0xff] }
 0x24a   :  { %7419 = vmatpush1.bf16.msra.mxu1 %v12334_v35  ;;  %7338 = vmatprep.subr.bf16.mxu0 %v12365_v2  ;;  %v12589_v35 = vcombine.high %v1676_v59, %v1692_v60  ;;  %v12591_v2 = vcombine.high %v1677_v28, %v1693_v32  ;;  %v1916_v59 = vld [vmem:[#allocation9 + $0x1c90] sm:$0xff]  ;;  %v1901_v60 = vld [vmem:[#allocation9 + $0x1c18] sm:$0xff] }
 0x24b   :  { %7420 = vmatprep.subr.bf16.mxu1 %v12367_v3  ;;  %v1708_v3 = vld [vmem:[#allocation9 + $0x1610] sm:$0xff] }
 0x24c   :  { %v12620_v43 = vcombine.low %v1708_v3, %v1724_v5 }
 0x24d   :  { %7339 = vmatpush1.bf16.msra.mxu0 %v12364_v7  ;;  %v12590_v7 = vcombine.low %v1677_v28, %v1693_v32  ;;  %v1917_v28 = vld [vmem:[#allocation9 + $0x1c98] sm:$0xff] }
 0x24e   :  { %7421 = vmatpush1.bf16.msra.mxu1 %v12366_v49  ;;  %7340 = vmatprep.subr.bf16.mxu0 %v12397_v51  ;;  %v12621_v49 = vcombine.high %v1708_v3, %v1724_v5  ;;  %v12623_v51 = vcombine.high %v1709_v48, %v1725_v6  ;;  %v1948_v3 = vld [vmem:[#allocation9 + $0x1d90] sm:$0xff]  ;;  %v1933_v5 = vld [vmem:[#allocation9 + $0x1d18] sm:$0xff] }
 0x24f   :  { %7422 = vmatprep.subr.bf16.mxu1 %v12399_v38  ;;  %v1740_v38 = vld [vmem:[#allocation9 + $0x1710] sm:$0xff] }
 0x250   :  { %v12652_v14 = vcombine.low %v1740_v38, %v1756_v39 }
 0x251   :  { %7341 = vmatpush1.bf16.msra.mxu0 %v12396_v44  ;;  %v12622_v44 = vcombine.low %v1709_v48, %v1725_v6  ;;  %v1949_v48 = vld [vmem:[#allocation9 + $0x1d98] sm:$0xff] }
 0x252   :  { %7423 = vmatpush1.bf16.msra.mxu1 %v12398_v9  ;;  %7351 = vmatprep.subr.bf16.mxu0 %v12429_v52  ;;  %v12653_v9 = vcombine.high %v1740_v38, %v1756_v39  ;;  %v12655_v52 = vcombine.high %v1741_v40, %v1757_v42  ;;  %v1980_v38 = vld [vmem:[#allocation9 + $0x1e90] sm:$0xff]  ;;  %v1965_v39 = vld [vmem:[#allocation9 + $0x1e18] sm:$0xff] }
 0x253   :  { %7433 = vmatprep.subr.bf16.mxu1 %v12431_v11  ;;  %v1772_v11 = vld [vmem:[#allocation9 + $0x1810] sm:$0xff]  ;;  %v1981_v40 = vld [vmem:[#allocation9 + $0x1e98] sm:$0xff] }
 0x254   :  { %7343 = vmatmul.mubr.bf16.vlgmr.msra.gmra.mrb[24].mxu0 %v14161_v1  ;;  %v12684_v23 = vcombine.low %v1772_v11, %v1788_v10 }
 0x255   :  { %7425 = vmatmul.mubr.bf16.vlgmr.msra.gmra.mrb[16].mxu1 %v14161_v1  ;;  %7352 = vmatpush1.bf16.msra.mxu0 %v12428_v13  ;;  %v1789_v13 = vld [vmem:[#allocation9 + $0x1898] sm:$0xff] }
 0x256   :  { %7383 = vmatprep.mubr.bf16.mxu0 %v14165_v4  ;;  %7434 = vmatpush1.bf16.msra.mxu1 %v12430_v16  ;;  %v12685_v16 = vcombine.high %v1772_v11, %v1788_v10  ;;  %v2012_v11 = vld [vmem:[#allocation9 + $0x1f90] sm:$0xff]  ;;  %v1997_v10 = vld [vmem:[#allocation9 + $0x1f18] sm:$0xff] }
 0x257   :  { %7465 = vmatprep.mubr.bf16.mxu1 %v14165_v4  ;;  %7353 = vmatprep.subr.bf16.mxu0 %v12461_v17  ;;  %v12687_v17 = vcombine.high %v1773_v12, %v1789_v13 }
 0x258   :  { %7435 = vmatprep.subr.bf16.mxu1 %v12463_v20  ;;  %v1805_v20 = vld [vmem:[#allocation9 + $0x1918] sm:$0xff] }
 0x259   :  { %7354 = vmatpush1.bf16.msra.mxu0 %v12460_v24  ;;  %v12686_v24 = vcombine.low %v1773_v12, %v1789_v13  ;;  %v2013_v12 = vld [vmem:[#allocation9 + $0x1f98] sm:$0xff] }
 0x25a   :  { %7436 = vmatpush1.bf16.msra.mxu1 %v12462_v25  ;;  %7355 = vmatprep.subr.bf16.mxu0 %v12493_v26  ;;  %v12717_v25 = vcombine.high %v1804_v18, %v1820_v19  ;;  %v12719_v26 = vcombine.high %v1805_v20, %v1821_v21  ;;  %v1022_v18 = vld [vmem:[#allocation9 + $0xa0] sm:$0xff]  ;;  %v1007_v19 = vld [vmem:[#allocation9 + $0x28] sm:$0xff] }
 0x25b   :  { %7437 = vmatprep.subr.bf16.mxu1 %v12495_v27  ;;  %v1836_v27 = vld [vmem:[#allocation9 + $0x1a10] sm:$0xff] }
 0x25c   :  { %v12748_v47 = vcombine.low %v1836_v27, %v1852_v30 }
 0x25d   :  { %7356 = vmatpush1.bf16.msra.mxu0 %v12492_v36  ;;  %v12718_v36 = vcombine.low %v1805_v20, %v1821_v21  ;;  %v1023_v20 = vld [vmem:[#allocation9 + $0xa8] sm:$0xff] }
 0x25e   :  { %7438 = vmatpush1.bf16.msra.mxu1 %v12494_v37  ;;  %7357 = vmatprep.subr.bf16.mxu0 %v12525_v41  ;;  %v12749_v37 = vcombine.high %v1836_v27, %v1852_v30  ;;  %v12751_v41 = vcombine.high %v1837_v31, %v1853_v33  ;;  %v1054_v27 = vld [vmem:[#allocation9 + $0x1a0] sm:$0xff] }
 0x25f   :  { %7439 = vmatprep.subr.bf16.mxu1 %v12527_v45  ;;  %v1868_v45 = vld [vmem:[#allocation9 + $0x1b10] sm:$0xff] }
 0x260   :  { %v12780_v32 = vcombine.low %v1868_v45, %v1884_v46 }
 0x261   :  { %7358 = vmatpush1.bf16.msra.mxu0 %v12524_v55  ;;  %v12750_v55 = vcombine.low %v1837_v31, %v1853_v33  ;;  %v1039_v31 = vld [vmem:[#allocation9 + $0x128] sm:$0xff] }
 0x262   :  { %7440 = vmatpush1.bf16.msra.mxu1 %v12526_v56  ;;  %7359 = vmatprep.subr.bf16.mxu0 %v12557_v57  ;;  %v12781_v56 = vcombine.high %v1868_v45, %v1884_v46  ;;  %v12783_v57 = vcombine.high %v1869_v53, %v1885_v54  ;;  %v1055_v33 = vld [vmem:[#allocation9 + $0x1a8] sm:$0xff] }
 0x263   :  { %7441 = vmatprep.subr.bf16.mxu1 %v12559_v58  ;;  %v1900_v58 = vld [vmem:[#allocation9 + $0x1c10] sm:$0xff]  ;;  %v11955_v45 = vcombine.high %v1039_v31, %v1055_v33  ;;  %v1071_v46 = vld [vmem:[#allocation9 + $0x228] sm:$0xff] }
 0x264   :  { %v12812_v6 = vcombine.low %v1900_v58, %v1916_v59 }
 0x265   :  { %7360 = vmatpush1.bf16.msra.mxu0 %v12556_v62  ;;  %v12782_v62 = vcombine.low %v1869_v53, %v1885_v54  ;;  %v1087_v53 = vld [vmem:[#allocation9 + $0x2a8] sm:$0xff] }
 0x266   :  { %7442 = vmatpush1.bf16.msra.mxu1 %v12558_v63  ;;  %7361 = vmatprep.subr.bf16.mxu0 %v12589_v35  ;;  %v12813_v63 = vcombine.high %v1900_v58, %v1916_v59  ;;  %v12815_v35 = vcombine.high %v1901_v60, %v1917_v28  ;;  %v1118_v58 = vld [vmem:[#allocation9 + $0x3a0] sm:$0xff]  ;;  %v1103_v59 = vld [vmem:[#allocation9 + $0x328] sm:$0xff] }
 0x267   :  { %7443 = vmatprep.subr.bf16.mxu1 %v12591_v2  ;;  %v1932_v2 = vld [vmem:[#allocation9 + $0x1d10] sm:$0xff] }
 0x268   :  { %v12844_v42 = vcombine.low %v1932_v2, %v1948_v3 }
 0x269   :  { %7362 = vmatpush1.bf16.msra.mxu0 %v12588_v50  ;;  %v12814_v50 = vcombine.low %v1901_v60, %v1917_v28  ;;  %v1119_v60 = vld [vmem:[#allocation9 + $0x3a8] sm:$0xff] }
 0x26a   :  { %7444 = vmatpush1.bf16.msra.mxu1 %v12590_v7  ;;  %7363 = vmatprep.subr.bf16.mxu0 %v12621_v49  ;;  %v12845_v7 = vcombine.high %v1932_v2, %v1948_v3  ;;  %v12847_v49 = vcombine.high %v1933_v5, %v1949_v48  ;;  %v1150_v2 = vld [vmem:[#allocation9 + $0x4a0] sm:$0xff]  ;;  %v1135_v3 = vld [vmem:[#allocation9 + $0x428] sm:$0xff] }
 0x26b   :  { %7445 = vmatprep.subr.bf16.mxu1 %v12623_v51  ;;  %v1964_v51 = vld [vmem:[#allocation9 + $0x1e10] sm:$0xff] }
 0x26c   :  { %v12876_v13 = vcombine.low %v1964_v51, %v1980_v38 }
 0x26d   :  { %7364 = vmatpush1.bf16.msra.mxu0 %v12620_v43  ;;  %v12846_v43 = vcombine.low %v1933_v5, %v1949_v48  ;;  %v1151_v5 = vld [vmem:[#allocation9 + $0x4a8] sm:$0xff] }
 0x26e   :  { %7446 = vmatpush1.bf16.msra.mxu1 %v12622_v44  ;;  %7365 = vmatprep.subr.bf16.mxu0 %v12653_v9  ;;  %v12877_v44 = vcombine.high %v1964_v51, %v1980_v38  ;;  %v12879_v9 = vcombine.high %v1965_v39, %v1981_v40  ;;  %v1182_v51 = vld [vmem:[#allocation9 + $0x5a0] sm:$0xff]  ;;  %v1167_v38 = vld [vmem:[#allocation9 + $0x528] sm:$0xff] }
 0x26f   :  { %7447 = vmatprep.subr.bf16.mxu1 %v12655_v52  ;;  %v1996_v52 = vld [vmem:[#allocation9 + $0x1f10] sm:$0xff] }
 0x270   :  { %v12908_v21 = vcombine.low %v1996_v52, %v2012_v11 }
 0x271   :  { %7366 = vmatpush1.bf16.msra.mxu0 %v12652_v14  ;;  %v12878_v14 = vcombine.low %v1965_v39, %v1981_v40  ;;  %v1183_v39 = vld [vmem:[#allocation9 + $0x5a8] sm:$0xff] }
 0x272   :  { %7448 = vmatpush1.bf16.msra.mxu1 %v12654_v15  ;;  %7367 = vmatprep.subr.bf16.mxu0 %v12685_v16  ;;  %v12909_v15 = vcombine.high %v1996_v52, %v2012_v11  ;;  %v12911_v16 = vcombine.high %v1997_v10, %v2013_v12  ;;  %v1214_v52 = vld [vmem:[#allocation9 + $0x6a0] sm:$0xff]  ;;  %v1199_v11 = vld [vmem:[#allocation9 + $0x628] sm:$0xff] }
 0x273   :  { %7449 = vmatprep.subr.bf16.mxu1 %v12687_v17  ;;  %v1006_v17 = vld [vmem:[#allocation9 + $0x20] sm:$0xff] }
 0x274   :  { %v11920_v30 = vcombine.low %v1006_v17, %v1022_v18 }
 0x275   :  { %7368 = vmatpush1.bf16.msra.mxu0 %v12684_v23  ;;  %v12910_v23 = vcombine.low %v1997_v10, %v2013_v12  ;;  %v1215_v10 = vld [vmem:[#allocation9 + $0x6a8] sm:$0xff] }
 0x276   :  { %7450 = vmatpush1.bf16.msra.mxu1 %v12686_v24  ;;  %7369 = vmatprep.subr.bf16.mxu0 %v12717_v25  ;;  %v11921_v24 = vcombine.high %v1006_v17, %v1022_v18  ;;  %v11923_v25 = vcombine.high %v1007_v19, %v1023_v20  ;;  %v1246_v17 = vld [vmem:[#allocation9 + $0x7a0] sm:$0xff]  ;;  %v1231_v18 = vld [vmem:[#allocation9 + $0x728] sm:$0xff] }
 0x277   :  { %7451 = vmatprep.subr.bf16.mxu1 %v12719_v26  ;;  %v1038_v26 = vld [vmem:[#allocation9 + $0x120] sm:$0xff] }
 0x278   :  { %v11952_v54 = vcombine.low %v1038_v26, %v1054_v27 }
 0x279   :  { %7370 = vmatpush1.bf16.msra.mxu0 %v12716_v34  ;;  %v11922_v34 = vcombine.low %v1007_v19, %v1023_v20  ;;  %v1247_v19 = vld [vmem:[#allocation9 + $0x7a8] sm:$0xff] }
 0x27a   :  { %7452 = vmatpush1.bf16.msra.mxu1 %v12718_v36  ;;  %7371 = vmatprep.subr.bf16.mxu0 %v12749_v37  ;;  %v11953_v36 = vcombine.high %v1038_v26, %v1054_v27  ;;  %v1070_v37 = vld [vmem:[#allocation9 + $0x220] sm:$0xff]  ;;  %v1263_v27 = vld [vmem:[#allocation9 + $0x828] sm:$0xff] }
 0x27b   :  { %7453 = vmatprep.subr.bf16.mxu1 %v12751_v41  ;;  %v1086_v41 = vld [vmem:[#allocation9 + $0x2a0] sm:$0xff] }
 0x27c   :  { %v11984_v28 = vcombine.low %v1070_v37, %v1086_v41  ;;  %v1278_v26 = vld [vmem:[#allocation9 + $0x8a0] sm:$0xff] }
 0x27d   :  { %7372 = vmatpush1.bf16.msra.mxu0 %v12748_v47  ;;  %v11954_v47 = vcombine.low %v1039_v31, %v1055_v33  ;;  %v12146_v33 = vcombine.low %v1231_v18, %v1247_v19 }
 0x27e   :  { %7454 = vmatpush1.bf16.msra.mxu1 %v12750_v55  ;;  %7373 = vmatprep.subr.bf16.mxu0 %v12781_v56  ;;  %v11985_v55 = vcombine.high %v1070_v37, %v1086_v41  ;;  %v11987_v56 = vcombine.high %v1071_v46, %v1087_v53  ;;  %v1294_v37 = vld [vmem:[#allocation9 + $0x920] sm:$0xff] }
 0x27f   :  { %7455 = vmatprep.subr.bf16.mxu1 %v12783_v57  ;;  %v1102_v57 = vld [vmem:[#allocation9 + $0x320] sm:$0xff] }
 0x280   :  { %v12016_v48 = vcombine.low %v1102_v57, %v1118_v58  ;;  %v1310_v41 = vld [vmem:[#allocation9 + $0x9a0] sm:$0xff] }
 0x281   :  { %7374 = vmatpush1.bf16.msra.mxu0 %v12780_v32  ;;  %v11986_v32 = vcombine.low %v1071_v46, %v1087_v53  ;;  %v1311_v46 = vld [vmem:[#allocation9 + $0x9a8] sm:$0xff] }
 0x282   :  { %7456 = vmatpush1.bf16.msra.mxu1 %v12782_v62  ;;  %7375 = vmatprep.subr.bf16.mxu0 %v12813_v63  ;;  %v12017_v62 = vcombine.high %v1102_v57, %v1118_v58  ;;  %v12019_v63 = vcombine.high %v1103_v59, %v1119_v60  ;;  %v1342_v57 = vld [vmem:[#allocation9 + $0xaa0] sm:$0xff]  ;;  %v1327_v58 = vld [vmem:[#allocation9 + $0xa28] sm:$0xff] }
 0x283   :  { %7457 = vmatprep.subr.bf16.mxu1 %v12815_v35  ;;  %v1134_v35 = vld [vmem:[#allocation9 + $0x420] sm:$0xff] }
 0x284   :  { %v12048_v40 = vcombine.low %v1134_v35, %v1150_v2 }
 0x285   :  { %7376 = vmatpush1.bf16.msra.mxu0 %v12812_v6  ;;  %v12018_v6 = vcombine.low %v1103_v59, %v1119_v60  ;;  %v1343_v59 = vld [vmem:[#allocation9 + $0xaa8] sm:$0xff]  ;;  %v12208_v60 = vcombine.low %v1294_v37, %v1310_v41 }
 0x286   :  { %7458 = vmatpush1.bf16.msra.mxu1 %v12814_v50  ;;  %7377 = vmatprep.subr.bf16.mxu0 %v12845_v7  ;;  %v12049_v50 = vcombine.high %v1134_v35, %v1150_v2  ;;  %v12051_v7 = vcombine.high %v1135_v3, %v1151_v5  ;;  %v1374_v35 = vld [vmem:[#allocation9 + $0xba0] sm:$0xff]  ;;  %v1359_v2 = vld [vmem:[#allocation9 + $0xb28] sm:$0xff] }
 0x287   :  { %7459 = vmatprep.subr.bf16.mxu1 %v12847_v49  ;;  %v1166_v49 = vld [vmem:[#allocation9 + $0x520] sm:$0xff] }
 0x288   :  { %v12080_v12 = vcombine.low %v1166_v49, %v1182_v51 }
 0x289   :  { %7378 = vmatpush1.bf16.msra.mxu0 %v12844_v42  ;;  %v12050_v42 = vcombine.low %v1135_v3, %v1151_v5  ;;  %v1375_v3 = vld [vmem:[#allocation9 + $0xba8] sm:$0xff] }
 0x28a   :  { %7460 = vmatpush1.bf16.msra.mxu1 %v12846_v43  ;;  %7379 = vmatprep.subr.bf16.mxu0 %v12877_v44  ;;  %v12081_v43 = vcombine.high %v1166_v49, %v1182_v51  ;;  %v12083_v44 = vcombine.high %v1167_v38, %v1183_v39  ;;  %v1406_v49 = vld [vmem:[#allocation9 + $0xca0] sm:$0xff]  ;;  %v1391_v51 = vld [vmem:[#allocation9 + $0xc28] sm:$0xff] }
 0x28b   :  { %7461 = vmatprep.subr.bf16.mxu1 %v12879_v9  ;;  %v1198_v9 = vld [vmem:[#allocation9 + $0x620] sm:$0xff] }
 0x28c   :  { %v12112_v20 = vcombine.low %v1198_v9, %v1214_v52 }
 0x28d   :  { %7380 = vmatpush1.bf16.msra.mxu0 %v12876_v13  ;;  %v12082_v13 = vcombine.low %v1167_v38, %v1183_v39  ;;  %v1407_v38 = vld [vmem:[#allocation9 + $0xca8] sm:$0xff] }
 0x28e   :  { %7462 = vmatpush1.bf16.msra.mxu1 %v12878_v14  ;;  %7381 = vmatprep.subr.bf16.mxu0 %v12909_v15  ;;  %v12113_v14 = vcombine.high %v1198_v9, %v1214_v52  ;;  %v12115_v15 = vcombine.high %v1199_v11, %v1215_v10  ;;  %v1438_v9 = vld [vmem:[#allocation9 + $0xda0] sm:$0xff]  ;;  %v1423_v52 = vld [vmem:[#allocation9 + $0xd28] sm:$0xff] }
 0x28f   :  { %7463 = vmatprep.subr.bf16.mxu1 %v12911_v16  ;;  %v1230_v16 = vld [vmem:[#allocation9 + $0x720] sm:$0xff] }
 0x290   :  { %v12144_v31 = vcombine.low %v1230_v16, %v1246_v17 }
 0x291   :  { %7382 = vmatpush1.bf16.msra.mxu0 %v12908_v21  ;;  %v12114_v21 = vcombine.low %v1199_v11, %v1215_v10  ;;  %v1439_v11 = vld [vmem:[#allocation9 + $0xda8] sm:$0xff] }
 0x292   :  { %7464 = vmatpush1.bf16.msra.mxu1 %v12910_v23  ;;  %7474 = vmatprep.subr.bf16.mxu0 %v11921_v24  ;;  %v12145_v23 = vcombine.high %v1230_v16, %v1246_v17  ;;  %v12147_v24 = vcombine.high %v1231_v18, %v1247_v19  ;;  %v1470_v16 = vld [vmem:[#allocation9 + $0xea0] sm:$0xff]  ;;  %v1455_v17 = vld [vmem:[#allocation9 + $0xe28] sm:$0xff] }
 0x293   :  { %7556 = vmatprep.subr.bf16.mxu1 %v11923_v25  ;;  %v1262_v25 = vld [vmem:[#allocation9 + $0x820] sm:$0xff]  ;;  %v1471_v18 = vld [vmem:[#allocation9 + $0xea8] sm:$0xff] }
 0x294   :  { %7384 = vmatmul.mubr.bf16.vlgmr.msra.gmra.mrb[24].mxu0 %v14179_v8  ;;  %v12176_v53 = vcombine.low %v1262_v25, %v1278_v26 }
 0x295   :  { %7466 = vmatmul.mubr.bf16.vlgmr.msra.gmra.mrb[16].mxu1 %v14179_v8  ;;  %7475 = vmatpush1.bf16.msra.mxu0 %v11920_v30  ;;  %v1279_v30 = vld [vmem:[#allocation9 + $0x8a8] sm:$0xff] }
 0x296   :  { %7506 = vmatprep.mubr.bf16.mxu0 %v14159_v61  ;;  %7557 = vmatpush1.bf16.msra.mxu1 %v11922_v34  ;;  %v12177_v34 = vcombine.high %v1262_v25, %v1278_v26  ;;  %v1502_v25 = vld [vmem:[#allocation9 + $0xfa0] sm:$0xff]  ;;  %v1487_v26 = vld [vmem:[#allocation9 + $0xf28] sm:$0xff] }
 0x297   :  { %7588 = vmatprep.mubr.bf16.mxu1 %v14159_v61  ;;  %7476 = vmatprep.subr.bf16.mxu0 %v11953_v36  ;;  %v12179_v36 = vcombine.high %v1263_v27, %v1279_v30 }
 0x298   :  { %7558 = vmatprep.subr.bf16.mxu1 %v11955_v45  ;;  %v1295_v45 = vld [vmem:[#allocation9 + $0x928] sm:$0xff] }
 0x299   :  { %7477 = vmatpush1.bf16.msra.mxu0 %v11952_v54  ;;  %v12178_v54 = vcombine.low %v1263_v27, %v1279_v30  ;;  %v1503_v27 = vld [vmem:[#allocation9 + $0xfa8] sm:$0xff] }
 0x29a   :  { %7559 = vmatpush1.bf16.msra.mxu1 %v11954_v47  ;;  %7478 = vmatprep.subr.bf16.mxu0 %v11985_v55  ;;  %v12209_v47 = vcombine.high %v1294_v37, %v1310_v41  ;;  %v12211_v55 = vcombine.high %v1295_v45, %v1311_v46  ;;  %v1534_v37 = vld [vmem:[#allocation9 + $0x10a0] sm:$0xff]  ;;  %v1519_v41 = vld [vmem:[#allocation9 + $0x1028] sm:$0xff] }
 0x29b   :  { %7560 = vmatprep.subr.bf16.mxu1 %v11987_v56  ;;  %v1326_v56 = vld [vmem:[#allocation9 + $0xa20] sm:$0xff] }
 0x29c   :  { %v12240_v5 = vcombine.low %v1326_v56, %v1342_v57 }
 0x29d   :  { %7479 = vmatpush1.bf16.msra.mxu0 %v11984_v28  ;;  %v12210_v28 = vcombine.low %v1295_v45, %v1311_v46  ;;  %v1535_v45 = vld [vmem:[#allocation9 + $0x10a8] sm:$0xff] }
 0x29e   :  { %7561 = vmatpush1.bf16.msra.mxu1 %v11986_v32  ;;  %7480 = vmatprep.subr.bf16.mxu0 %v12017_v62  ;;  %v12241_v32 = vcombine.high %v1326_v56, %v1342_v57  ;;  %v12243_v62 = vcombine.high %v1327_v58, %v1343_v59  ;;  %v1566_v56 = vld [vmem:[#allocation9 + $0x11a0] sm:$0xff] }
 0x29f   :  { %7562 = vmatprep.subr.bf16.mxu1 %v12019_v63  ;;  %v1358_v63 = vld [vmem:[#allocation9 + $0xb20] sm:$0xff] }
 0x2a0   :  { %v12272_v39 = vcombine.low %v1358_v63, %v1374_v35 }
 0x2a1   :  { %7481 = vmatpush1.bf16.msra.mxu0 %v12016_v48  ;;  %v12242_v48 = vcombine.low %v1327_v58, %v1343_v59  ;;  %v1551_v58 = vld [vmem:[#allocation9 + $0x1128] sm:$0xff] }
 0x2a2   :  { %7563 = vmatpush1.bf16.msra.mxu1 %v12018_v6  ;;  %7482 = vmatprep.subr.bf16.mxu0 %v12049_v50  ;;  %v12273_v6 = vcombine.high %v1358_v63, %v1374_v35  ;;  %v12275_v50 = vcombine.high %v1359_v2, %v1375_v3  ;;  %v1567_v59 = vld [vmem:[#allocation9 + $0x11a8] sm:$0xff] }
 0x2a3   :  { %7564 = vmatprep.subr.bf16.mxu1 %v12051_v7  ;;  %v1390_v7 = vld [vmem:[#allocation9 + $0xc20] sm:$0xff]  ;;  %v12467_v63 = vcombine.high %v1551_v58, %v1567_v59  ;;  %v1583_v35 = vld [vmem:[#allocation9 + $0x1228] sm:$0xff] }
 0x2a4   :  { %v12304_v10 = vcombine.low %v1390_v7, %v1406_v49 }
 0x2a5   :  { %7483 = vmatpush1.bf16.msra.mxu0 %v12048_v40  ;;  %v12274_v40 = vcombine.low %v1359_v2, %v1375_v3  ;;  %v1599_v2 = vld [vmem:[#allocation9 + $0x12a8] sm:$0xff] }
 0x2a6   :  { %7565 = vmatpush1.bf16.msra.mxu1 %v12050_v42  ;;  %7484 = vmatprep.subr.bf16.mxu0 %v12081_v43  ;;  %v12305_v42 = vcombine.high %v1390_v7, %v1406_v49  ;;  %v12307_v43 = vcombine.high %v1391_v51, %v1407_v38  ;;  %v1630_v7 = vld [vmem:[#allocation9 + $0x13a0] sm:$0xff]  ;;  %v1615_v49 = vld [vmem:[#allocation9 + $0x1328] sm:$0xff] }
 0x2a7   :  { %7566 = vmatprep.subr.bf16.mxu1 %v12083_v44  ;;  %v1422_v44 = vld [vmem:[#allocation9 + $0xd20] sm:$0xff] }
 0x2a8   :  { %v12336_v19 = vcombine.low %v1422_v44, %v1438_v9 }
 0x2a9   :  { %7485 = vmatpush1.bf16.msra.mxu0 %v12080_v12  ;;  %v12306_v12 = vcombine.low %v1391_v51, %v1407_v38  ;;  %v1631_v51 = vld [vmem:[#allocation9 + $0x13a8] sm:$0xff] }
 0x2aa   :  { %7567 = vmatpush1.bf16.msra.mxu1 %v12082_v13  ;;  %7486 = vmatprep.subr.bf16.mxu0 %v12113_v14  ;;  %v12337_v13 = vcombine.high %v1422_v44, %v1438_v9  ;;  %v12339_v14 = vcombine.high %v1423_v52, %v1439_v11  ;;  %v1662_v44 = vld [vmem:[#allocation9 + $0x14a0] sm:$0xff]  ;;  %v1647_v9 = vld [vmem:[#allocation9 + $0x1428] sm:$0xff] }
 0x2ab   :  { %7568 = vmatprep.subr.bf16.mxu1 %v12115_v15  ;;  %v1454_v15 = vld [vmem:[#allocation9 + $0xe20] sm:$0xff] }
 0x2ac   :  { %v12368_v30 = vcombine.low %v1454_v15, %v1470_v16 }
 0x2ad   :  { %7487 = vmatpush1.bf16.msra.mxu0 %v12112_v20  ;;  %v12338_v20 = vcombine.low %v1423_v52, %v1439_v11  ;;  %v1663_v52 = vld [vmem:[#allocation9 + $0x14a8] sm:$0xff] }
 0x2ae   :  { %7569 = vmatpush1.bf16.msra.mxu1 %v12114_v21  ;;  %7488 = vmatprep.subr.bf16.mxu0 %v12145_v23  ;;  %v12369_v21 = vcombine.high %v1454_v15, %v1470_v16  ;;  %v12371_v23 = vcombine.high %v1455_v17, %v1471_v18  ;;  %v1694_v15 = vld [vmem:[#allocation9 + $0x15a0] sm:$0xff]  ;;  %v1679_v16 = vld [vmem:[#allocation9 + $0x1528] sm:$0xff] }
 0x2af   :  { %7570 = vmatprep.subr.bf16.mxu1 %v12147_v24  ;;  %v1486_v24 = vld [vmem:[#allocation9 + $0xf20] sm:$0xff] }
 0x2b0   :  { %v12400_v46 = vcombine.low %v1486_v24, %v1502_v25 }
 0x2b1   :  { %7489 = vmatpush1.bf16.msra.mxu0 %v12144_v31  ;;  %v12370_v31 = vcombine.low %v1455_v17, %v1471_v18  ;;  %v1695_v17 = vld [vmem:[#allocation9 + $0x15a8] sm:$0xff] }
 0x2b2   :  { %7571 = vmatpush1.bf16.msra.mxu1 %v12146_v33  ;;  %7490 = vmatprep.subr.bf16.mxu0 %v12177_v34  ;;  %v12401_v33 = vcombine.high %v1486_v24, %v1502_v25  ;;  %v12403_v34 = vcombine.high %v1487_v26, %v1503_v27  ;;  %v1726_v24 = vld [vmem:[#allocation9 + $0x16a0] sm:$0xff]  ;;  %v1711_v25 = vld [vmem:[#allocation9 + $0x1628] sm:$0xff] }
 0x2b3   :  { %7572 = vmatprep.subr.bf16.mxu1 %v12179_v36  ;;  %v1518_v36 = vld [vmem:[#allocation9 + $0x1020] sm:$0xff] }
 0x2b4   :  { %v12432_v57 = vcombine.low %v1518_v36, %v1534_v37 }
 0x2b5   :  { %7491 = vmatpush1.bf16.msra.mxu0 %v12176_v53  ;;  %v12402_v53 = vcombine.low %v1487_v26, %v1503_v27  ;;  %v1727_v26 = vld [vmem:[#allocation9 + $0x16a8] sm:$0xff] }
 0x2b6   :  { %7573 = vmatpush1.bf16.msra.mxu1 %v12178_v54  ;;  %7492 = vmatprep.subr.bf16.mxu0 %v12209_v47  ;;  %v12433_v54 = vcombine.high %v1518_v36, %v1534_v37  ;;  %v12435_v47 = vcombine.high %v1519_v41, %v1535_v45  ;;  %v12627_v36 = vcombine.high %v1711_v25, %v1727_v26  ;;  %v1742_v37 = vld [vmem:[#allocation9 + $0x1720] sm:$0xff] }
 0x2b7   :  { %7574 = vmatprep.subr.bf16.mxu1 %v12211_v55  ;;  %v1550_v55 = vld [vmem:[#allocation9 + $0x1120] sm:$0xff] }
 0x2b8   :  { %v12464_v3 = vcombine.low %v1550_v55, %v1566_v56 }
 0x2b9   :  { %7493 = vmatpush1.bf16.msra.mxu0 %v12208_v60  ;;  %v12434_v60 = vcombine.low %v1519_v41, %v1535_v45  ;;  %v1758_v41 = vld [vmem:[#allocation9 + $0x17a0] sm:$0xff] }
 0x2ba   :  { %7575 = vmatpush1.bf16.msra.mxu1 %v12210_v28  ;;  %7494 = vmatprep.subr.bf16.mxu0 %v12241_v32  ;;  %v12465_v28 = vcombine.high %v1550_v55, %v1566_v56  ;;  %v1582_v32 = vld [vmem:[#allocation9 + $0x1220] sm:$0xff] }
 0x2bb   :  { %7576 = vmatprep.subr.bf16.mxu1 %v12243_v62  ;;  %v1598_v62 = vld [vmem:[#allocation9 + $0x12a0] sm:$0xff] }
 0x2bc   :  { %v12496_v38 = vcombine.low %v1582_v32, %v1598_v62 }
 0x2bd   :  { %7495 = vmatpush1.bf16.msra.mxu0 %v12240_v5  ;;  %v12466_v5 = vcombine.low %v1551_v58, %v1567_v59 }
 0x2be   :  { %7577 = vmatpush1.bf16.msra.mxu1 %v12242_v48  ;;  %7496 = vmatprep.subr.bf16.mxu0 %v12273_v6  ;;  %v12497_v48 = vcombine.high %v1582_v32, %v1598_v62  ;;  %v12499_v6 = vcombine.high %v1583_v35, %v1599_v2  ;;  %v12657_v32 = vcombine.high %v1742_v37, %v1758_v41 }
 0x2bf   :  { %7578 = vmatprep.subr.bf16.mxu1 %v12275_v50  ;;  %v1614_v50 = vld [vmem:[#allocation9 + $0x1320] sm:$0xff] }
 0x2c0   :  { %v12528_v11 = vcombine.low %v1614_v50, %v1630_v7 }
 0x2c1   :  { %7497 = vmatpush1.bf16.msra.mxu0 %v12272_v39  ;;  %v12498_v39 = vcombine.low %v1583_v35, %v1599_v2  ;;  %v1790_v35 = vld [vmem:[#allocation9 + $0x18a0] sm:$0xff]  ;;  %v1775_v2 = vld [vmem:[#allocation9 + $0x1828] sm:$0xff] }
 0x2c2   :  { %7579 = vmatpush1.bf16.msra.mxu1 %v12274_v40  ;;  %7498 = vmatprep.subr.bf16.mxu0 %v12305_v42  ;;  %v12529_v40 = vcombine.high %v1614_v50, %v1630_v7  ;;  %v12531_v42 = vcombine.high %v1615_v49, %v1631_v51  ;;  %v1806_v7 = vld [vmem:[#allocation9 + $0x1920] sm:$0xff] }
 0x2c3   :  { %7580 = vmatprep.subr.bf16.mxu1 %v12307_v43  ;;  %v1646_v43 = vld [vmem:[#allocation9 + $0x1420] sm:$0xff] }
 0x2c4   :  { %v12560_v18 = vcombine.low %v1646_v43, %v1662_v44 }
 0x2c5   :  { %7499 = vmatpush1.bf16.msra.mxu0 %v12304_v10  ;;  %v12530_v10 = vcombine.low %v1615_v49, %v1631_v51  ;;  %v1822_v49 = vld [vmem:[#allocation9 + $0x19a0] sm:$0xff]  ;;  %v1807_v51 = vld [vmem:[#allocation9 + $0x1928] sm:$0xff] }
 0x2c6   :  { %7581 = vmatpush1.bf16.msra.mxu1 %v12306_v12  ;;  %7500 = vmatprep.subr.bf16.mxu0 %v12337_v13  ;;  %v12561_v12 = vcombine.high %v1646_v43, %v1662_v44  ;;  %v12563_v13 = vcombine.high %v1647_v9, %v1663_v52  ;;  %v1838_v44 = vld [vmem:[#allocation9 + $0x1a20] sm:$0xff] }
 0x2c7   :  { %7582 = vmatprep.subr.bf16.mxu1 %v12339_v14  ;;  %v1678_v14 = vld [vmem:[#allocation9 + $0x1520] sm:$0xff] }
 0x2c8   :  { %v12592_v27 = vcombine.low %v1678_v14, %v1694_v15 }
 0x2c9   :  { %7501 = vmatpush1.bf16.msra.mxu0 %v12336_v19  ;;  %v12562_v19 = vcombine.low %v1647_v9, %v1663_v52  ;;  %v1854_v9 = vld [vmem:[#allocation9 + $0x1aa0] sm:$0xff]  ;;  %v1839_v52 = vld [vmem:[#allocation9 + $0x1a28] sm:$0xff] }
 0x2ca   :  { %7583 = vmatpush1.bf16.msra.mxu1 %v12338_v20  ;;  %7502 = vmatprep.subr.bf16.mxu0 %v12369_v21  ;;  %v12593_v20 = vcombine.high %v1678_v14, %v1694_v15  ;;  %v12595_v21 = vcombine.high %v1679_v16, %v1695_v17  ;;  %v1870_v15 = vld [vmem:[#allocation9 + $0x1b20] sm:$0xff] }
 0x2cb   :  { %7584 = vmatprep.subr.bf16.mxu1 %v12371_v23  ;;  %v1710_v23 = vld [vmem:[#allocation9 + $0x1620] sm:$0xff] }
 0x2cc   :  { %v12624_v58 = vcombine.low %v1710_v23, %v1726_v24 }
 0x2cd   :  { %7503 = vmatpush1.bf16.msra.mxu0 %v12368_v30  ;;  %v12594_v30 = vcombine.low %v1679_v16, %v1695_v17  ;;  %v1886_v16 = vld [vmem:[#allocation9 + $0x1ba0] sm:$0xff]  ;;  %v1871_v17 = vld [vmem:[#allocation9 + $0x1b28] sm:$0xff] }
 0x2ce   :  { %7585 = vmatpush1.bf16.msra.mxu1 %v12370_v31  ;;  %7504 = vmatprep.subr.bf16.mxu0 %v12401_v33  ;;  %v12625_v31 = vcombine.high %v1710_v23, %v1726_v24  ;;  %v1902_v24 = vld [vmem:[#allocation9 + $0x1c20] sm:$0xff] }
 0x2cf   :  { %7586 = vmatprep.subr.bf16.mxu1 %v12403_v34 }
 0x2d1   :  { %7505 = vmatpush1.bf16.msra.mxu0 %v12400_v46 }
 0x2d2   :  { %7587 = vmatpush1.bf16.msra.mxu1 %v12402_v53  ;;  %7515 = vmatprep.subr.bf16.mxu0 %v12433_v54  ;;  %v1743_v54 = vld [vmem:[#allocation9 + $0x1728] sm:$0xff] }
 0x2d3   :  { %7597 = vmatprep.subr.bf16.mxu1 %v12435_v47  ;;  %v1759_v47 = vld [vmem:[#allocation9 + $0x17a8] sm:$0xff] }
 0x2d4   :  { %7507 = vmatmul.mubr.bf16.vlgmr.msra.gmra.mrb[28].mxu0 %v14161_v1  ;;  %v12659_v62 = vcombine.high %v1743_v54, %v1759_v47 }
 0x2d5   :  { %7589 = vmatmul.mubr.bf16.vlgmr.msra.gmra.mrb[20].mxu1 %v14161_v1  ;;  %7516 = vmatpush1.bf16.msra.mxu0 %v12432_v57 }
 0x2d6   :  { %7547 = vmatprep.mubr.bf16.mxu0 %v14165_v4  ;;  %7598 = vmatpush1.bf16.msra.mxu1 %v12434_v60 }
 0x2d7   :  { %7629 = vmatprep.mubr.bf16.mxu1 %v14165_v4  ;;  %7517 = vmatprep.subr.bf16.mxu0 %v12465_v28  ;;  %v12626_v28 = vcombine.low %v1711_v25, %v1727_v26  ;;  %v1918_v25 = vld [vmem:[#allocation9 + $0x1ca0] sm:$0xff]  ;;  %v1903_v26 = vld [vmem:[#allocation9 + $0x1c28] sm:$0xff] }
 0x2d8   :  { %7599 = vmatprep.subr.bf16.mxu1 %v12467_v63  ;;  %v1774_v63 = vld [vmem:[#allocation9 + $0x1820] sm:$0xff] }
 0x2d9   :  { %7518 = vmatpush1.bf16.msra.mxu0 %v12464_v3  ;;  %v1791_v3 = vld [vmem:[#allocation9 + $0x18a8] sm:$0xff] }
 0x2da   :  { %7600 = vmatpush1.bf16.msra.mxu1 %v12466_v5  ;;  %7519 = vmatprep.subr.bf16.mxu0 %v12497_v48  ;;  %v12656_v5 = vcombine.low %v1742_v37, %v1758_v41  ;;  %v12658_v48 = vcombine.low %v1743_v54, %v1759_v47  ;;  %v12691_v50 = vcombine.high %v1775_v2, %v1791_v3  ;;  %v1934_v41 = vld [vmem:[#allocation9 + $0x1d20] sm:$0xff]  ;;  %v1935_v47 = vld [vmem:[#allocation9 + $0x1d28] sm:$0xff] }
 0x2db   :  { %7601 = vmatprep.subr.bf16.mxu1 %v12499_v6  ;;  %v12689_v6 = vcombine.high %v1774_v63, %v1790_v35  ;;  %v1950_v54 = vld [vmem:[#allocation9 + $0x1da0] sm:$0xff] }
 0x2dd   :  { %7520 = vmatpush1.bf16.msra.mxu0 %v12496_v38  ;;  %v1823_v38 = vld [vmem:[#allocation9 + $0x19a8] sm:$0xff] }
 0x2de   :  { %7602 = vmatpush1.bf16.msra.mxu1 %v12498_v39  ;;  %7521 = vmatprep.subr.bf16.mxu0 %v12529_v40  ;;  %v12688_v39 = vcombine.low %v1774_v63, %v1790_v35  ;;  %v12690_v40 = vcombine.low %v1775_v2, %v1791_v3  ;;  %v12723_v43 = vcombine.high %v1807_v51, %v1823_v38  ;;  %v1983_v63 = vld [vmem:[#allocation9 + $0x1ea8] sm:$0xff] }
 0x2df   :  { %7603 = vmatprep.subr.bf16.mxu1 %v12531_v42  ;;  %v12721_v42 = vcombine.high %v1806_v7, %v1822_v49  ;;  %v12848_v35 = vcombine.low %v1934_v41, %v1950_v54 }
 0x2e1   :  { %7522 = vmatpush1.bf16.msra.mxu0 %v12528_v11  ;;  %v1855_v11 = vld [vmem:[#allocation9 + $0x1aa8] sm:$0xff] }
 0x2e2   :  { %7604 = vmatpush1.bf16.msra.mxu1 %v12530_v10  ;;  %7523 = vmatprep.subr.bf16.mxu0 %v12561_v12  ;;  %v12720_v10 = vcombine.low %v1806_v7, %v1822_v49  ;;  %v12722_v12 = vcombine.low %v1807_v51, %v1823_v38  ;;  %v12755_v14 = vcombine.high %v1839_v52, %v1855_v11  ;;  %v2015_v7 = vld [vmem:[#allocation9 + $0x1fa8] sm:$0xff] }
 0x2e3   :  { %7605 = vmatprep.subr.bf16.mxu1 %v12563_v13  ;;  %v12753_v13 = vcombine.high %v1838_v44, %v1854_v9 }
 0x2e5   :  { %7524 = vmatpush1.bf16.msra.mxu0 %v12560_v18  ;;  %v1887_v18 = vld [vmem:[#allocation9 + $0x1ba8] sm:$0xff] }
 0x2e6   :  { %7606 = vmatpush1.bf16.msra.mxu1 %v12562_v19  ;;  %7525 = vmatprep.subr.bf16.mxu0 %v12593_v20  ;;  %v12752_v19 = vcombine.low %v1838_v44, %v1854_v9  ;;  %v12754_v20 = vcombine.low %v1839_v52, %v1855_v11  ;;  %v12787_v23 = vcombine.high %v1871_v17, %v1887_v18  ;;  %v1025_v44 = vld [vmem:[#allocation9 + $0xb8] sm:$0xff] }
 0x2e7   :  { %v14197_v33 = vpop.f32.mrb[20].mxu0  ;;  %v14199_v34 = vpop.f32.mrb[12].mxu1  ;;  %7607 = vmatprep.subr.bf16.mxu1 %v12595_v21  ;;  %v12785_v21 = vcombine.high %v1870_v15, %v1886_v16 }
 0x2e8   :  { %v8458_v45 = vpack.c.bf16 %v14199_v34, %v14197_v33  ;;  %v14203_v46 = vpop.f32.mrb[21].mxu0  ;;  %v14205_v53 = vpop.f32.mrb[13].mxu1 }
 0x2e9   :  { %v8459_v55 = vpack.c.bf16 %v14205_v53, %v14203_v46  ;;  %v7225_v56 = vpop.f32.mrb[22].mxu0  ;;  %v7307_v57 = vpop.f32.mrb[14].mxu1  ;;  %7526 = vmatpush1.bf16.msra.mxu0 %v12592_v27  ;;  %v1919_v27 = vld [vmem:[#allocation9 + $0x1ca8] sm:$0xff] }
 0x2ea   :  { %7608 = vmatpush1.bf16.msra.mxu1 %v12594_v30  ;;  %v7226_v59 = vpop.f32.mrb[23].mxu0  ;;  %v7308_v60 = vpop.f32.mrb[15].mxu1  ;;  %7527 = vmatprep.subr.bf16.mxu0 %v12625_v31  ;;  %v12784_v30 = vcombine.low %v1870_v15, %v1886_v16  ;;  %v12786_v31 = vcombine.low %v1871_v17, %v1887_v18  ;;  %v12819_v37 = vcombine.high %v1903_v26, %v1919_v27  ;;  %v1951_v56 = vld [vmem:[#allocation9 + $0x1da8] sm:$0xff]  ;;  %v1041_v15 = vld [vmem:[#allocation9 + $0x138] sm:$0xff] }
 0x2eb   :  { %7609 = vmatprep.subr.bf16.mxu1 %v12627_v36  ;;  %v12817_v36 = vcombine.high %v1902_v24, %v1918_v25  ;;  %v12816_v57 = vcombine.low %v1902_v24, %v1918_v25  ;;  %v12849_v59 = vcombine.high %v1934_v41, %v1950_v54  ;;  %v12851_v60 = vcombine.high %v1935_v47, %v1951_v56  ;;  %v1057_v16 = vld [vmem:[#allocation9 + $0x1b8] sm:$0xff] }
 0x2ec   :  { %v12850_v2 = vcombine.low %v1935_v47, %v1951_v56  ;;  %v1089_v24 = vld [vmem:[#allocation9 + $0x2b8] sm:$0xff] }
 0x2ed   :  { %7528 = vmatpush1.bf16.msra.mxu0 %v12624_v58  ;;  %v12818_v58 = vcombine.low %v1903_v26, %v1919_v27  ;;  %v11958_v26 = vcombine.low %v1041_v15, %v1057_v16  ;;  %v1121_v41 = vld [vmem:[#allocation9 + $0x3b8] sm:$0xff] }
 0x2ee   :  { %7610 = vmatpush1.bf16.msra.mxu1 %v12626_v28  ;;  %7529 = vmatprep.subr.bf16.mxu0 %v12657_v32  ;;  %v1966_v28 = vld [vmem:[#allocation9 + $0x1e20] sm:$0xff] }
 0x2ef   :  { %7611 = vmatprep.subr.bf16.mxu1 %v12659_v62  ;;  %v1982_v32 = vld [vmem:[#allocation9 + $0x1ea0] sm:$0xff]  ;;  %v1967_v62 = vld [vmem:[#allocation9 + $0x1e28] sm:$0xff] }
 0x2f0   :  { %v12881_v3 = vcombine.high %v1966_v28, %v1982_v32  ;;  %v12880_v49 = vcombine.low %v1966_v28, %v1982_v32  ;;  %v12882_v51 = vcombine.low %v1967_v62, %v1983_v63  ;;  %v1153_v28 = vld [vmem:[#allocation9 + $0x4b8] sm:$0xff] }
 0x2f1   :  { %7530 = vmatpush1.bf16.msra.mxu0 %v12656_v5  ;;  %v12883_v5 = vcombine.high %v1967_v62, %v1983_v63 }
 0x2f2   :  { %7612 = vmatpush1.bf16.msra.mxu1 %v12658_v48  ;;  %7531 = vmatprep.subr.bf16.mxu0 %v12689_v6  ;;  %v1998_v48 = vld [vmem:[#allocation9 + $0x1f20] sm:$0xff] }
 0x2f3   :  { %7613 = vmatprep.subr.bf16.mxu1 %v12691_v50  ;;  %v2014_v6 = vld [vmem:[#allocation9 + $0x1fa0] sm:$0xff]  ;;  %v1999_v50 = vld [vmem:[#allocation9 + $0x1f28] sm:$0xff] }
 0x2f4   :  { %v12913_v38 = vcombine.high %v1998_v48, %v2014_v6  ;;  %v12912_v9 = vcombine.low %v1998_v48, %v2014_v6  ;;  %v12914_v52 = vcombine.low %v1999_v50, %v2015_v7  ;;  %v1185_v48 = vld [vmem:[#allocation9 + $0x5b8] sm:$0xff] }
 0x2f5   :  { %7532 = vmatpush1.bf16.msra.mxu0 %v12688_v39  ;;  %v12915_v39 = vcombine.high %v1999_v50, %v2015_v7 }
 0x2f6   :  { %7614 = vmatpush1.bf16.msra.mxu1 %v12690_v40  ;;  %7533 = vmatprep.subr.bf16.mxu0 %v12721_v42  ;;  %v1008_v40 = vld [vmem:[#allocation9 + $0x30] sm:$0xff] }
 0x2f7   :  { %7615 = vmatprep.subr.bf16.mxu1 %v12723_v43  ;;  %v1024_v42 = vld [vmem:[#allocation9 + $0xb0] sm:$0xff]  ;;  %v1009_v43 = vld [vmem:[#allocation9 + $0x38] sm:$0xff] }
 0x2f8   :  { %v11925_v11 = vcombine.high %v1008_v40, %v1024_v42  ;;  %v11926_v17 = vcombine.low %v1009_v43, %v1025_v44 }
 0x2f9   :  { %7534 = vmatpush1.bf16.msra.mxu0 %v12720_v10  ;;  %v11927_v10 = vcombine.high %v1009_v43, %v1025_v44 }
 0x2fa   :  { %7616 = vmatpush1.bf16.msra.mxu1 %v12722_v12  ;;  %7535 = vmatprep.subr.bf16.mxu0 %v12753_v13  ;;  %v1040_v12 = vld [vmem:[#allocation9 + $0x130] sm:$0xff] }
 0x2fb   :  { %7617 = vmatprep.subr.bf16.mxu1 %v12755_v14  ;;  %v1056_v13 = vld [vmem:[#allocation9 + $0x1b0] sm:$0xff]  ;;  %v11924_v14 = vcombine.low %v1008_v40, %v1024_v42  ;;  %v1217_v40 = vld [vmem:[#allocation9 + $0x6b8] sm:$0xff] }
 0x2fc   :  { %v11957_v18 = vcombine.high %v1040_v12, %v1056_v13  ;;  %v11956_v25 = vcombine.low %v1040_v12, %v1056_v13  ;;  %v1249_v12 = vld [vmem:[#allocation9 + $0x7b8] sm:$0xff] }
 0x2fd   :  { %7536 = vmatpush1.bf16.msra.mxu0 %v12752_v19  ;;  %v1072_v19 = vld [vmem:[#allocation9 + $0x230] sm:$0xff] }
 0x2fe   :  { %7618 = vmatpush1.bf16.msra.mxu1 %v12754_v20  ;;  %7537 = vmatprep.subr.bf16.mxu0 %v12785_v21  ;;  %v1088_v20 = vld [vmem:[#allocation9 + $0x2b0] sm:$0xff]  ;;  %v11959_v21 = vcombine.high %v1041_v15, %v1057_v16 }
 0x2ff   :  { %7619 = vmatprep.subr.bf16.mxu1 %v12787_v23  ;;  %v1073_v23 = vld [vmem:[#allocation9 + $0x238] sm:$0xff]  ;;  %v11989_v27 = vcombine.high %v1072_v19, %v1088_v20  ;;  %v11988_v54 = vcombine.low %v1072_v19, %v1088_v20 }
 0x300   :  { %v11990_v47 = vcombine.low %v1073_v23, %v1089_v24  ;;  %v1265_v19 = vld [vmem:[#allocation9 + $0x838] sm:$0xff] }
 0x301   :  { %7538 = vmatpush1.bf16.msra.mxu0 %v12784_v30  ;;  %v11991_v30 = vcombine.high %v1073_v23, %v1089_v24  ;;  %v1281_v20 = vld [vmem:[#allocation9 + $0x8b8] sm:$0xff] }
 0x302   :  { %7620 = vmatpush1.bf16.msra.mxu1 %v12786_v31  ;;  %7539 = vmatprep.subr.bf16.mxu0 %v12817_v36  ;;  %v1104_v31 = vld [vmem:[#allocation9 + $0x330] sm:$0xff] }
 0x303   :  { %7621 = vmatprep.subr.bf16.mxu1 %v12819_v37  ;;  %v1120_v36 = vld [vmem:[#allocation9 + $0x3b0] sm:$0xff]  ;;  %v1105_v37 = vld [vmem:[#allocation9 + $0x338] sm:$0xff] }
 0x304   :  { %v12021_v56 = vcombine.high %v1104_v31, %v1120_v36  ;;  %v12020_v32 = vcombine.low %v1104_v31, %v1120_v36  ;;  %v12022_v62 = vcombine.low %v1105_v37, %v1121_v41  ;;  %v1313_v31 = vld [vmem:[#allocation9 + $0x9b8] sm:$0xff] }
 0x305   :  { %7540 = vmatpush1.bf16.msra.mxu0 %v12816_v57  ;;  %v12023_v57 = vcombine.high %v1105_v37, %v1121_v41  ;;  %v12182_v37 = vcombine.low %v1265_v19, %v1281_v20 }
 0x306   :  { %7622 = vmatpush1.bf16.msra.mxu1 %v12818_v58  ;;  %7541 = vmatprep.subr.bf16.mxu0 %v12849_v59  ;;  %v1136_v58 = vld [vmem:[#allocation9 + $0x430] sm:$0xff] }
 0x307   :  { %7623 = vmatprep.subr.bf16.mxu1 %v12851_v60  ;;  %v1152_v59 = vld [vmem:[#allocation9 + $0x4b0] sm:$0xff]  ;;  %v1137_v60 = vld [vmem:[#allocation9 + $0x438] sm:$0xff] }
 0x308   :  { %v12053_v63 = vcombine.high %v1136_v58, %v1152_v59  ;;  %v12052_v6 = vcombine.low %v1136_v58, %v1152_v59  ;;  %v12054_v50 = vcombine.low %v1137_v60, %v1153_v28  ;;  %v1345_v58 = vld [vmem:[#allocation9 + $0xab8] sm:$0xff] }
 0x309   :  { %7542 = vmatpush1.bf16.msra.mxu0 %v12848_v35  ;;  %v12055_v35 = vcombine.high %v1137_v60, %v1153_v28 }
 0x30a   :  { %7624 = vmatpush1.bf16.msra.mxu1 %v12850_v2  ;;  %7543 = vmatprep.subr.bf16.mxu0 %v12881_v3  ;;  %v1168_v2 = vld [vmem:[#allocation9 + $0x530] sm:$0xff] }
 0x30b   :  { %7625 = vmatprep.subr.bf16.mxu1 %v12883_v5  ;;  %v1184_v3 = vld [vmem:[#allocation9 + $0x5b0] sm:$0xff]  ;;  %v1169_v5 = vld [vmem:[#allocation9 + $0x538] sm:$0xff] }
 0x30c   :  { %v12085_v7 = vcombine.high %v1168_v2, %v1184_v3  ;;  %v12084_v42 = vcombine.low %v1168_v2, %v1184_v3  ;;  %v12086_v43 = vcombine.low %v1169_v5, %v1185_v48  ;;  %v1377_v2 = vld [vmem:[#allocation9 + $0xbb8] sm:$0xff] }
 0x30d   :  { %7544 = vmatpush1.bf16.msra.mxu0 %v12880_v49  ;;  %v12087_v49 = vcombine.high %v1169_v5, %v1185_v48 }
 0x30e   :  { %7626 = vmatpush1.bf16.msra.mxu1 %v12882_v51  ;;  %7545 = vmatprep.subr.bf16.mxu0 %v12913_v38  ;;  %v1200_v51 = vld [vmem:[#allocation9 + $0x630] sm:$0xff] }
 0x30f   :  { %7627 = vmatprep.subr.bf16.mxu1 %v12915_v39  ;;  %v1216_v38 = vld [vmem:[#allocation9 + $0x6b0] sm:$0xff]  ;;  %v1201_v39 = vld [vmem:[#allocation9 + $0x638] sm:$0xff] }
 0x310   :  { %v12117_v44 = vcombine.high %v1200_v51, %v1216_v38  ;;  %v12116_v13 = vcombine.low %v1200_v51, %v1216_v38  ;;  %v1409_v51 = vld [vmem:[#allocation9 + $0xcb8] sm:$0xff] }
 0x311   :  { %7546 = vmatpush1.bf16.msra.mxu0 %v12912_v9  ;;  %v12119_v9 = vcombine.high %v1201_v39, %v1217_v40 }
 0x312   :  { %7628 = vmatpush1.bf16.msra.mxu1 %v12914_v52  ;;  %7638 = vmatprep.subr.bf16.mxu0 %v11925_v11  ;;  %v1232_v52 = vld [vmem:[#allocation9 + $0x730] sm:$0xff] }
 0x313   :  { %7720 = vmatprep.subr.bf16.mxu1 %v11927_v10  ;;  %v1248_v11 = vld [vmem:[#allocation9 + $0x7b0] sm:$0xff]  ;;  %v1233_v10 = vld [vmem:[#allocation9 + $0x738] sm:$0xff] }
 0x314   :  { %7548 = vmatmul.mubr.bf16.vlgmr.msra.gmra.mrb[28].mxu0 %v14179_v8  ;;  %v12149_v15 = vcombine.high %v1232_v52, %v1248_v11  ;;  %v12151_v16 = vcombine.high %v1233_v10, %v1249_v12  ;;  %v12150_v23 = vcombine.low %v1233_v10, %v1249_v12 }
 0x315   :  { %7630 = vmatmul.mubr.bf16.vlgmr.msra.gmra.mrb[20].mxu1 %v14179_v8  ;;  %7639 = vmatpush1.bf16.msra.mxu0 %v11924_v14  ;;  %v12118_v14 = vcombine.low %v1201_v39, %v1217_v40 }
 0x316   :  { %7670 = vmatprep.mubr.bf16.mxu0 %v14159_v61  ;;  %7721 = vmatpush1.bf16.msra.mxu1 %v11926_v17  ;;  %v1264_v17 = vld [vmem:[#allocation9 + $0x830] sm:$0xff] }
 0x317   :  { %7752 = vmatprep.mubr.bf16.mxu1 %v14159_v61  ;;  %7640 = vmatprep.subr.bf16.mxu0 %v11957_v18  ;;  %v1280_v18 = vld [vmem:[#allocation9 + $0x8b0] sm:$0xff] }
 0x318   :  { %7722 = vmatprep.subr.bf16.mxu1 %v11959_v21  ;;  %v12148_v21 = vcombine.low %v1232_v52, %v1248_v11  ;;  %v12181_v24 = vcombine.high %v1264_v17, %v1280_v18  ;;  %v12180_v36 = vcombine.low %v1264_v17, %v1280_v18  ;;  %v1441_v52 = vld [vmem:[#allocation9 + $0xdb8] sm:$0xff] }
 0x319   :  { %7641 = vmatpush1.bf16.msra.mxu0 %v11956_v25  ;;  %v12183_v25 = vcombine.high %v1265_v19, %v1281_v20  ;;  %v1473_v17 = vld [vmem:[#allocation9 + $0xeb8] sm:$0xff] }
 0x31a   :  { %7723 = vmatpush1.bf16.msra.mxu1 %v11958_v26  ;;  %7642 = vmatprep.subr.bf16.mxu0 %v11989_v27  ;;  %v1296_v26 = vld [vmem:[#allocation9 + $0x930] sm:$0xff] }
 0x31b   :  { %7724 = vmatprep.subr.bf16.mxu1 %v11991_v30  ;;  %v1312_v27 = vld [vmem:[#allocation9 + $0x9b0] sm:$0xff]  ;;  %v1297_v30 = vld [vmem:[#allocation9 + $0x938] sm:$0xff] }
 0x31c   :  { %v12213_v41 = vcombine.high %v1296_v26, %v1312_v27  ;;  %v12212_v59 = vcombine.low %v1296_v26, %v1312_v27  ;;  %v12214_v60 = vcombine.low %v1297_v30, %v1313_v31  ;;  %v1505_v26 = vld [vmem:[#allocation9 + $0xfb8] sm:$0xff] }
 0x31d   :  { %7643 = vmatpush1.bf16.msra.mxu0 %v11988_v54  ;;  %v12215_v54 = vcombine.high %v1297_v30, %v1313_v31 }
 0x31e   :  { %7725 = vmatpush1.bf16.msra.mxu1 %v11990_v47  ;;  %7644 = vmatprep.subr.bf16.mxu0 %v12021_v56  ;;  %v1328_v47 = vld [vmem:[#allocation9 + $0xa30] sm:$0xff] }
 0x31f   :  { %7726 = vmatprep.subr.bf16.mxu1 %v12023_v57  ;;  %v1344_v56 = vld [vmem:[#allocation9 + $0xab0] sm:$0xff]  ;;  %v1329_v57 = vld [vmem:[#allocation9 + $0xa38] sm:$0xff] }
 0x320   :  { %v12245_v28 = vcombine.high %v1328_v47, %v1344_v56  ;;  %v12244_v3 = vcombine.low %v1328_v47, %v1344_v56  ;;  %v12246_v5 = vcombine.low %v1329_v57, %v1345_v58  ;;  %v1537_v47 = vld [vmem:[#allocation9 + $0x10b8] sm:$0xff] }
 0x321   :  { %7645 = vmatpush1.bf16.msra.mxu0 %v12020_v32  ;;  %v12247_v32 = vcombine.high %v1329_v57, %v1345_v58 }
 0x322   :  { %7727 = vmatpush1.bf16.msra.mxu1 %v12022_v62  ;;  %7646 = vmatprep.subr.bf16.mxu0 %v12053_v63  ;;  %v1360_v62 = vld [vmem:[#allocation9 + $0xb30] sm:$0xff] }
 0x323   :  { %7728 = vmatprep.subr.bf16.mxu1 %v12055_v35  ;;  %v1376_v63 = vld [vmem:[#allocation9 + $0xbb0] sm:$0xff]  ;;  %v1361_v35 = vld [vmem:[#allocation9 + $0xb38] sm:$0xff] }
 0x324   :  { %v12277_v48 = vcombine.high %v1360_v62, %v1376_v63  ;;  %v12276_v38 = vcombine.low %v1360_v62, %v1376_v63  ;;  %v12278_v39 = vcombine.low %v1361_v35, %v1377_v2  ;;  %v1553_v62 = vld [vmem:[#allocation9 + $0x1138] sm:$0xff] }
 0x325   :  { %7647 = vmatpush1.bf16.msra.mxu0 %v12052_v6  ;;  %v12279_v6 = vcombine.high %v1361_v35, %v1377_v2  ;;  %v1569_v63 = vld [vmem:[#allocation9 + $0x11b8] sm:$0xff] }
 0x326   :  { %7729 = vmatpush1.bf16.msra.mxu1 %v12054_v50  ;;  %7648 = vmatprep.subr.bf16.mxu0 %v12085_v7  ;;  %v1392_v50 = vld [vmem:[#allocation9 + $0xc30] sm:$0xff] }
 0x327   :  { %7730 = vmatprep.subr.bf16.mxu1 %v12087_v49  ;;  %v1408_v7 = vld [vmem:[#allocation9 + $0xcb0] sm:$0xff]  ;;  %v1393_v49 = vld [vmem:[#allocation9 + $0xc38] sm:$0xff] }
 0x328   :  { %v12309_v40 = vcombine.high %v1392_v50, %v1408_v7  ;;  %v12308_v11 = vcombine.low %v1392_v50, %v1408_v7  ;;  %v12310_v10 = vcombine.low %v1393_v49, %v1409_v51  ;;  %v1601_v50 = vld [vmem:[#allocation9 + $0x12b8] sm:$0xff] }
 0x329   :  { %7649 = vmatpush1.bf16.msra.mxu0 %v12084_v42  ;;  %v12311_v42 = vcombine.high %v1393_v49, %v1409_v51  ;;  %v12470_v49 = vcombine.low %v1553_v62, %v1569_v63 }
 0x32a   :  { %7731 = vmatpush1.bf16.msra.mxu1 %v12086_v43  ;;  %7650 = vmatprep.subr.bf16.mxu0 %v12117_v44  ;;  %v1424_v43 = vld [vmem:[#allocation9 + $0xd30] sm:$0xff] }
 0x32b   :  { %7732 = vmatprep.subr.bf16.mxu1 %v12119_v9  ;;  %v1440_v44 = vld [vmem:[#allocation9 + $0xdb0] sm:$0xff]  ;;  %v1425_v9 = vld [vmem:[#allocation9 + $0xd38] sm:$0xff] }
 0x32c   :  { %v12341_v12 = vcombine.high %v1424_v43, %v1440_v44  ;;  %v12340_v18 = vcombine.low %v1424_v43, %v1440_v44  ;;  %v12342_v19 = vcombine.low %v1425_v9, %v1441_v52  ;;  %v1633_v43 = vld [vmem:[#allocation9 + $0x13b8] sm:$0xff] }
 0x32d   :  { %7651 = vmatpush1.bf16.msra.mxu0 %v12116_v13  ;;  %v12343_v13 = vcombine.high %v1425_v9, %v1441_v52 }
 0x32e   :  { %7733 = vmatpush1.bf16.msra.mxu1 %v12118_v14  ;;  %7652 = vmatprep.subr.bf16.mxu0 %v12149_v15  ;;  %v1456_v14 = vld [vmem:[#allocation9 + $0xe30] sm:$0xff] }
 0x32f   :  { %7734 = vmatprep.subr.bf16.mxu1 %v12151_v16  ;;  %v1472_v15 = vld [vmem:[#allocation9 + $0xeb0] sm:$0xff]  ;;  %v1457_v16 = vld [vmem:[#allocation9 + $0xe38] sm:$0xff] }
 0x330   :  { %v12373_v20 = vcombine.high %v1456_v14, %v1472_v15  ;;  %v12372_v27 = vcombine.low %v1456_v14, %v1472_v15  ;;  %v12374_v30 = vcombine.low %v1457_v16, %v1473_v17  ;;  %v1665_v14 = vld [vmem:[#allocation9 + $0x14b8] sm:$0xff] }
 0x331   :  { %7653 = vmatpush1.bf16.msra.mxu0 %v12148_v21  ;;  %v12375_v21 = vcombine.high %v1457_v16, %v1473_v17 }
 0x332   :  { %7735 = vmatpush1.bf16.msra.mxu1 %v12150_v23  ;;  %7654 = vmatprep.subr.bf16.mxu0 %v12181_v24  ;;  %v1488_v23 = vld [vmem:[#allocation9 + $0xf30] sm:$0xff] }
 0x333   :  { %7736 = vmatprep.subr.bf16.mxu1 %v12183_v25  ;;  %v1504_v24 = vld [vmem:[#allocation9 + $0xfb0] sm:$0xff]  ;;  %v1489_v25 = vld [vmem:[#allocation9 + $0xf38] sm:$0xff] }
 0x334   :  { %v12405_v31 = vcombine.high %v1488_v23, %v1504_v24  ;;  %v12404_v56 = vcombine.low %v1488_v23, %v1504_v24  ;;  %v12406_v57 = vcombine.low %v1489_v25, %v1505_v26  ;;  %v1697_v23 = vld [vmem:[#allocation9 + $0x15b8] sm:$0xff] }
 0x335   :  { %7655 = vmatpush1.bf16.msra.mxu0 %v12180_v36  ;;  %v12407_v36 = vcombine.high %v1489_v25, %v1505_v26 }
 0x336   :  { %7737 = vmatpush1.bf16.msra.mxu1 %v12182_v37  ;;  %7656 = vmatprep.subr.bf16.mxu0 %v12213_v41  ;;  %v1520_v37 = vld [vmem:[#allocation9 + $0x1030] sm:$0xff] }
 0x337   :  { %7738 = vmatprep.subr.bf16.mxu1 %v12215_v54  ;;  %v1536_v41 = vld [vmem:[#allocation9 + $0x10b0] sm:$0xff]  ;;  %v1521_v54 = vld [vmem:[#allocation9 + $0x1038] sm:$0xff] }
 0x338   :  { %v12437_v58 = vcombine.high %v1520_v37, %v1536_v41  ;;  %v12438_v35 = vcombine.low %v1521_v54, %v1537_v47 }
 0x339   :  { %7657 = vmatpush1.bf16.msra.mxu0 %v12212_v59  ;;  %v12439_v59 = vcombine.high %v1521_v54, %v1537_v47 }
 0x33a   :  { %7739 = vmatpush1.bf16.msra.mxu1 %v12214_v60  ;;  %7658 = vmatprep.subr.bf16.mxu0 %v12245_v28  ;;  %v1552_v60 = vld [vmem:[#allocation9 + $0x1130] sm:$0xff] }
 0x33b   :  { %7740 = vmatprep.subr.bf16.mxu1 %v12247_v32  ;;  %v1568_v28 = vld [vmem:[#allocation9 + $0x11b0] sm:$0xff]  ;;  %v12436_v32 = vcombine.low %v1520_v37, %v1536_v41  ;;  %v1729_v37 = vld [vmem:[#allocation9 + $0x16b8] sm:$0xff] }
 0x33c   :  { %v12469_v2 = vcombine.high %v1552_v60, %v1568_v28  ;;  %v12468_v7 = vcombine.low %v1552_v60, %v1568_v28 }
 0x33d   :  { %7659 = vmatpush1.bf16.msra.mxu0 %v12244_v3  ;;  %v1584_v3 = vld [vmem:[#allocation9 + $0x1230] sm:$0xff] }
 0x33e   :  { %7741 = vmatpush1.bf16.msra.mxu1 %v12246_v5  ;;  %7660 = vmatprep.subr.bf16.mxu0 %v12277_v48  ;;  %v1600_v5 = vld [vmem:[#allocation9 + $0x12b0] sm:$0xff]  ;;  %v12471_v48 = vcombine.high %v1553_v62, %v1569_v63  ;;  %v1761_v62 = vld [vmem:[#allocation9 + $0x17b8] sm:$0xff] }
 0x33f   :  { %7742 = vmatprep.subr.bf16.mxu1 %v12279_v6  ;;  %v1585_v6 = vld [vmem:[#allocation9 + $0x1238] sm:$0xff]  ;;  %v12501_v51 = vcombine.high %v1584_v3, %v1600_v5  ;;  %v12500_v44 = vcombine.low %v1584_v3, %v1600_v5 }
 0x340   :  { %v12502_v9 = vcombine.low %v1585_v6, %v1601_v50 }
 0x341   :  { %7661 = vmatpush1.bf16.msra.mxu0 %v12276_v38  ;;  %v12503_v38 = vcombine.high %v1585_v6, %v1601_v50 }
 0x342   :  { %7743 = vmatpush1.bf16.msra.mxu1 %v12278_v39  ;;  %7662 = vmatprep.subr.bf16.mxu0 %v12309_v40  ;;  %v1616_v39 = vld [vmem:[#allocation9 + $0x1330] sm:$0xff] }
 0x343   :  { %7744 = vmatprep.subr.bf16.mxu1 %v12311_v42  ;;  %v1632_v40 = vld [vmem:[#allocation9 + $0x13b0] sm:$0xff]  ;;  %v1617_v42 = vld [vmem:[#allocation9 + $0x1338] sm:$0xff] }
 0x344   :  { %v12533_v52 = vcombine.high %v1616_v39, %v1632_v40  ;;  %v12532_v15 = vcombine.low %v1616_v39, %v1632_v40  ;;  %v12534_v16 = vcombine.low %v1617_v42, %v1633_v43  ;;  %v1792_v39 = vld [vmem:[#allocation9 + $0x18b0] sm:$0xff]  ;;  %v1777_v40 = vld [vmem:[#allocation9 + $0x1838] sm:$0xff] }
 0x345   :  { %7663 = vmatpush1.bf16.msra.mxu0 %v12308_v11  ;;  %v12535_v11 = vcombine.high %v1617_v42, %v1633_v43  ;;  %v1793_v42 = vld [vmem:[#allocation9 + $0x18b8] sm:$0xff] }
 0x346   :  { %7745 = vmatpush1.bf16.msra.mxu1 %v12310_v10  ;;  %7664 = vmatprep.subr.bf16.mxu0 %v12341_v12  ;;  %v1648_v10 = vld [vmem:[#allocation9 + $0x1430] sm:$0xff] }
 0x347   :  { %7746 = vmatprep.subr.bf16.mxu1 %v12343_v13  ;;  %v1664_v12 = vld [vmem:[#allocation9 + $0x14b0] sm:$0xff]  ;;  %v1649_v13 = vld [vmem:[#allocation9 + $0x1438] sm:$0xff] }
 0x348   :  { %v12565_v17 = vcombine.high %v1648_v10, %v1664_v12  ;;  %v12564_v24 = vcombine.low %v1648_v10, %v1664_v12  ;;  %v12566_v25 = vcombine.low %v1649_v13, %v1665_v14  ;;  %v1824_v10 = vld [vmem:[#allocation9 + $0x19b0] sm:$0xff]  ;;  %v1809_v12 = vld [vmem:[#allocation9 + $0x1938] sm:$0xff] }
 0x349   :  { %7665 = vmatpush1.bf16.msra.mxu0 %v12340_v18  ;;  %v12567_v18 = vcombine.high %v1649_v13, %v1665_v14  ;;  %v1825_v13 = vld [vmem:[#allocation9 + $0x19b8] sm:$0xff] }
 0x34a   :  { %7747 = vmatpush1.bf16.msra.mxu1 %v12342_v19  ;;  %7666 = vmatprep.subr.bf16.mxu0 %v12373_v20  ;;  %v1680_v19 = vld [vmem:[#allocation9 + $0x1530] sm:$0xff] }
 0x34b   :  { %7748 = vmatprep.subr.bf16.mxu1 %v12375_v21  ;;  %v1696_v20 = vld [vmem:[#allocation9 + $0x15b0] sm:$0xff]  ;;  %v1681_v21 = vld [vmem:[#allocation9 + $0x1538] sm:$0xff] }
 0x34c   :  { %v12597_v26 = vcombine.high %v1680_v19, %v1696_v20  ;;  %v12596_v41 = vcombine.low %v1680_v19, %v1696_v20  ;;  %v12598_v54 = vcombine.low %v1681_v21, %v1697_v23  ;;  %v1856_v19 = vld [vmem:[#allocation9 + $0x1ab0] sm:$0xff]  ;;  %v1841_v20 = vld [vmem:[#allocation9 + $0x1a38] sm:$0xff] }
 0x34d   :  { %7667 = vmatpush1.bf16.msra.mxu0 %v12372_v27  ;;  %v12599_v27 = vcombine.high %v1681_v21, %v1697_v23  ;;  %v1857_v21 = vld [vmem:[#allocation9 + $0x1ab8] sm:$0xff] }
 0x34e   :  { %7749 = vmatpush1.bf16.msra.mxu1 %v12374_v30  ;;  %7668 = vmatprep.subr.bf16.mxu0 %v12405_v31  ;;  %v1712_v30 = vld [vmem:[#allocation9 + $0x1630] sm:$0xff] }
 0x34f   :  { %7750 = vmatprep.subr.bf16.mxu1 %v12407_v36  ;;  %v1728_v31 = vld [vmem:[#allocation9 + $0x16b0] sm:$0xff]  ;;  %v1713_v36 = vld [vmem:[#allocation9 + $0x1638] sm:$0xff] }
 0x350   :  { %v12629_v47 = vcombine.high %v1712_v30, %v1728_v31  ;;  %v12628_v3 = vcombine.low %v1712_v30, %v1728_v31  ;;  %v12630_v50 = vcombine.low %v1713_v36, %v1729_v37  ;;  %v1888_v30 = vld [vmem:[#allocation9 + $0x1bb0] sm:$0xff]  ;;  %v1873_v31 = vld [vmem:[#allocation9 + $0x1b38] sm:$0xff] }
 0x351   :  { %7669 = vmatpush1.bf16.msra.mxu0 %v12404_v56 }
 0x352   :  { %7751 = vmatpush1.bf16.msra.mxu1 %v12406_v57  ;;  %7679 = vmatprep.subr.bf16.mxu0 %v12437_v58  ;;  %v12631_v57 = vcombine.high %v1713_v36, %v1729_v37  ;;  %v1744_v58 = vld [vmem:[#allocation9 + $0x1730] sm:$0xff]  ;;  %v1889_v36 = vld [vmem:[#allocation9 + $0x1bb8] sm:$0xff] }
 0x353   :  { %7761 = vmatprep.subr.bf16.mxu1 %v12439_v59  ;;  %v1760_v59 = vld [vmem:[#allocation9 + $0x17b0] sm:$0xff] }
 0x354   :  { %7671 = vmatmul.mubr.bf16.vlgmr.msra.gmra.mrb[32].mxu0 %v14161_v1  ;;  %v12660_v43 = vcombine.low %v1744_v58, %v1760_v59 }
 0x355   :  { %7753 = vmatmul.mubr.bf16.vlgmr.msra.gmra.mrb[24].mxu1 %v14161_v1  ;;  %7680 = vmatpush1.bf16.msra.mxu0 %v12436_v32  ;;  %v1745_v32 = vld [vmem:[#allocation9 + $0x1738] sm:$0xff] }
 0x356   :  { %7711 = vmatprep.mubr.bf16.mxu0 %v14165_v4  ;;  %7762 = vmatpush1.bf16.msra.mxu1 %v12438_v35 }
 0x357   :  { %7793 = vmatprep.mubr.bf16.mxu1 %v14165_v4  ;;  %7681 = vmatprep.subr.bf16.mxu0 %v12469_v2 }
 0x358   :  { %7763 = vmatprep.subr.bf16.mxu1 %v12471_v48 }
 0x359   :  { %7682 = vmatpush1.bf16.msra.mxu0 %v12468_v7  ;;  %v12661_v7 = vcombine.high %v1744_v58, %v1760_v59  ;;  %v1920_v58 = vld [vmem:[#allocation9 + $0x1cb0] sm:$0xff]  ;;  %v1905_v59 = vld [vmem:[#allocation9 + $0x1c38] sm:$0xff] }
 0x35a   :  { %7764 = vmatpush1.bf16.msra.mxu1 %v12470_v49  ;;  %7683 = vmatprep.subr.bf16.mxu0 %v12501_v51  ;;  %v12663_v51 = vcombine.high %v1745_v32, %v1761_v62 }
 0x35b   :  { %7765 = vmatprep.subr.bf16.mxu1 %v12503_v38  ;;  %v1776_v38 = vld [vmem:[#allocation9 + $0x1830] sm:$0xff] }
 0x35c   :  { %v12692_v14 = vcombine.low %v1776_v38, %v1792_v39 }
 0x35d   :  { %7684 = vmatpush1.bf16.msra.mxu0 %v12500_v44  ;;  %v12662_v44 = vcombine.low %v1745_v32, %v1761_v62  ;;  %v1921_v32 = vld [vmem:[#allocation9 + $0x1cb8] sm:$0xff] }
 0x35e   :  { %7766 = vmatpush1.bf16.msra.mxu1 %v12502_v9  ;;  %7685 = vmatprep.subr.bf16.mxu0 %v12533_v52  ;;  %v12693_v9 = vcombine.high %v1776_v38, %v1792_v39  ;;  %v12695_v52 = vcombine.high %v1777_v40, %v1793_v42  ;;  %v12822_v38 = vcombine.low %v1905_v59, %v1921_v32 }
 0x35f   :  { %7767 = vmatprep.subr.bf16.mxu1 %v12535_v11  ;;  %v1808_v11 = vld [vmem:[#allocation9 + $0x1930] sm:$0xff] }
 0x360   :  { %v12724_v23 = vcombine.low %v1808_v11, %v1824_v10 }
 0x361   :  { %7686 = vmatpush1.bf16.msra.mxu0 %v12532_v15  ;;  %v12694_v15 = vcombine.low %v1777_v40, %v1793_v42  ;;  %v1968_v42 = vld [vmem:[#allocation9 + $0x1e30] sm:$0xff] }
 0x362   :  { %7768 = vmatpush1.bf16.msra.mxu1 %v12534_v16  ;;  %7687 = vmatprep.subr.bf16.mxu0 %v12565_v17  ;;  %v12725_v16 = vcombine.high %v1808_v11, %v1824_v10  ;;  %v12727_v17 = vcombine.high %v1809_v12, %v1825_v13 }
 0x363   :  { %7769 = vmatprep.subr.bf16.mxu1 %v12567_v18  ;;  %v1840_v18 = vld [vmem:[#allocation9 + $0x1a30] sm:$0xff] }
 0x364   :  { %v12756_v37 = vcombine.low %v1840_v18, %v1856_v19 }
 0x365   :  { %7688 = vmatpush1.bf16.msra.mxu0 %v12564_v24  ;;  %v12726_v24 = vcombine.low %v1809_v12, %v1825_v13  ;;  %v2000_v13 = vld [vmem:[#allocation9 + $0x1f30] sm:$0xff] }
 0x366   :  { %7770 = vmatpush1.bf16.msra.mxu1 %v12566_v25  ;;  %7689 = vmatprep.subr.bf16.mxu0 %v12597_v26  ;;  %v12757_v25 = vcombine.high %v1840_v18, %v1856_v19  ;;  %v12759_v26 = vcombine.high %v1841_v20, %v1857_v21 }
 0x367   :  { %v14217_v56 = vpop.f32.mrb[24].mxu0  ;;  %7771 = vmatprep.subr.bf16.mxu1 %v12599_v27  ;;  %v1872_v27 = vld [vmem:[#allocation9 + $0x1b30] sm:$0xff] }
 0x368   :  { %v14219_v60 = vpop.f32.mrb[16].mxu1  ;;  %v14221_v28 = vpop.f32.mrb[25].mxu0  ;;  %v12788_v62 = vcombine.low %v1872_v27, %v1888_v30 }
 0x369   :  { %v8460_v63 = vpack.c.bf16 %v14219_v60, %v14217_v56  ;;  %v14225_v35 = vpop.f32.mrb[17].mxu1  ;;  %v7389_v2 = vpop.f32.mrb[26].mxu0  ;;  %7690 = vmatpush1.bf16.msra.mxu0 %v12596_v41  ;;  %v12758_v41 = vcombine.low %v1841_v20, %v1857_v21  ;;  %v1010_v21 = vld [vmem:[#allocation9 + $0x40] sm:$0xff] }
 0x36a   :  { %v8461_v5 = vpack.c.bf16 %v14225_v35, %v14221_v28  ;;  %v7471_v48 = vpop.f32.mrb[18].mxu1  ;;  %7772 = vmatpush1.bf16.msra.mxu1 %v12598_v54  ;;  %v7390_v6 = vpop.f32.mrb[27].mxu0  ;;  %7691 = vmatprep.subr.bf16.mxu0 %v12629_v47  ;;  %v12789_v54 = vcombine.high %v1872_v27, %v1888_v30  ;;  %v12791_v47 = vcombine.high %v1873_v31, %v1889_v36 }
 0x36b   :  { %v7472_v49 = vpop.f32.mrb[19].mxu1  ;;  %7773 = vmatprep.subr.bf16.mxu1 %v12631_v57  ;;  %v1904_v57 = vld [vmem:[#allocation9 + $0x1c30] sm:$0xff]  ;;  %v12790_v2 = vcombine.low %v1873_v31, %v1889_v36  ;;  %v12823_v48 = vcombine.high %v1905_v59, %v1921_v32  ;;  %v1042_v36 = vld [vmem:[#allocation9 + $0x140] sm:$0xff] }
 0x36c   :  { %v1936_v6 = vld [vmem:[#allocation9 + $0x1d30] sm:$0xff]  ;;  %v1953_v49 = vld [vmem:[#allocation9 + $0x1db8] sm:$0xff]  ;;  %v1074_v59 = vld [vmem:[#allocation9 + $0x240] sm:$0xff] }
 0x36d   :  { %7692 = vmatpush1.bf16.msra.mxu0 %v12628_v3  ;;  %v12821_v3 = vcombine.high %v1904_v57, %v1920_v58  ;;  %v1090_v32 = vld [vmem:[#allocation9 + $0x2c0] sm:$0xff] }
 0x36e   :  { %7774 = vmatpush1.bf16.msra.mxu1 %v12630_v50  ;;  %7693 = vmatprep.subr.bf16.mxu0 %v12661_v7  ;;  %v1952_v50 = vld [vmem:[#allocation9 + $0x1db0] sm:$0xff]  ;;  %v1937_v7 = vld [vmem:[#allocation9 + $0x1d38] sm:$0xff] }
 0x36f   :  { %7775 = vmatprep.subr.bf16.mxu1 %v12663_v51  ;;  %v12820_v51 = vcombine.low %v1904_v57, %v1920_v58  ;;  %v12853_v39 = vcombine.high %v1936_v6, %v1952_v50  ;;  %v12855_v40 = vcombine.high %v1937_v7, %v1953_v49  ;;  %v12854_v11 = vcombine.low %v1937_v7, %v1953_v49  ;;  %v1106_v49 = vld [vmem:[#allocation9 + $0x340] sm:$0xff] }
 0x371   :  { %7694 = vmatpush1.bf16.msra.mxu0 %v12660_v43  ;;  %v1984_v43 = vld [vmem:[#allocation9 + $0x1eb0] sm:$0xff] }
 0x372   :  { %7776 = vmatpush1.bf16.msra.mxu1 %v12662_v44  ;;  %7695 = vmatprep.subr.bf16.mxu0 %v12693_v9  ;;  %v1969_v44 = vld [vmem:[#allocation9 + $0x1e38] sm:$0xff]  ;;  %v12885_v10 = vcombine.high %v1968_v42, %v1984_v43 }
 0x373   :  { %7777 = vmatprep.subr.bf16.mxu1 %v12695_v52  ;;  %v1985_v9 = vld [vmem:[#allocation9 + $0x1eb8] sm:$0xff]  ;;  %v12852_v52 = vcombine.low %v1936_v6, %v1952_v50  ;;  %v11993_v50 = vcombine.high %v1074_v59, %v1090_v32 }
 0x374   :  { %v12887_v12 = vcombine.high %v1969_v44, %v1985_v9  ;;  %v12886_v18 = vcombine.low %v1969_v44, %v1985_v9  ;;  %v1138_v9 = vld [vmem:[#allocation9 + $0x440] sm:$0xff] }
 0x375   :  { %7696 = vmatpush1.bf16.msra.mxu0 %v12692_v14  ;;  %v2016_v14 = vld [vmem:[#allocation9 + $0x1fb0] sm:$0xff] }
 0x376   :  { %7778 = vmatpush1.bf16.msra.mxu1 %v12694_v15  ;;  %7697 = vmatprep.subr.bf16.mxu0 %v12725_v16  ;;  %v2001_v15 = vld [vmem:[#allocation9 + $0x1f38] sm:$0xff]  ;;  %v12917_v19 = vcombine.high %v2000_v13, %v2016_v14 }
 0x377   :  { %7779 = vmatprep.subr.bf16.mxu1 %v12727_v17  ;;  %v2017_v16 = vld [vmem:[#allocation9 + $0x1fb8] sm:$0xff]  ;;  %v12884_v17 = vcombine.low %v1968_v42, %v1984_v43 }
 0x378   :  { %v12919_v20 = vcombine.high %v2001_v15, %v2017_v16  ;;  %v12918_v27 = vcombine.low %v2001_v15, %v2017_v16  ;;  %v1170_v16 = vld [vmem:[#allocation9 + $0x540] sm:$0xff] }
 0x379   :  { %7698 = vmatpush1.bf16.msra.mxu0 %v12724_v23  ;;  %v1026_v23 = vld [vmem:[#allocation9 + $0xc0] sm:$0xff] }
 0x37a   :  { %7780 = vmatpush1.bf16.msra.mxu1 %v12726_v24  ;;  %7699 = vmatprep.subr.bf16.mxu0 %v12757_v25  ;;  %v1011_v24 = vld [vmem:[#allocation9 + $0x48] sm:$0xff]  ;;  %v11929_v30 = vcombine.high %v1010_v21, %v1026_v23 }
 0x37b   :  { %7781 = vmatprep.subr.bf16.mxu1 %v12759_v26  ;;  %v1027_v25 = vld [vmem:[#allocation9 + $0xc8] sm:$0xff]  ;;  %v12916_v26 = vcombine.low %v2000_v13, %v2016_v14 }
 0x37c   :  { %v11931_v31 = vcombine.high %v1011_v24, %v1027_v25  ;;  %v11930_v57 = vcombine.low %v1011_v24, %v1027_v25  ;;  %v1202_v25 = vld [vmem:[#allocation9 + $0x640] sm:$0xff] }
 0x37d   :  { %7700 = vmatpush1.bf16.msra.mxu0 %v12756_v37  ;;  %v1058_v37 = vld [vmem:[#allocation9 + $0x1c0] sm:$0xff] }
 0x37e   :  { %7782 = vmatpush1.bf16.msra.mxu1 %v12758_v41  ;;  %7701 = vmatprep.subr.bf16.mxu0 %v12789_v54  ;;  %v11928_v41 = vcombine.low %v1010_v21, %v1026_v23  ;;  %v1043_v54 = vld [vmem:[#allocation9 + $0x148] sm:$0xff]  ;;  %v11961_v58 = vcombine.high %v1042_v36, %v1058_v37 }
 0x37f   :  { %7783 = vmatprep.subr.bf16.mxu1 %v12791_v47  ;;  %v1059_v47 = vld [vmem:[#allocation9 + $0x1c8] sm:$0xff] }
 0x380   :  { %v11962_v6 = vcombine.low %v1043_v54, %v1059_v47 }
 0x381   :  { %7702 = vmatpush1.bf16.msra.mxu0 %v12788_v62  ;;  %v11963_v62 = vcombine.high %v1043_v54, %v1059_v47  ;;  %v1234_v54 = vld [vmem:[#allocation9 + $0x740] sm:$0xff] }
 0x382   :  { %7784 = vmatpush1.bf16.msra.mxu1 %v12790_v2  ;;  %7703 = vmatprep.subr.bf16.mxu0 %v12821_v3  ;;  %v1075_v2 = vld [vmem:[#allocation9 + $0x248] sm:$0xff]  ;;  %v1250_v47 = vld [vmem:[#allocation9 + $0x7c0] sm:$0xff] }
 0x383   :  { %7785 = vmatprep.subr.bf16.mxu1 %v12823_v48  ;;  %v1091_v3 = vld [vmem:[#allocation9 + $0x2c8] sm:$0xff]  ;;  %v11960_v48 = vcombine.low %v1042_v36, %v1058_v37 }
 0x384   :  { %v11995_v7 = vcombine.high %v1075_v2, %v1091_v3  ;;  %v11994_v42 = vcombine.low %v1075_v2, %v1091_v3  ;;  %v1266_v3 = vld [vmem:[#allocation9 + $0x840] sm:$0xff] }
 0x385   :  { %7704 = vmatpush1.bf16.msra.mxu0 %v12820_v51  ;;  %v1122_v51 = vld [vmem:[#allocation9 + $0x3c0] sm:$0xff] }
 0x386   :  { %7786 = vmatpush1.bf16.msra.mxu1 %v12822_v38  ;;  %7705 = vmatprep.subr.bf16.mxu0 %v12853_v39  ;;  %v1107_v38 = vld [vmem:[#allocation9 + $0x348] sm:$0xff]  ;;  %v12025_v43 = vcombine.high %v1106_v49, %v1122_v51 }
 0x387   :  { %7787 = vmatprep.subr.bf16.mxu1 %v12855_v40  ;;  %v1123_v39 = vld [vmem:[#allocation9 + $0x3c8] sm:$0xff]  ;;  %v11992_v40 = vcombine.low %v1074_v59, %v1090_v32 }
 0x388   :  { %v12027_v44 = vcombine.high %v1107_v38, %v1123_v39  ;;  %v12026_v13 = vcombine.low %v1107_v38, %v1123_v39  ;;  %v1298_v39 = vld [vmem:[#allocation9 + $0x940] sm:$0xff] }
 0x389   :  { %7706 = vmatpush1.bf16.msra.mxu0 %v12852_v52  ;;  %v1154_v52 = vld [vmem:[#allocation9 + $0x4c0] sm:$0xff] }
 0x38a   :  { %7788 = vmatpush1.bf16.msra.mxu1 %v12854_v11  ;;  %7707 = vmatprep.subr.bf16.mxu0 %v12885_v10  ;;  %v1139_v11 = vld [vmem:[#allocation9 + $0x448] sm:$0xff]  ;;  %v12057_v14 = vcombine.high %v1138_v9, %v1154_v52 }
 0x38b   :  { %7789 = vmatprep.subr.bf16.mxu1 %v12887_v12  ;;  %v1155_v10 = vld [vmem:[#allocation9 + $0x4c8] sm:$0xff]  ;;  %v12024_v12 = vcombine.low %v1106_v49, %v1122_v51 }
 0x38c   :  { %v12059_v15 = vcombine.high %v1139_v11, %v1155_v10  ;;  %v12058_v21 = vcombine.low %v1139_v11, %v1155_v10  ;;  %v1330_v10 = vld [vmem:[#allocation9 + $0xa40] sm:$0xff] }
 0x38d   :  { %7708 = vmatpush1.bf16.msra.mxu0 %v12884_v17  ;;  %v1186_v17 = vld [vmem:[#allocation9 + $0x5c0] sm:$0xff] }
 0x38e   :  { %7790 = vmatpush1.bf16.msra.mxu1 %v12886_v18  ;;  %7709 = vmatprep.subr.bf16.mxu0 %v12917_v19  ;;  %v1171_v18 = vld [vmem:[#allocation9 + $0x548] sm:$0xff]  ;;  %v12089_v23 = vcombine.high %v1170_v16, %v1186_v17 }
 0x38f   :  { %7791 = vmatprep.subr.bf16.mxu1 %v12919_v20  ;;  %v1187_v19 = vld [vmem:[#allocation9 + $0x5c8] sm:$0xff]  ;;  %v12056_v20 = vcombine.low %v1138_v9, %v1154_v52 }
 0x390   :  { %v12091_v24 = vcombine.high %v1171_v18, %v1187_v19  ;;  %v12090_v36 = vcombine.low %v1171_v18, %v1187_v19  ;;  %v1362_v19 = vld [vmem:[#allocation9 + $0xb40] sm:$0xff] }
 0x391   :  { %7710 = vmatpush1.bf16.msra.mxu0 %v12916_v26  ;;  %v1218_v26 = vld [vmem:[#allocation9 + $0x6c0] sm:$0xff] }
 0x392   :  { %7792 = vmatpush1.bf16.msra.mxu1 %v12918_v27  ;;  %7802 = vmatprep.subr.bf16.mxu0 %v11929_v30  ;;  %v1203_v27 = vld [vmem:[#allocation9 + $0x648] sm:$0xff]  ;;  %v12121_v37 = vcombine.high %v1202_v25, %v1218_v26  ;;  %v12120_v59 = vcombine.low %v1202_v25, %v1218_v26 }
 0x393   :  { %7884 = vmatprep.subr.bf16.mxu1 %v11931_v31  ;;  %v1219_v30 = vld [vmem:[#allocation9 + $0x6c8] sm:$0xff]  ;;  %v12088_v31 = vcombine.low %v1170_v16, %v1186_v17 }
 0x394   :  { %7712 = vmatmul.mubr.bf16.vlgmr.msra.gmra.mrb[32].mxu0 %v14179_v8  ;;  %v12122_v32 = vcombine.low %v1203_v27, %v1219_v30 }
 0x395   :  { %7794 = vmatmul.mubr.bf16.vlgmr.msra.gmra.mrb[24].mxu1 %v14179_v8  ;;  %7803 = vmatpush1.bf16.msra.mxu0 %v11928_v41  ;;  %v12123_v41 = vcombine.high %v1203_v27, %v1219_v30  ;;  %v1394_v30 = vld [vmem:[#allocation9 + $0xc40] sm:$0xff] }
 0x396   :  { %7834 = vmatprep.mubr.bf16.mxu0 %v14159_v61  ;;  %7885 = vmatpush1.bf16.msra.mxu1 %v11930_v57  ;;  %v1235_v57 = vld [vmem:[#allocation9 + $0x748] sm:$0xff] }
 0x397   :  { %7916 = vmatprep.mubr.bf16.mxu1 %v14159_v61  ;;  %7804 = vmatprep.subr.bf16.mxu0 %v11961_v58  ;;  %v1251_v58 = vld [vmem:[#allocation9 + $0x7c8] sm:$0xff] }
 0x398   :  { %7886 = vmatprep.subr.bf16.mxu1 %v11963_v62  ;;  %v12153_v62 = vcombine.high %v1234_v54, %v1250_v47  ;;  %v12155_v2 = vcombine.high %v1235_v57, %v1251_v58  ;;  %v12154_v49 = vcombine.low %v1235_v57, %v1251_v58  ;;  %v1426_v58 = vld [vmem:[#allocation9 + $0xd40] sm:$0xff] }
 0x399   :  { %7805 = vmatpush1.bf16.msra.mxu0 %v11960_v48  ;;  %v1282_v48 = vld [vmem:[#allocation9 + $0x8c0] sm:$0xff] }
 0x39a   :  { %7887 = vmatpush1.bf16.msra.mxu1 %v11962_v6  ;;  %7806 = vmatprep.subr.bf16.mxu0 %v11993_v50  ;;  %v1267_v6 = vld [vmem:[#allocation9 + $0x848] sm:$0xff]  ;;  %v12185_v51 = vcombine.high %v1266_v3, %v1282_v48 }
 0x39b   :  { %7888 = vmatprep.subr.bf16.mxu1 %v11995_v7  ;;  %v1283_v50 = vld [vmem:[#allocation9 + $0x8c8] sm:$0xff]  ;;  %v12152_v7 = vcombine.low %v1234_v54, %v1250_v47 }
 0x39c   :  { %v12187_v38 = vcombine.high %v1267_v6, %v1283_v50  ;;  %v12186_v9 = vcombine.low %v1267_v6, %v1283_v50  ;;  %v1458_v50 = vld [vmem:[#allocation9 + $0xe40] sm:$0xff] }
 0x39d   :  { %7807 = vmatpush1.bf16.msra.mxu0 %v11992_v40  ;;  %v1314_v40 = vld [vmem:[#allocation9 + $0x9c0] sm:$0xff] }
 0x39e   :  { %7889 = vmatpush1.bf16.msra.mxu1 %v11994_v42  ;;  %7808 = vmatprep.subr.bf16.mxu0 %v12025_v43  ;;  %v1299_v42 = vld [vmem:[#allocation9 + $0x948] sm:$0xff]  ;;  %v12217_v52 = vcombine.high %v1298_v39, %v1314_v40 }
 0x39f   :  { %7890 = vmatprep.subr.bf16.mxu1 %v12027_v44  ;;  %v1315_v43 = vld [vmem:[#allocation9 + $0x9c8] sm:$0xff]  ;;  %v12184_v44 = vcombine.low %v1266_v3, %v1282_v48 }
 0x3a0   :  { %v12219_v11 = vcombine.high %v1299_v42, %v1315_v43  ;;  %v12218_v16 = vcombine.low %v1299_v42, %v1315_v43  ;;  %v1490_v43 = vld [vmem:[#allocation9 + $0xf40] sm:$0xff] }
 0x3a1   :  { %7809 = vmatpush1.bf16.msra.mxu0 %v12024_v12  ;;  %v1346_v12 = vld [vmem:[#allocation9 + $0xac0] sm:$0xff] }
 0x3a2   :  { %7891 = vmatpush1.bf16.msra.mxu1 %v12026_v13  ;;  %7810 = vmatprep.subr.bf16.mxu0 %v12057_v14  ;;  %v1331_v13 = vld [vmem:[#allocation9 + $0xa48] sm:$0xff]  ;;  %v12249_v17 = vcombine.high %v1330_v10, %v1346_v12 }
 0x3a3   :  { %7892 = vmatprep.subr.bf16.mxu1 %v12059_v15  ;;  %v1347_v14 = vld [vmem:[#allocation9 + $0xac8] sm:$0xff]  ;;  %v12216_v15 = vcombine.low %v1298_v39, %v1314_v40 }
 0x3a4   :  { %v12251_v18 = vcombine.high %v1331_v13, %v1347_v14  ;;  %v12250_v25 = vcombine.low %v1331_v13, %v1347_v14  ;;  %v1522_v14 = vld [vmem:[#allocation9 + $0x1040] sm:$0xff] }
 0x3a5   :  { %7811 = vmatpush1.bf16.msra.mxu0 %v12056_v20  ;;  %v1378_v20 = vld [vmem:[#allocation9 + $0xbc0] sm:$0xff] }
 0x3a6   :  { %7893 = vmatpush1.bf16.msra.mxu1 %v12058_v21  ;;  %7812 = vmatprep.subr.bf16.mxu0 %v12089_v23  ;;  %v1363_v21 = vld [vmem:[#allocation9 + $0xb48] sm:$0xff]  ;;  %v12281_v26 = vcombine.high %v1362_v19, %v1378_v20 }
 0x3a7   :  { %7894 = vmatprep.subr.bf16.mxu1 %v12091_v24  ;;  %v1379_v23 = vld [vmem:[#allocation9 + $0xbc8] sm:$0xff]  ;;  %v12248_v24 = vcombine.low %v1330_v10, %v1346_v12 }
 0x3a8   :  { %v12283_v27 = vcombine.high %v1363_v21, %v1379_v23  ;;  %v12282_v54 = vcombine.low %v1363_v21, %v1379_v23  ;;  %v1554_v23 = vld [vmem:[#allocation9 + $0x1140] sm:$0xff] }
 0x3a9   :  { %7813 = vmatpush1.bf16.msra.mxu0 %v12088_v31  ;;  %v1410_v31 = vld [vmem:[#allocation9 + $0xcc0] sm:$0xff] }
 0x3aa   :  { %7895 = vmatpush1.bf16.msra.mxu1 %v12090_v36  ;;  %7814 = vmatprep.subr.bf16.mxu0 %v12121_v37  ;;  %v1395_v36 = vld [vmem:[#allocation9 + $0xc48] sm:$0xff]  ;;  %v12313_v47 = vcombine.high %v1394_v30, %v1410_v31 }
 0x3ab   :  { %7896 = vmatprep.subr.bf16.mxu1 %v12123_v41  ;;  %v1411_v37 = vld [vmem:[#allocation9 + $0xcc8] sm:$0xff]  ;;  %v12280_v41 = vcombine.low %v1362_v19, %v1378_v20 }
 0x3ac   :  { %v12315_v57 = vcombine.high %v1395_v36, %v1411_v37  ;;  %v12314_v3 = vcombine.low %v1395_v36, %v1411_v37  ;;  %v1586_v36 = vld [vmem:[#allocation9 + $0x1240] sm:$0xff] }
 0x3ad   :  { %7815 = vmatpush1.bf16.msra.mxu0 %v12120_v59  ;;  %v1442_v59 = vld [vmem:[#allocation9 + $0xdc0] sm:$0xff] }
 0x3ae   :  { %7897 = vmatpush1.bf16.msra.mxu1 %v12122_v32  ;;  %7816 = vmatprep.subr.bf16.mxu0 %v12153_v62  ;;  %v1427_v32 = vld [vmem:[#allocation9 + $0xd48] sm:$0xff]  ;;  %v12345_v48 = vcombine.high %v1426_v58, %v1442_v59  ;;  %v1602_v37 = vld [vmem:[#allocation9 + $0x12c0] sm:$0xff] }
 0x3af   :  { %7898 = vmatprep.subr.bf16.mxu1 %v12155_v2  ;;  %v1443_v62 = vld [vmem:[#allocation9 + $0xdc8] sm:$0xff]  ;;  %v12312_v2 = vcombine.low %v1394_v30, %v1410_v31 }
 0x3b0   :  { %v12347_v6 = vcombine.high %v1427_v32, %v1443_v62  ;;  %v12346_v39 = vcombine.low %v1427_v32, %v1443_v62  ;;  %v1618_v62 = vld [vmem:[#allocation9 + $0x1340] sm:$0xff] }
 0x3b1   :  { %7817 = vmatpush1.bf16.msra.mxu0 %v12152_v7  ;;  %v1474_v7 = vld [vmem:[#allocation9 + $0xec0] sm:$0xff] }
 0x3b2   :  { %7899 = vmatpush1.bf16.msra.mxu1 %v12154_v49  ;;  %7818 = vmatprep.subr.bf16.mxu0 %v12185_v51  ;;  %v1459_v49 = vld [vmem:[#allocation9 + $0xe48] sm:$0xff]  ;;  %v12377_v40 = vcombine.high %v1458_v50, %v1474_v7 }
 0x3b3   :  { %7900 = vmatprep.subr.bf16.mxu1 %v12187_v38  ;;  %v1475_v51 = vld [vmem:[#allocation9 + $0xec8] sm:$0xff]  ;;  %v12344_v38 = vcombine.low %v1426_v58, %v1442_v59  ;;  %v12505_v59 = vcombine.high %v1586_v36, %v1602_v37 }
 0x3b4   :  { %v12379_v42 = vcombine.high %v1459_v49, %v1475_v51  ;;  %v12378_v10 = vcombine.low %v1459_v49, %v1475_v51  ;;  %v1650_v51 = vld [vmem:[#allocation9 + $0x1440] sm:$0xff] }
 0x3b5   :  { %7819 = vmatpush1.bf16.msra.mxu0 %v12184_v44  ;;  %v1506_v44 = vld [vmem:[#allocation9 + $0xfc0] sm:$0xff] }
 0x3b6   :  { %7901 = vmatpush1.bf16.msra.mxu1 %v12186_v9  ;;  %7820 = vmatprep.subr.bf16.mxu0 %v12217_v52  ;;  %v1491_v9 = vld [vmem:[#allocation9 + $0xf48] sm:$0xff]  ;;  %v12409_v12 = vcombine.high %v1490_v43, %v1506_v44 }
 0x3b7   :  { %7902 = vmatprep.subr.bf16.mxu1 %v12219_v11  ;;  %v1507_v52 = vld [vmem:[#allocation9 + $0xfc8] sm:$0xff]  ;;  %v12376_v11 = vcombine.low %v1458_v50, %v1474_v7 }
 0x3b8   :  { %v12411_v13 = vcombine.high %v1491_v9, %v1507_v52  ;;  %v12410_v19 = vcombine.low %v1491_v9, %v1507_v52  ;;  %v1682_v52 = vld [vmem:[#allocation9 + $0x1540] sm:$0xff] }
 0x3b9   :  { %7821 = vmatpush1.bf16.msra.mxu0 %v12216_v15  ;;  %v1538_v15 = vld [vmem:[#allocation9 + $0x10c0] sm:$0xff] }
 0x3ba   :  { %7903 = vmatpush1.bf16.msra.mxu1 %v12218_v16  ;;  %7822 = vmatprep.subr.bf16.mxu0 %v12249_v17  ;;  %v1523_v16 = vld [vmem:[#allocation9 + $0x1048] sm:$0xff]  ;;  %v12441_v20 = vcombine.high %v1522_v14, %v1538_v15 }
 0x3bb   :  { %7904 = vmatprep.subr.bf16.mxu1 %v12251_v18  ;;  %v1539_v17 = vld [vmem:[#allocation9 + $0x10c8] sm:$0xff]  ;;  %v12408_v18 = vcombine.low %v1490_v43, %v1506_v44 }
 0x3bc   :  { %v12443_v21 = vcombine.high %v1523_v16, %v1539_v17  ;;  %v12442_v30 = vcombine.low %v1523_v16, %v1539_v17  ;;  %v1714_v17 = vld [vmem:[#allocation9 + $0x1640] sm:$0xff] }
 0x3bd   :  { %7823 = vmatpush1.bf16.msra.mxu0 %v12248_v24  ;;  %v1570_v24 = vld [vmem:[#allocation9 + $0x11c0] sm:$0xff] }
 0x3be   :  { %7905 = vmatpush1.bf16.msra.mxu1 %v12250_v25  ;;  %7824 = vmatprep.subr.bf16.mxu0 %v12281_v26  ;;  %v12440_v25 = vcombine.low %v1522_v14, %v1538_v15  ;;  %v1555_v26 = vld [vmem:[#allocation9 + $0x1148] sm:$0xff]  ;;  %v12473_v31 = vcombine.high %v1554_v23, %v1570_v24 }
 0x3bf   :  { %7906 = vmatprep.subr.bf16.mxu1 %v12283_v27  ;;  %v1571_v27 = vld [vmem:[#allocation9 + $0x11c8] sm:$0xff] }
 0x3c0   :  { %v12474_v58 = vcombine.low %v1555_v26, %v1571_v27 }
 0x3c1   :  { %7825 = vmatpush1.bf16.msra.mxu0 %v12280_v41  ;;  %v12475_v41 = vcombine.high %v1555_v26, %v1571_v27  ;;  %v1746_v27 = vld [vmem:[#allocation9 + $0x1740] sm:$0xff] }
 0x3c2   :  { %7907 = vmatpush1.bf16.msra.mxu1 %v12282_v54  ;;  %7826 = vmatprep.subr.bf16.mxu0 %v12313_v47  ;;  %v1587_v54 = vld [vmem:[#allocation9 + $0x1248] sm:$0xff] }
 0x3c3   :  { %7908 = vmatprep.subr.bf16.mxu1 %v12315_v57  ;;  %v1603_v47 = vld [vmem:[#allocation9 + $0x12c8] sm:$0xff]  ;;  %v12472_v57 = vcombine.low %v1554_v23, %v1570_v24 }
 0x3c4   :  { %v12507_v32 = vcombine.high %v1587_v54, %v1603_v47  ;;  %v12506_v50 = vcombine.low %v1587_v54, %v1603_v47 }
 0x3c5   :  { %7827 = vmatpush1.bf16.msra.mxu0 %v12312_v2  ;;  %v1634_v2 = vld [vmem:[#allocation9 + $0x13c0] sm:$0xff] }
 0x3c6   :  { %7909 = vmatpush1.bf16.msra.mxu1 %v12314_v3  ;;  %7828 = vmatprep.subr.bf16.mxu0 %v12345_v48  ;;  %v1619_v3 = vld [vmem:[#allocation9 + $0x1348] sm:$0xff]  ;;  %v12537_v7 = vcombine.high %v1618_v62, %v1634_v2 }
 0x3c7   :  { %7910 = vmatprep.subr.bf16.mxu1 %v12347_v6  ;;  %v1635_v48 = vld [vmem:[#allocation9 + $0x13c8] sm:$0xff]  ;;  %v12504_v6 = vcombine.low %v1586_v36, %v1602_v37 }
 0x3c8   :  { %v12539_v49 = vcombine.high %v1619_v3, %v1635_v48  ;;  %v12538_v43 = vcombine.low %v1619_v3, %v1635_v48  ;;  %v1747_v37 = vld [vmem:[#allocation9 + $0x1748] sm:$0xff] }
 0x3c9   :  { %7829 = vmatpush1.bf16.msra.mxu0 %v12344_v38  ;;  %v1666_v38 = vld [vmem:[#allocation9 + $0x14c0] sm:$0xff] }
 0x3ca   :  { %7911 = vmatpush1.bf16.msra.mxu1 %v12346_v39  ;;  %7830 = vmatprep.subr.bf16.mxu0 %v12377_v40  ;;  %v1651_v39 = vld [vmem:[#allocation9 + $0x1448] sm:$0xff]  ;;  %v12569_v44 = vcombine.high %v1650_v51, %v1666_v38 }
 0x3cb   :  { %7912 = vmatprep.subr.bf16.mxu1 %v12379_v42  ;;  %v1667_v40 = vld [vmem:[#allocation9 + $0x14c8] sm:$0xff]  ;;  %v12536_v42 = vcombine.low %v1618_v62, %v1634_v2 }
 0x3cc   :  { %v12571_v9 = vcombine.high %v1651_v39, %v1667_v40  ;;  %v12570_v14 = vcombine.low %v1651_v39, %v1667_v40 }
 0x3cd   :  { %7831 = vmatpush1.bf16.msra.mxu0 %v12376_v11  ;;  %v1698_v11 = vld [vmem:[#allocation9 + $0x15c0] sm:$0xff] }
 0x3ce   :  { %7913 = vmatpush1.bf16.msra.mxu1 %v12378_v10  ;;  %7832 = vmatprep.subr.bf16.mxu0 %v12409_v12  ;;  %v1683_v10 = vld [vmem:[#allocation9 + $0x1548] sm:$0xff]  ;;  %v12601_v15 = vcombine.high %v1682_v52, %v1698_v11 }
 0x3cf   :  { %7914 = vmatprep.subr.bf16.mxu1 %v12411_v13  ;;  %v1699_v12 = vld [vmem:[#allocation9 + $0x15c8] sm:$0xff]  ;;  %v12568_v13 = vcombine.low %v1650_v51, %v1666_v38 }
 0x3d0   :  { %v12603_v16 = vcombine.high %v1683_v10, %v1699_v12  ;;  %v12602_v23 = vcombine.low %v1683_v10, %v1699_v12  ;;  %v1795_v51 = vld [vmem:[#allocation9 + $0x18c8] sm:$0xff] }
 0x3d1   :  { %7833 = vmatpush1.bf16.msra.mxu0 %v12408_v18  ;;  %v1730_v18 = vld [vmem:[#allocation9 + $0x16c0] sm:$0xff] }
 0x3d2   :  { %7915 = vmatpush1.bf16.msra.mxu1 %v12410_v19  ;;  %7843 = vmatprep.subr.bf16.mxu0 %v12441_v20  ;;  %v1715_v19 = vld [vmem:[#allocation9 + $0x1648] sm:$0xff]  ;;  %v12633_v24 = vcombine.high %v1714_v17, %v1730_v18 }
 0x3d3   :  { %7925 = vmatprep.subr.bf16.mxu1 %v12443_v21  ;;  %v1731_v20 = vld [vmem:[#allocation9 + $0x16c8] sm:$0xff]  ;;  %v12600_v21 = vcombine.low %v1682_v52, %v1698_v11 }
 0x3d4   :  { %7835 = vmatmul.mubr.bf16.vlgmr.msra.gmra.mrb[36].mxu0 %v14161_v1  ;;  %v12635_v26 = vcombine.high %v1715_v19, %v1731_v20  ;;  %v12634_v2 = vcombine.low %v1715_v19, %v1731_v20  ;;  %v1827_v52 = vld [vmem:[#allocation9 + $0x19c8] sm:$0xff] }
 0x3d5   :  { %7917 = vmatmul.mubr.bf16.vlgmr.msra.gmra.mrb[28].mxu1 %v14161_v1  ;;  %7844 = vmatpush1.bf16.msra.mxu0 %v12440_v25 }
 0x3d6   :  { %7875 = vmatprep.mubr.bf16.mxu0 %v14165_v4  ;;  %7926 = vmatpush1.bf16.msra.mxu1 %v12442_v30  ;;  %v1762_v30 = vld [vmem:[#allocation9 + $0x17c0] sm:$0xff] }
 0x3d7   :  { %7957 = vmatprep.mubr.bf16.mxu1 %v14165_v4  ;;  %7845 = vmatprep.subr.bf16.mxu0 %v12473_v31  ;;  %v12665_v3 = vcombine.high %v1746_v27, %v1762_v30  ;;  %v12664_v38 = vcombine.low %v1746_v27, %v1762_v30  ;;  %v1891_v27 = vld [vmem:[#allocation9 + $0x1bc8] sm:$0xff] }
 0x3d8   :  { %7927 = vmatprep.subr.bf16.mxu1 %v12475_v41  ;;  %v1763_v41 = vld [vmem:[#allocation9 + $0x17c8] sm:$0xff] }
 0x3d9   :  { %7846 = vmatpush1.bf16.msra.mxu0 %v12472_v57  ;;  %v12666_v39 = vcombine.low %v1747_v37, %v1763_v41 }
 0x3da   :  { %7928 = vmatpush1.bf16.msra.mxu1 %v12474_v58  ;;  %7847 = vmatprep.subr.bf16.mxu0 %v12505_v59  ;;  %v12632_v58 = vcombine.low %v1714_v17, %v1730_v18  ;;  %v1859_v17 = vld [vmem:[#allocation9 + $0x1ac8] sm:$0xff] }
 0x3db   :  { %7929 = vmatprep.subr.bf16.mxu1 %v12507_v32 }
 0x3dd   :  { %7848 = vmatpush1.bf16.msra.mxu0 %v12504_v6  ;;  %v12667_v6 = vcombine.high %v1747_v37, %v1763_v41 }
 0x3de   :  { %7930 = vmatpush1.bf16.msra.mxu1 %v12506_v50  ;;  %7849 = vmatprep.subr.bf16.mxu0 %v12537_v7  ;;  %v1778_v50 = vld [vmem:[#allocation9 + $0x1840] sm:$0xff] }
 0x3df   :  { %7931 = vmatprep.subr.bf16.mxu1 %v12539_v49  ;;  %v1794_v7 = vld [vmem:[#allocation9 + $0x18c0] sm:$0xff]  ;;  %v1779_v49 = vld [vmem:[#allocation9 + $0x1848] sm:$0xff] }
 0x3e0   :  { %v12697_v40 = vcombine.high %v1778_v50, %v1794_v7  ;;  %v12696_v11 = vcombine.low %v1778_v50, %v1794_v7  ;;  %v12698_v10 = vcombine.low %v1779_v49, %v1795_v51  ;;  %v1938_v7 = vld [vmem:[#allocation9 + $0x1d40] sm:$0xff] }
 0x3e1   :  { %7850 = vmatpush1.bf16.msra.mxu0 %v12536_v42  ;;  %v12699_v42 = vcombine.high %v1779_v49, %v1795_v51  ;;  %v1954_v49 = vld [vmem:[#allocation9 + $0x1dc0] sm:$0xff]  ;;  %v1939_v51 = vld [vmem:[#allocation9 + $0x1d48] sm:$0xff] }
 0x3e2   :  { %7932 = vmatpush1.bf16.msra.mxu1 %v12538_v43  ;;  %7851 = vmatprep.subr.bf16.mxu0 %v12569_v44  ;;  %v1810_v43 = vld [vmem:[#allocation9 + $0x1940] sm:$0xff] }
 0x3e3   :  { %7933 = vmatprep.subr.bf16.mxu1 %v12571_v9  ;;  %v1826_v44 = vld [vmem:[#allocation9 + $0x19c0] sm:$0xff]  ;;  %v1811_v9 = vld [vmem:[#allocation9 + $0x1948] sm:$0xff] }
 0x3e4   :  { %v12729_v12 = vcombine.high %v1810_v43, %v1826_v44  ;;  %v12728_v18 = vcombine.low %v1810_v43, %v1826_v44  ;;  %v12730_v19 = vcombine.low %v1811_v9, %v1827_v52  ;;  %v1970_v44 = vld [vmem:[#allocation9 + $0x1e40] sm:$0xff] }
 0x3e5   :  { %7852 = vmatpush1.bf16.msra.mxu0 %v12568_v13  ;;  %v12731_v13 = vcombine.high %v1811_v9, %v1827_v52  ;;  %v1986_v9 = vld [vmem:[#allocation9 + $0x1ec0] sm:$0xff]  ;;  %v1971_v52 = vld [vmem:[#allocation9 + $0x1e48] sm:$0xff] }
 0x3e6   :  { %7934 = vmatpush1.bf16.msra.mxu1 %v12570_v14  ;;  %7853 = vmatprep.subr.bf16.mxu0 %v12601_v15  ;;  %v1842_v14 = vld [vmem:[#allocation9 + $0x1a40] sm:$0xff] }
 0x3e7   :  { %v14237_v25 = vpop.f32.mrb[28].mxu0  ;;  %7935 = vmatprep.subr.bf16.mxu1 %v12603_v16  ;;  %v1858_v15 = vld [vmem:[#allocation9 + $0x1ac0] sm:$0xff]  ;;  %v1843_v16 = vld [vmem:[#allocation9 + $0x1a48] sm:$0xff] }
 0x3e8   :  { %v14239_v31 = vpop.f32.mrb[20].mxu1  ;;  %v14241_v36 = vpop.f32.mrb[29].mxu0  ;;  %v12761_v20 = vcombine.high %v1842_v14, %v1858_v15  ;;  %v12760_v30 = vcombine.low %v1842_v14, %v1858_v15  ;;  %v12762_v37 = vcombine.low %v1843_v16, %v1859_v17  ;;  %v2002_v15 = vld [vmem:[#allocation9 + $0x1f40] sm:$0xff] }
 0x3e9   :  { %v8462_v54 = vpack.c.bf16 %v14239_v31, %v14237_v25  ;;  %v14245_v47 = vpop.f32.mrb[21].mxu1  ;;  %v7553_v57 = vpop.f32.mrb[30].mxu0  ;;  %7854 = vmatpush1.bf16.msra.mxu0 %v12600_v21  ;;  %v12763_v21 = vcombine.high %v1843_v16, %v1859_v17  ;;  %v2018_v16 = vld [vmem:[#allocation9 + $0x1fc0] sm:$0xff]  ;;  %v2003_v17 = vld [vmem:[#allocation9 + $0x1f48] sm:$0xff] }
 0x3ea   :  { %v8463_v59 = vpack.c.bf16 %v14245_v47, %v14241_v36  ;;  %v7635_v32 = vpop.f32.mrb[22].mxu1  ;;  %7936 = vmatpush1.bf16.msra.mxu1 %v12602_v23  ;;  %v7554_v62 = vpop.f32.mrb[31].mxu0  ;;  %7855 = vmatprep.subr.bf16.mxu0 %v12633_v24  ;;  %v1874_v23 = vld [vmem:[#allocation9 + $0x1b40] sm:$0xff] }
 0x3eb   :  { %v7636_v48 = vpop.f32.mrb[23].mxu1  ;;  %7937 = vmatprep.subr.bf16.mxu1 %v12635_v26  ;;  %v1890_v24 = vld [vmem:[#allocation9 + $0x1bc0] sm:$0xff]  ;;  %v1875_v26 = vld [vmem:[#allocation9 + $0x1b48] sm:$0xff] }
 0x3ec   :  { %v12793_v41 = vcombine.high %v1874_v23, %v1890_v24  ;;  %v12795_v57 = vcombine.high %v1875_v26, %v1891_v27  ;;  %v1922_v32 = vld [vmem:[#allocation9 + $0x1cc0] sm:$0xff]  ;;  %v1907_v62 = vld [vmem:[#allocation9 + $0x1c48] sm:$0xff]  ;;  %v12794_v48 = vcombine.low %v1875_v26, %v1891_v27  ;;  %v1028_v26 = vld [vmem:[#allocation9 + $0xd0] sm:$0xff] }
 0x3ed   :  { %7856 = vmatpush1.bf16.msra.mxu0 %v12632_v58  ;;  %v1906_v58 = vld [vmem:[#allocation9 + $0x1c40] sm:$0xff]  ;;  %v1013_v27 = vld [vmem:[#allocation9 + $0x58] sm:$0xff] }
 0x3ee   :  { %7938 = vmatpush1.bf16.msra.mxu1 %v12634_v2  ;;  %7857 = vmatprep.subr.bf16.mxu0 %v12665_v3  ;;  %v1923_v2 = vld [vmem:[#allocation9 + $0x1cc8] sm:$0xff]  ;;  %v12792_v3 = vcombine.low %v1874_v23, %v1890_v24  ;;  %v1012_v24 = vld [vmem:[#allocation9 + $0x50] sm:$0xff] }
 0x3ef   :  { %7939 = vmatprep.subr.bf16.mxu1 %v12667_v6  ;;  %v12825_v6 = vcombine.high %v1906_v58, %v1922_v32  ;;  %v12827_v50 = vcombine.high %v1907_v62, %v1923_v2 }
 0x3f1   :  { %7858 = vmatpush1.bf16.msra.mxu0 %v12664_v38  ;;  %v1955_v38 = vld [vmem:[#allocation9 + $0x1dc8] sm:$0xff] }
 0x3f2   :  { %7940 = vmatpush1.bf16.msra.mxu1 %v12666_v39  ;;  %7859 = vmatprep.subr.bf16.mxu0 %v12697_v40  ;;  %v12824_v39 = vcombine.low %v1906_v58, %v1922_v32  ;;  %v12826_v40 = vcombine.low %v1907_v62, %v1923_v2  ;;  %v12859_v43 = vcombine.high %v1939_v51, %v1955_v38  ;;  %v1044_v32 = vld [vmem:[#allocation9 + $0x150] sm:$0xff] }
 0x3f3   :  { %7941 = vmatprep.subr.bf16.mxu1 %v12699_v42  ;;  %v12857_v42 = vcombine.high %v1938_v7, %v1954_v49  ;;  %v1060_v62 = vld [vmem:[#allocation9 + $0x1d0] sm:$0xff]  ;;  %v11932_v2 = vcombine.low %v1012_v24, %v1028_v26 }
 0x3f5   :  { %7860 = vmatpush1.bf16.msra.mxu0 %v12696_v11  ;;  %v1987_v11 = vld [vmem:[#allocation9 + $0x1ec8] sm:$0xff] }
 0x3f6   :  { %7942 = vmatpush1.bf16.msra.mxu1 %v12698_v10  ;;  %7861 = vmatprep.subr.bf16.mxu0 %v12729_v12  ;;  %v12856_v10 = vcombine.low %v1938_v7, %v1954_v49  ;;  %v12858_v12 = vcombine.low %v1939_v51, %v1955_v38  ;;  %v12891_v14 = vcombine.high %v1971_v52, %v1987_v11  ;;  %v1076_v7 = vld [vmem:[#allocation9 + $0x250] sm:$0xff]  ;;  %v1077_v38 = vld [vmem:[#allocation9 + $0x258] sm:$0xff] }
 0x3f7   :  { %7943 = vmatprep.subr.bf16.mxu1 %v12731_v13  ;;  %v12889_v13 = vcombine.high %v1970_v44, %v1986_v9  ;;  %v1092_v49 = vld [vmem:[#allocation9 + $0x2d0] sm:$0xff] }
 0x3f9   :  { %7862 = vmatpush1.bf16.msra.mxu0 %v12728_v18  ;;  %v2019_v18 = vld [vmem:[#allocation9 + $0x1fc8] sm:$0xff] }
 0x3fa   :  { %7944 = vmatpush1.bf16.msra.mxu1 %v12730_v19  ;;  %7863 = vmatprep.subr.bf16.mxu0 %v12761_v20  ;;  %v12888_v19 = vcombine.low %v1970_v44, %v1986_v9  ;;  %v12890_v20 = vcombine.low %v1971_v52, %v1987_v11  ;;  %v12923_v23 = vcombine.high %v2003_v17, %v2019_v18  ;;  %v1108_v9 = vld [vmem:[#allocation9 + $0x350] sm:$0xff]  ;;  %v1109_v11 = vld [vmem:[#allocation9 + $0x358] sm:$0xff] }
 0x3fb   :  { %7945 = vmatprep.subr.bf16.mxu1 %v12763_v21  ;;  %v12921_v21 = vcombine.high %v2002_v15, %v2018_v16  ;;  %v1124_v52 = vld [vmem:[#allocation9 + $0x3d0] sm:$0xff] }
 0x3fd   :  { %7864 = vmatpush1.bf16.msra.mxu0 %v12760_v30  ;;  %v1029_v30 = vld [vmem:[#allocation9 + $0xd8] sm:$0xff] }
 0x3fe   :  { %7946 = vmatpush1.bf16.msra.mxu1 %v12762_v37  ;;  %7865 = vmatprep.subr.bf16.mxu0 %v12793_v41  ;;  %v12920_v37 = vcombine.low %v2002_v15, %v2018_v16  ;;  %v12922_v41 = vcombine.low %v2003_v17, %v2019_v18  ;;  %v11935_v58 = vcombine.high %v1013_v27, %v1029_v30  ;;  %v1140_v16 = vld [vmem:[#allocation9 + $0x450] sm:$0xff]  ;;  %v1141_v18 = vld [vmem:[#allocation9 + $0x458] sm:$0xff] }
 0x3ff   :  { %7947 = vmatprep.subr.bf16.mxu1 %v12795_v57  ;;  %v11933_v57 = vcombine.high %v1012_v24, %v1028_v26  ;;  %v1156_v17 = vld [vmem:[#allocation9 + $0x4d0] sm:$0xff] }
 0x400   :  { %v1172_v26 = vld [vmem:[#allocation9 + $0x550] sm:$0xff] }
 0x401   :  { %7866 = vmatpush1.bf16.msra.mxu0 %v12792_v3  ;;  %v1045_v3 = vld [vmem:[#allocation9 + $0x158] sm:$0xff] }
 0x402   :  { %7948 = vmatpush1.bf16.msra.mxu1 %v12794_v48  ;;  %7867 = vmatprep.subr.bf16.mxu0 %v12825_v6  ;;  %v1061_v48 = vld [vmem:[#allocation9 + $0x1d8] sm:$0xff]  ;;  %v11934_v6 = vcombine.low %v1013_v27, %v1029_v30  ;;  %v1188_v27 = vld [vmem:[#allocation9 + $0x5d0] sm:$0xff] }
 0x403   :  { %7949 = vmatprep.subr.bf16.mxu1 %v12827_v50  ;;  %v11965_v50 = vcombine.high %v1044_v32, %v1060_v62  ;;  %v11967_v51 = vcombine.high %v1045_v3, %v1061_v48  ;;  %v1173_v30 = vld [vmem:[#allocation9 + $0x558] sm:$0xff] }
 0x405   :  { %7868 = vmatpush1.bf16.msra.mxu0 %v12824_v39  ;;  %v1093_v39 = vld [vmem:[#allocation9 + $0x2d8] sm:$0xff] }
 0x406   :  { %7950 = vmatpush1.bf16.msra.mxu1 %v12826_v40  ;;  %7869 = vmatprep.subr.bf16.mxu0 %v12857_v42  ;;  %v11964_v40 = vcombine.low %v1044_v32, %v1060_v62  ;;  %v11966_v42 = vcombine.low %v1045_v3, %v1061_v48  ;;  %v11999_v44 = vcombine.high %v1077_v38, %v1093_v39  ;;  %v1204_v62 = vld [vmem:[#allocation9 + $0x650] sm:$0xff]  ;;  %v1205_v3 = vld [vmem:[#allocation9 + $0x658] sm:$0xff] }
 0x407   :  { %7951 = vmatprep.subr.bf16.mxu1 %v12859_v43  ;;  %v11997_v43 = vcombine.high %v1076_v7, %v1092_v49  ;;  %v1221_v48 = vld [vmem:[#allocation9 + $0x6d8] sm:$0xff] }
 0x409   :  { %7870 = vmatpush1.bf16.msra.mxu0 %v12856_v10  ;;  %v1125_v10 = vld [vmem:[#allocation9 + $0x3d8] sm:$0xff] }
 0x40a   :  { %7952 = vmatpush1.bf16.msra.mxu1 %v12858_v12  ;;  %7871 = vmatprep.subr.bf16.mxu0 %v12889_v13  ;;  %v11996_v12 = vcombine.low %v1076_v7, %v1092_v49  ;;  %v11998_v13 = vcombine.low %v1077_v38, %v1093_v39  ;;  %v12031_v15 = vcombine.high %v1109_v11, %v1125_v10  ;;  %v1252_v38 = vld [vmem:[#allocation9 + $0x7d0] sm:$0xff]  ;;  %v1237_v39 = vld [vmem:[#allocation9 + $0x758] sm:$0xff] }
 0x40b   :  { %7953 = vmatprep.subr.bf16.mxu1 %v12891_v14  ;;  %v12029_v14 = vcombine.high %v1108_v9, %v1124_v52  ;;  %v12127_v49 = vcombine.high %v1205_v3, %v1221_v48 }
 0x40d   :  { %7872 = vmatpush1.bf16.msra.mxu0 %v12888_v19  ;;  %v1157_v19 = vld [vmem:[#allocation9 + $0x4d8] sm:$0xff] }
 0x40e   :  { %7954 = vmatpush1.bf16.msra.mxu1 %v12890_v20  ;;  %7873 = vmatprep.subr.bf16.mxu0 %v12921_v21  ;;  %v12028_v20 = vcombine.low %v1108_v9, %v1124_v52  ;;  %v12030_v21 = vcombine.low %v1109_v11, %v1125_v10  ;;  %v12063_v24 = vcombine.high %v1141_v18, %v1157_v19  ;;  %v1268_v52 = vld [vmem:[#allocation9 + $0x850] sm:$0xff]  ;;  %v1269_v10 = vld [vmem:[#allocation9 + $0x858] sm:$0xff] }
 0x40f   :  { %7955 = vmatprep.subr.bf16.mxu1 %v12923_v23  ;;  %v12061_v23 = vcombine.high %v1140_v16, %v1156_v17  ;;  %v1284_v11 = vld [vmem:[#allocation9 + $0x8d0] sm:$0xff] }
 0x411   :  { %7874 = vmatpush1.bf16.msra.mxu0 %v12920_v37  ;;  %v1189_v37 = vld [vmem:[#allocation9 + $0x5d8] sm:$0xff] }
 0x412   :  { %7956 = vmatpush1.bf16.msra.mxu1 %v12922_v41  ;;  %7966 = vmatprep.subr.bf16.mxu0 %v11933_v57  ;;  %v12060_v41 = vcombine.low %v1140_v16, %v1156_v17  ;;  %v12062_v57 = vcombine.low %v1141_v18, %v1157_v19  ;;  %v12095_v32 = vcombine.high %v1173_v30, %v1189_v37  ;;  %v1300_v17 = vld [vmem:[#allocation9 + $0x950] sm:$0xff]  ;;  %v1301_v19 = vld [vmem:[#allocation9 + $0x958] sm:$0xff] }
 0x413   :  { %8048 = vmatprep.subr.bf16.mxu1 %v11935_v58  ;;  %v12093_v58 = vcombine.high %v1172_v26, %v1188_v27  ;;  %v1316_v18 = vld [vmem:[#allocation9 + $0x9d0] sm:$0xff] }
 0x414   :  { %7876 = vmatmul.mubr.bf16.vlgmr.msra.gmra.mrb[36].mxu0 %v14179_v8 }
 0x415   :  { %7958 = vmatmul.mubr.bf16.vlgmr.msra.gmra.mrb[28].mxu1 %v14179_v8  ;;  %7967 = vmatpush1.bf16.msra.mxu0 %v11932_v2  ;;  %v1220_v2 = vld [vmem:[#allocation9 + $0x6d0] sm:$0xff] }
 0x416   :  { %7998 = vmatprep.mubr.bf16.mxu0 %v14159_v61  ;;  %8049 = vmatpush1.bf16.msra.mxu1 %v11934_v6  ;;  %v12092_v6 = vcombine.low %v1172_v26, %v1188_v27  ;;  %v12125_v7 = vcombine.high %v1204_v62, %v1220_v2  ;;  %v1332_v27 = vld [vmem:[#allocation9 + $0xa50] sm:$0xff] }
 0x417   :  { %8080 = vmatprep.mubr.bf16.mxu1 %v14159_v61  ;;  %7968 = vmatprep.subr.bf16.mxu0 %v11965_v50  ;;  %v12094_v50 = vcombine.low %v1173_v30, %v1189_v37  ;;  %v1348_v30 = vld [vmem:[#allocation9 + $0xad0] sm:$0xff]  ;;  %v1333_v37 = vld [vmem:[#allocation9 + $0xa58] sm:$0xff] }
 0x418   :  { %8050 = vmatprep.subr.bf16.mxu1 %v11967_v51  ;;  %v1236_v51 = vld [vmem:[#allocation9 + $0x750] sm:$0xff] }
 0x419   :  { %7969 = vmatpush1.bf16.msra.mxu0 %v11964_v40  ;;  %v1253_v40 = vld [vmem:[#allocation9 + $0x7d8] sm:$0xff] }
 0x41a   :  { %8051 = vmatpush1.bf16.msra.mxu1 %v11966_v42  ;;  %7970 = vmatprep.subr.bf16.mxu0 %v11997_v43  ;;  %v12124_v42 = vcombine.low %v1204_v62, %v1220_v2  ;;  %v12126_v43 = vcombine.low %v1205_v3, %v1221_v48  ;;  %v12159_v9 = vcombine.high %v1237_v39, %v1253_v40  ;;  %v1364_v2 = vld [vmem:[#allocation9 + $0xb50] sm:$0xff]  ;;  %v1365_v48 = vld [vmem:[#allocation9 + $0xb58] sm:$0xff] }
 0x41b   :  { %8052 = vmatprep.subr.bf16.mxu1 %v11999_v44  ;;  %v12157_v44 = vcombine.high %v1236_v51, %v1252_v38  ;;  %v1380_v3 = vld [vmem:[#allocation9 + $0xbd0] sm:$0xff] }
 0x41d   :  { %7971 = vmatpush1.bf16.msra.mxu0 %v11996_v12  ;;  %v1285_v12 = vld [vmem:[#allocation9 + $0x8d8] sm:$0xff] }
 0x41e   :  { %8053 = vmatpush1.bf16.msra.mxu1 %v11998_v13  ;;  %7972 = vmatprep.subr.bf16.mxu0 %v12029_v14  ;;  %v12156_v13 = vcombine.low %v1236_v51, %v1252_v38  ;;  %v12158_v14 = vcombine.low %v1237_v39, %v1253_v40  ;;  %v12191_v16 = vcombine.high %v1269_v10, %v1285_v12  ;;  %v1396_v38 = vld [vmem:[#allocation9 + $0xc50] sm:$0xff]  ;;  %v1397_v40 = vld [vmem:[#allocation9 + $0xc58] sm:$0xff] }
 0x41f   :  { %8054 = vmatprep.subr.bf16.mxu1 %v12031_v15  ;;  %v12189_v15 = vcombine.high %v1268_v52, %v1284_v11  ;;  %v1412_v39 = vld [vmem:[#allocation9 + $0xcd0] sm:$0xff] }
 0x421   :  { %7973 = vmatpush1.bf16.msra.mxu0 %v12028_v20  ;;  %v1317_v20 = vld [vmem:[#allocation9 + $0x9d8] sm:$0xff] }
 0x422   :  { %8055 = vmatpush1.bf16.msra.mxu1 %v12030_v21  ;;  %7974 = vmatprep.subr.bf16.mxu0 %v12061_v23  ;;  %v12188_v21 = vcombine.low %v1268_v52, %v1284_v11  ;;  %v12190_v23 = vcombine.low %v1269_v10, %v1285_v12  ;;  %v12223_v26 = vcombine.high %v1301_v19, %v1317_v20  ;;  %v1428_v11 = vld [vmem:[#allocation9 + $0xd50] sm:$0xff]  ;;  %v1429_v12 = vld [vmem:[#allocation9 + $0xd58] sm:$0xff] }
 0x423   :  { %8056 = vmatprep.subr.bf16.mxu1 %v12063_v24  ;;  %v12221_v24 = vcombine.high %v1300_v17, %v1316_v18  ;;  %v1444_v10 = vld [vmem:[#allocation9 + $0xdd0] sm:$0xff] }
 0x425   :  { %7975 = vmatpush1.bf16.msra.mxu0 %v12060_v41  ;;  %v1349_v41 = vld [vmem:[#allocation9 + $0xad8] sm:$0xff] }
 0x426   :  { %8057 = vmatpush1.bf16.msra.mxu1 %v12062_v57  ;;  %7976 = vmatprep.subr.bf16.mxu0 %v12093_v58  ;;  %v12220_v57 = vcombine.low %v1300_v17, %v1316_v18  ;;  %v12222_v58 = vcombine.low %v1301_v19, %v1317_v20  ;;  %v12255_v62 = vcombine.high %v1333_v37, %v1349_v41  ;;  %v1460_v18 = vld [vmem:[#allocation9 + $0xe50] sm:$0xff]  ;;  %v1461_v20 = vld [vmem:[#allocation9 + $0xe58] sm:$0xff] }
 0x427   :  { %8058 = vmatprep.subr.bf16.mxu1 %v12095_v32  ;;  %v12253_v32 = vcombine.high %v1332_v27, %v1348_v30  ;;  %v1476_v19 = vld [vmem:[#allocation9 + $0xed0] sm:$0xff] }
 0x429   :  { %7977 = vmatpush1.bf16.msra.mxu0 %v12092_v6  ;;  %v1381_v6 = vld [vmem:[#allocation9 + $0xbd8] sm:$0xff] }
 0x42a   :  { %8059 = vmatpush1.bf16.msra.mxu1 %v12094_v50  ;;  %7978 = vmatprep.subr.bf16.mxu0 %v12125_v7  ;;  %v12252_v50 = vcombine.low %v1332_v27, %v1348_v30  ;;  %v12254_v7 = vcombine.low %v1333_v37, %v1349_v41  ;;  %v12287_v51 = vcombine.high %v1365_v48, %v1381_v6  ;;  %v1492_v30 = vld [vmem:[#allocation9 + $0xf50] sm:$0xff]  ;;  %v1493_v41 = vld [vmem:[#allocation9 + $0xf58] sm:$0xff] }
 0x42b   :  { %8060 = vmatprep.subr.bf16.mxu1 %v12127_v49  ;;  %v12285_v49 = vcombine.high %v1364_v2, %v1380_v3  ;;  %v1508_v37 = vld [vmem:[#allocation9 + $0xfd0] sm:$0xff] }
 0x42d   :  { %7979 = vmatpush1.bf16.msra.mxu0 %v12124_v42  ;;  %v1413_v42 = vld [vmem:[#allocation9 + $0xcd8] sm:$0xff] }
 0x42e   :  { %8061 = vmatpush1.bf16.msra.mxu1 %v12126_v43  ;;  %7980 = vmatprep.subr.bf16.mxu0 %v12157_v44  ;;  %v12284_v43 = vcombine.low %v1364_v2, %v1380_v3  ;;  %v12286_v44 = vcombine.low %v1365_v48, %v1381_v6  ;;  %v12319_v52 = vcombine.high %v1397_v40, %v1413_v42  ;;  %v1524_v3 = vld [vmem:[#allocation9 + $0x1050] sm:$0xff]  ;;  %v1525_v6 = vld [vmem:[#allocation9 + $0x1058] sm:$0xff] }
 0x42f   :  { %8062 = vmatprep.subr.bf16.mxu1 %v12159_v9  ;;  %v12317_v9 = vcombine.high %v1396_v38, %v1412_v39  ;;  %v1540_v48 = vld [vmem:[#allocation9 + $0x10d0] sm:$0xff] }
 0x431   :  { %7981 = vmatpush1.bf16.msra.mxu0 %v12156_v13  ;;  %v1445_v13 = vld [vmem:[#allocation9 + $0xdd8] sm:$0xff] }
 0x432   :  { %8063 = vmatpush1.bf16.msra.mxu1 %v12158_v14  ;;  %7982 = vmatprep.subr.bf16.mxu0 %v12189_v15  ;;  %v12316_v14 = vcombine.low %v1396_v38, %v1412_v39  ;;  %v12318_v15 = vcombine.low %v1397_v40, %v1413_v42  ;;  %v12351_v17 = vcombine.high %v1429_v12, %v1445_v13  ;;  %v1556_v39 = vld [vmem:[#allocation9 + $0x1150] sm:$0xff] }
 0x433   :  { %8064 = vmatprep.subr.bf16.mxu1 %v12191_v16  ;;  %v12349_v16 = vcombine.high %v1428_v11, %v1444_v10  ;;  %v1572_v40 = vld [vmem:[#allocation9 + $0x11d0] sm:$0xff]  ;;  %v12444_v42 = vcombine.low %v1524_v3, %v1540_v48 }
 0x435   :  { %7983 = vmatpush1.bf16.msra.mxu0 %v12188_v21  ;;  %v1477_v21 = vld [vmem:[#allocation9 + $0xed8] sm:$0xff] }
 0x436   :  { %8065 = vmatpush1.bf16.msra.mxu1 %v12190_v23  ;;  %7984 = vmatprep.subr.bf16.mxu0 %v12221_v24  ;;  %v12348_v23 = vcombine.low %v1428_v11, %v1444_v10  ;;  %v12350_v24 = vcombine.low %v1429_v12, %v1445_v13  ;;  %v12383_v27 = vcombine.high %v1461_v20, %v1477_v21  ;;  %v1588_v11 = vld [vmem:[#allocation9 + $0x1250] sm:$0xff]  ;;  %v1589_v13 = vld [vmem:[#allocation9 + $0x1258] sm:$0xff] }
 0x437   :  { %8066 = vmatprep.subr.bf16.mxu1 %v12223_v26  ;;  %v12381_v26 = vcombine.high %v1460_v18, %v1476_v19  ;;  %v1604_v10 = vld [vmem:[#allocation9 + $0x12d0] sm:$0xff] }
 0x439   :  { %7985 = vmatpush1.bf16.msra.mxu0 %v12220_v57  ;;  %v1509_v57 = vld [vmem:[#allocation9 + $0xfd8] sm:$0xff] }
 0x43a   :  { %8067 = vmatpush1.bf16.msra.mxu1 %v12222_v58  ;;  %7986 = vmatprep.subr.bf16.mxu0 %v12253_v32  ;;  %v12380_v58 = vcombine.low %v1460_v18, %v1476_v19  ;;  %v12382_v32 = vcombine.low %v1461_v20, %v1477_v21  ;;  %v12415_v2 = vcombine.high %v1493_v41, %v1509_v57  ;;  %v1620_v19 = vld [vmem:[#allocation9 + $0x1350] sm:$0xff]  ;;  %v1621_v21 = vld [vmem:[#allocation9 + $0x1358] sm:$0xff] }
 0x43b   :  { %8068 = vmatprep.subr.bf16.mxu1 %v12255_v62  ;;  %v12413_v62 = vcombine.high %v1492_v30, %v1508_v37  ;;  %v1636_v20 = vld [vmem:[#allocation9 + $0x13d0] sm:$0xff] }
 0x43d   :  { %7987 = vmatpush1.bf16.msra.mxu0 %v12252_v50  ;;  %v1541_v50 = vld [vmem:[#allocation9 + $0x10d8] sm:$0xff] }
 0x43e   :  { %8069 = vmatpush1.bf16.msra.mxu1 %v12254_v7  ;;  %7988 = vmatprep.subr.bf16.mxu0 %v12285_v49  ;;  %v12412_v7 = vcombine.low %v1492_v30, %v1508_v37  ;;  %v12414_v49 = vcombine.low %v1493_v41, %v1509_v57  ;;  %v12447_v38 = vcombine.high %v1525_v6, %v1541_v50  ;;  %v1652_v37 = vld [vmem:[#allocation9 + $0x1450] sm:$0xff]  ;;  %v1653_v57 = vld [vmem:[#allocation9 + $0x1458] sm:$0xff] }
 0x43f   :  { %8070 = vmatprep.subr.bf16.mxu1 %v12287_v51  ;;  %v12445_v51 = vcombine.high %v1524_v3, %v1540_v48  ;;  %v1668_v41 = vld [vmem:[#allocation9 + $0x14d0] sm:$0xff] }
 0x440   :  { %v1684_v48 = vld [vmem:[#allocation9 + $0x1550] sm:$0xff] }
 0x441   :  { %7989 = vmatpush1.bf16.msra.mxu0 %v12284_v43  ;;  %v1557_v43 = vld [vmem:[#allocation9 + $0x1158] sm:$0xff] }
 0x442   :  { %8071 = vmatpush1.bf16.msra.mxu1 %v12286_v44  ;;  %7990 = vmatprep.subr.bf16.mxu0 %v12317_v9  ;;  %v1573_v44 = vld [vmem:[#allocation9 + $0x11d8] sm:$0xff]  ;;  %v12446_v9 = vcombine.low %v1525_v6, %v1541_v50  ;;  %v1700_v6 = vld [vmem:[#allocation9 + $0x15d0] sm:$0xff] }
 0x443   :  { %8072 = vmatprep.subr.bf16.mxu1 %v12319_v52  ;;  %v12477_v52 = vcombine.high %v1556_v39, %v1572_v40  ;;  %v12479_v12 = vcombine.high %v1557_v43, %v1573_v44  ;;  %v1685_v50 = vld [vmem:[#allocation9 + $0x1558] sm:$0xff] }
 0x445   :  { %7991 = vmatpush1.bf16.msra.mxu0 %v12316_v14  ;;  %v1605_v14 = vld [vmem:[#allocation9 + $0x12d8] sm:$0xff] }
 0x446   :  { %8073 = vmatpush1.bf16.msra.mxu1 %v12318_v15  ;;  %7992 = vmatprep.subr.bf16.mxu0 %v12349_v16  ;;  %v12476_v15 = vcombine.low %v1556_v39, %v1572_v40  ;;  %v12478_v16 = vcombine.low %v1557_v43, %v1573_v44  ;;  %v12511_v18 = vcombine.high %v1589_v13, %v1605_v14  ;;  %v1716_v40 = vld [vmem:[#allocation9 + $0x1650] sm:$0xff]  ;;  %v1717_v43 = vld [vmem:[#allocation9 + $0x1658] sm:$0xff] }
 0x447   :  { %8074 = vmatprep.subr.bf16.mxu1 %v12351_v17  ;;  %v12509_v17 = vcombine.high %v1588_v11, %v1604_v10  ;;  %v1733_v44 = vld [vmem:[#allocation9 + $0x16d8] sm:$0xff] }
 0x449   :  { %7993 = vmatpush1.bf16.msra.mxu0 %v12348_v23  ;;  %v1637_v23 = vld [vmem:[#allocation9 + $0x13d8] sm:$0xff] }
 0x44a   :  { %8075 = vmatpush1.bf16.msra.mxu1 %v12350_v24  ;;  %7994 = vmatprep.subr.bf16.mxu0 %v12381_v26  ;;  %v12508_v24 = vcombine.low %v1588_v11, %v1604_v10  ;;  %v12510_v26 = vcombine.low %v1589_v13, %v1605_v14  ;;  %v12543_v30 = vcombine.high %v1621_v21, %v1637_v23  ;;  %v1748_v13 = vld [vmem:[#allocation9 + $0x1750] sm:$0xff] }
 0x44b   :  { %8076 = vmatprep.subr.bf16.mxu1 %v12383_v27  ;;  %v12541_v27 = vcombine.high %v1620_v19, %v1636_v20  ;;  %v1764_v14 = vld [vmem:[#allocation9 + $0x17d0] sm:$0xff] }
 0x44d   :  { %7995 = vmatpush1.bf16.msra.mxu0 %v12380_v58  ;;  %v1669_v58 = vld [vmem:[#allocation9 + $0x14d8] sm:$0xff] }
 0x44e   :  { %8077 = vmatpush1.bf16.msra.mxu1 %v12382_v32  ;;  %7996 = vmatprep.subr.bf16.mxu0 %v12413_v62  ;;  %v12540_v32 = vcombine.low %v1620_v19, %v1636_v20  ;;  %v12542_v62 = vcombine.low %v1621_v21, %v1637_v23  ;;  %v12575_v3 = vcombine.high %v1653_v57, %v1669_v58 }
 0x44f   :  { %8078 = vmatprep.subr.bf16.mxu1 %v12415_v2  ;;  %v12573_v2 = vcombine.high %v1652_v37, %v1668_v41 }
 0x451   :  { %7997 = vmatpush1.bf16.msra.mxu0 %v12412_v7  ;;  %v1701_v7 = vld [vmem:[#allocation9 + $0x15d8] sm:$0xff] }
 0x452   :  { %8079 = vmatpush1.bf16.msra.mxu1 %v12414_v49  ;;  %8007 = vmatprep.subr.bf16.mxu0 %v12445_v51  ;;  %v12572_v49 = vcombine.low %v1652_v37, %v1668_v41  ;;  %v12574_v51 = vcombine.low %v1653_v57, %v1669_v58  ;;  %v12607_v39 = vcombine.high %v1685_v50, %v1701_v7  ;;  %v1780_v58 = vld [vmem:[#allocation9 + $0x1850] sm:$0xff] }
 0x453   :  { %8089 = vmatprep.subr.bf16.mxu1 %v12447_v38  ;;  %v12605_v38 = vcombine.high %v1684_v48, %v1700_v6  ;;  %v12669_v37 = vcombine.high %v1748_v13, %v1764_v14 }
 0x454   :  { %7999 = vmatmul.mubr.bf16.vlgmr.msra.gmra.mrb[40].mxu0 %v14161_v1 }
 0x455   :  { %8081 = vmatmul.mubr.bf16.vlgmr.msra.gmra.mrb[32].mxu1 %v14161_v1  ;;  %8008 = vmatpush1.bf16.msra.mxu0 %v12444_v42  ;;  %v1732_v42 = vld [vmem:[#allocation9 + $0x16d0] sm:$0xff] }
 0x456   :  { %8039 = vmatprep.mubr.bf16.mxu0 %v14165_v4  ;;  %8090 = vmatpush1.bf16.msra.mxu1 %v12446_v9  ;;  %v12604_v9 = vcombine.low %v1684_v48, %v1700_v6  ;;  %v12637_v11 = vcombine.high %v1716_v40, %v1732_v42  ;;  %v12636_v23 = vcombine.low %v1716_v40, %v1732_v42 }
 0x457   :  { %8121 = vmatprep.mubr.bf16.mxu1 %v14165_v4  ;;  %8009 = vmatprep.subr.bf16.mxu0 %v12477_v52  ;;  %v12606_v52 = vcombine.low %v1685_v50, %v1701_v7  ;;  %v1812_v7 = vld [vmem:[#allocation9 + $0x1950] sm:$0xff] }
 0x458   :  { %8091 = vmatprep.subr.bf16.mxu1 %v12479_v12  ;;  %v12639_v12 = vcombine.high %v1717_v43, %v1733_v44 }
 0x459   :  { %8010 = vmatpush1.bf16.msra.mxu0 %v12476_v15 }
 0x45a   :  { %8092 = vmatpush1.bf16.msra.mxu1 %v12478_v16  ;;  %8011 = vmatprep.subr.bf16.mxu0 %v12509_v17  ;;  %v1749_v17 = vld [vmem:[#allocation9 + $0x1758] sm:$0xff] }
 0x45b   :  { %8093 = vmatprep.subr.bf16.mxu1 %v12511_v18  ;;  %v1765_v18 = vld [vmem:[#allocation9 + $0x17d8] sm:$0xff] }
 0x45c   :  { %v12671_v57 = vcombine.high %v1749_v17, %v1765_v18  ;;  %v12670_v48 = vcombine.low %v1749_v17, %v1765_v18  ;;  %v1876_v18 = vld [vmem:[#allocation9 + $0x1b50] sm:$0xff] }
 0x45d   :  { %8012 = vmatpush1.bf16.msra.mxu0 %v12508_v24 }
 0x45e   :  { %8094 = vmatpush1.bf16.msra.mxu1 %v12510_v26  ;;  %8013 = vmatprep.subr.bf16.mxu0 %v12541_v27 }
 0x45f   :  { %8095 = vmatprep.subr.bf16.mxu1 %v12543_v30  ;;  %v12638_v30 = vcombine.low %v1717_v43, %v1733_v44  ;;  %v1844_v44 = vld [vmem:[#allocation9 + $0x1a50] sm:$0xff] }
 0x461   :  { %8014 = vmatpush1.bf16.msra.mxu0 %v12540_v32  ;;  %v1796_v32 = vld [vmem:[#allocation9 + $0x18d0] sm:$0xff] }
 0x462   :  { %8096 = vmatpush1.bf16.msra.mxu1 %v12542_v62  ;;  %8015 = vmatprep.subr.bf16.mxu0 %v12573_v2  ;;  %v1781_v62 = vld [vmem:[#allocation9 + $0x1858] sm:$0xff]  ;;  %v12701_v6 = vcombine.high %v1780_v58, %v1796_v32 }
 0x463   :  { %8097 = vmatprep.subr.bf16.mxu1 %v12575_v3  ;;  %v1797_v2 = vld [vmem:[#allocation9 + $0x18d8] sm:$0xff]  ;;  %v12668_v3 = vcombine.low %v1748_v13, %v1764_v14 }
 0x464   :  { %v12703_v50 = vcombine.high %v1781_v62, %v1797_v2  ;;  %v12702_v40 = vcombine.low %v1781_v62, %v1797_v2  ;;  %v1925_v62 = vld [vmem:[#allocation9 + $0x1cd8] sm:$0xff] }
 0x465   :  { %8016 = vmatpush1.bf16.msra.mxu0 %v12572_v49  ;;  %v1828_v49 = vld [vmem:[#allocation9 + $0x19d0] sm:$0xff] }
 0x466   :  { %8098 = vmatpush1.bf16.msra.mxu1 %v12574_v51  ;;  %8017 = vmatprep.subr.bf16.mxu0 %v12605_v38  ;;  %v1813_v51 = vld [vmem:[#allocation9 + $0x1958] sm:$0xff]  ;;  %v12733_v42 = vcombine.high %v1812_v7, %v1828_v49 }
 0x467   :  { %v14257_v10 = vpop.f32.mrb[32].mxu0  ;;  %8099 = vmatprep.subr.bf16.mxu1 %v12607_v39  ;;  %v1829_v38 = vld [vmem:[#allocation9 + $0x19d8] sm:$0xff]  ;;  %v12700_v39 = vcombine.low %v1780_v58, %v1796_v32  ;;  %v1924_v58 = vld [vmem:[#allocation9 + $0x1cd0] sm:$0xff] }
 0x468   :  { %v14259_v15 = vpop.f32.mrb[24].mxu1  ;;  %v14261_v16 = vpop.f32.mrb[33].mxu0  ;;  %v12735_v43 = vcombine.high %v1813_v51, %v1829_v38  ;;  %v12734_v13 = vcombine.low %v1813_v51, %v1829_v38  ;;  %v1909_v32 = vld [vmem:[#allocation9 + $0x1c58] sm:$0xff] }
 0x469   :  { %v8464_v19 = vpack.c.bf16 %v14259_v15, %v14257_v10  ;;  %v14265_v20 = vpop.f32.mrb[25].mxu1  ;;  %v7717_v21 = vpop.f32.mrb[34].mxu0  ;;  %8018 = vmatpush1.bf16.msra.mxu0 %v12604_v9  ;;  %v1860_v9 = vld [vmem:[#allocation9 + $0x1ad0] sm:$0xff]  ;;  %v1957_v51 = vld [vmem:[#allocation9 + $0x1dd8] sm:$0xff]  ;;  %v13504_v15 = vld [vmem:[#allocation10] sm:$0xff]  }
 0x46a   :  { %v8465_v24 = vpack.c.bf16 %v14265_v20, %v14261_v16  ;;  %v7799_v26 = vpop.f32.mrb[26].mxu1  ;;  %8100 = vmatpush1.bf16.msra.mxu1 %v12606_v52  ;;  %v7718_v27 = vpop.f32.mrb[35].mxu0  ;;  %8019 = vmatprep.subr.bf16.mxu0 %v12637_v11  ;;  %v1845_v52 = vld [vmem:[#allocation9 + $0x1a58] sm:$0xff]  ;;  %v12765_v14 = vcombine.high %v1844_v44, %v1860_v9  ;;  %v1892_v21 = vld [vmem:[#allocation9 + $0x1bd0] sm:$0xff]  ;;  %v13505_v16 = vld [vmem:[#allocation10 + $0x8] sm:$0xff]  }
 0x46b   :  { %v7800_v41 = vpop.f32.mrb[27].mxu1  ;;  %8101 = vmatprep.subr.bf16.mxu1 %v12639_v12  ;;  %v1861_v11 = vld [vmem:[#allocation9 + $0x1ad8] sm:$0xff]  ;;  %v12732_v12 = vcombine.low %v1812_v7, %v1828_v49  ;;  %v12764_v27 = vcombine.low %v1844_v44, %v1860_v9  ;;  %v12796_v2 = vcombine.low %v1876_v18, %v1892_v21  ;;  %v1956_v7 = vld [vmem:[#allocation9 + $0x1dd0] sm:$0xff] }
 0x46c   :  { %v12767_v17 = vcombine.high %v1845_v52, %v1861_v11  ;;  %v1893_v26 = vld [vmem:[#allocation9 + $0x1bd8] sm:$0xff]  ;;  %v1988_v44 = vld [vmem:[#allocation9 + $0x1ed0] sm:$0xff] }
 0x46d   :  { %8020 = vmatpush1.bf16.msra.mxu0 %v12636_v23  ;;  %v1877_v23 = vld [vmem:[#allocation9 + $0x1b58] sm:$0xff] }
 0x46e   :  { %8102 = vmatpush1.bf16.msra.mxu1 %v12638_v30  ;;  %8021 = vmatprep.subr.bf16.mxu0 %v12669_v37  ;;  %v12766_v30 = vcombine.low %v1845_v52, %v1861_v11  ;;  %v12797_v37 = vcombine.high %v1876_v18, %v1892_v21  ;;  %v12799_v41 = vcombine.high %v1877_v23, %v1893_v26  ;;  %v1941_v49 = vld [vmem:[#allocation9 + $0x1d58] sm:$0xff]  ;;  %v2020_v18 = vld [vmem:[#allocation9 + $0x1fd0] sm:$0xff] }
 0x46f   :  { %8103 = vmatprep.subr.bf16.mxu1 %v12671_v57  ;;  %v1908_v57 = vld [vmem:[#allocation9 + $0x1c50] sm:$0xff]  ;;  %v1973_v9 = vld [vmem:[#allocation9 + $0x1e58] sm:$0xff] }
 0x470   :  { %v12828_v38 = vcombine.low %v1908_v57, %v1924_v58  ;;  %v1989_v52 = vld [vmem:[#allocation9 + $0x1ed8] sm:$0xff] }
 0x471   :  { %8022 = vmatpush1.bf16.msra.mxu0 %v12668_v3  ;;  %v12798_v3 = vcombine.low %v1877_v23, %v1893_v26  ;;  %v2005_v21 = vld [vmem:[#allocation9 + $0x1f58] sm:$0xff] }
 0x472   :  { %8104 = vmatpush1.bf16.msra.mxu1 %v12670_v48  ;;  %8023 = vmatprep.subr.bf16.mxu0 %v12701_v6  ;;  %v12829_v48 = vcombine.high %v1908_v57, %v1924_v58  ;;  %v12831_v6 = vcombine.high %v1909_v32, %v1925_v62  ;;  %v2021_v23 = vld [vmem:[#allocation9 + $0x1fd8] sm:$0xff]  ;;  %v1030_v57 = vld [vmem:[#allocation9 + $0xe0] sm:$0xff]  ;;  %v1015_v58 = vld [vmem:[#allocation9 + $0x68] sm:$0xff] }
 0x473   :  { %8105 = vmatprep.subr.bf16.mxu1 %v12703_v50  ;;  %v1940_v50 = vld [vmem:[#allocation9 + $0x1d50] sm:$0xff] }
 0x474   :  { %v12860_v11 = vcombine.low %v1940_v50, %v1956_v7 }
 0x475   :  { %8024 = vmatpush1.bf16.msra.mxu0 %v12700_v39  ;;  %v12830_v39 = vcombine.low %v1909_v32, %v1925_v62  ;;  %v1031_v32 = vld [vmem:[#allocation9 + $0xe8] sm:$0xff] }
 0x476   :  { %8106 = vmatpush1.bf16.msra.mxu1 %v12702_v40  ;;  %8025 = vmatprep.subr.bf16.mxu0 %v12733_v42  ;;  %v12861_v40 = vcombine.high %v1940_v50, %v1956_v7  ;;  %v12863_v42 = vcombine.high %v1941_v49, %v1957_v51  ;;  %v1062_v50 = vld [vmem:[#allocation9 + $0x1e0] sm:$0xff] }
 0x477   :  { %8107 = vmatprep.subr.bf16.mxu1 %v12735_v43  ;;  %v1972_v43 = vld [vmem:[#allocation9 + $0x1e50] sm:$0xff] }
 0x478   :  { %v12892_v26 = vcombine.low %v1972_v43, %v1988_v44 }
 0x479   :  { %8026 = vmatpush1.bf16.msra.mxu0 %v12732_v12  ;;  %v12862_v12 = vcombine.low %v1941_v49, %v1957_v51  ;;  %v1047_v49 = vld [vmem:[#allocation9 + $0x168] sm:$0xff] }
 0x47a   :  { %8108 = vmatpush1.bf16.msra.mxu1 %v12734_v13  ;;  %8027 = vmatprep.subr.bf16.mxu0 %v12765_v14  ;;  %v12893_v13 = vcombine.high %v1972_v43, %v1988_v44  ;;  %v12895_v14 = vcombine.high %v1973_v9, %v1989_v52  ;;  %v1063_v51 = vld [vmem:[#allocation9 + $0x1e8] sm:$0xff] }
 0x47b   :  { %8109 = vmatprep.subr.bf16.mxu1 %v12767_v17  ;;  %v2004_v17 = vld [vmem:[#allocation9 + $0x1f50] sm:$0xff]  ;;  %v11971_v43 = vcombine.high %v1047_v49, %v1063_v51  ;;  %v1079_v44 = vld [vmem:[#allocation9 + $0x268] sm:$0xff] }
 0x47c   :  { %v12924_v62 = vcombine.low %v2004_v17, %v2020_v18 }
 0x47d   :  { %8028 = vmatpush1.bf16.msra.mxu0 %v12764_v27  ;;  %v12894_v27 = vcombine.low %v1973_v9, %v1989_v52  ;;  %v1095_v9 = vld [vmem:[#allocation9 + $0x2e8] sm:$0xff] }
 0x47e   :  { %8110 = vmatpush1.bf16.msra.mxu1 %v12766_v30  ;;  %8029 = vmatprep.subr.bf16.mxu0 %v12797_v37  ;;  %v12925_v30 = vcombine.high %v2004_v17, %v2020_v18  ;;  %v12927_v37 = vcombine.high %v2005_v21, %v2021_v23  ;;  %v1126_v17 = vld [vmem:[#allocation9 + $0x3e0] sm:$0xff]  ;;  %v1111_v18 = vld [vmem:[#allocation9 + $0x368] sm:$0xff] }
 0x47f   :  { %8111 = vmatprep.subr.bf16.mxu1 %v12799_v41  ;;  %v1014_v41 = vld [vmem:[#allocation9 + $0x60] sm:$0xff] }
 0x480   :  { %v11936_v7 = vcombine.low %v1014_v41, %v1030_v57 }
 0x481   :  { %8030 = vmatpush1.bf16.msra.mxu0 %v12796_v2  ;;  %v12926_v2 = vcombine.low %v2005_v21, %v2021_v23  ;;  %v1127_v21 = vld [vmem:[#allocation9 + $0x3e8] sm:$0xff] }
 0x482   :  { %8112 = vmatpush1.bf16.msra.mxu1 %v12798_v3  ;;  %8031 = vmatprep.subr.bf16.mxu0 %v12829_v48  ;;  %v11937_v3 = vcombine.high %v1014_v41, %v1030_v57  ;;  %v11939_v48 = vcombine.high %v1015_v58, %v1031_v32  ;;  %v1158_v41 = vld [vmem:[#allocation9 + $0x4e0] sm:$0xff]  ;;  %v1143_v57 = vld [vmem:[#allocation9 + $0x468] sm:$0xff] }
 0x483   :  { %8113 = vmatprep.subr.bf16.mxu1 %v12831_v6  ;;  %v1046_v6 = vld [vmem:[#allocation9 + $0x160] sm:$0xff] }
 0x484   :  { %v11968_v52 = vcombine.low %v1046_v6, %v1062_v50 }
 0x485   :  { %8032 = vmatpush1.bf16.msra.mxu0 %v12828_v38  ;;  %v11938_v38 = vcombine.low %v1015_v58, %v1031_v32  ;;  %v1159_v58 = vld [vmem:[#allocation9 + $0x4e8] sm:$0xff] }
 0x486   :  { %8114 = vmatpush1.bf16.msra.mxu1 %v12830_v39  ;;  %8033 = vmatprep.subr.bf16.mxu0 %v12861_v40  ;;  %v11969_v39 = vcombine.high %v1046_v6, %v1062_v50  ;;  %v1078_v40 = vld [vmem:[#allocation9 + $0x260] sm:$0xff]  ;;  %v1175_v50 = vld [vmem:[#allocation9 + $0x568] sm:$0xff] }
 0x487   :  { %8115 = vmatprep.subr.bf16.mxu1 %v12863_v42  ;;  %v1094_v42 = vld [vmem:[#allocation9 + $0x2e0] sm:$0xff] }
 0x488   :  { %v12000_v23 = vcombine.low %v1078_v40, %v1094_v42  ;;  %v1190_v6 = vld [vmem:[#allocation9 + $0x5e0] sm:$0xff] }
 0x489   :  { %8034 = vmatpush1.bf16.msra.mxu0 %v12860_v11  ;;  %v11970_v11 = vcombine.low %v1047_v49, %v1063_v51  ;;  %v12066_v51 = vcombine.low %v1143_v57, %v1159_v58 }
 0x48a   :  { %8116 = vmatpush1.bf16.msra.mxu1 %v12862_v12  ;;  %8035 = vmatprep.subr.bf16.mxu0 %v12893_v13  ;;  %v12001_v12 = vcombine.high %v1078_v40, %v1094_v42  ;;  %v12003_v13 = vcombine.high %v1079_v44, %v1095_v9  ;;  %v1206_v40 = vld [vmem:[#allocation9 + $0x660] sm:$0xff] }
 0x48b   :  { %8117 = vmatprep.subr.bf16.mxu1 %v12895_v14  ;;  %v1110_v14 = vld [vmem:[#allocation9 + $0x360] sm:$0xff] }
 0x48c   :  { %v12032_v32 = vcombine.low %v1110_v14, %v1126_v17  ;;  %v1222_v42 = vld [vmem:[#allocation9 + $0x6e0] sm:$0xff] }
 0x48d   :  { %8036 = vmatpush1.bf16.msra.mxu0 %v12892_v26  ;;  %v12002_v26 = vcombine.low %v1079_v44, %v1095_v9  ;;  %v1223_v44 = vld [vmem:[#allocation9 + $0x6e8] sm:$0xff] }
 0x48e   :  { %8118 = vmatpush1.bf16.msra.mxu1 %v12894_v27  ;;  %8037 = vmatprep.subr.bf16.mxu0 %v12925_v30  ;;  %v12033_v27 = vcombine.high %v1110_v14, %v1126_v17  ;;  %v12035_v30 = vcombine.high %v1111_v18, %v1127_v21  ;;  %v1254_v14 = vld [vmem:[#allocation9 + $0x7e0] sm:$0xff]  ;;  %v1239_v17 = vld [vmem:[#allocation9 + $0x768] sm:$0xff] }
 0x48f   :  { %8119 = vmatprep.subr.bf16.mxu1 %v12927_v37  ;;  %v1142_v37 = vld [vmem:[#allocation9 + $0x460] sm:$0xff] }
 0x490   :  { %v12064_v49 = vcombine.low %v1142_v37, %v1158_v41 }
 0x491   :  { %8038 = vmatpush1.bf16.msra.mxu0 %v12924_v62  ;;  %v12034_v62 = vcombine.low %v1111_v18, %v1127_v21  ;;  %v1255_v18 = vld [vmem:[#allocation9 + $0x7e8] sm:$0xff]  ;;  %v12128_v21 = vcombine.low %v1206_v40, %v1222_v42 }
 0x492   :  { %8120 = vmatpush1.bf16.msra.mxu1 %v12926_v2  ;;  %8130 = vmatprep.subr.bf16.mxu0 %v11937_v3  ;;  %v12065_v2 = vcombine.high %v1142_v37, %v1158_v41  ;;  %v12067_v3 = vcombine.high %v1143_v57, %v1159_v58  ;;  %v1286_v37 = vld [vmem:[#allocation9 + $0x8e0] sm:$0xff]  ;;  %v1271_v41 = vld [vmem:[#allocation9 + $0x868] sm:$0xff] }
 0x493   :  { %8212 = vmatprep.subr.bf16.mxu1 %v11939_v48  ;;  %v1174_v48 = vld [vmem:[#allocation9 + $0x560] sm:$0xff]  ;;  %v1287_v57 = vld [vmem:[#allocation9 + $0x8e8] sm:$0xff] }
 0x494   :  { %8040 = vmatmul.mubr.bf16.vlgmr.msra.gmra.mrb[40].mxu0 %v14179_v8  ;;  %v12096_v9 = vcombine.low %v1174_v48, %v1190_v6 }
 0x495   :  { %8122 = vmatmul.mubr.bf16.vlgmr.msra.gmra.mrb[32].mxu1 %v14179_v8  ;;  %8131 = vmatpush1.bf16.msra.mxu0 %v11936_v7  ;;  %v1191_v7 = vld [vmem:[#allocation9 + $0x5e8] sm:$0xff] }
 0x496   :  { %8162 = vmatprep.mubr.bf16.mxu0 %v14159_v61  ;;  %8213 = vmatpush1.bf16.msra.mxu1 %v11938_v38  ;;  %v12097_v38 = vcombine.high %v1174_v48, %v1190_v6  ;;  %v1318_v48 = vld [vmem:[#allocation9 + $0x9e0] sm:$0xff]  ;;  %v1303_v6 = vld [vmem:[#allocation9 + $0x968] sm:$0xff] }
 0x497   :  { %8244 = vmatprep.mubr.bf16.mxu1 %v14159_v61  ;;  %8132 = vmatprep.subr.bf16.mxu0 %v11969_v39  ;;  %v12099_v39 = vcombine.high %v1175_v50, %v1191_v7 }
 0x498   :  { %8214 = vmatprep.subr.bf16.mxu1 %v11971_v43  ;;  %v1207_v43 = vld [vmem:[#allocation9 + $0x668] sm:$0xff] }
 0x499   :  { %8133 = vmatpush1.bf16.msra.mxu0 %v11968_v52  ;;  %v12098_v52 = vcombine.low %v1175_v50, %v1191_v7  ;;  %v1319_v50 = vld [vmem:[#allocation9 + $0x9e8] sm:$0xff] }
 0x49a   :  { %8215 = vmatpush1.bf16.msra.mxu1 %v11970_v11  ;;  %8134 = vmatprep.subr.bf16.mxu0 %v12001_v12  ;;  %v12129_v11 = vcombine.high %v1206_v40, %v1222_v42  ;;  %v12131_v12 = vcombine.high %v1207_v43, %v1223_v44  ;;  %v1350_v40 = vld [vmem:[#allocation9 + $0xae0] sm:$0xff]  ;;  %v1335_v42 = vld [vmem:[#allocation9 + $0xa68] sm:$0xff] }
 0x49b   :  { %8216 = vmatprep.subr.bf16.mxu1 %v12003_v13  ;;  %v1238_v13 = vld [vmem:[#allocation9 + $0x760] sm:$0xff] }
 0x49c   :  { %v12160_v58 = vcombine.low %v1238_v13, %v1254_v14 }
 0x49d   :  { %8135 = vmatpush1.bf16.msra.mxu0 %v12000_v23  ;;  %v12130_v23 = vcombine.low %v1207_v43, %v1223_v44  ;;  %v1351_v43 = vld [vmem:[#allocation9 + $0xae8] sm:$0xff] }
 0x49e   :  { %8217 = vmatpush1.bf16.msra.mxu1 %v12002_v26  ;;  %8136 = vmatprep.subr.bf16.mxu0 %v12033_v27  ;;  %v12161_v26 = vcombine.high %v1238_v13, %v1254_v14  ;;  %v12163_v27 = vcombine.high %v1239_v17, %v1255_v18  ;;  %v1382_v13 = vld [vmem:[#allocation9 + $0xbe0] sm:$0xff]  ;;  %v1367_v14 = vld [vmem:[#allocation9 + $0xb68] sm:$0xff] }
 0x49f   :  { %8218 = vmatprep.subr.bf16.mxu1 %v12035_v30  ;;  %v1270_v30 = vld [vmem:[#allocation9 + $0x860] sm:$0xff] }
 0x4a0   :  { %v12192_v7 = vcombine.low %v1270_v30, %v1286_v37 }
 0x4a1   :  { %8137 = vmatpush1.bf16.msra.mxu0 %v12032_v32  ;;  %v12162_v32 = vcombine.low %v1239_v17, %v1255_v18  ;;  %v1383_v17 = vld [vmem:[#allocation9 + $0xbe8] sm:$0xff] }
 0x4a2   :  { %8219 = vmatpush1.bf16.msra.mxu1 %v12034_v62  ;;  %8138 = vmatprep.subr.bf16.mxu0 %v12065_v2  ;;  %v12193_v62 = vcombine.high %v1270_v30, %v1286_v37  ;;  %v12195_v2 = vcombine.high %v1271_v41, %v1287_v57  ;;  %v1414_v30 = vld [vmem:[#allocation9 + $0xce0] sm:$0xff]  ;;  %v1399_v37 = vld [vmem:[#allocation9 + $0xc68] sm:$0xff] }
 0x4a3   :  { %8220 = vmatprep.subr.bf16.mxu1 %v12067_v3  ;;  %v1302_v3 = vld [vmem:[#allocation9 + $0x960] sm:$0xff] }
 0x4a4   :  { %v12224_v44 = vcombine.low %v1302_v3, %v1318_v48 }
 0x4a5   :  { %8139 = vmatpush1.bf16.msra.mxu0 %v12064_v49  ;;  %v12194_v49 = vcombine.low %v1271_v41, %v1287_v57  ;;  %v1415_v41 = vld [vmem:[#allocation9 + $0xce8] sm:$0xff] }
 0x4a6   :  { %8221 = vmatpush1.bf16.msra.mxu1 %v12066_v51  ;;  %8140 = vmatprep.subr.bf16.mxu0 %v12097_v38  ;;  %v12225_v51 = vcombine.high %v1302_v3, %v1318_v48  ;;  %v12227_v38 = vcombine.high %v1303_v6, %v1319_v50  ;;  %v1446_v3 = vld [vmem:[#allocation9 + $0xde0] sm:$0xff]  ;;  %v1431_v48 = vld [vmem:[#allocation9 + $0xd68] sm:$0xff] }
 0x4a7   :  { %8222 = vmatprep.subr.bf16.mxu1 %v12099_v39  ;;  %v1334_v39 = vld [vmem:[#allocation9 + $0xa60] sm:$0xff] }
 0x4a8   :  { %v12256_v18 = vcombine.low %v1334_v39, %v1350_v40 }
 0x4a9   :  { %8141 = vmatpush1.bf16.msra.mxu0 %v12096_v9  ;;  %v12226_v9 = vcombine.low %v1303_v6, %v1319_v50  ;;  %v1447_v6 = vld [vmem:[#allocation9 + $0xde8] sm:$0xff] }
 0x4aa   :  { %8223 = vmatpush1.bf16.msra.mxu1 %v12098_v52  ;;  %8142 = vmatprep.subr.bf16.mxu0 %v12129_v11  ;;  %v12257_v52 = vcombine.high %v1334_v39, %v1350_v40  ;;  %v12259_v11 = vcombine.high %v1335_v42, %v1351_v43  ;;  %v1478_v39 = vld [vmem:[#allocation9 + $0xee0] sm:$0xff]  ;;  %v1463_v40 = vld [vmem:[#allocation9 + $0xe68] sm:$0xff] }
 0x4ab   :  { %8224 = vmatprep.subr.bf16.mxu1 %v12131_v12  ;;  %v1366_v12 = vld [vmem:[#allocation9 + $0xb60] sm:$0xff] }
 0x4ac   :  { %v12288_v57 = vcombine.low %v1366_v12, %v1382_v13 }
 0x4ad   :  { %8143 = vmatpush1.bf16.msra.mxu0 %v12128_v21  ;;  %v12258_v21 = vcombine.low %v1335_v42, %v1351_v43  ;;  %v1479_v42 = vld [vmem:[#allocation9 + $0xee8] sm:$0xff] }
 0x4ae   :  { %8225 = vmatpush1.bf16.msra.mxu1 %v12130_v23  ;;  %8144 = vmatprep.subr.bf16.mxu0 %v12161_v26  ;;  %v12289_v23 = vcombine.high %v1366_v12, %v1382_v13  ;;  %v12291_v26 = vcombine.high %v1367_v14, %v1383_v17  ;;  %v1510_v12 = vld [vmem:[#allocation9 + $0xfe0] sm:$0xff]  ;;  %v1495_v13 = vld [vmem:[#allocation9 + $0xf68] sm:$0xff] }
 0x4af   :  { %8226 = vmatprep.subr.bf16.mxu1 %v12163_v27  ;;  %v1398_v27 = vld [vmem:[#allocation9 + $0xc60] sm:$0xff] }
 0x4b0   :  { %v12320_v50 = vcombine.low %v1398_v27, %v1414_v30 }
 0x4b1   :  { %8145 = vmatpush1.bf16.msra.mxu0 %v12160_v58  ;;  %v12290_v58 = vcombine.low %v1367_v14, %v1383_v17  ;;  %v1511_v14 = vld [vmem:[#allocation9 + $0xfe8] sm:$0xff] }
 0x4b2   :  { %8227 = vmatpush1.bf16.msra.mxu1 %v12162_v32  ;;  %8146 = vmatprep.subr.bf16.mxu0 %v12193_v62  ;;  %v12321_v32 = vcombine.high %v1398_v27, %v1414_v30  ;;  %v12323_v62 = vcombine.high %v1399_v37, %v1415_v41  ;;  %v1542_v27 = vld [vmem:[#allocation9 + $0x10e0] sm:$0xff]  ;;  %v1527_v30 = vld [vmem:[#allocation9 + $0x1068] sm:$0xff] }
 0x4b3   :  { %8228 = vmatprep.subr.bf16.mxu1 %v12195_v2  ;;  %v1430_v2 = vld [vmem:[#allocation9 + $0xd60] sm:$0xff] }
 0x4b4   :  { %v12352_v43 = vcombine.low %v1430_v2, %v1446_v3 }
 0x4b5   :  { %8147 = vmatpush1.bf16.msra.mxu0 %v12192_v7  ;;  %v12322_v7 = vcombine.low %v1399_v37, %v1415_v41  ;;  %v1543_v37 = vld [vmem:[#allocation9 + $0x10e8] sm:$0xff] }
 0x4b6   :  { %8229 = vmatpush1.bf16.msra.mxu1 %v12194_v49  ;;  %8148 = vmatprep.subr.bf16.mxu0 %v12225_v51  ;;  %v12353_v49 = vcombine.high %v1430_v2, %v1446_v3  ;;  %v12355_v51 = vcombine.high %v1431_v48, %v1447_v6  ;;  %v1574_v2 = vld [vmem:[#allocation9 + $0x11e0] sm:$0xff] }
 0x4b7   :  { %8230 = vmatprep.subr.bf16.mxu1 %v12227_v38  ;;  %v1462_v38 = vld [vmem:[#allocation9 + $0xe60] sm:$0xff] }
 0x4b8   :  { %v12384_v17 = vcombine.low %v1462_v38, %v1478_v39 }
 0x4b9   :  { %8149 = vmatpush1.bf16.msra.mxu0 %v12224_v44  ;;  %v12354_v44 = vcombine.low %v1431_v48, %v1447_v6  ;;  %v1559_v48 = vld [vmem:[#allocation9 + $0x1168] sm:$0xff] }
 0x4ba   :  { %8231 = vmatpush1.bf16.msra.mxu1 %v12226_v9  ;;  %8150 = vmatprep.subr.bf16.mxu0 %v12257_v52  ;;  %v12385_v9 = vcombine.high %v1462_v38, %v1478_v39  ;;  %v12387_v52 = vcombine.high %v1463_v40, %v1479_v42  ;;  %v1575_v6 = vld [vmem:[#allocation9 + $0x11e8] sm:$0xff] }
 0x4bb   :  { %8232 = vmatprep.subr.bf16.mxu1 %v12259_v11  ;;  %v1494_v11 = vld [vmem:[#allocation9 + $0xf60] sm:$0xff]  ;;  %v12483_v38 = vcombine.high %v1559_v48, %v1575_v6  ;;  %v1591_v39 = vld [vmem:[#allocation9 + $0x1268] sm:$0xff] }
 0x4bc   :  { %v12416_v41 = vcombine.low %v1494_v11, %v1510_v12 }
 0x4bd   :  { %8151 = vmatpush1.bf16.msra.mxu0 %v12256_v18  ;;  %v12386_v18 = vcombine.low %v1463_v40, %v1479_v42  ;;  %v1607_v40 = vld [vmem:[#allocation9 + $0x12e8] sm:$0xff] }
 0x4be   :  { %8233 = vmatpush1.bf16.msra.mxu1 %v12258_v21  ;;  %8152 = vmatprep.subr.bf16.mxu0 %v12289_v23  ;;  %v12417_v21 = vcombine.high %v1494_v11, %v1510_v12  ;;  %v12419_v23 = vcombine.high %v1495_v13, %v1511_v14  ;;  %v1638_v11 = vld [vmem:[#allocation9 + $0x13e0] sm:$0xff]  ;;  %v1623_v12 = vld [vmem:[#allocation9 + $0x1368] sm:$0xff] }
 0x4bf   :  { %8234 = vmatprep.subr.bf16.mxu1 %v12291_v26  ;;  %v1526_v26 = vld [vmem:[#allocation9 + $0x1060] sm:$0xff] }
 0x4c0   :  { %v12448_v3 = vcombine.low %v1526_v26, %v1542_v27 }
 0x4c1   :  { %8153 = vmatpush1.bf16.msra.mxu0 %v12288_v57  ;;  %v12418_v57 = vcombine.low %v1495_v13, %v1511_v14  ;;  %v1639_v13 = vld [vmem:[#allocation9 + $0x13e8] sm:$0xff] }
 0x4c2   :  { %8235 = vmatpush1.bf16.msra.mxu1 %v12290_v58  ;;  %8154 = vmatprep.subr.bf16.mxu0 %v12321_v32  ;;  %v12449_v58 = vcombine.high %v1526_v26, %v1542_v27  ;;  %v12451_v32 = vcombine.high %v1527_v30, %v1543_v37  ;;  %v1670_v26 = vld [vmem:[#allocation9 + $0x14e0] sm:$0xff]  ;;  %v1655_v27 = vld [vmem:[#allocation9 + $0x1468] sm:$0xff] }
 0x4c3   :  { %8236 = vmatprep.subr.bf16.mxu1 %v12323_v62  ;;  %v1558_v62 = vld [vmem:[#allocation9 + $0x1160] sm:$0xff] }
 0x4c4   :  { %v12480_v42 = vcombine.low %v1558_v62, %v1574_v2 }
 0x4c5   :  { %8155 = vmatpush1.bf16.msra.mxu0 %v12320_v50  ;;  %v12450_v50 = vcombine.low %v1527_v30, %v1543_v37  ;;  %v1671_v30 = vld [vmem:[#allocation9 + $0x14e8] sm:$0xff] }
 0x4c6   :  { %8237 = vmatpush1.bf16.msra.mxu1 %v12322_v7  ;;  %8156 = vmatprep.subr.bf16.mxu0 %v12353_v49  ;;  %v12481_v7 = vcombine.high %v1558_v62, %v1574_v2  ;;  %v1590_v49 = vld [vmem:[#allocation9 + $0x1260] sm:$0xff]  ;;  %v1687_v2 = vld [vmem:[#allocation9 + $0x1568] sm:$0xff] }
 0x4c7   :  { %8238 = vmatprep.subr.bf16.mxu1 %v12355_v51  ;;  %v1606_v51 = vld [vmem:[#allocation9 + $0x12e0] sm:$0xff] }
 0x4c8   :  { %v12512_v14 = vcombine.low %v1590_v49, %v1606_v51  ;;  %v1702_v62 = vld [vmem:[#allocation9 + $0x15e0] sm:$0xff] }
 0x4c9   :  { %8157 = vmatpush1.bf16.msra.mxu0 %v12352_v43  ;;  %v12482_v43 = vcombine.low %v1559_v48, %v1575_v6  ;;  %v12578_v6 = vcombine.low %v1655_v27, %v1671_v30 }
 0x4ca   :  { %8239 = vmatpush1.bf16.msra.mxu1 %v12354_v44  ;;  %8158 = vmatprep.subr.bf16.mxu0 %v12385_v9  ;;  %v12513_v44 = vcombine.high %v1590_v49, %v1606_v51  ;;  %v12515_v9 = vcombine.high %v1591_v39, %v1607_v40  ;;  %v1718_v49 = vld [vmem:[#allocation9 + $0x1660] sm:$0xff] }
 0x4cb   :  { %8240 = vmatprep.subr.bf16.mxu1 %v12387_v52  ;;  %v1622_v52 = vld [vmem:[#allocation9 + $0x1360] sm:$0xff] }
 0x4cc   :  { %v12544_v37 = vcombine.low %v1622_v52, %v1638_v11  ;;  %v1734_v51 = vld [vmem:[#allocation9 + $0x16e0] sm:$0xff] }
 0x4cd   :  { %8159 = vmatpush1.bf16.msra.mxu0 %v12384_v17  ;;  %v12514_v17 = vcombine.low %v1591_v39, %v1607_v40  ;;  %v1735_v39 = vld [vmem:[#allocation9 + $0x16e8] sm:$0xff] }
 0x4ce   :  { %8241 = vmatpush1.bf16.msra.mxu1 %v12386_v18  ;;  %8160 = vmatprep.subr.bf16.mxu0 %v12417_v21  ;;  %v12545_v18 = vcombine.high %v1622_v52, %v1638_v11  ;;  %v12547_v21 = vcombine.high %v1623_v12, %v1639_v13  ;;  %v1750_v52 = vld [vmem:[#allocation9 + $0x1760] sm:$0xff] }
 0x4cf   :  { %8242 = vmatprep.subr.bf16.mxu1 %v12419_v23  ;;  %v1654_v23 = vld [vmem:[#allocation9 + $0x1460] sm:$0xff] }
 0x4d0   :  { %v12576_v48 = vcombine.low %v1654_v23, %v1670_v26  ;;  %v1766_v11 = vld [vmem:[#allocation9 + $0x17e0] sm:$0xff] }
 0x4d1   :  { %8161 = vmatpush1.bf16.msra.mxu0 %v12416_v41  ;;  %v12546_v41 = vcombine.low %v1623_v12, %v1639_v13 }
 0x4d2   :  { %8243 = vmatpush1.bf16.msra.mxu1 %v12418_v57  ;;  %8171 = vmatprep.subr.bf16.mxu0 %v12449_v58  ;;  %v12577_v57 = vcombine.high %v1654_v23, %v1670_v26  ;;  %v12579_v58 = vcombine.high %v1655_v27, %v1671_v30  ;;  %v12640_v26 = vcombine.low %v1718_v49, %v1734_v51 }
 0x4d3   :  { %8253 = vmatprep.subr.bf16.mxu1 %v12451_v32  ;;  %v1686_v32 = vld [vmem:[#allocation9 + $0x1560] sm:$0xff] }
 0x4d4   :  { %8163 = vmatmul.mubr.bf16.vlgmr.msra.gmra.mrb[44].mxu0 %v14161_v1  ;;  %v12608_v40 = vcombine.low %v1686_v32, %v1702_v62 }
 0x4d5   :  { %8245 = vmatmul.mubr.bf16.vlgmr.msra.gmra.mrb[36].mxu1 %v14161_v1  ;;  %8172 = vmatpush1.bf16.msra.mxu0 %v12448_v3  ;;  %v1703_v3 = vld [vmem:[#allocation9 + $0x15e8] sm:$0xff] }
 0x4d6   :  { %8203 = vmatprep.mubr.bf16.mxu0 %v14165_v4  ;;  %8254 = vmatpush1.bf16.msra.mxu1 %v12450_v50  ;;  %v12609_v50 = vcombine.high %v1686_v32, %v1702_v62  ;;  %v1782_v62 = vld [vmem:[#allocation9 + $0x1860] sm:$0xff] }
 0x4d7   :  { %8285 = vmatprep.mubr.bf16.mxu1 %v14165_v4  ;;  %8173 = vmatprep.subr.bf16.mxu0 %v12481_v7  ;;  %v12611_v7 = vcombine.high %v1687_v2, %v1703_v3 }
 0x4d8   :  { %8255 = vmatprep.subr.bf16.mxu1 %v12483_v38  ;;  %v1719_v38 = vld [vmem:[#allocation9 + $0x1668] sm:$0xff] }
 0x4d9   :  { %8174 = vmatpush1.bf16.msra.mxu0 %v12480_v42  ;;  %v12610_v42 = vcombine.low %v1687_v2, %v1703_v3  ;;  %v1798_v2 = vld [vmem:[#allocation9 + $0x18e0] sm:$0xff]  ;;  %v1783_v3 = vld [vmem:[#allocation9 + $0x1868] sm:$0xff] }
 0x4da   :  { %8256 = vmatpush1.bf16.msra.mxu1 %v12482_v43  ;;  %8175 = vmatprep.subr.bf16.mxu0 %v12513_v44  ;;  %v12641_v43 = vcombine.high %v1718_v49, %v1734_v51  ;;  %v1814_v51 = vld [vmem:[#allocation9 + $0x1960] sm:$0xff] }
 0x4db   :  { %8257 = vmatprep.subr.bf16.mxu1 %v12515_v9  ;;  %v12643_v9 = vcombine.high %v1719_v38, %v1735_v39 }
 0x4dd   :  { %8176 = vmatpush1.bf16.msra.mxu0 %v12512_v14  ;;  %v1751_v14 = vld [vmem:[#allocation9 + $0x1768] sm:$0xff] }
 0x4de   :  { %8258 = vmatpush1.bf16.msra.mxu1 %v12514_v17  ;;  %8177 = vmatprep.subr.bf16.mxu0 %v12545_v18  ;;  %v1767_v17 = vld [vmem:[#allocation9 + $0x17e8] sm:$0xff] }
 0x4df   :  { %8259 = vmatprep.subr.bf16.mxu1 %v12547_v21  ;;  %v12675_v32 = vcombine.high %v1751_v14, %v1767_v17 }
 0x4e1   :  { %8178 = vmatpush1.bf16.msra.mxu0 %v12544_v37 }
 0x4e2   :  { %8260 = vmatpush1.bf16.msra.mxu1 %v12546_v41  ;;  %8179 = vmatprep.subr.bf16.mxu0 %v12577_v57  ;;  %v12642_v41 = vcombine.low %v1719_v38, %v1735_v39  ;;  %v12673_v57 = vcombine.high %v1750_v52, %v1766_v11  ;;  %v1831_v38 = vld [vmem:[#allocation9 + $0x19e8] sm:$0xff]  ;;  %v12704_v39 = vcombine.low %v1782_v62, %v1798_v2 }
 0x4e3   :  { %8261 = vmatprep.subr.bf16.mxu1 %v12579_v58 }
 0x4e5   :  { %8180 = vmatpush1.bf16.msra.mxu0 %v12576_v48  ;;  %v1799_v48 = vld [vmem:[#allocation9 + $0x18e8] sm:$0xff] }
 0x4e6   :  { %8262 = vmatpush1.bf16.msra.mxu1 %v12578_v6  ;;  %8181 = vmatprep.subr.bf16.mxu0 %v12609_v50  ;;  %v12672_v6 = vcombine.low %v1750_v52, %v1766_v11  ;;  %v12674_v50 = vcombine.low %v1751_v14, %v1767_v17  ;;  %v12707_v49 = vcombine.high %v1783_v3, %v1799_v48  ;;  %v1862_v52 = vld [vmem:[#allocation9 + $0x1ae0] sm:$0xff]  ;;  %v1847_v11 = vld [vmem:[#allocation9 + $0x1a68] sm:$0xff] }
 0x4e7   :  { %v14277_v44 = vpop.f32.mrb[36].mxu0  ;;  %8263 = vmatprep.subr.bf16.mxu1 %v12611_v7  ;;  %v12705_v7 = vcombine.high %v1782_v62, %v1798_v2  ;;  %v1895_v62 = vld [vmem:[#allocation9 + $0x1be8] sm:$0xff] }
 0x4e8   :  { %v14279_v12 = vpop.f32.mrb[28].mxu1  ;;  %v14281_v13 = vpop.f32.mrb[37].mxu0 }
 0x4e9   :  { %v8466_v18 = vpack.c.bf16 %v14279_v12, %v14277_v44  ;;  %v14285_v21 = vpop.f32.mrb[29].mxu1  ;;  %v7881_v23 = vpop.f32.mrb[38].mxu0  ;;  %8182 = vmatpush1.bf16.msra.mxu0 %v12608_v40  ;;  %v1830_v40 = vld [vmem:[#allocation9 + $0x19e0] sm:$0xff] }
 0x4ea   :  { %v8467_v27 = vpack.c.bf16 %v14285_v21, %v14281_v13  ;;  %v7963_v30 = vpop.f32.mrb[30].mxu1  ;;  %8264 = vmatpush1.bf16.msra.mxu1 %v12610_v42  ;;  %v7882_v37 = vpop.f32.mrb[39].mxu0  ;;  %8183 = vmatprep.subr.bf16.mxu0 %v12641_v43  ;;  %v1815_v42 = vld [vmem:[#allocation9 + $0x1968] sm:$0xff]  ;;  %v12706_v43 = vcombine.low %v1783_v3, %v1799_v48  ;;  %v12736_v14 = vcombine.low %v1814_v51, %v1830_v40 }
 0x4eb   :  { %v7964_v58 = vpop.f32.mrb[31].mxu1  ;;  %8265 = vmatprep.subr.bf16.mxu1 %v12643_v9  ;;  %v12737_v9 = vcombine.high %v1814_v51, %v1830_v40  ;;  %v12739_v23 = vcombine.high %v1815_v42, %v1831_v38  ;;  %v1863_v30 = vld [vmem:[#allocation9 + $0x1ae8] sm:$0xff]  ;;  %v12738_v17 = vcombine.low %v1815_v42, %v1831_v38 }
 0x4ec   :  { %v1894_v58 = vld [vmem:[#allocation9 + $0x1be0] sm:$0xff]  ;;  %v12770_v3 = vcombine.low %v1847_v11, %v1863_v30  ;;  %v1927_v51 = vld [vmem:[#allocation9 + $0x1ce8] sm:$0xff] }
 0x4ed   :  { %8184 = vmatpush1.bf16.msra.mxu0 %v12640_v26  ;;  %v1846_v26 = vld [vmem:[#allocation9 + $0x1a60] sm:$0xff] }
 0x4ee   :  { %8266 = vmatpush1.bf16.msra.mxu1 %v12642_v41  ;;  %8185 = vmatprep.subr.bf16.mxu0 %v12673_v57  ;;  %v12769_v37 = vcombine.high %v1846_v26, %v1862_v52  ;;  %v12771_v41 = vcombine.high %v1847_v11, %v1863_v30  ;;  %v1878_v57 = vld [vmem:[#allocation9 + $0x1b60] sm:$0xff]  ;;  %v12768_v2 = vcombine.low %v1846_v26, %v1862_v52  ;;  %v1959_v26 = vld [vmem:[#allocation9 + $0x1de8] sm:$0xff] }
 0x4ef   :  { %8267 = vmatprep.subr.bf16.mxu1 %v12675_v32  ;;  %v1879_v32 = vld [vmem:[#allocation9 + $0x1b68] sm:$0xff]  ;;  %v12801_v48 = vcombine.high %v1878_v57, %v1894_v58  ;;  %v12800_v40 = vcombine.low %v1878_v57, %v1894_v58 }
 0x4f0   :  { %v12802_v42 = vcombine.low %v1879_v32, %v1895_v62  ;;  %v1991_v57 = vld [vmem:[#allocation9 + $0x1ee8] sm:$0xff] }
 0x4f1   :  { %8186 = vmatpush1.bf16.msra.mxu0 %v12672_v6  ;;  %v12803_v6 = vcombine.high %v1879_v32, %v1895_v62 }
 0x4f2   :  { %8268 = vmatpush1.bf16.msra.mxu1 %v12674_v50  ;;  %8187 = vmatprep.subr.bf16.mxu0 %v12705_v7  ;;  %v1910_v50 = vld [vmem:[#allocation9 + $0x1c60] sm:$0xff] }
 0x4f3   :  { %8269 = vmatprep.subr.bf16.mxu1 %v12707_v49  ;;  %v1926_v7 = vld [vmem:[#allocation9 + $0x1ce0] sm:$0xff]  ;;  %v1911_v49 = vld [vmem:[#allocation9 + $0x1c68] sm:$0xff] }
 0x4f4   :  { %v12833_v38 = vcombine.high %v1910_v50, %v1926_v7  ;;  %v12832_v52 = vcombine.low %v1910_v50, %v1926_v7  ;;  %v12834_v11 = vcombine.low %v1911_v49, %v1927_v51  ;;  %v2023_v50 = vld [vmem:[#allocation9 + $0x1fe8] sm:$0xff] }
 0x4f5   :  { %8188 = vmatpush1.bf16.msra.mxu0 %v12704_v39  ;;  %v12835_v39 = vcombine.high %v1911_v49, %v1927_v51 }
 0x4f6   :  { %8270 = vmatpush1.bf16.msra.mxu1 %v12706_v43  ;;  %8189 = vmatprep.subr.bf16.mxu0 %v12737_v9  ;;  %v1942_v43 = vld [vmem:[#allocation9 + $0x1d60] sm:$0xff] }
 0x4f7   :  { %8271 = vmatprep.subr.bf16.mxu1 %v12739_v23  ;;  %v1958_v9 = vld [vmem:[#allocation9 + $0x1de0] sm:$0xff]  ;;  %v1943_v23 = vld [vmem:[#allocation9 + $0x1d68] sm:$0xff] }
 0x4f8   :  { %v12865_v30 = vcombine.high %v1942_v43, %v1958_v9  ;;  %v12864_v58 = vcombine.low %v1942_v43, %v1958_v9  ;;  %v12866_v32 = vcombine.low %v1943_v23, %v1959_v26  ;;  %v1033_v43 = vld [vmem:[#allocation9 + $0xf8] sm:$0xff] }
 0x4f9   :  { %8190 = vmatpush1.bf16.msra.mxu0 %v12736_v14  ;;  %v12867_v14 = vcombine.high %v1943_v23, %v1959_v26 }
 0x4fa   :  { %8272 = vmatpush1.bf16.msra.mxu1 %v12738_v17  ;;  %8191 = vmatprep.subr.bf16.mxu0 %v12769_v37  ;;  %v1974_v17 = vld [vmem:[#allocation9 + $0x1e60] sm:$0xff] }
 0x4fb   :  { %8273 = vmatprep.subr.bf16.mxu1 %v12771_v41  ;;  %v1990_v37 = vld [vmem:[#allocation9 + $0x1ee0] sm:$0xff]  ;;  %v1975_v41 = vld [vmem:[#allocation9 + $0x1e68] sm:$0xff] }
 0x4fc   :  { %v12897_v62 = vcombine.high %v1974_v17, %v1990_v37  ;;  %v12896_v7 = vcombine.low %v1974_v17, %v1990_v37  ;;  %v12898_v49 = vcombine.low %v1975_v41, %v1991_v57  ;;  %v1049_v17 = vld [vmem:[#allocation9 + $0x178] sm:$0xff] }
 0x4fd   :  { %8192 = vmatpush1.bf16.msra.mxu0 %v12768_v2  ;;  %v12899_v2 = vcombine.high %v1975_v41, %v1991_v57  ;;  %v1065_v37 = vld [vmem:[#allocation9 + $0x1f8] sm:$0xff] }
 0x4fe   :  { %8274 = vmatpush1.bf16.msra.mxu1 %v12770_v3  ;;  %8193 = vmatprep.subr.bf16.mxu0 %v12801_v48  ;;  %v2006_v3 = vld [vmem:[#allocation9 + $0x1f60] sm:$0xff] }
 0x4ff   :  { %8275 = vmatprep.subr.bf16.mxu1 %v12803_v6  ;;  %v2022_v48 = vld [vmem:[#allocation9 + $0x1fe0] sm:$0xff]  ;;  %v2007_v6 = vld [vmem:[#allocation9 + $0x1f68] sm:$0xff] }
 0x500   :  { %v12929_v51 = vcombine.high %v2006_v3, %v2022_v48  ;;  %v12928_v9 = vcombine.low %v2006_v3, %v2022_v48  ;;  %v12930_v23 = vcombine.low %v2007_v6, %v2023_v50  ;;  %v1097_v3 = vld [vmem:[#allocation9 + $0x2f8] sm:$0xff] }
 0x501   :  { %8194 = vmatpush1.bf16.msra.mxu0 %v12800_v40  ;;  %v12931_v40 = vcombine.high %v2007_v6, %v2023_v50  ;;  %v11974_v6 = vcombine.low %v1049_v17, %v1065_v37 }
 0x502   :  { %8276 = vmatpush1.bf16.msra.mxu1 %v12802_v42  ;;  %8195 = vmatprep.subr.bf16.mxu0 %v12833_v38  ;;  %v1016_v42 = vld [vmem:[#allocation9 + $0x70] sm:$0xff] }
 0x503   :  { %8277 = vmatprep.subr.bf16.mxu1 %v12835_v39  ;;  %v1032_v38 = vld [vmem:[#allocation9 + $0xf0] sm:$0xff]  ;;  %v1017_v39 = vld [vmem:[#allocation9 + $0x78] sm:$0xff] }
 0x504   :  { %v11941_v26 = vcombine.high %v1016_v42, %v1032_v38  ;;  %v11942_v41 = vcombine.low %v1017_v39, %v1033_v43 }
 0x505   :  { %8196 = vmatpush1.bf16.msra.mxu0 %v12832_v52  ;;  %v11943_v52 = vcombine.high %v1017_v39, %v1033_v43 }
 0x506   :  { %8278 = vmatpush1.bf16.msra.mxu1 %v12834_v11  ;;  %8197 = vmatprep.subr.bf16.mxu0 %v12865_v30  ;;  %v1048_v11 = vld [vmem:[#allocation9 + $0x170] sm:$0xff] }
 0x507   :  { %8279 = vmatprep.subr.bf16.mxu1 %v12867_v14  ;;  %v1064_v30 = vld [vmem:[#allocation9 + $0x1f0] sm:$0xff]  ;;  %v11940_v14 = vcombine.low %v1016_v42, %v1032_v38  ;;  %v1129_v42 = vld [vmem:[#allocation9 + $0x3f8] sm:$0xff] }
 0x508   :  { %v11973_v57 = vcombine.high %v1048_v11, %v1064_v30  ;;  %v11972_v48 = vcombine.low %v1048_v11, %v1064_v30  ;;  %v1161_v11 = vld [vmem:[#allocation9 + $0x4f8] sm:$0xff] }
 0x509   :  { %8198 = vmatpush1.bf16.msra.mxu0 %v12864_v58  ;;  %v1080_v58 = vld [vmem:[#allocation9 + $0x270] sm:$0xff] }
 0x50a   :  { %8280 = vmatpush1.bf16.msra.mxu1 %v12866_v32  ;;  %8199 = vmatprep.subr.bf16.mxu0 %v12897_v62  ;;  %v1096_v32 = vld [vmem:[#allocation9 + $0x2f0] sm:$0xff]  ;;  %v11975_v62 = vcombine.high %v1049_v17, %v1065_v37 }
 0x50b   :  { %8281 = vmatprep.subr.bf16.mxu1 %v12899_v2  ;;  %v1081_v2 = vld [vmem:[#allocation9 + $0x278] sm:$0xff]  ;;  %v12005_v50 = vcombine.high %v1080_v58, %v1096_v32  ;;  %v12004_v38 = vcombine.low %v1080_v58, %v1096_v32  ;;  %v1176_v37 = vld [vmem:[#allocation9 + $0x570] sm:$0xff] }
 0x50c   :  { %v12006_v39 = vcombine.low %v1081_v2, %v1097_v3  ;;  %v1193_v58 = vld [vmem:[#allocation9 + $0x5f8] sm:$0xff] }
 0x50d   :  { %8200 = vmatpush1.bf16.msra.mxu0 %v12896_v7  ;;  %v12007_v7 = vcombine.high %v1081_v2, %v1097_v3 }
 0x50e   :  { %8282 = vmatpush1.bf16.msra.mxu1 %v12898_v49  ;;  %8201 = vmatprep.subr.bf16.mxu0 %v12929_v51  ;;  %v1112_v49 = vld [vmem:[#allocation9 + $0x370] sm:$0xff] }
 0x50f   :  { %8283 = vmatprep.subr.bf16.mxu1 %v12931_v40  ;;  %v1128_v51 = vld [vmem:[#allocation9 + $0x3f0] sm:$0xff]  ;;  %v1113_v40 = vld [vmem:[#allocation9 + $0x378] sm:$0xff] }
 0x510   :  { %v12037_v43 = vcombine.high %v1112_v49, %v1128_v51  ;;  %v12038_v30 = vcombine.low %v1113_v40, %v1129_v42 }
 0x511   :  { %8202 = vmatpush1.bf16.msra.mxu0 %v12928_v9  ;;  %v12039_v9 = vcombine.high %v1113_v40, %v1129_v42 }
 0x512   :  { %8284 = vmatpush1.bf16.msra.mxu1 %v12930_v23  ;;  %8294 = vmatprep.subr.bf16.mxu0 %v11941_v26  ;;  %v1144_v23 = vld [vmem:[#allocation9 + $0x470] sm:$0xff] }
 0x513   :  { %8376 = vmatprep.subr.bf16.mxu1 %v11943_v52  ;;  %v1160_v26 = vld [vmem:[#allocation9 + $0x4f0] sm:$0xff]  ;;  %v1145_v52 = vld [vmem:[#allocation9 + $0x478] sm:$0xff] }
 0x514   :  { %8204 = vmatmul.mubr.bf16.vlgmr.msra.gmra.mrb[44].mxu0 %v14179_v8  ;;  %v12071_v17 = vcombine.high %v1145_v52, %v1161_v11  ;;  %v12068_v32 = vcombine.low %v1144_v23, %v1160_v26 }
 0x515   :  { %8286 = vmatmul.mubr.bf16.vlgmr.msra.gmra.mrb[36].mxu1 %v14179_v8  ;;  %8295 = vmatpush1.bf16.msra.mxu0 %v11940_v14  ;;  %v12069_v14 = vcombine.high %v1144_v23, %v1160_v26 }
 0x516   :  { %8326 = vmatprep.mubr.bf16.mxu0 %v14159_v61  ;;  %8377 = vmatpush1.bf16.msra.mxu1 %v11942_v41  ;;  %v1192_v41 = vld [vmem:[#allocation9 + $0x5f0] sm:$0xff] }
 0x517   :  { %8408 = vmatprep.mubr.bf16.mxu1 %v14159_v61  ;;  %8296 = vmatprep.subr.bf16.mxu0 %v11973_v57  ;;  %v12036_v61 = vcombine.low %v1112_v49, %v1128_v51  ;;  %v1177_v57 = vld [vmem:[#allocation9 + $0x578] sm:$0xff]  ;;  %v12101_v2 = vcombine.high %v1176_v37, %v1192_v41  ;;  %v12100_v49 = vcombine.low %v1176_v37, %v1192_v41 }
 0x518   :  { %8378 = vmatprep.subr.bf16.mxu1 %v11975_v62  ;;  %v12070_v62 = vcombine.low %v1145_v52, %v1161_v11  ;;  %v12103_v3 = vcombine.high %v1177_v57, %v1193_v58  ;;  %v12102_v51 = vcombine.low %v1177_v57, %v1193_v58 }
 0x519   :  { %8297 = vmatpush1.bf16.msra.mxu0 %v11972_v48  ;;  %v1208_v48 = vld [vmem:[#allocation9 + $0x670] sm:$0xff] }
 0x51a   :  { %8379 = vmatpush1.bf16.msra.mxu1 %v11974_v6  ;;  %8298 = vmatprep.subr.bf16.mxu0 %v12005_v50  ;;  %v1224_v6 = vld [vmem:[#allocation9 + $0x6f0] sm:$0xff]  ;;  %v1209_v50 = vld [vmem:[#allocation9 + $0x678] sm:$0xff] }
 0x51b   :  { %8380 = vmatprep.subr.bf16.mxu1 %v12007_v7  ;;  %v1225_v7 = vld [vmem:[#allocation9 + $0x6f8] sm:$0xff]  ;;  %v12133_v40 = vcombine.high %v1208_v48, %v1224_v6  ;;  %v12132_v23 = vcombine.low %v1208_v48, %v1224_v6 }
 0x51c   :  { %v12135_v42 = vcombine.high %v1209_v50, %v1225_v7  ;;  %v12134_v26 = vcombine.low %v1209_v50, %v1225_v7 }
 0x51d   :  { %8299 = vmatpush1.bf16.msra.mxu0 %v12004_v38  ;;  %v1240_v38 = vld [vmem:[#allocation9 + $0x770] sm:$0xff] }
 0x51e   :  { %8381 = vmatpush1.bf16.msra.mxu1 %v12006_v39  ;;  %8300 = vmatprep.subr.bf16.mxu0 %v12037_v43  ;;  %v1256_v39 = vld [vmem:[#allocation9 + $0x7f0] sm:$0xff]  ;;  %v1241_v43 = vld [vmem:[#allocation9 + $0x778] sm:$0xff] }
 0x51f   :  { %8382 = vmatprep.subr.bf16.mxu1 %v12039_v9  ;;  %v1257_v9 = vld [vmem:[#allocation9 + $0x7f8] sm:$0xff]  ;;  %v12165_v52 = vcombine.high %v1240_v38, %v1256_v39  ;;  %v12164_v37 = vcombine.low %v1240_v38, %v1256_v39 }
 0x520   :  { %v12167_v11 = vcombine.high %v1241_v43, %v1257_v9  ;;  %v12166_v41 = vcombine.low %v1241_v43, %v1257_v9 }
 0x521   :  { %8301 = vmatpush1.bf16.msra.mxu0 %v12036_v61  ;;  %v1272_v61 = vld [vmem:[#allocation9 + $0x870] sm:$0xff] }
 0x522   :  { %8383 = vmatpush1.bf16.msra.mxu1 %v12038_v30  ;;  %8302 = vmatprep.subr.bf16.mxu0 %v12069_v14  ;;  %v1288_v30 = vld [vmem:[#allocation9 + $0x8f0] sm:$0xff]  ;;  %v1273_v14 = vld [vmem:[#allocation9 + $0x878] sm:$0xff] }
 0x523   :  { %8384 = vmatprep.subr.bf16.mxu1 %v12071_v17  ;;  %v1289_v17 = vld [vmem:[#allocation9 + $0x8f8] sm:$0xff]  ;;  %v12197_v57 = vcombine.high %v1272_v61, %v1288_v30  ;;  %v12196_v48 = vcombine.low %v1272_v61, %v1288_v30 }
 0x524   :  { %v12199_v58 = vcombine.high %v1273_v14, %v1289_v17  ;;  %v12198_v6 = vcombine.low %v1273_v14, %v1289_v17 }
 0x525   :  { %8303 = vmatpush1.bf16.msra.mxu0 %v12068_v32  ;;  %v1304_v32 = vld [vmem:[#allocation9 + $0x970] sm:$0xff] }
 0x526   :  { %8385 = vmatpush1.bf16.msra.mxu1 %v12070_v62  ;;  %8304 = vmatprep.subr.bf16.mxu0 %v12101_v2  ;;  %v1320_v62 = vld [vmem:[#allocation9 + $0x9f0] sm:$0xff]  ;;  %v1305_v2 = vld [vmem:[#allocation9 + $0x978] sm:$0xff] }
 0x527   :  { %8386 = vmatprep.subr.bf16.mxu1 %v12103_v3  ;;  %v1321_v3 = vld [vmem:[#allocation9 + $0x9f8] sm:$0xff]  ;;  %v12229_v50 = vcombine.high %v1304_v32, %v1320_v62  ;;  %v12228_v38 = vcombine.low %v1304_v32, %v1320_v62 }
 0x528   :  { %v12231_v7 = vcombine.high %v1305_v2, %v1321_v3  ;;  %v12230_v39 = vcombine.low %v1305_v2, %v1321_v3 }
 0x529   :  { %8305 = vmatpush1.bf16.msra.mxu0 %v12100_v49  ;;  %v1336_v49 = vld [vmem:[#allocation9 + $0xa70] sm:$0xff] }
 0x52a   :  { %8387 = vmatpush1.bf16.msra.mxu1 %v12102_v51  ;;  %8306 = vmatprep.subr.bf16.mxu0 %v12133_v40  ;;  %v1352_v51 = vld [vmem:[#allocation9 + $0xaf0] sm:$0xff]  ;;  %v1337_v40 = vld [vmem:[#allocation9 + $0xa78] sm:$0xff] }
 0x52b   :  { %8388 = vmatprep.subr.bf16.mxu1 %v12135_v42  ;;  %v1353_v42 = vld [vmem:[#allocation9 + $0xaf8] sm:$0xff]  ;;  %v12261_v43 = vcombine.high %v1336_v49, %v1352_v51  ;;  %v12260_v61 = vcombine.low %v1336_v49, %v1352_v51 }
 0x52c   :  { %v12263_v9 = vcombine.high %v1337_v40, %v1353_v42  ;;  %v12262_v30 = vcombine.low %v1337_v40, %v1353_v42 }
 0x52d   :  { %8307 = vmatpush1.bf16.msra.mxu0 %v12132_v23  ;;  %v1368_v23 = vld [vmem:[#allocation9 + $0xb70] sm:$0xff] }
 0x52e   :  { %8389 = vmatpush1.bf16.msra.mxu1 %v12134_v26  ;;  %8308 = vmatprep.subr.bf16.mxu0 %v12165_v52  ;;  %v1384_v26 = vld [vmem:[#allocation9 + $0xbf0] sm:$0xff]  ;;  %v1369_v52 = vld [vmem:[#allocation9 + $0xb78] sm:$0xff] }
 0x52f   :  { %8390 = vmatprep.subr.bf16.mxu1 %v12167_v11  ;;  %v1385_v11 = vld [vmem:[#allocation9 + $0xbf8] sm:$0xff]  ;;  %v12293_v14 = vcombine.high %v1368_v23, %v1384_v26  ;;  %v12292_v32 = vcombine.low %v1368_v23, %v1384_v26 }
 0x530   :  { %v12295_v17 = vcombine.high %v1369_v52, %v1385_v11  ;;  %v12294_v62 = vcombine.low %v1369_v52, %v1385_v11 }
 0x531   :  { %8309 = vmatpush1.bf16.msra.mxu0 %v12164_v37  ;;  %v1400_v37 = vld [vmem:[#allocation9 + $0xc70] sm:$0xff] }
 0x532   :  { %8391 = vmatpush1.bf16.msra.mxu1 %v12166_v41  ;;  %8310 = vmatprep.subr.bf16.mxu0 %v12197_v57  ;;  %v1416_v41 = vld [vmem:[#allocation9 + $0xcf0] sm:$0xff]  ;;  %v1401_v57 = vld [vmem:[#allocation9 + $0xc78] sm:$0xff] }
 0x533   :  { %8392 = vmatprep.subr.bf16.mxu1 %v12199_v58  ;;  %v1417_v58 = vld [vmem:[#allocation9 + $0xcf8] sm:$0xff]  ;;  %v12325_v2 = vcombine.high %v1400_v37, %v1416_v41  ;;  %v12324_v49 = vcombine.low %v1400_v37, %v1416_v41 }
 0x534   :  { %v12327_v3 = vcombine.high %v1401_v57, %v1417_v58  ;;  %v12326_v51 = vcombine.low %v1401_v57, %v1417_v58 }
 0x535   :  { %8311 = vmatpush1.bf16.msra.mxu0 %v12196_v48  ;;  %v1432_v48 = vld [vmem:[#allocation9 + $0xd70] sm:$0xff] }
 0x536   :  { %8393 = vmatpush1.bf16.msra.mxu1 %v12198_v6  ;;  %8312 = vmatprep.subr.bf16.mxu0 %v12229_v50  ;;  %v1448_v6 = vld [vmem:[#allocation9 + $0xdf0] sm:$0xff]  ;;  %v1433_v50 = vld [vmem:[#allocation9 + $0xd78] sm:$0xff] }
 0x537   :  { %8394 = vmatprep.subr.bf16.mxu1 %v12231_v7  ;;  %v1449_v7 = vld [vmem:[#allocation9 + $0xdf8] sm:$0xff]  ;;  %v12357_v40 = vcombine.high %v1432_v48, %v1448_v6  ;;  %v12356_v23 = vcombine.low %v1432_v48, %v1448_v6 }
 0x538   :  { %v12359_v42 = vcombine.high %v1433_v50, %v1449_v7  ;;  %v12358_v26 = vcombine.low %v1433_v50, %v1449_v7 }
 0x539   :  { %8313 = vmatpush1.bf16.msra.mxu0 %v12228_v38  ;;  %v1464_v38 = vld [vmem:[#allocation9 + $0xe70] sm:$0xff] }
 0x53a   :  { %8395 = vmatpush1.bf16.msra.mxu1 %v12230_v39  ;;  %8314 = vmatprep.subr.bf16.mxu0 %v12261_v43  ;;  %v1480_v39 = vld [vmem:[#allocation9 + $0xef0] sm:$0xff]  ;;  %v1465_v43 = vld [vmem:[#allocation9 + $0xe78] sm:$0xff] }
 0x53b   :  { %8396 = vmatprep.subr.bf16.mxu1 %v12263_v9  ;;  %v1481_v9 = vld [vmem:[#allocation9 + $0xef8] sm:$0xff]  ;;  %v12389_v52 = vcombine.high %v1464_v38, %v1480_v39  ;;  %v12388_v37 = vcombine.low %v1464_v38, %v1480_v39 }
 0x53c   :  { %v12391_v11 = vcombine.high %v1465_v43, %v1481_v9  ;;  %v12390_v41 = vcombine.low %v1465_v43, %v1481_v9  ;;  %v1577_v38 = vld [vmem:[#allocation9 + $0x11f8] sm:$0xff]  ;;  %v1592_v9 = vld [vmem:[#allocation9 + $0x1270] sm:$0xff] }
 0x53d   :  { %8315 = vmatpush1.bf16.msra.mxu0 %v12260_v61  ;;  %v1496_v61 = vld [vmem:[#allocation9 + $0xf70] sm:$0xff] }
 0x53e   :  { %8397 = vmatpush1.bf16.msra.mxu1 %v12262_v30  ;;  %8316 = vmatprep.subr.bf16.mxu0 %v12293_v14  ;;  %v1512_v30 = vld [vmem:[#allocation9 + $0xff0] sm:$0xff]  ;;  %v1497_v14 = vld [vmem:[#allocation9 + $0xf78] sm:$0xff] }
 0x53f   :  { %8398 = vmatprep.subr.bf16.mxu1 %v12295_v17  ;;  %v1513_v17 = vld [vmem:[#allocation9 + $0xff8] sm:$0xff]  ;;  %v12421_v57 = vcombine.high %v1496_v61, %v1512_v30  ;;  %v12420_v48 = vcombine.low %v1496_v61, %v1512_v30 }
 0x540   :  { %v12423_v58 = vcombine.high %v1497_v14, %v1513_v17  ;;  %v12422_v6 = vcombine.low %v1497_v14, %v1513_v17 }
 0x541   :  { %8317 = vmatpush1.bf16.msra.mxu0 %v12292_v32  ;;  %v1528_v32 = vld [vmem:[#allocation9 + $0x1070] sm:$0xff] }
 0x542   :  { %8399 = vmatpush1.bf16.msra.mxu1 %v12294_v62  ;;  %8318 = vmatprep.subr.bf16.mxu0 %v12325_v2  ;;  %v1544_v62 = vld [vmem:[#allocation9 + $0x10f0] sm:$0xff]  ;;  %v1529_v2 = vld [vmem:[#allocation9 + $0x1078] sm:$0xff] }
 0x543   :  { %8400 = vmatprep.subr.bf16.mxu1 %v12327_v3  ;;  %v1545_v3 = vld [vmem:[#allocation9 + $0x10f8] sm:$0xff]  ;;  %v12453_v50 = vcombine.high %v1528_v32, %v1544_v62 }
 0x544   :  { %v12455_v7 = vcombine.high %v1529_v2, %v1545_v3  ;;  %v12454_v39 = vcombine.low %v1529_v2, %v1545_v3  ;;  %v1656_v3 = vld [vmem:[#allocation9 + $0x1470] sm:$0xff] }
 0x545   :  { %8319 = vmatpush1.bf16.msra.mxu0 %v12324_v49  ;;  %v1560_v49 = vld [vmem:[#allocation9 + $0x1170] sm:$0xff] }
 0x546   :  { %8401 = vmatpush1.bf16.msra.mxu1 %v12326_v51  ;;  %8320 = vmatprep.subr.bf16.mxu0 %v12357_v40  ;;  %v1576_v51 = vld [vmem:[#allocation9 + $0x11f0] sm:$0xff]  ;;  %v12452_v40 = vcombine.low %v1528_v32, %v1544_v62 }
 0x547   :  { %8402 = vmatprep.subr.bf16.mxu1 %v12359_v42  ;;  %v1561_v42 = vld [vmem:[#allocation9 + $0x1178] sm:$0xff]  ;;  %v12485_v43 = vcombine.high %v1560_v49, %v1576_v51  ;;  %v12484_v61 = vcombine.low %v1560_v49, %v1576_v51 }
 0x548   :  { %v12486_v30 = vcombine.low %v1561_v42, %v1577_v38 }
 0x549   :  { %8321 = vmatpush1.bf16.msra.mxu0 %v12356_v23  ;;  %v1608_v23 = vld [vmem:[#allocation9 + $0x12f0] sm:$0xff] }
 0x54a   :  { %8403 = vmatpush1.bf16.msra.mxu1 %v12358_v26  ;;  %8322 = vmatprep.subr.bf16.mxu0 %v12389_v52  ;;  %v12487_v26 = vcombine.high %v1561_v42, %v1577_v38  ;;  %v1593_v52 = vld [vmem:[#allocation9 + $0x1278] sm:$0xff]  ;;  %v12517_v14 = vcombine.high %v1592_v9, %v1608_v23  ;;  %v12516_v32 = vcombine.low %v1592_v9, %v1608_v23  ;;  %v1704_v42 = vld [vmem:[#allocation9 + $0x15f0] sm:$0xff] }
 0x54b   :  { %8404 = vmatprep.subr.bf16.mxu1 %v12391_v11  ;;  %v1609_v11 = vld [vmem:[#allocation9 + $0x12f8] sm:$0xff] }
 0x54c   :  { %v12519_v17 = vcombine.high %v1593_v52, %v1609_v11  ;;  %v1689_v38 = vld [vmem:[#allocation9 + $0x1578] sm:$0xff] }
 0x54d   :  { %8323 = vmatpush1.bf16.msra.mxu0 %v12388_v37  ;;  %v1624_v37 = vld [vmem:[#allocation9 + $0x1370] sm:$0xff] }
 0x54e   :  { %8405 = vmatpush1.bf16.msra.mxu1 %v12390_v41  ;;  %8324 = vmatprep.subr.bf16.mxu0 %v12421_v57  ;;  %v1640_v41 = vld [vmem:[#allocation9 + $0x13f0] sm:$0xff]  ;;  %v1625_v57 = vld [vmem:[#allocation9 + $0x1378] sm:$0xff] }
 0x54f   :  { %8406 = vmatprep.subr.bf16.mxu1 %v12423_v58  ;;  %v1641_v58 = vld [vmem:[#allocation9 + $0x13f8] sm:$0xff]  ;;  %v12549_v62 = vcombine.high %v1624_v37, %v1640_v41 }
 0x550   :  { %v12551_v2 = vcombine.high %v1625_v57, %v1641_v58 }
 0x551   :  { %8325 = vmatpush1.bf16.msra.mxu0 %v12420_v48  ;;  %v1672_v48 = vld [vmem:[#allocation9 + $0x14f0] sm:$0xff] }
 0x552   :  { %8407 = vmatpush1.bf16.msra.mxu1 %v12422_v6  ;;  %8335 = vmatprep.subr.bf16.mxu0 %v12453_v50  ;;  %v1657_v6 = vld [vmem:[#allocation9 + $0x1478] sm:$0xff]  ;;  %v12581_v49 = vcombine.high %v1656_v3, %v1672_v48 }
 0x553   :  { %8417 = vmatprep.subr.bf16.mxu1 %v12455_v7  ;;  %v1673_v50 = vld [vmem:[#allocation9 + $0x14f8] sm:$0xff]  ;;  %v12550_v7 = vcombine.low %v1625_v57, %v1641_v58  ;;  %v1752_v58 = vld [vmem:[#allocation9 + $0x1770] sm:$0xff] }
 0x554   :  { %8327 = vmatmul.mubr.bf16.vlgmr.msra.gmra.mrb[48].mxu0 %v14161_v1  ;;  %v12583_v51 = vcombine.high %v1657_v6, %v1673_v50  ;;  %v12582_v9 = vcombine.low %v1657_v6, %v1673_v50 }
 0x555   :  { %8409 = vmatmul.mubr.bf16.vlgmr.msra.gmra.mrb[40].mxu1 %v14161_v1  ;;  %8336 = vmatpush1.bf16.msra.mxu0 %v12452_v40  ;;  %v12518_v1 = vcombine.low %v1593_v52, %v1609_v11  ;;  %v1688_v40 = vld [vmem:[#allocation9 + $0x1570] sm:$0xff] }
 0x556   :  { %8367 = vmatprep.mubr.bf16.mxu0 %v14165_v4  ;;  %8418 = vmatpush1.bf16.msra.mxu1 %v12454_v39  ;;  %v1705_v39 = vld [vmem:[#allocation9 + $0x15f8] sm:$0xff]  ;;  %v12613_v23 = vcombine.high %v1688_v40, %v1704_v42  ;;  %v1720_v52 = vld [vmem:[#allocation9 + $0x1670] sm:$0xff] }
 0x557   :  { %8449 = vmatprep.mubr.bf16.mxu1 %v14165_v4  ;;  %8337 = vmatprep.subr.bf16.mxu0 %v12485_v43  ;;  %v12548_v4 = vcombine.low %v1624_v37, %v1640_v41  ;;  %v12580_v43 = vcombine.low %v1656_v3, %v1672_v48  ;;  %v1736_v11 = vld [vmem:[#allocation9 + $0x16f0] sm:$0xff]  ;;  %v1769_v3 = vld [vmem:[#allocation9 + $0x17f8] sm:$0xff] }
 0x558   :  { %8419 = vmatprep.subr.bf16.mxu1 %v12487_v26  ;;  %v12615_v26 = vcombine.high %v1689_v38, %v1705_v39  ;;  %v12645_v37 = vcombine.high %v1720_v52, %v1736_v11 }
 0x559   :  { %8338 = vmatpush1.bf16.msra.mxu0 %v12484_v61  ;;  %v1721_v61 = vld [vmem:[#allocation9 + $0x1678] sm:$0xff] }
 0x55a   :  { %8420 = vmatpush1.bf16.msra.mxu1 %v12486_v30  ;;  %8339 = vmatprep.subr.bf16.mxu0 %v12517_v14  ;;  %v1737_v30 = vld [vmem:[#allocation9 + $0x16f8] sm:$0xff]  ;;  %v12612_v14 = vcombine.low %v1688_v40, %v1704_v42 }
 0x55b   :  { %8421 = vmatprep.subr.bf16.mxu1 %v12519_v17  ;;  %v12614_v17 = vcombine.low %v1689_v38, %v1705_v39  ;;  %v12647_v57 = vcombine.high %v1721_v61, %v1737_v30  ;;  %v12646_v40 = vcombine.low %v1721_v61, %v1737_v30  ;;  %v1833_v61 = vld [vmem:[#allocation9 + $0x19f8] sm:$0xff] }
 0x55d   :  { %8340 = vmatpush1.bf16.msra.mxu0 %v12516_v32  ;;  %v1768_v32 = vld [vmem:[#allocation9 + $0x17f0] sm:$0xff] }
 0x55e   :  { %8422 = vmatpush1.bf16.msra.mxu1 %v12518_v1  ;;  %8341 = vmatprep.subr.bf16.mxu0 %v12549_v62  ;;  %v12677_v42 = vcombine.high %v1752_v58, %v1768_v32 }
 0x55f   :  { %8423 = vmatprep.subr.bf16.mxu1 %v12551_v2  ;;  %v1753_v2 = vld [vmem:[#allocation9 + $0x1778] sm:$0xff] }
 0x560   :  { %v12679_v39 = vcombine.high %v1753_v2, %v1769_v3 }
 0x561   :  { %8342 = vmatpush1.bf16.msra.mxu0 %v12548_v4  ;;  %v12644_v4 = vcombine.low %v1720_v52, %v1736_v11  ;;  %v12678_v52 = vcombine.low %v1753_v2, %v1769_v3 }
 0x562   :  { %8424 = vmatpush1.bf16.msra.mxu1 %v12550_v7  ;;  %8343 = vmatprep.subr.bf16.mxu0 %v12581_v49 }
 0x563   :  { %8425 = vmatprep.subr.bf16.mxu1 %v12583_v51 }
 0x565   :  { %8344 = vmatpush1.bf16.msra.mxu0 %v12580_v43  ;;  %v1784_v43 = vld [vmem:[#allocation9 + $0x1870] sm:$0xff] }
 0x566   :  { %8426 = vmatpush1.bf16.msra.mxu1 %v12582_v9  ;;  %8345 = vmatprep.subr.bf16.mxu0 %v12613_v23  ;;  %v1800_v9 = vld [vmem:[#allocation9 + $0x18f0] sm:$0xff]  ;;  %v1785_v23 = vld [vmem:[#allocation9 + $0x1878] sm:$0xff] }
 0x567   :  { %v14297_v41 = vpop.f32.mrb[40].mxu0  ;;  %8427 = vmatprep.subr.bf16.mxu1 %v12615_v26  ;;  %v1801_v26 = vld [vmem:[#allocation9 + $0x18f8] sm:$0xff]  ;;  %v12709_v11 = vcombine.high %v1784_v43, %v1800_v9  ;;  %v12708_v30 = vcombine.low %v1784_v43, %v1800_v9  ;;  %v1896_v43 = vld [vmem:[#allocation9 + $0x1bf0] sm:$0xff] }
 0x568   :  { %v14299_v1 = vpop.f32.mrb[32].mxu1  ;;  %v14301_v62 = vpop.f32.mrb[41].mxu0  ;;  %v1881_v9 = vld [vmem:[#allocation9 + $0x1b78] sm:$0xff] }
 0x569   :  { %v8468_v48 = vpack.c.bf16 %v14299_v1, %v14297_v41  ;;  %v14305_v6 = vpop.f32.mrb[33].mxu1  ;;  %v8045_v50 = vpop.f32.mrb[42].mxu0  ;;  %8346 = vmatpush1.bf16.msra.mxu0 %v12612_v14  ;;  %v12711_v14 = vcombine.high %v1785_v23, %v1801_v26 }
 0x56a   :  { %v8469_v7 = vpack.c.bf16 %v14305_v6, %v14301_v62  ;;  %v8127_v49 = vpop.f32.mrb[34].mxu1  ;;  %8428 = vmatpush1.bf16.msra.mxu1 %v12614_v17  ;;  %v8046_v51 = vpop.f32.mrb[43].mxu0  ;;  %8347 = vmatprep.subr.bf16.mxu0 %v12645_v37  ;;  %v12676_v50 = vcombine.low %v1752_v58, %v1768_v32  ;;  %v1816_v17 = vld [vmem:[#allocation9 + $0x1970] sm:$0xff]  ;;  %v1817_v37 = vld [vmem:[#allocation9 + $0x1978] sm:$0xff] }
 0x56b   :  { %v8128_v38 = vpop.f32.mrb[35].mxu1  ;;  %8429 = vmatprep.subr.bf16.mxu1 %v12647_v57  ;;  %v1832_v49 = vld [vmem:[#allocation9 + $0x19f0] sm:$0xff]  ;;  %v12710_v57 = vcombine.low %v1785_v23, %v1801_v26  ;;  %v1849_v32 = vld [vmem:[#allocation9 + $0x1a78] sm:$0xff]  ;;  %v12742_v3 = vcombine.low %v1817_v37, %v1833_v61 }
 0x56c   :  { %v12741_v51 = vcombine.high %v1816_v17, %v1832_v49  ;;  %v12743_v38 = vcombine.high %v1817_v37, %v1833_v61  ;;  %v1864_v58 = vld [vmem:[#allocation9 + $0x1af0] sm:$0xff]  ;;  %v12740_v2 = vcombine.low %v1816_v17, %v1832_v49  ;;  %v1913_v49 = vld [vmem:[#allocation9 + $0x1c78] sm:$0xff] }
 0x56d   :  { %8348 = vmatpush1.bf16.msra.mxu0 %v12644_v4  ;;  %v1848_v4 = vld [vmem:[#allocation9 + $0x1a70] sm:$0xff] }
 0x56e   :  { %8430 = vmatpush1.bf16.msra.mxu1 %v12646_v40  ;;  %8349 = vmatprep.subr.bf16.mxu0 %v12677_v42  ;;  %v1865_v40 = vld [vmem:[#allocation9 + $0x1af8] sm:$0xff]  ;;  %v12773_v42 = vcombine.high %v1848_v4, %v1864_v58  ;;  %v12772_v23 = vcombine.low %v1848_v4, %v1864_v58  ;;  %v1928_v17 = vld [vmem:[#allocation9 + $0x1cf0] sm:$0xff] }
 0x56f   :  { %8431 = vmatprep.subr.bf16.mxu1 %v12679_v39  ;;  %v12775_v39 = vcombine.high %v1849_v32, %v1865_v40  ;;  %v12774_v26 = vcombine.low %v1849_v32, %v1865_v40  ;;  %v1960_v4 = vld [vmem:[#allocation9 + $0x1df0] sm:$0xff]  ;;  %v1945_v58 = vld [vmem:[#allocation9 + $0x1d78] sm:$0xff] }
 0x571   :  { %8350 = vmatpush1.bf16.msra.mxu0 %v12676_v50  ;;  %v1880_v50 = vld [vmem:[#allocation9 + $0x1b70] sm:$0xff] }
 0x572   :  { %8432 = vmatpush1.bf16.msra.mxu1 %v12678_v52  ;;  %8351 = vmatprep.subr.bf16.mxu0 %v12709_v11  ;;  %v1897_v52 = vld [vmem:[#allocation9 + $0x1bf8] sm:$0xff]  ;;  %v12805_v11 = vcombine.high %v1880_v50, %v1896_v43  ;;  %v12804_v37 = vcombine.low %v1880_v50, %v1896_v43  ;;  %v1992_v50 = vld [vmem:[#allocation9 + $0x1ef0] sm:$0xff] }
 0x573   :  { %8433 = vmatprep.subr.bf16.mxu1 %v12711_v14  ;;  %v12807_v14 = vcombine.high %v1881_v9, %v1897_v52  ;;  %v12806_v61 = vcombine.low %v1881_v9, %v1897_v52  ;;  %v1977_v43 = vld [vmem:[#allocation9 + $0x1e78] sm:$0xff] }
 0x575   :  { %8352 = vmatpush1.bf16.msra.mxu0 %v12708_v30  ;;  %v1912_v30 = vld [vmem:[#allocation9 + $0x1c70] sm:$0xff] }
 0x576   :  { %8434 = vmatpush1.bf16.msra.mxu1 %v12710_v57  ;;  %8353 = vmatprep.subr.bf16.mxu0 %v12741_v51  ;;  %v1929_v57 = vld [vmem:[#allocation9 + $0x1cf8] sm:$0xff]  ;;  %v12837_v51 = vcombine.high %v1912_v30, %v1928_v17  ;;  %v12836_v32 = vcombine.low %v1912_v30, %v1928_v17  ;;  %v2024_v30 = vld [vmem:[#allocation9 + $0x1ff0] sm:$0xff] }
 0x577   :  { %8435 = vmatprep.subr.bf16.mxu1 %v12743_v38  ;;  %v12839_v38 = vcombine.high %v1913_v49, %v1929_v57  ;;  %v12838_v40 = vcombine.low %v1913_v49, %v1929_v57  ;;  %v2009_v17 = vld [vmem:[#allocation9 + $0x1f78] sm:$0xff] }
 0x579   :  { %8354 = vmatpush1.bf16.msra.mxu0 %v12740_v2  ;;  %v1944_v2 = vld [vmem:[#allocation9 + $0x1d70] sm:$0xff] }
 0x57a   :  { %8436 = vmatpush1.bf16.msra.mxu1 %v12742_v3  ;;  %8355 = vmatprep.subr.bf16.mxu0 %v12773_v42  ;;  %v1961_v3 = vld [vmem:[#allocation9 + $0x1df8] sm:$0xff]  ;;  %v12869_v42 = vcombine.high %v1944_v2, %v1960_v4  ;;  %v12868_v9 = vcombine.low %v1944_v2, %v1960_v4 }
 0x57b   :  { %8437 = vmatprep.subr.bf16.mxu1 %v12775_v39  ;;  %v12871_v39 = vcombine.high %v1945_v58, %v1961_v3  ;;  %v12870_v52 = vcombine.low %v1945_v58, %v1961_v3 }
 0x57d   :  { %8356 = vmatpush1.bf16.msra.mxu0 %v12772_v23  ;;  %v1976_v23 = vld [vmem:[#allocation9 + $0x1e70] sm:$0xff] }
 0x57e   :  { %8438 = vmatpush1.bf16.msra.mxu1 %v12774_v26  ;;  %8357 = vmatprep.subr.bf16.mxu0 %v12805_v11  ;;  %v1993_v26 = vld [vmem:[#allocation9 + $0x1ef8] sm:$0xff]  ;;  %v12901_v11 = vcombine.high %v1976_v23, %v1992_v50  ;;  %v12900_v49 = vcombine.low %v1976_v23, %v1992_v50 }
 0x57f   :  { %8439 = vmatprep.subr.bf16.mxu1 %v12807_v14  ;;  %v12903_v14 = vcombine.high %v1977_v43, %v1993_v26  ;;  %v12902_v57 = vcombine.low %v1977_v43, %v1993_v26 }
 0x581   :  { %8358 = vmatpush1.bf16.msra.mxu0 %v12804_v37  ;;  %v2008_v37 = vld [vmem:[#allocation9 + $0x1f70] sm:$0xff] }
 0x582   :  { %8440 = vmatpush1.bf16.msra.mxu1 %v12806_v61  ;;  %8359 = vmatprep.subr.bf16.mxu0 %v12837_v51  ;;  %v2025_v61 = vld [vmem:[#allocation9 + $0x1ff8] sm:$0xff]  ;;  %v12933_v51 = vcombine.high %v2008_v37, %v2024_v30  ;;  %v12932_v2 = vcombine.low %v2008_v37, %v2024_v30 }
 0x583   :  { %8441 = vmatprep.subr.bf16.mxu1 %v12839_v38  ;;  %v12935_v38 = vcombine.high %v2009_v17, %v2025_v61  ;;  %v12934_v4 = vcombine.low %v2009_v17, %v2025_v61 }
 0x585   :  { %8360 = vmatpush1.bf16.msra.mxu0 %v12836_v32 }
 0x586   :  { %8442 = vmatpush1.bf16.msra.mxu1 %v12838_v40  ;;  %8361 = vmatprep.subr.bf16.mxu0 %v12869_v42 }
 0x587   :  { %8443 = vmatprep.subr.bf16.mxu1 %v12871_v39 }
 0x589   :  { %8362 = vmatpush1.bf16.msra.mxu0 %v12868_v9 }
 0x58a   :  { %8444 = vmatpush1.bf16.msra.mxu1 %v12870_v52  ;;  %8363 = vmatprep.subr.bf16.mxu0 %v12901_v11 }
 0x58b   :  { %8445 = vmatprep.subr.bf16.mxu1 %v12903_v14 }
 0x58d   :  { %8364 = vmatpush1.bf16.msra.mxu0 %v12900_v49 }
 0x58e   :  { %8446 = vmatpush1.bf16.msra.mxu1 %v12902_v57  ;;  %8365 = vmatprep.subr.bf16.mxu0 %v12933_v51 }
 0x58f   :  { %8447 = vmatprep.subr.bf16.mxu1 %v12935_v38 }
 0x591   :  { %8366 = vmatpush1.bf16.msra.mxu0 %v12932_v2 }
 0x592   :  { %8448 = vmatpush1.bf16.msra.mxu1 %v12934_v4  ;;  %8502 = vmatprep.subr.bf16.mxu0 %v8459_v55 }
 0x594   :  { %8368 = vmatmul.mubr.bf16.vlgmr.msra.gmra.mrb[48].mxu0 %v14179_v8 }
 0x595   :  { %8450 = vmatmul.mubr.bf16.vlgmr.msra.gmra.mrb[40].mxu1 %v14179_v8  ;;  %8503 = vmatpush1.bf16.msra.mxu0 %v8458_v45 }
 0x596   :  { %8504 = vmatprep.subr.bf16.mxu0 %v8461_v5  ;;  %8534 = vmatprep.mubr.bf16.mxu0 %v13824_v0 }
 0x599   :  { %8505 = vmatpush1.bf16.msra.mxu0 %v8460_v63 }
 0x59a   :  { %8506 = vmatprep.subr.bf16.mxu0 %v8463_v59 }
 0x59d   :  { %8507 = vmatpush1.bf16.msra.mxu0 %v8462_v54 }
 0x59e   :  { %8508 = vmatprep.subr.bf16.mxu0 %v8465_v24 }
 0x5a1   :  { %8509 = vmatpush1.bf16.msra.mxu0 %v8464_v19  ;;  %v8478_v19 = vld [vmem:[#allocation12] sm:$0x3] }
 0x5a2   :  { %8510 = vmatprep.subr.bf16.mxu0 %v8467_v27  ;;  %v8483_v20 = vrot.slane %v8478_v19, %v14124_v22  ;;  %v8487_v24 = vrot.slane %v8478_v19, %v14129_v29 }
 0x5a5   :  { %8511 = vmatpush1.bf16.msra.mxu0 %v8466_v18 }
 0x5a6   :  { %8512 = vmatprep.subr.bf16.mxu0 %v8469_v7 }
 0x5a9   :  { %8513 = vmatpush1.bf16.msra.mxu0 %v8468_v48 }
 0x5e7   :  { %v8205_v8 = vpop.f32.mrb[44].mxu0 }
 0x5e8   :  { %v8287_v33 = vpop.f32.mrb[36].mxu1  ;;  %v8207_v34 = vpop.f32.mrb[45].mxu0 }
 0x5e9   :  { %v8470_v45 = vpack.c.bf16 %v8287_v33, %v8205_v8  ;;  %v8289_v46 = vpop.f32.mrb[37].mxu1  ;;  %v8209_v53 = vpop.f32.mrb[46].mxu0 }
 0x5ea   :  { %v8471_v55 = vpack.c.bf16 %v8289_v46, %v8207_v34  ;;  %v8291_v56 = vpop.f32.mrb[38].mxu1  ;;  %v8210_v60 = vpop.f32.mrb[47].mxu0 }
 0x5eb   :  { %v8292_v28 = vpop.f32.mrb[39].mxu1 }
 0x5ec   :  { %8514 = vmatprep.subr.bf16.mxu0 %v8471_v55 }
 0x5ed   :  { %8515 = vmatpush1.bf16.msra.mxu0 %v8470_v45 }
 0x667   :  { %v8369_v63 = vpop.f32.mrb[48].mxu0 }
 0x668   :  { %v8451_v35 = vpop.f32.mrb[40].mxu1  ;;  %v8371_v5 = vpop.f32.mrb[49].mxu0 }
 0x669   :  { %v8472_v25 = vpack.c.bf16 %v8451_v35, %v8369_v63  ;;  %v8453_v31 = vpop.f32.mrb[41].mxu1  ;;  %v8373_v36 = vpop.f32.mrb[50].mxu0 }
 0x66a   :  { %v8473_v54 = vpack.c.bf16 %v8453_v31, %v8371_v5  ;;  %v8455_v47 = vpop.f32.mrb[42].mxu1  ;;  %v8374_v59 = vpop.f32.mrb[51].mxu0 }
 0x66b   :  { %v8456_v10 = vpop.f32.mrb[43].mxu1 }
 0x66c   :  { %8516 = vmatprep.subr.bf16.mxu0 %v8473_v54 }
 0x66d   :  { %8517 = vmatpush1.bf16.msra.mxu0 %v8472_v25 }
 0x670   :  { %8535 = vmatmul.mubr.bf16.vlgmr.msra.gmra.mrb[52].mxu0 %v13504_v15 }
 0x671   :  { %8544 = vmatprep.mubr.bf16.mxu0 %v13824_v0 }
 0x678   :  { %8545 = vmatmul.mubr.bf16.gmra.mrb[56].mxu0 %v13505_v16 }
 0x743   :  { %v8536_v44 = vpop.f32.mrb[52].mxu0 }
 0x744   :  { %v8537_v12 = vadd.f32 %v8536_v44, %v8483_v20  ;;  %v8538_v13 = vpop.f32.mrb[53].mxu0 }
 0x745   :  { %v8539_v18 = vadd.f32 %v8538_v13, %v8487_v24  ;;  %v8540_v21 = vpop.f32.mrb[54].mxu0 }
 0x746   :  { %v8541_v27 = vadd.f32 %v8540_v21, %v8483_v20  ;;  %v8542_v41 = vpop.f32.mrb[55].mxu0  ;;  %v8555_v62 = vmax.f32 %v8537_v12, 0.0 }
 0x747   :  { %v8543_v1 = vadd.f32 %v8542_v41, %v8487_v24  ;;  %v8556_v6 = vmax.f32 %v8539_v18, 0.0 }
 0x748   :  { %v8557_v48 = vmax.f32 %v8541_v27, 0.0 }
 0x749   :  { %v8558_v7 = vmax.f32 %v8543_v1, 0.0 }
 0x74a   :  { %v14351_v58 = vpack.c.bf16 %v8557_v48, %v8555_v62 }
 0x74b   :  { %v14353_v3 = vpack.c.bf16 %v8558_v7, %v8556_v6  ;;  %v8546_v32 = vpop.f32.mrb[56].mxu0 }
 0x74c   :  { %v8547_v22 = vadd.f32 %v8546_v32, %v8483_v20  ;;  %v8548_v40 = vpop.f32.mrb[57].mxu0 }
 0x74d   :  { %v8549_v29 = vadd.f32 %v8548_v40, %v8487_v24  ;;  %v8550_v42 = vpop.f32.mrb[58].mxu0 }
 0x74e   :  { %v8551_v39 = vadd.f32 %v8550_v42, %v8483_v20  ;;  %v8552_v23 = vpop.f32.mrb[59].mxu0  ;;  %v8559_v43 = vmax.f32 %v8547_v22, 0.0 }
 0x74f   :  { %v8553_v50 = vadd.f32 %v8552_v23, %v8487_v24  ;;  %v8560_v9 = vmax.f32 %v8549_v29, 0.0 }
 0x750   :  { %v8561_v26 = vmax.f32 %v8551_v39, 0.0 }
 0x751   :  { %v8562_v52 = vmax.f32 %v8553_v50, 0.0 }
 0x752   :  { %v14355_v11 = vpack.c.bf16 %v8561_v26, %v8559_v43 }
 0x753   :  { %v14357_v14 = vpack.c.bf16 %v8562_v52, %v8560_v9 }
 0x754   :  { %13804 = dma.done.wait [#allocation4], 32768 }
 0x755   :  { %13805 = vsyncadd [#allocation4], 4294934528  ;;  %8859 = vmatprep.mubr.bf16.mxu1 %v14353_v3  ;;  %8912 = vmatprep.mubr.bf16.mxu0 %v14353_v3  ;;  %v8572_v37 = vld [vmem:[#allocation2 + $0x8] sm:$0xff]  ;;  %v8571_v30 = vld [vmem:[#allocation2] sm:$0xff] }
 0x756   :  { %v8588_v17 = vld [vmem:[#allocation2 + $0x88] sm:$0xff]  ;;  %8827 = vmatprep.subr.bf16.mxu1 %v8572_v37  ;;  %v8574_v61 = vld [vmem:[#allocation2 + $0x18] sm:$0xff]  ;;  %v8587_v49 = vld [vmem:[#allocation2 + $0x80] sm:$0xff] }
 0x757   :  { %8828 = vmatpush1.bf16.msra.mxu1 %v8571_v30  ;;  %8880 = vmatprep.subr.bf16.mxu0 %v8574_v61  ;;  %v8573_v57 = vld [vmem:[#allocation2 + $0x10] sm:$0xff]  ;;  %v8604_v51 = vld [vmem:[#allocation2 + $0x108] sm:$0xff]  ;;  %v8590_v38 = vld [vmem:[#allocation2 + $0x98] sm:$0xff] }
 0x758   :  { %8829 = vmatprep.subr.bf16.mxu1 %v8588_v17  ;;  %8881 = vmatpush1.bf16.msra.mxu0 %v8573_v57  ;;  %v8589_v2 = vld [vmem:[#allocation2 + $0x90] sm:$0xff]  ;;  %v8606_v4 = vld [vmem:[#allocation2 + $0x118] sm:$0xff]  ;;  %v8603_v8 = vld [vmem:[#allocation2 + $0x100] sm:$0xff] }
 0x759   :  { %8882 = vmatprep.subr.bf16.mxu0 %v8590_v38  ;;  %v8620_v33 = vld [vmem:[#allocation2 + $0x188] sm:$0xff]  ;;  %v8605_v34 = vld [vmem:[#allocation2 + $0x110] sm:$0xff]  ;;  %v8622_v45 = vld [vmem:[#allocation2 + $0x198] sm:$0xff] }
 0x75a   :  { %v8619_v46 = vld [vmem:[#allocation2 + $0x180] sm:$0xff]  ;;  %v8636_v53 = vld [vmem:[#allocation2 + $0x208] sm:$0xff]  ;;  %v8621_v55 = vld [vmem:[#allocation2 + $0x190] sm:$0xff] }
 0x75b   :  { %8830 = vmatpush1.bf16.msra.mxu1 %v8587_v49  ;;  %v8638_v56 = vld [vmem:[#allocation2 + $0x218] sm:$0xff]  ;;  %v8635_v60 = vld [vmem:[#allocation2 + $0x200] sm:$0xff]  ;;  %v8652_v28 = vld [vmem:[#allocation2 + $0x288] sm:$0xff] }
 0x75c   :  { %8831 = vmatprep.subr.bf16.mxu1 %v8604_v51  ;;  %8883 = vmatpush1.bf16.msra.mxu0 %v8589_v2  ;;  %v8637_v63 = vld [vmem:[#allocation2 + $0x210] sm:$0xff]  ;;  %v8654_v35 = vld [vmem:[#allocation2 + $0x298] sm:$0xff]  ;;  %v8651_v5 = vld [vmem:[#allocation2 + $0x280] sm:$0xff] }
 0x75d   :  { %8884 = vmatprep.subr.bf16.mxu0 %v8606_v4  ;;  %v8668_v25 = vld [vmem:[#allocation2 + $0x308] sm:$0xff]  ;;  %v8653_v31 = vld [vmem:[#allocation2 + $0x290] sm:$0xff]  ;;  %v8670_v36 = vld [vmem:[#allocation2 + $0x318] sm:$0xff] }
 0x75e   :  { %v8667_v54 = vld [vmem:[#allocation2 + $0x300] sm:$0xff]  ;;  %v8684_v47 = vld [vmem:[#allocation2 + $0x388] sm:$0xff]  ;;  %v8669_v59 = vld [vmem:[#allocation2 + $0x310] sm:$0xff] }
 0x75f   :  { %8832 = vmatpush1.bf16.msra.mxu1 %v8603_v8  ;;  %v8686_v10 = vld [vmem:[#allocation2 + $0x398] sm:$0xff]  ;;  %v8683_v15 = vld [vmem:[#allocation2 + $0x380] sm:$0xff]  ;;  %v8700_v16 = vld [vmem:[#allocation2 + $0x408] sm:$0xff] }
 0x760   :  { %8833 = vmatprep.subr.bf16.mxu1 %v8620_v33  ;;  %8885 = vmatpush1.bf16.msra.mxu0 %v8605_v34  ;;  %v8685_v19 = vld [vmem:[#allocation2 + $0x390] sm:$0xff]  ;;  %v8702_v20 = vld [vmem:[#allocation2 + $0x418] sm:$0xff]  ;;  %v8699_v24 = vld [vmem:[#allocation2 + $0x400] sm:$0xff] }
 0x761   :  { %8886 = vmatprep.subr.bf16.mxu0 %v8622_v45  ;;  %v8716_v44 = vld [vmem:[#allocation2 + $0x488] sm:$0xff]  ;;  %v8701_v12 = vld [vmem:[#allocation2 + $0x410] sm:$0xff]  ;;  %v8718_v13 = vld [vmem:[#allocation2 + $0x498] sm:$0xff] }
 0x762   :  { %v8715_v18 = vld [vmem:[#allocation2 + $0x480] sm:$0xff]  ;;  %v8732_v21 = vld [vmem:[#allocation2 + $0x508] sm:$0xff]  ;;  %v8717_v27 = vld [vmem:[#allocation2 + $0x490] sm:$0xff] }
 0x763   :  { %8834 = vmatpush1.bf16.msra.mxu1 %v8619_v46  ;;  %v8734_v41 = vld [vmem:[#allocation2 + $0x518] sm:$0xff]  ;;  %v8731_v1 = vld [vmem:[#allocation2 + $0x500] sm:$0xff]  ;;  %v8748_v62 = vld [vmem:[#allocation2 + $0x588] sm:$0xff] }
 0x764   :  { %8835 = vmatprep.subr.bf16.mxu1 %v8636_v53  ;;  %8887 = vmatpush1.bf16.msra.mxu0 %v8621_v55  ;;  %v8733_v48 = vld [vmem:[#allocation2 + $0x510] sm:$0xff]  ;;  %v8750_v6 = vld [vmem:[#allocation2 + $0x598] sm:$0xff]  ;;  %v8747_v7 = vld [vmem:[#allocation2 + $0x580] sm:$0xff] }
 0x765   :  { %8888 = vmatprep.subr.bf16.mxu0 %v8638_v56  ;;  %v8764_v32 = vld [vmem:[#allocation2 + $0x608] sm:$0xff]  ;;  %v8749_v22 = vld [vmem:[#allocation2 + $0x590] sm:$0xff]  ;;  %v8766_v40 = vld [vmem:[#allocation2 + $0x618] sm:$0xff] }
 0x766   :  { %v8763_v29 = vld [vmem:[#allocation2 + $0x600] sm:$0xff]  ;;  %v8780_v42 = vld [vmem:[#allocation2 + $0x688] sm:$0xff]  ;;  %v8765_v39 = vld [vmem:[#allocation2 + $0x610] sm:$0xff] }
 0x767   :  { %8836 = vmatpush1.bf16.msra.mxu1 %v8635_v60  ;;  %v8782_v23 = vld [vmem:[#allocation2 + $0x698] sm:$0xff]  ;;  %v8779_v50 = vld [vmem:[#allocation2 + $0x680] sm:$0xff]  ;;  %v8796_v43 = vld [vmem:[#allocation2 + $0x708] sm:$0xff] }
 0x768   :  { %8837 = vmatprep.subr.bf16.mxu1 %v8652_v28  ;;  %8889 = vmatpush1.bf16.msra.mxu0 %v8637_v63  ;;  %v8781_v26 = vld [vmem:[#allocation2 + $0x690] sm:$0xff]  ;;  %v8798_v9 = vld [vmem:[#allocation2 + $0x718] sm:$0xff]  ;;  %v8795_v52 = vld [vmem:[#allocation2 + $0x700] sm:$0xff] }
 0x769   :  { %8890 = vmatprep.subr.bf16.mxu0 %v8654_v35  ;;  %v8812_v37 = vld [vmem:[#allocation2 + $0x788] sm:$0xff]  ;;  %v8797_v30 = vld [vmem:[#allocation2 + $0x710] sm:$0xff]  ;;  %v8814_v17 = vld [vmem:[#allocation2 + $0x798] sm:$0xff] }
 0x76a   :  { %v8811_v61 = vld [vmem:[#allocation2 + $0x780] sm:$0xff]  ;;  %v8576_v49 = vld [vmem:[#allocation2 + $0x28] sm:$0xff]  ;;  %v8813_v51 = vld [vmem:[#allocation2 + $0x790] sm:$0xff] }
 0x76b   :  { %8838 = vmatpush1.bf16.msra.mxu1 %v8651_v5  ;;  %v8575_v57 = vld [vmem:[#allocation2 + $0x20] sm:$0xff]  ;;  %v8578_v38 = vld [vmem:[#allocation2 + $0x38] sm:$0xff]  ;;  %v8592_v2 = vld [vmem:[#allocation2 + $0xa8] sm:$0xff] }
 0x76c   :  { %8839 = vmatprep.subr.bf16.mxu1 %v8668_v25  ;;  %8891 = vmatpush1.bf16.msra.mxu0 %v8653_v31  ;;  %v8577_v4 = vld [vmem:[#allocation2 + $0x30] sm:$0xff]  ;;  %v8591_v8 = vld [vmem:[#allocation2 + $0xa0] sm:$0xff]  ;;  %v8594_v33 = vld [vmem:[#allocation2 + $0xb8] sm:$0xff] }
 0x76d   :  { %8892 = vmatprep.subr.bf16.mxu0 %v8670_v36  ;;  %v8608_v34 = vld [vmem:[#allocation2 + $0x128] sm:$0xff]  ;;  %v8593_v45 = vld [vmem:[#allocation2 + $0xb0] sm:$0xff]  ;;  %v8607_v46 = vld [vmem:[#allocation2 + $0x120] sm:$0xff] }
 0x76e   :  { %v8610_v53 = vld [vmem:[#allocation2 + $0x138] sm:$0xff]  ;;  %v8624_v55 = vld [vmem:[#allocation2 + $0x1a8] sm:$0xff]  ;;  %v8609_v56 = vld [vmem:[#allocation2 + $0x130] sm:$0xff] }
 0x76f   :  { %8840 = vmatpush1.bf16.msra.mxu1 %v8667_v54  ;;  %v8623_v60 = vld [vmem:[#allocation2 + $0x1a0] sm:$0xff]  ;;  %v8626_v28 = vld [vmem:[#allocation2 + $0x1b8] sm:$0xff]  ;;  %v8640_v63 = vld [vmem:[#allocation2 + $0x228] sm:$0xff] }
 0x770   :  { %8841 = vmatprep.subr.bf16.mxu1 %v8684_v47  ;;  %8893 = vmatpush1.bf16.msra.mxu0 %v8669_v59  ;;  %v8625_v35 = vld [vmem:[#allocation2 + $0x1b0] sm:$0xff]  ;;  %v8639_v5 = vld [vmem:[#allocation2 + $0x220] sm:$0xff]  ;;  %v8642_v25 = vld [vmem:[#allocation2 + $0x238] sm:$0xff] }
 0x771   :  { %8894 = vmatprep.subr.bf16.mxu0 %v8686_v10  ;;  %v8656_v31 = vld [vmem:[#allocation2 + $0x2a8] sm:$0xff]  ;;  %v8641_v36 = vld [vmem:[#allocation2 + $0x230] sm:$0xff]  ;;  %v8655_v54 = vld [vmem:[#allocation2 + $0x2a0] sm:$0xff] }
 0x772   :  { %v8658_v47 = vld [vmem:[#allocation2 + $0x2b8] sm:$0xff]  ;;  %v8672_v59 = vld [vmem:[#allocation2 + $0x328] sm:$0xff]  ;;  %v8657_v10 = vld [vmem:[#allocation2 + $0x2b0] sm:$0xff] }
 0x773   :  { %8842 = vmatpush1.bf16.msra.mxu1 %v8683_v15  ;;  %v8671_v15 = vld [vmem:[#allocation2 + $0x320] sm:$0xff] }
 0x774   :  { %8843 = vmatprep.subr.bf16.mxu1 %v8700_v16  ;;  %8895 = vmatpush1.bf16.msra.mxu0 %v8685_v19  ;;  %v8674_v16 = vld [vmem:[#allocation2 + $0x338] sm:$0xff]  ;;  %v8688_v19 = vld [vmem:[#allocation2 + $0x3a8] sm:$0xff] }
 0x775   :  { %8896 = vmatprep.subr.bf16.mxu0 %v8702_v20  ;;  %v8673_v20 = vld [vmem:[#allocation2 + $0x330] sm:$0xff] }
 0x777   :  { %8844 = vmatpush1.bf16.msra.mxu1 %v8699_v24  ;;  %v8687_v24 = vld [vmem:[#allocation2 + $0x3a0] sm:$0xff] }
 0x778   :  { %8845 = vmatprep.subr.bf16.mxu1 %v8716_v44  ;;  %8897 = vmatpush1.bf16.msra.mxu0 %v8701_v12  ;;  %v8690_v44 = vld [vmem:[#allocation2 + $0x3b8] sm:$0xff]  ;;  %v8704_v12 = vld [vmem:[#allocation2 + $0x428] sm:$0xff] }
 0x779   :  { %8898 = vmatprep.subr.bf16.mxu0 %v8718_v13  ;;  %v8689_v13 = vld [vmem:[#allocation2 + $0x3b0] sm:$0xff] }
 0x77b   :  { %8846 = vmatpush1.bf16.msra.mxu1 %v8715_v18  ;;  %v8703_v18 = vld [vmem:[#allocation2 + $0x420] sm:$0xff] }
 0x77c   :  { %8847 = vmatprep.subr.bf16.mxu1 %v8732_v21  ;;  %8899 = vmatpush1.bf16.msra.mxu0 %v8717_v27  ;;  %v8706_v21 = vld [vmem:[#allocation2 + $0x438] sm:$0xff]  ;;  %v8720_v27 = vld [vmem:[#allocation2 + $0x4a8] sm:$0xff] }
 0x77d   :  { %8900 = vmatprep.subr.bf16.mxu0 %v8734_v41  ;;  %v8705_v41 = vld [vmem:[#allocation2 + $0x430] sm:$0xff] }
 0x77f   :  { %8848 = vmatpush1.bf16.msra.mxu1 %v8731_v1  ;;  %v8719_v1 = vld [vmem:[#allocation2 + $0x4a0] sm:$0xff] }
 0x780   :  { %8849 = vmatprep.subr.bf16.mxu1 %v8748_v62  ;;  %8901 = vmatpush1.bf16.msra.mxu0 %v8733_v48  ;;  %v8722_v62 = vld [vmem:[#allocation2 + $0x4b8] sm:$0xff]  ;;  %v8736_v48 = vld [vmem:[#allocation2 + $0x528] sm:$0xff] }
 0x781   :  { %8902 = vmatprep.subr.bf16.mxu0 %v8750_v6  ;;  %v8721_v6 = vld [vmem:[#allocation2 + $0x4b0] sm:$0xff] }
 0x783   :  { %8850 = vmatpush1.bf16.msra.mxu1 %v8747_v7  ;;  %v8735_v7 = vld [vmem:[#allocation2 + $0x520] sm:$0xff] }
 0x784   :  { %8851 = vmatprep.subr.bf16.mxu1 %v8764_v32  ;;  %8903 = vmatpush1.bf16.msra.mxu0 %v8749_v22  ;;  %v8738_v32 = vld [vmem:[#allocation2 + $0x538] sm:$0xff]  ;;  %v8752_v22 = vld [vmem:[#allocation2 + $0x5a8] sm:$0xff] }
 0x785   :  { %8904 = vmatprep.subr.bf16.mxu0 %v8766_v40  ;;  %v8737_v40 = vld [vmem:[#allocation2 + $0x530] sm:$0xff] }
 0x787   :  { %8852 = vmatpush1.bf16.msra.mxu1 %v8763_v29  ;;  %v8751_v29 = vld [vmem:[#allocation2 + $0x5a0] sm:$0xff] }
 0x788   :  { %8853 = vmatprep.subr.bf16.mxu1 %v8780_v42  ;;  %8905 = vmatpush1.bf16.msra.mxu0 %v8765_v39  ;;  %v8754_v42 = vld [vmem:[#allocation2 + $0x5b8] sm:$0xff]  ;;  %v8768_v39 = vld [vmem:[#allocation2 + $0x628] sm:$0xff] }
 0x789   :  { %8906 = vmatprep.subr.bf16.mxu0 %v8782_v23  ;;  %v8753_v23 = vld [vmem:[#allocation2 + $0x5b0] sm:$0xff] }
 0x78b   :  { %8854 = vmatpush1.bf16.msra.mxu1 %v8779_v50  ;;  %v8770_v50 = vld [vmem:[#allocation2 + $0x638] sm:$0xff] }
 0x78c   :  { %8855 = vmatprep.subr.bf16.mxu1 %v8796_v43  ;;  %8907 = vmatpush1.bf16.msra.mxu0 %v8781_v26  ;;  %v8767_v43 = vld [vmem:[#allocation2 + $0x620] sm:$0xff]  ;;  %v8784_v26 = vld [vmem:[#allocation2 + $0x6a8] sm:$0xff] }
 0x78d   :  { %8908 = vmatprep.subr.bf16.mxu0 %v8798_v9  ;;  %v8769_v9 = vld [vmem:[#allocation2 + $0x630] sm:$0xff] }
 0x78f   :  { %8856 = vmatpush1.bf16.msra.mxu1 %v8795_v52  ;;  %v8786_v52 = vld [vmem:[#allocation2 + $0x6b8] sm:$0xff] }
 0x790   :  { %8857 = vmatprep.subr.bf16.mxu1 %v8812_v37  ;;  %8909 = vmatpush1.bf16.msra.mxu0 %v8797_v30  ;;  %v8783_v37 = vld [vmem:[#allocation2 + $0x6a0] sm:$0xff]  ;;  %v8800_v30 = vld [vmem:[#allocation2 + $0x728] sm:$0xff] }
 0x791   :  { %8910 = vmatprep.subr.bf16.mxu0 %v8814_v17  ;;  %v8785_v17 = vld [vmem:[#allocation2 + $0x6b0] sm:$0xff] }
 0x793   :  { %8858 = vmatpush1.bf16.msra.mxu1 %v8811_v61  ;;  %v8802_v61 = vld [vmem:[#allocation2 + $0x738] sm:$0xff] }
 0x794   :  { %8933 = vmatprep.subr.bf16.mxu1 %v8576_v49  ;;  %8911 = vmatpush1.bf16.msra.mxu0 %v8813_v51  ;;  %v8799_v49 = vld [vmem:[#allocation2 + $0x720] sm:$0xff]  ;;  %v8801_v51 = vld [vmem:[#allocation2 + $0x730] sm:$0xff] }
 0x795   :  { %8986 = vmatprep.subr.bf16.mxu0 %v8578_v38  ;;  %v8818_v38 = vld [vmem:[#allocation2 + $0x7b8] sm:$0xff] }
 0x796   :  { %8860 = vmatmul.mubr.bf16.vlgmr.msra.gmra.mrb[44].mxu1 %v14351_v58 }
 0x797   :  { %8934 = vmatpush1.bf16.msra.mxu1 %v8575_v57  ;;  %8869 = vmatprep.mubr.bf16.mxu1 %v14357_v14  ;;  %v8816_v57 = vld [vmem:[#allocation2 + $0x7a8] sm:$0xff] }
 0x798   :  { %8935 = vmatprep.subr.bf16.mxu1 %v8592_v2  ;;  %8913 = vmatmul.mubr.bf16.vlgmr.msra.gmra.mrb[60].mxu0 %v14351_v58  ;;  %v8815_v2 = vld [vmem:[#allocation2 + $0x7a0] sm:$0xff] }
 0x799   :  { %8987 = vmatpush1.bf16.msra.mxu0 %v8577_v4  ;;  %8922 = vmatprep.mubr.bf16.mxu0 %v14357_v14  ;;  %v8580_v4 = vld [vmem:[#allocation2 + $0x48] sm:$0xff] }
 0x79a   :  { %8988 = vmatprep.subr.bf16.mxu0 %v8594_v33  ;;  %v8582_v33 = vld [vmem:[#allocation2 + $0x58] sm:$0xff] }
 0x79b   :  { %8936 = vmatpush1.bf16.msra.mxu1 %v8591_v8  ;;  %v8817_v8 = vld [vmem:[#allocation2 + $0x7b0] sm:$0xff] }
 0x79c   :  { %8937 = vmatprep.subr.bf16.mxu1 %v8608_v34  ;;  %v8579_v34 = vld [vmem:[#allocation2 + $0x40] sm:$0xff] }
 0x79d   :  { %8989 = vmatpush1.bf16.msra.mxu0 %v8593_v45  ;;  %v8596_v45 = vld [vmem:[#allocation2 + $0xc8] sm:$0xff] }
 0x79e   :  { %8990 = vmatprep.subr.bf16.mxu0 %v8610_v53  ;;  %8870 = vmatmul.mubr.bf16.gmra.mrb[48].mxu1 %v14355_v11  ;;  %v8598_v53 = vld [vmem:[#allocation2 + $0xd8] sm:$0xff] }
 0x79f   :  { %8938 = vmatpush1.bf16.msra.mxu1 %v8607_v46  ;;  %8965 = vmatprep.mubr.bf16.mxu1 %v14353_v3  ;;  %v8581_v46 = vld [vmem:[#allocation2 + $0x50] sm:$0xff] }
 0x7a0   :  { %8939 = vmatprep.subr.bf16.mxu1 %v8624_v55  ;;  %8923 = vmatmul.mubr.bf16.gmra.mrb[64].mxu0 %v14355_v11  ;;  %v8595_v55 = vld [vmem:[#allocation2 + $0xc0] sm:$0xff] }
 0x7a1   :  { %8991 = vmatpush1.bf16.msra.mxu0 %v8609_v56  ;;  %9018 = vmatprep.mubr.bf16.mxu0 %v14353_v3  ;;  %v8612_v56 = vld [vmem:[#allocation2 + $0x148] sm:$0xff] }
 0x7a2   :  { %8992 = vmatprep.subr.bf16.mxu0 %v8626_v28  ;;  %v8614_v28 = vld [vmem:[#allocation2 + $0x158] sm:$0xff] }
 0x7a3   :  { %8940 = vmatpush1.bf16.msra.mxu1 %v8623_v60  ;;  %v8597_v60 = vld [vmem:[#allocation2 + $0xd0] sm:$0xff] }
 0x7a4   :  { %8941 = vmatprep.subr.bf16.mxu1 %v8640_v63  ;;  %v8611_v63 = vld [vmem:[#allocation2 + $0x140] sm:$0xff] }
 0x7a5   :  { %8993 = vmatpush1.bf16.msra.mxu0 %v8625_v35  ;;  %v8628_v35 = vld [vmem:[#allocation2 + $0x1c8] sm:$0xff] }
 0x7a6   :  { %8994 = vmatprep.subr.bf16.mxu0 %v8642_v25  ;;  %v8630_v25 = vld [vmem:[#allocation2 + $0x1d8] sm:$0xff] }
 0x7a7   :  { %8942 = vmatpush1.bf16.msra.mxu1 %v8639_v5  ;;  %v8613_v5 = vld [vmem:[#allocation2 + $0x150] sm:$0xff] }
 0x7a8   :  { %8943 = vmatprep.subr.bf16.mxu1 %v8656_v31  ;;  %v8627_v31 = vld [vmem:[#allocation2 + $0x1c0] sm:$0xff] }
 0x7a9   :  { %8995 = vmatpush1.bf16.msra.mxu0 %v8641_v36  ;;  %v8644_v36 = vld [vmem:[#allocation2 + $0x248] sm:$0xff] }
 0x7aa   :  { %8996 = vmatprep.subr.bf16.mxu0 %v8658_v47  ;;  %v8646_v47 = vld [vmem:[#allocation2 + $0x258] sm:$0xff] }
 0x7ab   :  { %8944 = vmatpush1.bf16.msra.mxu1 %v8655_v54  ;;  %v8629_v54 = vld [vmem:[#allocation2 + $0x1d0] sm:$0xff] }
 0x7ac   :  { %8945 = vmatprep.subr.bf16.mxu1 %v8672_v59  ;;  %v8643_v59 = vld [vmem:[#allocation2 + $0x240] sm:$0xff] }
 0x7ad   :  { %8997 = vmatpush1.bf16.msra.mxu0 %v8657_v10  ;;  %v8660_v10 = vld [vmem:[#allocation2 + $0x2c8] sm:$0xff] }
 0x7ae   :  { %8998 = vmatprep.subr.bf16.mxu0 %v8674_v16  ;;  %v8662_v16 = vld [vmem:[#allocation2 + $0x2d8] sm:$0xff] }
 0x7af   :  { %8946 = vmatpush1.bf16.msra.mxu1 %v8671_v15  ;;  %v8645_v15 = vld [vmem:[#allocation2 + $0x250] sm:$0xff] }
 0x7b0   :  { %8947 = vmatprep.subr.bf16.mxu1 %v8688_v19  ;;  %v8659_v19 = vld [vmem:[#allocation2 + $0x2c0] sm:$0xff] }
 0x7b1   :  { %8999 = vmatpush1.bf16.msra.mxu0 %v8673_v20  ;;  %v8676_v20 = vld [vmem:[#allocation2 + $0x348] sm:$0xff] }
 0x7b2   :  { %9000 = vmatprep.subr.bf16.mxu0 %v8690_v44  ;;  %v8678_v44 = vld [vmem:[#allocation2 + $0x358] sm:$0xff] }
 0x7b3   :  { %8948 = vmatpush1.bf16.msra.mxu1 %v8687_v24  ;;  %v8661_v24 = vld [vmem:[#allocation2 + $0x2d0] sm:$0xff] }
 0x7b4   :  { %8949 = vmatprep.subr.bf16.mxu1 %v8704_v12  ;;  %v8675_v12 = vld [vmem:[#allocation2 + $0x340] sm:$0xff] }
 0x7b5   :  { %9001 = vmatpush1.bf16.msra.mxu0 %v8689_v13  ;;  %v8692_v13 = vld [vmem:[#allocation2 + $0x3c8] sm:$0xff] }
 0x7b6   :  { %9002 = vmatprep.subr.bf16.mxu0 %v8706_v21  ;;  %v8694_v21 = vld [vmem:[#allocation2 + $0x3d8] sm:$0xff] }
 0x7b7   :  { %8950 = vmatpush1.bf16.msra.mxu1 %v8703_v18  ;;  %v8677_v18 = vld [vmem:[#allocation2 + $0x350] sm:$0xff] }
 0x7b8   :  { %8951 = vmatprep.subr.bf16.mxu1 %v8720_v27  ;;  %v8691_v27 = vld [vmem:[#allocation2 + $0x3c0] sm:$0xff] }
 0x7b9   :  { %9003 = vmatpush1.bf16.msra.mxu0 %v8705_v41  ;;  %v8708_v41 = vld [vmem:[#allocation2 + $0x448] sm:$0xff] }
 0x7ba   :  { %9004 = vmatprep.subr.bf16.mxu0 %v8722_v62  ;;  %v8710_v62 = vld [vmem:[#allocation2 + $0x458] sm:$0xff] }
 0x7bb   :  { %8952 = vmatpush1.bf16.msra.mxu1 %v8719_v1  ;;  %v8693_v1 = vld [vmem:[#allocation2 + $0x3d0] sm:$0xff] }
 0x7bc   :  { %8953 = vmatprep.subr.bf16.mxu1 %v8736_v48  ;;  %v8707_v48 = vld [vmem:[#allocation2 + $0x440] sm:$0xff] }
 0x7bd   :  { %9005 = vmatpush1.bf16.msra.mxu0 %v8721_v6  ;;  %v8724_v6 = vld [vmem:[#allocation2 + $0x4c8] sm:$0xff] }
 0x7be   :  { %9006 = vmatprep.subr.bf16.mxu0 %v8738_v32  ;;  %v8726_v32 = vld [vmem:[#allocation2 + $0x4d8] sm:$0xff] }
 0x7bf   :  { %8954 = vmatpush1.bf16.msra.mxu1 %v8735_v7  ;;  %v8709_v7 = vld [vmem:[#allocation2 + $0x450] sm:$0xff] }
 0x7c0   :  { %8955 = vmatprep.subr.bf16.mxu1 %v8752_v22  ;;  %v8723_v22 = vld [vmem:[#allocation2 + $0x4c0] sm:$0xff] }
 0x7c1   :  { %9007 = vmatpush1.bf16.msra.mxu0 %v8737_v40  ;;  %v8740_v40 = vld [vmem:[#allocation2 + $0x548] sm:$0xff] }
 0x7c2   :  { %9008 = vmatprep.subr.bf16.mxu0 %v8754_v42  ;;  %v8742_v42 = vld [vmem:[#allocation2 + $0x558] sm:$0xff] }
 0x7c3   :  { %8956 = vmatpush1.bf16.msra.mxu1 %v8751_v29  ;;  %v8725_v29 = vld [vmem:[#allocation2 + $0x4d0] sm:$0xff] }
 0x7c4   :  { %8957 = vmatprep.subr.bf16.mxu1 %v8768_v39  ;;  %v8739_v39 = vld [vmem:[#allocation2 + $0x540] sm:$0xff] }
 0x7c5   :  { %9009 = vmatpush1.bf16.msra.mxu0 %v8753_v23  ;;  %v8756_v23 = vld [vmem:[#allocation2 + $0x5c8] sm:$0xff] }
 0x7c6   :  { %9010 = vmatprep.subr.bf16.mxu0 %v8770_v50  ;;  %v8741_v50 = vld [vmem:[#allocation2 + $0x550] sm:$0xff] }
 0x7c7   :  { %8958 = vmatpush1.bf16.msra.mxu1 %v8767_v43  ;;  %v8758_v43 = vld [vmem:[#allocation2 + $0x5d8] sm:$0xff] }
 0x7c8   :  { %8959 = vmatprep.subr.bf16.mxu1 %v8784_v26  ;;  %v8755_v26 = vld [vmem:[#allocation2 + $0x5c0] sm:$0xff] }
 0x7c9   :  { %9011 = vmatpush1.bf16.msra.mxu0 %v8769_v9  ;;  %v8772_v9 = vld [vmem:[#allocation2 + $0x648] sm:$0xff] }
 0x7ca   :  { %9012 = vmatprep.subr.bf16.mxu0 %v8786_v52  ;;  %v8757_v52 = vld [vmem:[#allocation2 + $0x5d0] sm:$0xff] }
 0x7cb   :  { %8960 = vmatpush1.bf16.msra.mxu1 %v8783_v37  ;;  %v8774_v37 = vld [vmem:[#allocation2 + $0x658] sm:$0xff] }
 0x7cc   :  { %8961 = vmatprep.subr.bf16.mxu1 %v8800_v30  ;;  %v8771_v30 = vld [vmem:[#allocation2 + $0x640] sm:$0xff] }
 0x7cd   :  { %9013 = vmatpush1.bf16.msra.mxu0 %v8785_v17  ;;  %v8788_v17 = vld [vmem:[#allocation2 + $0x6c8] sm:$0xff] }
 0x7ce   :  { %9014 = vmatprep.subr.bf16.mxu0 %v8802_v61  ;;  %v8773_v61 = vld [vmem:[#allocation2 + $0x650] sm:$0xff] }
 0x7cf   :  { %8962 = vmatpush1.bf16.msra.mxu1 %v8799_v49  ;;  %v8790_v49 = vld [vmem:[#allocation2 + $0x6d8] sm:$0xff] }
 0x7d0   :  { %8963 = vmatprep.subr.bf16.mxu1 %v8816_v57  ;;  %v8787_v57 = vld [vmem:[#allocation2 + $0x6c0] sm:$0xff] }
 0x7d1   :  { %9015 = vmatpush1.bf16.msra.mxu0 %v8801_v51  ;;  %v8804_v51 = vld [vmem:[#allocation2 + $0x748] sm:$0xff] }
 0x7d2   :  { %9016 = vmatprep.subr.bf16.mxu0 %v8818_v38  ;;  %v8789_v38 = vld [vmem:[#allocation2 + $0x6d0] sm:$0xff] }
 0x7d3   :  { %8964 = vmatpush1.bf16.msra.mxu1 %v8815_v2  ;;  %v8806_v2 = vld [vmem:[#allocation2 + $0x758] sm:$0xff] }
 0x7d4   :  { %9039 = vmatprep.subr.bf16.mxu1 %v8580_v4  ;;  %v8803_v4 = vld [vmem:[#allocation2 + $0x740] sm:$0xff] }
 0x7d5   :  { %9017 = vmatpush1.bf16.msra.mxu0 %v8817_v8  ;;  %v8820_v8 = vld [vmem:[#allocation2 + $0x7c8] sm:$0xff] }
 0x7d6   :  { %8966 = vmatmul.mubr.bf16.vlgmr.msra.gmra.mrb[52].mxu1 %v14351_v58  ;;  %9092 = vmatprep.subr.bf16.mxu0 %v8582_v33  ;;  %v8805_v33 = vld [vmem:[#allocation2 + $0x750] sm:$0xff] }
 0x7d7   :  { %9040 = vmatpush1.bf16.msra.mxu1 %v8579_v34  ;;  %8975 = vmatprep.mubr.bf16.mxu1 %v14357_v14  ;;  %v8822_v34 = vld [vmem:[#allocation2 + $0x7d8] sm:$0xff] }
 0x7d8   :  { %9041 = vmatprep.subr.bf16.mxu1 %v8596_v45  ;;  %9019 = vmatmul.mubr.bf16.vlgmr.msra.gmra.mrb[68].mxu0 %v14351_v58  ;;  %v8819_v45 = vld [vmem:[#allocation2 + $0x7c0] sm:$0xff] }
 0x7d9   :  { %9093 = vmatpush1.bf16.msra.mxu0 %v8581_v46  ;;  %9028 = vmatprep.mubr.bf16.mxu0 %v14357_v14  ;;  %v8584_v46 = vld [vmem:[#allocation2 + $0x68] sm:$0xff] }
 0x7da   :  { %9094 = vmatprep.subr.bf16.mxu0 %v8598_v53  ;;  %v8821_v53 = vld [vmem:[#allocation2 + $0x7d0] sm:$0xff] }
 0x7db   :  { %9042 = vmatpush1.bf16.msra.mxu1 %v8595_v55  ;;  %v8586_v55 = vld [vmem:[#allocation2 + $0x78] sm:$0xff] }
 0x7dc   :  { %9043 = vmatprep.subr.bf16.mxu1 %v8612_v56  ;;  %v8583_v56 = vld [vmem:[#allocation2 + $0x60] sm:$0xff] }
 0x7dd   :  { %9095 = vmatpush1.bf16.msra.mxu0 %v8597_v60  ;;  %v8600_v60 = vld [vmem:[#allocation2 + $0xe8] sm:$0xff] }
 0x7de   :  { %8976 = vmatmul.mubr.bf16.gmra.mrb[56].mxu1 %v14355_v11  ;;  %9096 = vmatprep.subr.bf16.mxu0 %v8614_v28  ;;  %v8585_v28 = vld [vmem:[#allocation2 + $0x70] sm:$0xff] }
 0x7df   :  { %9044 = vmatpush1.bf16.msra.mxu1 %v8611_v63  ;;  %9071 = vmatprep.mubr.bf16.mxu1 %v14353_v3  ;;  %v8602_v63 = vld [vmem:[#allocation2 + $0xf8] sm:$0xff] }
 0x7e0   :  { %9045 = vmatprep.subr.bf16.mxu1 %v8628_v35  ;;  %9029 = vmatmul.mubr.bf16.gmra.mrb[72].mxu0 %v14355_v11  ;;  %v8599_v35 = vld [vmem:[#allocation2 + $0xe0] sm:$0xff] }
 0x7e1   :  { %9097 = vmatpush1.bf16.msra.mxu0 %v8613_v5  ;;  %9124 = vmatprep.mubr.bf16.mxu0 %v14353_v3  ;;  %v8616_v5 = vld [vmem:[#allocation2 + $0x168] sm:$0xff] }
 0x7e2   :  { %9098 = vmatprep.subr.bf16.mxu0 %v8630_v25  ;;  %v8601_v25 = vld [vmem:[#allocation2 + $0xf0] sm:$0xff] }
 0x7e3   :  { %9046 = vmatpush1.bf16.msra.mxu1 %v8627_v31  ;;  %v8618_v31 = vld [vmem:[#allocation2 + $0x178] sm:$0xff] }
 0x7e4   :  { %9047 = vmatprep.subr.bf16.mxu1 %v8644_v36  ;;  %v8615_v36 = vld [vmem:[#allocation2 + $0x160] sm:$0xff] }
 0x7e5   :  { %9099 = vmatpush1.bf16.msra.mxu0 %v8629_v54  ;;  %v8632_v54 = vld [vmem:[#allocation2 + $0x1e8] sm:$0xff] }
 0x7e6   :  { %9100 = vmatprep.subr.bf16.mxu0 %v8646_v47  ;;  %v8617_v47 = vld [vmem:[#allocation2 + $0x170] sm:$0xff] }
 0x7e7   :  { %9048 = vmatpush1.bf16.msra.mxu1 %v8643_v59  ;;  %v8634_v59 = vld [vmem:[#allocation2 + $0x1f8] sm:$0xff] }
 0x7e8   :  { %9049 = vmatprep.subr.bf16.mxu1 %v8660_v10  ;;  %v8631_v10 = vld [vmem:[#allocation2 + $0x1e0] sm:$0xff] }
 0x7e9   :  { %9101 = vmatpush1.bf16.msra.mxu0 %v8645_v15  ;;  %v8648_v15 = vld [vmem:[#allocation2 + $0x268] sm:$0xff] }
 0x7ea   :  { %9102 = vmatprep.subr.bf16.mxu0 %v8662_v16  ;;  %v8633_v16 = vld [vmem:[#allocation2 + $0x1f0] sm:$0xff] }
 0x7eb   :  { %9050 = vmatpush1.bf16.msra.mxu1 %v8659_v19  ;;  %v8650_v19 = vld [vmem:[#allocation2 + $0x278] sm:$0xff] }
 0x7ec   :  { %9051 = vmatprep.subr.bf16.mxu1 %v8676_v20  ;;  %v8647_v20 = vld [vmem:[#allocation2 + $0x260] sm:$0xff] }
 0x7ed   :  { %9103 = vmatpush1.bf16.msra.mxu0 %v8661_v24  ;;  %v8664_v24 = vld [vmem:[#allocation2 + $0x2e8] sm:$0xff] }
 0x7ee   :  { %9104 = vmatprep.subr.bf16.mxu0 %v8678_v44  ;;  %v8649_v44 = vld [vmem:[#allocation2 + $0x270] sm:$0xff] }
 0x7ef   :  { %9052 = vmatpush1.bf16.msra.mxu1 %v8675_v12  ;;  %v8666_v12 = vld [vmem:[#allocation2 + $0x2f8] sm:$0xff] }
 0x7f0   :  { %9053 = vmatprep.subr.bf16.mxu1 %v8692_v13  ;;  %v8663_v13 = vld [vmem:[#allocation2 + $0x2e0] sm:$0xff] }
 0x7f1   :  { %9105 = vmatpush1.bf16.msra.mxu0 %v8677_v18  ;;  %v8680_v18 = vld [vmem:[#allocation2 + $0x368] sm:$0xff] }
 0x7f2   :  { %9106 = vmatprep.subr.bf16.mxu0 %v8694_v21  ;;  %v8665_v21 = vld [vmem:[#allocation2 + $0x2f0] sm:$0xff] }
 0x7f3   :  { %9054 = vmatpush1.bf16.msra.mxu1 %v8691_v27  ;;  %v8679_v27 = vld [vmem:[#allocation2 + $0x360] sm:$0xff] }
 0x7f4   :  { %9055 = vmatprep.subr.bf16.mxu1 %v8708_v41  ;;  %v8696_v41 = vld [vmem:[#allocation2 + $0x3e8] sm:$0xff] }
 0x7f5   :  { %9107 = vmatpush1.bf16.msra.mxu0 %v8693_v1  ;;  %v8681_v1 = vld [vmem:[#allocation2 + $0x370] sm:$0xff] }
 0x7f6   :  { %9108 = vmatprep.subr.bf16.mxu0 %v8710_v62  ;;  %v8698_v62 = vld [vmem:[#allocation2 + $0x3f8] sm:$0xff] }
 0x7f7   :  { %9056 = vmatpush1.bf16.msra.mxu1 %v8707_v48  ;;  %v8695_v48 = vld [vmem:[#allocation2 + $0x3e0] sm:$0xff] }
 0x7f8   :  { %9057 = vmatprep.subr.bf16.mxu1 %v8724_v6  ;;  %v8712_v6 = vld [vmem:[#allocation2 + $0x468] sm:$0xff] }
 0x7f9   :  { %9109 = vmatpush1.bf16.msra.mxu0 %v8709_v7  ;;  %v8697_v7 = vld [vmem:[#allocation2 + $0x3f0] sm:$0xff] }
 0x7fa   :  { %9110 = vmatprep.subr.bf16.mxu0 %v8726_v32  ;;  %v8714_v32 = vld [vmem:[#allocation2 + $0x478] sm:$0xff] }
 0x7fb   :  { %9058 = vmatpush1.bf16.msra.mxu1 %v8723_v22  ;;  %v8711_v22 = vld [vmem:[#allocation2 + $0x460] sm:$0xff] }
 0x7fc   :  { %9059 = vmatprep.subr.bf16.mxu1 %v8740_v40  ;;  %v8728_v40 = vld [vmem:[#allocation2 + $0x4e8] sm:$0xff] }
 0x7fd   :  { %9111 = vmatpush1.bf16.msra.mxu0 %v8725_v29  ;;  %v8713_v29 = vld [vmem:[#allocation2 + $0x470] sm:$0xff] }
 0x7fe   :  { %9112 = vmatprep.subr.bf16.mxu0 %v8742_v42  ;;  %v8730_v42 = vld [vmem:[#allocation2 + $0x4f8] sm:$0xff] }
 0x7ff   :  { %9060 = vmatpush1.bf16.msra.mxu1 %v8739_v39  ;;  %v8727_v39 = vld [vmem:[#allocation2 + $0x4e0] sm:$0xff] }
 0x800   :  { %9061 = vmatprep.subr.bf16.mxu1 %v8756_v23  ;;  %v8744_v23 = vld [vmem:[#allocation2 + $0x568] sm:$0xff] }
 0x801   :  { %9113 = vmatpush1.bf16.msra.mxu0 %v8741_v50  ;;  %v8729_v50 = vld [vmem:[#allocation2 + $0x4f0] sm:$0xff] }
 0x802   :  { %9114 = vmatprep.subr.bf16.mxu0 %v8758_v43  ;;  %v8746_v43 = vld [vmem:[#allocation2 + $0x578] sm:$0xff] }
 0x803   :  { %9062 = vmatpush1.bf16.msra.mxu1 %v8755_v26  ;;  %v8743_v26 = vld [vmem:[#allocation2 + $0x560] sm:$0xff] }
 0x804   :  { %9063 = vmatprep.subr.bf16.mxu1 %v8772_v9  ;;  %v8760_v9 = vld [vmem:[#allocation2 + $0x5e8] sm:$0xff] }
 0x805   :  { %9115 = vmatpush1.bf16.msra.mxu0 %v8757_v52  ;;  %v8745_v52 = vld [vmem:[#allocation2 + $0x570] sm:$0xff] }
 0x806   :  { %9116 = vmatprep.subr.bf16.mxu0 %v8774_v37  ;;  %v8762_v37 = vld [vmem:[#allocation2 + $0x5f8] sm:$0xff] }
 0x807   :  { %9064 = vmatpush1.bf16.msra.mxu1 %v8771_v30  ;;  %v8759_v30 = vld [vmem:[#allocation2 + $0x5e0] sm:$0xff] }
 0x808   :  { %9065 = vmatprep.subr.bf16.mxu1 %v8788_v17  ;;  %v8776_v17 = vld [vmem:[#allocation2 + $0x668] sm:$0xff] }
 0x809   :  { %9117 = vmatpush1.bf16.msra.mxu0 %v8773_v61  ;;  %v8761_v61 = vld [vmem:[#allocation2 + $0x5f0] sm:$0xff] }
 0x80a   :  { %9118 = vmatprep.subr.bf16.mxu0 %v8790_v49  ;;  %v8778_v49 = vld [vmem:[#allocation2 + $0x678] sm:$0xff] }
 0x80b   :  { %9066 = vmatpush1.bf16.msra.mxu1 %v8787_v57  ;;  %v8775_v57 = vld [vmem:[#allocation2 + $0x660] sm:$0xff] }
 0x80c   :  { %9067 = vmatprep.subr.bf16.mxu1 %v8804_v51  ;;  %v8792_v51 = vld [vmem:[#allocation2 + $0x6e8] sm:$0xff] }
 0x80d   :  { %9119 = vmatpush1.bf16.msra.mxu0 %v8789_v38  ;;  %v8777_v38 = vld [vmem:[#allocation2 + $0x670] sm:$0xff] }
 0x80e   :  { %9120 = vmatprep.subr.bf16.mxu0 %v8806_v2  ;;  %v8794_v2 = vld [vmem:[#allocation2 + $0x6f8] sm:$0xff] }
 0x80f   :  { %9068 = vmatpush1.bf16.msra.mxu1 %v8803_v4  ;;  %v8791_v4 = vld [vmem:[#allocation2 + $0x6e0] sm:$0xff] }
 0x810   :  { %9069 = vmatprep.subr.bf16.mxu1 %v8820_v8  ;;  %v8808_v8 = vld [vmem:[#allocation2 + $0x768] sm:$0xff] }
 0x811   :  { %9121 = vmatpush1.bf16.msra.mxu0 %v8805_v33  ;;  %v8793_v33 = vld [vmem:[#allocation2 + $0x6f0] sm:$0xff] }
 0x812   :  { %9122 = vmatprep.subr.bf16.mxu0 %v8822_v34  ;;  %v8810_v34 = vld [vmem:[#allocation2 + $0x778] sm:$0xff] }
 0x813   :  { %9070 = vmatpush1.bf16.msra.mxu1 %v8819_v45  ;;  %v8807_v45 = vld [vmem:[#allocation2 + $0x760] sm:$0xff] }
 0x814   :  { %9145 = vmatprep.subr.bf16.mxu1 %v8584_v46  ;;  %v8824_v46 = vld [vmem:[#allocation2 + $0x7e8] sm:$0xff] }
 0x815   :  { %9123 = vmatpush1.bf16.msra.mxu0 %v8821_v53  ;;  %v8809_v53 = vld [vmem:[#allocation2 + $0x770] sm:$0xff] }
 0x816   :  { %9072 = vmatmul.mubr.bf16.vlgmr.msra.gmra.mrb[60].mxu1 %v14351_v58  ;;  %9198 = vmatprep.subr.bf16.mxu0 %v8586_v55  ;;  %v8826_v55 = vld [vmem:[#allocation2 + $0x7f8] sm:$0xff] }
 0x817   :  { %9146 = vmatpush1.bf16.msra.mxu1 %v8583_v56  ;;  %9081 = vmatprep.mubr.bf16.mxu1 %v14357_v14  ;;  %v8823_v56 = vld [vmem:[#allocation2 + $0x7e0] sm:$0xff] }
 0x818   :  { %9147 = vmatprep.subr.bf16.mxu1 %v8600_v60  ;;  %9125 = vmatmul.mubr.bf16.vlgmr.msra.gmra.mrb[76].mxu0 %v14351_v58  ;;  %v8825_v60 = vld [vmem:[#allocation2 + $0x7f0] sm:$0xff] }
 0x819   :  { %9199 = vmatpush1.bf16.msra.mxu0 %v8585_v28  ;;  %9134 = vmatprep.mubr.bf16.mxu0 %v14357_v14 }
 0x81a   :  { %9200 = vmatprep.subr.bf16.mxu0 %v8602_v63 }
 0x81b   :  { %9148 = vmatpush1.bf16.msra.mxu1 %v8599_v35 }
 0x81c   :  { %9149 = vmatprep.subr.bf16.mxu1 %v8616_v5 }
 0x81d   :  { %9201 = vmatpush1.bf16.msra.mxu0 %v8601_v25 }
 0x81e   :  { %9202 = vmatprep.subr.bf16.mxu0 %v8618_v31  ;;  %9082 = vmatmul.mubr.bf16.gmra.mrb[64].mxu1 %v14355_v11 }
 0x81f   :  { %9150 = vmatpush1.bf16.msra.mxu1 %v8615_v36  ;;  %9177 = vmatprep.mubr.bf16.mxu1 %v14353_v3 }
 0x820   :  { %9151 = vmatprep.subr.bf16.mxu1 %v8632_v54  ;;  %9135 = vmatmul.mubr.bf16.gmra.mrb[80].mxu0 %v14355_v11 }
 0x821   :  { %9203 = vmatpush1.bf16.msra.mxu0 %v8617_v47  ;;  %9230 = vmatprep.mubr.bf16.mxu0 %v14353_v3  ;;  %v8682_v3 = vld [vmem:[#allocation2 + $0x378] sm:$0xff] }
 0x822   :  { %9204 = vmatprep.subr.bf16.mxu0 %v8634_v59 }
 0x823   :  { %9152 = vmatpush1.bf16.msra.mxu1 %v8631_v10 }
 0x824   :  { %9153 = vmatprep.subr.bf16.mxu1 %v8648_v15 }
 0x825   :  { %9205 = vmatpush1.bf16.msra.mxu0 %v8633_v16 }
 0x826   :  { %9206 = vmatprep.subr.bf16.mxu0 %v8650_v19 }
 0x827   :  { %9154 = vmatpush1.bf16.msra.mxu1 %v8647_v20 }
 0x828   :  { %9155 = vmatprep.subr.bf16.mxu1 %v8664_v24 }
 0x829   :  { %9207 = vmatpush1.bf16.msra.mxu0 %v8649_v44 }
 0x82a   :  { %9208 = vmatprep.subr.bf16.mxu0 %v8666_v12 }
 0x82b   :  { %9156 = vmatpush1.bf16.msra.mxu1 %v8663_v13 }
 0x82c   :  { %9157 = vmatprep.subr.bf16.mxu1 %v8680_v18 }
 0x82d   :  { %9209 = vmatpush1.bf16.msra.mxu0 %v8665_v21 }
 0x82e   :  { %9210 = vmatprep.subr.bf16.mxu0 %v8682_v3 }
 0x82f   :  { %9158 = vmatpush1.bf16.msra.mxu1 %v8679_v27 }
 0x830   :  { %9159 = vmatprep.subr.bf16.mxu1 %v8696_v41 }
 0x831   :  { %9211 = vmatpush1.bf16.msra.mxu0 %v8681_v1 }
 0x832   :  { %9212 = vmatprep.subr.bf16.mxu0 %v8698_v62 }
 0x833   :  { %9160 = vmatpush1.bf16.msra.mxu1 %v8695_v48 }
 0x834   :  { %9161 = vmatprep.subr.bf16.mxu1 %v8712_v6 }
 0x835   :  { %9213 = vmatpush1.bf16.msra.mxu0 %v8697_v7  ;;  %v13508_v7 = vld [vmem:[#allocation13 + $0x4] ss:$16 sps:$4 sm:$0xff]  }
 0x836   :  { %9214 = vmatprep.subr.bf16.mxu0 %v8714_v32 }
 0x837   :  { %9162 = vmatpush1.bf16.msra.mxu1 %v8711_v22 }
 0x838   :  { %9163 = vmatprep.subr.bf16.mxu1 %v8728_v40 }
 0x839   :  { %9215 = vmatpush1.bf16.msra.mxu0 %v8713_v29 }
 0x83a   :  { %9216 = vmatprep.subr.bf16.mxu0 %v8730_v42 }
 0x83b   :  { %9164 = vmatpush1.bf16.msra.mxu1 %v8727_v39 }
 0x83c   :  { %9165 = vmatprep.subr.bf16.mxu1 %v8744_v23 }
 0x83d   :  { %9217 = vmatpush1.bf16.msra.mxu0 %v8729_v50 }
 0x83e   :  { %9218 = vmatprep.subr.bf16.mxu0 %v8746_v43 }
 0x83f   :  { %9166 = vmatpush1.bf16.msra.mxu1 %v8743_v26 }
 0x840   :  { %9167 = vmatprep.subr.bf16.mxu1 %v8760_v9 }
 0x841   :  { %9219 = vmatpush1.bf16.msra.mxu0 %v8745_v52 }
 0x842   :  { %9220 = vmatprep.subr.bf16.mxu0 %v8762_v37 }
 0x843   :  { %9168 = vmatpush1.bf16.msra.mxu1 %v8759_v30 }
 0x844   :  { %9169 = vmatprep.subr.bf16.mxu1 %v8776_v17 }
 0x845   :  { %9221 = vmatpush1.bf16.msra.mxu0 %v8761_v61 }
 0x846   :  { %9222 = vmatprep.subr.bf16.mxu0 %v8778_v49 }
 0x847   :  { %9170 = vmatpush1.bf16.msra.mxu1 %v8775_v57  ;;  %v13506_v57 = vld [vmem:[#allocation13] ss:$16 sps:$4 sm:$0xff]  }
 0x848   :  { %9171 = vmatprep.subr.bf16.mxu1 %v8792_v51  ;;  %v13509_v51 = vld [vmem:[#allocation13 + $0x24] ss:$16 sps:$4 sm:$0xff]  }
 0x849   :  { %9223 = vmatpush1.bf16.msra.mxu0 %v8777_v38  ;;  %v13511_v38 = vld [vmem:[#allocation13 + $0x20] ss:$16 sps:$4 sm:$0xff]  }
 0x84a   :  { %9224 = vmatprep.subr.bf16.mxu0 %v8794_v2  ;;  %v13512_v2 = vld [vmem:[#allocation13 + $0x44] ss:$16 sps:$4 sm:$0xff]  }
 0x84b   :  { %9172 = vmatpush1.bf16.msra.mxu1 %v8791_v4  ;;  %v13514_v4 = vld [vmem:[#allocation13 + $0x40] ss:$16 sps:$4 sm:$0xff]  }
 0x84c   :  { %9173 = vmatprep.subr.bf16.mxu1 %v8808_v8  ;;  %v13515_v8 = vld [vmem:[#allocation13 + $0x64] ss:$16 sps:$4 sm:$0xff]  }
 0x84d   :  { %9225 = vmatpush1.bf16.msra.mxu0 %v8793_v33  ;;  %v13517_v33 = vld [vmem:[#allocation13 + $0x60] ss:$16 sps:$4 sm:$0xff]  }
 0x84e   :  { %9226 = vmatprep.subr.bf16.mxu0 %v8810_v34  ;;  %v13520_v34 = vld [vmem:[#allocation13 + $0xc] ss:$16 sps:$4 sm:$0xff]  }
 0x84f   :  { %9174 = vmatpush1.bf16.msra.mxu1 %v8807_v45 }
 0x850   :  { %9175 = vmatprep.subr.bf16.mxu1 %v8824_v46 }
 0x851   :  { %9227 = vmatpush1.bf16.msra.mxu0 %v8809_v53  ;;  %v13530_v53 = vld [vmem:[#allocation13 + $0x80] ss:$16 sps:$4 sm:$0xff]  }
 0x852   :  { %9228 = vmatprep.subr.bf16.mxu0 %v8826_v55  ;;  %v13532_v55 = vld [vmem:[#allocation13 + $0x84] ss:$16 sps:$4 sm:$0xff]  }
 0x853   :  { %9176 = vmatpush1.bf16.msra.mxu1 %v8823_v56 }
 0x855   :  { %9229 = vmatpush1.bf16.msra.mxu0 %v8825_v60 }
 0x856   :  { %9178 = vmatmul.mubr.bf16.vlgmr.msra.gmra.mrb[68].mxu1 %v14351_v58 }
 0x857   :  { %9187 = vmatprep.mubr.bf16.mxu1 %v14357_v14 }
 0x858   :  { %9231 = vmatmul.mubr.bf16.vlgmr.msra.gmra.mrb[84].mxu0 %v14351_v58 }
 0x859   :  { %9240 = vmatprep.mubr.bf16.mxu0 %v14357_v14 }
 0x85e   :  { %9188 = vmatmul.mubr.bf16.gmra.mrb[72].mxu1 %v14355_v11 }
 0x85f   :  { %9546 = vmatprep.mubr.bf16.mxu1 %v13532_v55  ;;  %v13541_v55 = vld [vmem:[#allocation13 + $0xa8] ss:$16 sps:$4 sm:$0xff]  }
 0x860   :  { %9241 = vmatmul.mubr.bf16.gmra.mrb[88].mxu0 %v14355_v11 }
 0x861   :  { %9514 = vmatprep.mubr.bf16.mxu0 %v13508_v7 }
 0x869   :  { %v8861_v28 = vpop.f32.mrb[44].mxu1 }
 0x86a   :  { %v8863_v63 = vpop.f32.mrb[45].mxu1 }
 0x86b   :  { %v8865_v35 = vpop.f32.mrb[46].mxu1  ;;  %v8914_v5 = vpop.f32.mrb[60].mxu0 }
 0x86c   :  { %v9251_v25 = vpack.c.bf16 %v8865_v35, %v8861_v28  ;;  %v8867_v31 = vpop.f32.mrb[47].mxu1  ;;  %v8916_v36 = vpop.f32.mrb[61].mxu0 }
 0x86d   :  { %v9253_v54 = vpack.c.bf16 %v8867_v31, %v8863_v63  ;;  %v8918_v47 = vpop.f32.mrb[62].mxu0 }
 0x86e   :  { %v9255_v59 = vpack.c.bf16 %v8918_v47, %v8914_v5  ;;  %v8920_v10 = vpop.f32.mrb[63].mxu0 }
 0x86f   :  { %v14391_v15 = vpack.c.bf16 %v8920_v10, %v8916_v36  ;;  %v13536_v10 = vld [vmem:[#allocation13 + $0xa4] ss:$16 sps:$4 sm:$0xff]  }
 0x871   :  { %v8871_v58 = vpop.f32.mrb[48].mxu1 }
 0x872   :  { %v8873_v16 = vpop.f32.mrb[49].mxu1 }
 0x873   :  { %v8875_v14 = vpop.f32.mrb[50].mxu1  ;;  %v8924_v19 = vpop.f32.mrb[64].mxu0 }
 0x874   :  { %v9252_v20 = vpack.c.bf16 %v8875_v14, %v8871_v58  ;;  %v8877_v24 = vpop.f32.mrb[51].mxu1  ;;  %v8926_v11 = vpop.f32.mrb[65].mxu0 }
 0x875   :  { %v9254_v44 = vpack.c.bf16 %v8877_v24, %v8873_v16  ;;  %v8928_v12 = vpop.f32.mrb[66].mxu0 }
 0x876   :  { %v9256_v13 = vpack.c.bf16 %v8928_v12, %v8924_v19  ;;  %v8930_v18 = vpop.f32.mrb[67].mxu0 }
 0x877   :  { %v9258_v21 = vpack.c.bf16 %v8930_v18, %v8926_v11  ;;  %v13542_v18 = vld [vmem:[#allocation13 + $0xc4] ss:$16 sps:$4 sm:$0xff]  }
 0x8a9   :  { %v8967_v3 = vpop.f32.mrb[52].mxu1 }
 0x8aa   :  { %v8969_v27 = vpop.f32.mrb[53].mxu1 }
 0x8ab   :  { %v8971_v41 = vpop.f32.mrb[54].mxu1  ;;  %v9020_v1 = vpop.f32.mrb[68].mxu0 }
 0x8ac   :  { %v9259_v62 = vpack.c.bf16 %v8971_v41, %v8967_v3  ;;  %v8973_v48 = vpop.f32.mrb[55].mxu1  ;;  %v9022_v6 = vpop.f32.mrb[69].mxu0  ;;  %v13548_v3 = vld [vmem:[#allocation13 + $0xe4] ss:$16 sps:$4 sm:$0xff]  }
 0x8ad   :  { %v9261_v32 = vpack.c.bf16 %v8973_v48, %v8969_v27  ;;  %v9024_v22 = vpop.f32.mrb[70].mxu0  ;;  %v13550_v27 = vld [vmem:[#allocation13 + $0xe0] ss:$16 sps:$4 sm:$0xff]  }
 0x8ae   :  { %13007 = vmatprep.subr.bf16.mxu0 %v9259_v62  ;;  %13255 = vmatprep.subr.bf16.mxu1 %v9259_v62  ;;  %v9263_v40 = vpack.c.bf16 %v9024_v22, %v9020_v1  ;;  %v9026_v29 = vpop.f32.mrb[71].mxu0 }
 0x8af   :  { %13008 = vmatpush3.bf16.msra.mxu0 %v9251_v25  ;;  %13263 = vmatpush3.bf16.msra.mxu1 %v9251_v25  ;;  %v9265_v42 = vpack.c.bf16 %v9026_v29, %v9022_v6 }
 0x8b1   :  { %v8977_v39 = vpop.f32.mrb[56].mxu1 }
 0x8b2   :  { %v8979_v23 = vpop.f32.mrb[57].mxu1 }
 0x8b3   :  { %v8981_v50 = vpop.f32.mrb[58].mxu1  ;;  %v9030_v43 = vpop.f32.mrb[72].mxu0 }
 0x8b4   :  { %v9260_v26 = vpack.c.bf16 %v8981_v50, %v8977_v39  ;;  %v8983_v9 = vpop.f32.mrb[59].mxu1  ;;  %v9032_v52 = vpop.f32.mrb[73].mxu0 }
 0x8b5   :  { %v9262_v37 = vpack.c.bf16 %v8983_v9, %v8979_v23  ;;  %v9034_v30 = vpop.f32.mrb[74].mxu0 }
 0x8b6   :  { %13009 = vmatprep.subr.bf16.mxu0 %v9260_v26  ;;  %13256 = vmatprep.subr.bf16.mxu1 %v9260_v26  ;;  %v9264_v17 = vpack.c.bf16 %v9034_v30, %v9030_v43  ;;  %v9036_v61 = vpop.f32.mrb[75].mxu0 }
 0x8b7   :  { %13010 = vmatpush3.bf16.msra.mxu0 %v9252_v20  ;;  %13264 = vmatpush3.bf16.msra.mxu1 %v9252_v20  ;;  %v9266_v49 = vpack.c.bf16 %v9036_v61, %v9032_v52 }
 0x8b8   :  { %13011 = vmatprep.subr.bf16.mxu0 %v9261_v32  ;;  %13257 = vmatprep.subr.bf16.mxu1 %v9261_v32 }
 0x8bb   :  { %13012 = vmatpush3.bf16.msra.mxu0 %v9253_v54  ;;  %13265 = vmatpush3.bf16.msra.mxu1 %v9253_v54 }
 0x8bc   :  { %13013 = vmatprep.subr.bf16.mxu0 %v9262_v37  ;;  %13258 = vmatprep.subr.bf16.mxu1 %v9262_v37 }
 0x8bf   :  { %13014 = vmatpush3.bf16.msra.mxu0 %v9254_v44  ;;  %13266 = vmatpush3.bf16.msra.mxu1 %v9254_v44 }
 0x8c0   :  { %13015 = vmatprep.subr.bf16.mxu0 %v9263_v40  ;;  %13259 = vmatprep.subr.bf16.mxu1 %v9263_v40 }
 0x8c3   :  { %13016 = vmatpush3.bf16.msra.mxu0 %v9255_v59  ;;  %13267 = vmatpush3.bf16.msra.mxu1 %v9255_v59 }
 0x8c4   :  { %13017 = vmatprep.subr.bf16.mxu0 %v9264_v17  ;;  %13260 = vmatprep.subr.bf16.mxu1 %v9264_v17 }
 0x8c7   :  { %13018 = vmatpush3.bf16.msra.mxu0 %v9256_v13  ;;  %13268 = vmatpush3.bf16.msra.mxu1 %v9256_v13 }
 0x8c8   :  { %13019 = vmatprep.subr.bf16.mxu0 %v9265_v42  ;;  %13261 = vmatprep.subr.bf16.mxu1 %v9265_v42 }
 0x8cb   :  { %13020 = vmatpush3.bf16.msra.mxu0 %v14391_v15  ;;  %13269 = vmatpush3.bf16.msra.mxu1 %v14391_v15  ;;  %v13538_v15 = vld [vmem:[#allocation13 + $0xa0] ss:$16 sps:$4 sm:$0xff]  }
 0x8cc   :  { %13021 = vmatprep.subr.bf16.mxu0 %v9266_v49  ;;  %13262 = vmatprep.subr.bf16.mxu1 %v9266_v49 }
 0x8cf   :  { %13022 = vmatpush3.bf16.msra.mxu0 %v9258_v21  ;;  %13270 = vmatpush3.bf16.msra.mxu1 %v9258_v21  ;;  %v13544_v21 = vld [vmem:[#allocation13 + $0xc0] ss:$16 sps:$4 sm:$0xff]  }
 0x8d2   :  { %9515 = vmatmul.mubr.bf16.vlgmr.msra.gmra.mrb[92].mxu0 %v13506_v57  ;;  %9547 = vmatmul.mubr.bf16.vlgmr.msra.gmra.mrb[76].mxu1 %v13530_v53  ;;  %v13539_v53 = vld [vmem:[#allocation13 + $0xac] ss:$16 sps:$4 sm:$0xff]  }
 0x8d3   :  { %9522 = vmatprep.mubr.bf16.mxu0 %v13509_v51  ;;  %9554 = vmatprep.mubr.bf16.mxu1 %v13536_v10  ;;  %v13518_v51 = vld [vmem:[#allocation13 + $0x8] ss:$16 sps:$4 sm:$0xff]  }
 0x8da   :  { %9523 = vmatmul.mubr.bf16.gmra.mrb[96].mxu0 %v13511_v38  ;;  %9555 = vmatmul.mubr.bf16.gmra.mrb[80].mxu1 %v13538_v15  ;;  %v13521_v38 = vld [vmem:[#allocation13 + $0x2c] ss:$16 sps:$4 sm:$0xff]  }
 0x8db   :  { %9530 = vmatprep.mubr.bf16.mxu0 %v13512_v2  ;;  %9562 = vmatprep.mubr.bf16.mxu1 %v13542_v18  ;;  %v13523_v2 = vld [vmem:[#allocation13 + $0x28] ss:$16 sps:$4 sm:$0xff]  }
 0x8e2   :  { %9531 = vmatmul.mubr.bf16.gmra.mrb[100].mxu0 %v13514_v4  ;;  %9563 = vmatmul.mubr.bf16.gmra.mrb[84].mxu1 %v13544_v21  ;;  %v13524_v4 = vld [vmem:[#allocation13 + $0x4c] ss:$16 sps:$4 sm:$0xff]  }
 0x8e3   :  { %9538 = vmatprep.mubr.bf16.mxu0 %v13515_v8  ;;  %9570 = vmatprep.mubr.bf16.mxu1 %v13548_v3  ;;  %v13526_v8 = vld [vmem:[#allocation13 + $0x48] ss:$16 sps:$4 sm:$0xff]  }
 0x8e9   :  { %v9073_v45 = vpop.f32.mrb[60].mxu1 }
 0x8ea   :  { %v14395_v46 = vpop.f32.mrb[61].mxu1  ;;  %9539 = vmatmul.mubr.bf16.gmra.mrb[104].mxu0 %v13517_v33  ;;  %9571 = vmatmul.mubr.bf16.gmra.mrb[88].mxu1 %v13550_v27  ;;  %v13527_v33 = vld [vmem:[#allocation13 + $0x6c] ss:$16 sps:$4 sm:$0xff]  }
 0x8eb   :  { %v9077_v56 = vpop.f32.mrb[62].mxu1  ;;  %v14397_v60 = vpop.f32.mrb[76].mxu0  ;;  %9611 = vmatprep.mubr.bf16.mxu0 %v13520_v34  ;;  %v13529_v34 = vld [vmem:[#allocation13 + $0x68] ss:$16 sps:$4 sm:$0xff]  }
 0x8ec   :  { %v9267_v28 = vpack.c.bf16 %v9077_v56, %v9073_v45  ;;  %v9079_v63 = vpop.f32.mrb[63].mxu1  ;;  %v14399_v35 = vpop.f32.mrb[77].mxu0  ;;  %v13533_v45 = vld [vmem:[#allocation13 + $0x8c] ss:$16 sps:$4 sm:$0xff]  }
 0x8ed   :  { %v9269_v5 = vpack.c.bf16 %v9079_v63, %v14395_v46  ;;  %v9130_v25 = vpop.f32.mrb[78].mxu0  ;;  %v13535_v46 = vld [vmem:[#allocation13 + $0x88] ss:$16 sps:$4 sm:$0xff]   ;;  %v13545_v56 = vld [vmem:[#allocation13 + $0xcc] ss:$16 sps:$4 sm:$0xff]  }
 0x8ee   :  { %v9271_v31 = vpack.c.bf16 %v9130_v25, %v14397_v60  ;;  %v14403_v36 = vpop.f32.mrb[79].mxu0  ;;  %v13547_v60 = vld [vmem:[#allocation13 + $0xc8] ss:$16 sps:$4 sm:$0xff]  }
 0x8ef   :  { %v9273_v54 = vpack.c.bf16 %v14403_v36, %v14399_v35  ;;  %v13553_v63 = vld [vmem:[#allocation13 + $0xe8] ss:$16 sps:$4 sm:$0xff]  }
 0x8f1   :  { %v9083_v47 = vpop.f32.mrb[64].mxu1 }
 0x8f2   :  { %v9085_v59 = vpop.f32.mrb[65].mxu1 }
 0x8f3   :  { %v9087_v58 = vpop.f32.mrb[66].mxu1  ;;  %v9136_v16 = vpop.f32.mrb[80].mxu0 }
 0x8f4   :  { %v9268_v14 = vpack.c.bf16 %v9087_v58, %v9083_v47  ;;  %v9089_v19 = vpop.f32.mrb[67].mxu1  ;;  %v9138_v20 = vpop.f32.mrb[81].mxu0 }
 0x8f5   :  { %v9270_v24 = vpack.c.bf16 %v9089_v19, %v9085_v59  ;;  %v9140_v11 = vpop.f32.mrb[82].mxu0 }
 0x8f6   :  { %v9272_v44 = vpack.c.bf16 %v9140_v11, %v9136_v16  ;;  %v9142_v12 = vpop.f32.mrb[83].mxu0 }
 0x8f7   :  { %v9274_v13 = vpack.c.bf16 %v9142_v12, %v9138_v20 }
 0x929   :  { %v9179_v41 = vpop.f32.mrb[68].mxu1 }
 0x92a   :  { %v9181_v1 = vpop.f32.mrb[69].mxu1 }
 0x92b   :  { %v9183_v62 = vpop.f32.mrb[70].mxu1  ;;  %v9232_v48 = vpop.f32.mrb[84].mxu0 }
 0x92c   :  { %v9275_v6 = vpack.c.bf16 %v9183_v62, %v9179_v41  ;;  %v9185_v7 = vpop.f32.mrb[71].mxu1  ;;  %v9234_v32 = vpop.f32.mrb[85].mxu0 }
 0x92d   :  { %v9277_v22 = vpack.c.bf16 %v9185_v7, %v9181_v1  ;;  %v9236_v40 = vpop.f32.mrb[86].mxu0 }
 0x92e   :  { %13071 = vmatprep.subr.bf16.mxu0 %v9275_v6  ;;  %v9279_v29 = vpack.c.bf16 %v9236_v40, %v9232_v48  ;;  %v9238_v42 = vpop.f32.mrb[87].mxu0 }
 0x92f   :  { %13072 = vmatpush3.bf16.msra.mxu0 %v9267_v28  ;;  %v9281_v39 = vpack.c.bf16 %v9238_v42, %v9234_v32  ;;  %v13551_v28 = vld [vmem:[#allocation13 + $0xec] ss:$16 sps:$4 sm:$0xff]  }
 0x931   :  { %v9189_v23 = vpop.f32.mrb[72].mxu1 }
 0x932   :  { %v9191_v50 = vpop.f32.mrb[73].mxu1 }
 0x933   :  { %v9193_v43 = vpop.f32.mrb[74].mxu1  ;;  %v9242_v26 = vpop.f32.mrb[88].mxu0 }
 0x934   :  { %v9276_v9 = vpack.c.bf16 %v9193_v43, %v9189_v23  ;;  %v9195_v52 = vpop.f32.mrb[75].mxu1  ;;  %v9244_v37 = vpop.f32.mrb[89].mxu0 }
 0x935   :  { %v9278_v30 = vpack.c.bf16 %v9195_v52, %v9191_v50  ;;  %v9246_v17 = vpop.f32.mrb[90].mxu0 }
 0x936   :  { %13073 = vmatprep.subr.bf16.mxu0 %v9276_v9  ;;  %v9280_v61 = vpack.c.bf16 %v9246_v17, %v9242_v26  ;;  %v9248_v49 = vpop.f32.mrb[91].mxu0 }
 0x937   :  { %13074 = vmatpush3.bf16.msra.mxu0 %v9268_v14  ;;  %v9282_v57 = vpack.c.bf16 %v9248_v49, %v9244_v37 }
 0x938   :  { %13075 = vmatprep.subr.bf16.mxu0 %v9277_v22 }
 0x93b   :  { %13076 = vmatpush3.bf16.msra.mxu0 %v9269_v5 }
 0x93c   :  { %13077 = vmatprep.subr.bf16.mxu0 %v9278_v30 }
 0x93f   :  { %13078 = vmatpush3.bf16.msra.mxu0 %v9270_v24 }
 0x940   :  { %13079 = vmatprep.subr.bf16.mxu0 %v9279_v29 }
 0x943   :  { %13080 = vmatpush3.bf16.msra.mxu0 %v9271_v31 }
 0x944   :  { %13081 = vmatprep.subr.bf16.mxu0 %v9280_v61 }
 0x947   :  { %13082 = vmatpush3.bf16.msra.mxu0 %v9272_v44 }
 0x948   :  { %13083 = vmatprep.subr.bf16.mxu0 %v9281_v39 }
 0x94b   :  { %13084 = vmatpush3.bf16.msra.mxu0 %v9273_v54 }
 0x94c   :  { %13085 = vmatprep.subr.bf16.mxu0 %v9282_v57 }
 0x94f   :  { %13086 = vmatpush3.bf16.msra.mxu0 %v9274_v13 }
 0x952   :  { %9612 = vmatmul.mubr.bf16.vlgmr.msra.gmra.mrb[108].mxu0 %v13518_v51  ;;  %v14431_v51 = vld [vmem:[#allocation15] ss:$0 sm:$0xff] }
 0x953   :  { %9619 = vmatprep.mubr.bf16.mxu0 %v13521_v38 }
 0x95a   :  { %9620 = vmatmul.mubr.bf16.gmra.mrb[112].mxu0 %v13523_v2 }
 0x95b   :  { %9627 = vmatprep.mubr.bf16.mxu0 %v13524_v4 }
 0x962   :  { %9628 = vmatmul.mubr.bf16.gmra.mrb[116].mxu0 %v13526_v8 }
 0x963   :  { %9635 = vmatprep.mubr.bf16.mxu0 %v13527_v33 }
 0x96a   :  { %9636 = vmatmul.mubr.bf16.gmra.mrb[120].mxu0 %v13529_v34 }
 0x96b   :  { %9643 = vmatprep.mubr.bf16.mxu0 %v13533_v45 }
 0x972   :  { %9644 = vmatmul.mubr.bf16.gmra.mrb[124].mxu0 %v13535_v46 }
 0x973   :  { %9651 = vmatprep.mubr.bf16.mxu0 %v13539_v53 }
 0x97a   :  { %9652 = vmatmul.mubr.bf16.gmra.mrb[128].mxu0 %v13541_v55 }
 0x97b   :  { %9659 = vmatprep.mubr.bf16.mxu0 %v13545_v56 }
 0x982   :  { %9660 = vmatmul.mubr.bf16.gmra.mrb[132].mxu0 %v13547_v60 }
 0x983   :  { %9667 = vmatprep.mubr.bf16.mxu0 %v13551_v28 }
 0x98a   :  { %9668 = vmatmul.mubr.bf16.gmra.mrb[136].mxu0 %v13553_v63 }
 0x9a5   :  { %v13023_v35 = vpop.f32.mrb[92].mxu0  ;;  %v13047_v27 = vpop.f32.mrb[76].mxu1 }
 0x9a6   :  { %v13024_v5 = vpop.f32.mrb[93].mxu0  ;;  %v13048_v1 = vpop.f32.mrb[77].mxu1 }
 0x9a7   :  { %v13025_v25 = vadd.f32 %v13024_v5, %v13023_v35  ;;  %v13026_v31 = vpop.f32.mrb[94].mxu0  ;;  %v14415_v62 = vadd.f32 %v13048_v1, %v13047_v27  ;;  %v13050_v48 = vpop.f32.mrb[78].mxu1 }
 0x9a8   :  { %v13027_v36 = vpop.f32.mrb[95].mxu0  ;;  %v13051_v6 = vpop.f32.mrb[79].mxu1 }
 0x9a9   :  { %v13028_v54 = vadd.f32 %v13027_v36, %v13026_v31  ;;  %v14417_v7 = vadd.f32 %v13051_v6, %v13050_v48  ;;  %v9517_v33 = vadd.f32 %v13025_v25, %v14431_v51 }
 0x9ab   :  { %v9520_v45 = vadd.f32 %v13028_v54, %v14431_v51 }
 0x9ad   :  { %v13029_v47 = vpop.f32.mrb[96].mxu0  ;;  %v13053_v32 = vpop.f32.mrb[80].mxu1 }
 0x9ae   :  { %v13030_v59 = vpop.f32.mrb[97].mxu0  ;;  %v13054_v22 = vpop.f32.mrb[81].mxu1 }
 0x9af   :  { %v13031_v10 = vadd.f32 %v13030_v59, %v13029_v47  ;;  %v13032_v15 = vpop.f32.mrb[98].mxu0  ;;  %v14419_v40 = vadd.f32 %v13054_v22, %v13053_v32  ;;  %v13056_v29 = vpop.f32.mrb[82].mxu1 }
 0x9b0   :  { %v13033_v58 = vpop.f32.mrb[99].mxu0  ;;  %v13057_v42 = vpop.f32.mrb[83].mxu1 }
 0x9b1   :  { %v13034_v16 = vadd.f32 %v13033_v58, %v13032_v15  ;;  %v14421_v39 = vadd.f32 %v13057_v42, %v13056_v29  ;;  %v9525_v63 = vadd.f32 %v13031_v10, %v14431_v51 }
 0x9b3   :  { %v9528_v47 = vadd.f32 %v13034_v16, %v14431_v51 }
 0x9b5   :  { %v13035_v14 = vpop.f32.mrb[100].mxu0  ;;  %v13059_v23 = vpop.f32.mrb[84].mxu1 }
 0x9b6   :  { %v13036_v19 = vpop.f32.mrb[101].mxu0  ;;  %v13060_v50 = vpop.f32.mrb[85].mxu1 }
 0x9b7   :  { %v14407_v20 = vadd.f32 %v13036_v19, %v13035_v14  ;;  %v13038_v24 = vpop.f32.mrb[102].mxu0  ;;  %v14423_v43 = vadd.f32 %v13060_v50, %v13059_v23  ;;  %v13062_v26 = vpop.f32.mrb[86].mxu1 }
 0x9b8   :  { %v13039_v11 = vpop.f32.mrb[103].mxu0  ;;  %v13063_v9 = vpop.f32.mrb[87].mxu1 }
 0x9b9   :  { %v14409_v44 = vadd.f32 %v13039_v11, %v13038_v24  ;;  %v14425_v52 = vadd.f32 %v13063_v9, %v13062_v26  ;;  %v9533_v19 = vadd.f32 %v14407_v20, %v14431_v51  ;;  %v9549_v9 = vadd.f32 %v14415_v62, %v14431_v51 }
 0x9bd   :  { %v13041_v12 = vpop.f32.mrb[104].mxu0  ;;  %v13065_v37 = vpop.f32.mrb[88].mxu1 }
 0x9be   :  { %v13042_v13 = vpop.f32.mrb[105].mxu0  ;;  %v13066_v30 = vpop.f32.mrb[89].mxu1 }
 0x9bf   :  { %v14411_v18 = vadd.f32 %v13042_v13, %v13041_v12  ;;  %v13044_v21 = vpop.f32.mrb[106].mxu0  ;;  %v14427_v17 = vadd.f32 %v13066_v30, %v13065_v37  ;;  %v13068_v61 = vpop.f32.mrb[90].mxu1  ;;  %v9536_v13 = vadd.f32 %v14409_v44, %v14431_v51 }
 0x9c0   :  { %v13045_v3 = vpop.f32.mrb[107].mxu0  ;;  %v13069_v49 = vpop.f32.mrb[91].mxu1 }
 0x9c1   :  { %v14413_v41 = vadd.f32 %v13045_v3, %v13044_v21  ;;  %v14429_v57 = vadd.f32 %v13069_v49, %v13068_v61  ;;  %v9541_v6 = vadd.f32 %v14411_v18, %v14431_v51 }
 0x9c3   :  { %v9544_v42 = vadd.f32 %v14413_v41, %v14431_v51 }
 0xa25   :  { %v13087_v38 = vpop.f32.mrb[108].mxu0 }
 0xa26   :  { %v13088_v2 = vpop.f32.mrb[109].mxu0 }
 0xa27   :  { %v13089_v4 = vadd.f32 %v13088_v2, %v13087_v38  ;;  %v13090_v8 = vpop.f32.mrb[110].mxu0  ;;  %v9552_v2 = vadd.f32 %v14417_v7, %v14431_v51 }
 0xa28   :  { %v13091_v34 = vpop.f32.mrb[111].mxu0 }
 0xa29   :  { %v13092_v46 = vadd.f32 %v13091_v34, %v13090_v8  ;;  %v9614_v53 = vadd.f32 %v13089_v4, %v9517_v33  ;;  %v9557_v34 = vadd.f32 %v14419_v40, %v14431_v51 }
 0xa2b   :  { %v9676_v55 = vmax.f32 %v9614_v53, 0.0  ;;  %v9617_v56 = vadd.f32 %v13092_v46, %v9520_v45 }
 0xa2d   :  { %v13093_v60 = vpop.f32.mrb[112].mxu0  ;;  %9692 = vxpose.xlu0.b32.start [1/16] %v9676_v55, 128  ;;  %v9677_v31 = vmax.f32 %v9617_v56, 0.0 }
 0xa2e   :  { %v13094_v28 = vpop.f32.mrb[113].mxu0 }
 0xa2f   :  { %v13095_v35 = vadd.f32 %v13094_v28, %v13093_v60  ;;  %v13096_v5 = vpop.f32.mrb[114].mxu0  ;;  %v9560_v60 = vadd.f32 %v14421_v39, %v14431_v51 }
 0xa30   :  { %v13097_v36 = vpop.f32.mrb[115].mxu0 }
 0xa31   :  { %v13098_v59 = vadd.f32 %v13097_v36, %v13096_v5  ;;  %9693 = vxpose.xlu0.b32.cont [2/16] %v9677_v31, 128  ;;  %v9622_v25 = vadd.f32 %v13095_v35, %v9525_v63  ;;  %v9565_v5 = vadd.f32 %v14423_v43, %v14431_v51 }
 0xa33   :  { %v9678_v15 = vmax.f32 %v9622_v25, 0.0  ;;  %v9625_v54 = vadd.f32 %v13098_v59, %v9528_v47 }
 0xa35   :  { %v13099_v58 = vpop.f32.mrb[116].mxu0  ;;  %9694 = vxpose.xlu0.b32.cont [3/16] %v9678_v15, 128  ;;  %v9679_v10 = vmax.f32 %v9625_v54, 0.0  ;;  %v9568_v15 = vadd.f32 %v14425_v52, %v14431_v51 }
 0xa36   :  { %v13100_v14 = vpop.f32.mrb[117].mxu0 }
 0xa37   :  { %v13101_v24 = vadd.f32 %v13100_v14, %v13099_v58  ;;  %v13102_v11 = vpop.f32.mrb[118].mxu0 }
 0xa38   :  { %v13103_v12 = vpop.f32.mrb[119].mxu0 }
 0xa39   :  { %v13104_v21 = vadd.f32 %v13103_v12, %v13102_v11  ;;  %9695 = vxpose.xlu0.b32.cont [4/16] %v9679_v10, 128  ;;  %v9630_v16 = vadd.f32 %v13101_v24, %v9533_v19  ;;  %v9573_v19 = vadd.f32 %v14427_v17, %v14431_v51 }
 0xa3b   :  { %v9680_v3 = vmax.f32 %v9630_v16, 0.0  ;;  %v9633_v27 = vadd.f32 %v13104_v21, %v9536_v13  ;;  %v9576_v21 = vadd.f32 %v14429_v57, %v14431_v51 }
 0xa3d   :  { %v13105_v1 = vpop.f32.mrb[120].mxu0  ;;  %9696 = vxpose.xlu0.b32.cont [5/16] %v9680_v3, 128  ;;  %v9681_v22 = vmax.f32 %v9633_v27, 0.0 }
 0xa3e   :  { %v13106_v48 = vpop.f32.mrb[121].mxu0 }
 0xa3f   :  { %v13107_v32 = vadd.f32 %v13106_v48, %v13105_v1  ;;  %v13108_v20 = vpop.f32.mrb[122].mxu0  ;;  %v13554_v48 = vld [vmem:[#allocation16] sm:$0xff]  }
 0xa40   :  { %v13109_v29 = vpop.f32.mrb[123].mxu0  ;;  %13191 = vmatprep.mubr.bf16.mxu1 %v13554_v48 }
 0xa41   :  { %v13110_v23 = vadd.f32 %v13109_v29, %v13108_v20  ;;  %9697 = vxpose.xlu0.b32.cont [6/16] %v9681_v22, 128  ;;  %v9638_v44 = vadd.f32 %v13107_v32, %v9541_v6 }
 0xa43   :  { %v9682_v50 = vmax.f32 %v9638_v44, 0.0  ;;  %v9641_v26 = vadd.f32 %v13110_v23, %v9544_v42 }
 0xa45   :  { %v13111_v37 = vpop.f32.mrb[124].mxu0  ;;  %9698 = vxpose.xlu0.b32.cont [7/16] %v9682_v50, 128  ;;  %v9683_v49 = vmax.f32 %v9641_v26, 0.0 }
 0xa46   :  { %v13112_v30 = vpop.f32.mrb[125].mxu0 }
 0xa47   :  { %v13113_v61 = vadd.f32 %v13112_v30, %v13111_v37  ;;  %v13114_v18 = vpop.f32.mrb[126].mxu0 }
 0xa48   :  { %v13115_v38 = vpop.f32.mrb[127].mxu0 }
 0xa49   :  { %v13116_v4 = vadd.f32 %v13115_v38, %v13114_v18  ;;  %9699 = vxpose.xlu0.b32.cont [8/16] %v9683_v49, 128  ;;  %v9646_v41 = vadd.f32 %v13113_v61, %v9549_v9 }
 0xa4b   :  { %v9684_v8 = vmax.f32 %v9646_v41, 0.0  ;;  %v9649_v33 = vadd.f32 %v13116_v4, %v9552_v2 }
 0xa4d   :  { %v13117_v45 = vpop.f32.mrb[128].mxu0  ;;  %9700 = vxpose.xlu0.b32.cont [9/16] %v9684_v8, 128  ;;  %v9685_v55 = vmax.f32 %v9649_v33, 0.0  ;;  %v13555_v33 = vld [vmem:[#allocation16 + $0x8] sm:$0xff]  }
 0xa4e   :  { %v13118_v62 = vpop.f32.mrb[129].mxu0 }
 0xa4f   :  { %v13119_v46 = vadd.f32 %v13118_v62, %v13117_v45  ;;  %v13120_v53 = vpop.f32.mrb[130].mxu0  ;;  %v13557_v45 = vld [vmem:[#allocation16 + $0x18] sm:$0xff]   ;;  %v13558_v62 = vld [vmem:[#allocation16 + $0x20] sm:$0xff]  }
 0xa50   :  { %v13121_v56 = vpop.f32.mrb[131].mxu0 }
 0xa51   :  { %v13122_v28 = vadd.f32 %v13121_v56, %v13120_v53  ;;  %9701 = vxpose.xlu0.b32.cont [10/16] %v9685_v55, 128  ;;  %v9654_v7 = vadd.f32 %v13119_v46, %v9557_v34  ;;  %v13556_v34 = vld [vmem:[#allocation16 + $0x10] sm:$0xff]   ;;  %v13559_v46 = vld [vmem:[#allocation16 + $0x28] sm:$0xff]   ;;  %v13561_v55 = vld [vmem:[#allocation16 + $0x38] sm:$0xff]  }
 0xa52   :  { %v13560_v53 = vld [vmem:[#allocation16 + $0x30] sm:$0xff]   ;;  %v13562_v56 = vld [vmem:[#allocation16 + $0x40] sm:$0xff]  }
 0xa53   :  { %v9686_v63 = vmax.f32 %v9654_v7, 0.0  ;;  %v9657_v35 = vadd.f32 %v13122_v28, %v9560_v60  ;;  %v13563_v60 = vld [vmem:[#allocation16 + $0x48] sm:$0xff]   ;;  %v13564_v28 = vld [vmem:[#allocation16 + $0x50] sm:$0xff]   ;;  %v13565_v7 = vld [vmem:[#allocation16 + $0x58] sm:$0xff]  }
 0xa55   :  { %v13123_v31 = vpop.f32.mrb[132].mxu0  ;;  %9702 = vxpose.xlu0.b32.cont [11/16] %v9686_v63, 128  ;;  %v9687_v59 = vmax.f32 %v9657_v35, 0.0  ;;  %v13566_v63 = vld [vmem:[#allocation16 + $0x60] sm:$0xff]   ;;  %v13567_v35 = vld [vmem:[#allocation16 + $0x68] sm:$0xff]  }
 0xa56   :  { %v13124_v40 = vpop.f32.mrb[133].mxu0 }
 0xa57   :  { %v13125_v36 = vadd.f32 %v13124_v40, %v13123_v31  ;;  %v13126_v47 = vpop.f32.mrb[134].mxu0  ;;  %v13569_v31 = vld [vmem:[#allocation16 + $0x78] sm:$0xff]   ;;  %v13570_v40 = vld [vmem:[#allocation16 + $0x80] sm:$0xff]  }
 0xa58   :  { %v13127_v25 = vpop.f32.mrb[135].mxu0 }
 0xa59   :  { %v13128_v54 = vadd.f32 %v13127_v25, %v13126_v47  ;;  %9703 = vxpose.xlu0.b32.cont [12/16] %v9687_v59, 128  ;;  %v9662_v39 = vadd.f32 %v13125_v36, %v9565_v5  ;;  %v13568_v5 = vld [vmem:[#allocation16 + $0x70] sm:$0xff]   ;;  %v13571_v36 = vld [vmem:[#allocation16 + $0x88] sm:$0xff]   ;;  %v13573_v59 = vld [vmem:[#allocation16 + $0x98] sm:$0xff]  }
 0xa5a   :  { %v13572_v47 = vld [vmem:[#allocation16 + $0x90] sm:$0xff]   ;;  %v13574_v25 = vld [vmem:[#allocation16 + $0xa0] sm:$0xff]  }
 0xa5b   :  { %v9688_v58 = vmax.f32 %v9662_v39, 0.0  ;;  %v9665_v14 = vadd.f32 %v13128_v54, %v9568_v15  ;;  %v13575_v15 = vld [vmem:[#allocation16 + $0xa8] sm:$0xff]   ;;  %v13576_v54 = vld [vmem:[#allocation16 + $0xb0] sm:$0xff]   ;;  %v13577_v39 = vld [vmem:[#allocation16 + $0xb8] sm:$0xff]  }
 0xa5d   :  { %v13129_v24 = vpop.f32.mrb[136].mxu0  ;;  %9704 = vxpose.xlu0.b32.cont [13/16] %v9688_v58, 128  ;;  %v9689_v12 = vmax.f32 %v9665_v14, 0.0  ;;  %v13578_v58 = vld [vmem:[#allocation16 + $0xc0] sm:$0xff]   ;;  %v13579_v14 = vld [vmem:[#allocation16 + $0xc8] sm:$0xff]  }
 0xa5e   :  { %v13130_v43 = vpop.f32.mrb[137].mxu0 }
 0xa5f   :  { %v13131_v11 = vadd.f32 %v13130_v43, %v13129_v24  ;;  %v13132_v10 = vpop.f32.mrb[138].mxu0  ;;  %v13581_v24 = vld [vmem:[#allocation16 + $0xd8] sm:$0xff]   ;;  %v13582_v43 = vld [vmem:[#allocation16 + $0xe0] sm:$0xff]  }
 0xa60   :  { %v13133_v13 = vpop.f32.mrb[139].mxu0 }
 0xa61   :  { %v13134_v16 = vadd.f32 %v13133_v13, %v13132_v10  ;;  %9705 = vxpose.xlu0.b32.cont [14/16] %v9689_v12, 128  ;;  %v9670_v52 = vadd.f32 %v13131_v11, %v9573_v19  ;;  %v13580_v19 = vld [vmem:[#allocation16 + $0xd0] sm:$0xff]   ;;  %v13583_v11 = vld [vmem:[#allocation16 + $0xe8] sm:$0xff]   ;;  %v13585_v12 = vld [vmem:[#allocation16 + $0xf8] sm:$0xff]  }
 0xa62   :  { %v13584_v10 = vld [vmem:[#allocation16 + $0xf0] sm:$0xff]  }
 0xa63   :  { %v9690_v3 = vmax.f32 %v9670_v52, 0.0  ;;  %v9673_v27 = vadd.f32 %v13134_v16, %v9576_v21 }
 0xa65   :  { %9706 = vxpose.xlu0.b32.cont [15/16] %v9690_v3, 128  ;;  %v9691_v1 = vmax.f32 %v9673_v27, 0.0 }
 0xa69   :  { %9707 = vxpose.xlu0.b32.end [16/16] %v9691_v1, 128 }
 0xaad   :  { %v9708_v17 = vpop.trf.xlu0 }
 0xab1   :  { %v9709_v6 = vpop.trf.xlu0 }
 0xab2   :  { %v9724_v32 = vpack.c.bf16 %v9709_v6, %v9708_v17 }
 0xab4   :  { %13175 = vmatprep.subr.bf16.mxu1 %v9724_v32 }
 0xab5   :  { %v9710_v20 = vpop.trf.xlu0  ;;  %13176 = vmatpush3.bf16.msra.mxu1 %v9724_v32 }
 0xab9   :  { %v9711_v22 = vpop.trf.xlu0 }
 0xaba   :  { %v9725_v29 = vpack.c.bf16 %v9711_v22, %v9710_v20 }
 0xabc   :  { %13177 = vmatprep.subr.bf16.mxu1 %v9725_v29 }
 0xabd   :  { %v9712_v57 = vpop.trf.xlu0  ;;  %13178 = vmatpush3.bf16.msra.mxu1 %v9725_v29 }
 0xac1   :  { %v9713_v51 = vpop.trf.xlu0 }
 0xac2   :  { %v9726_v42 = vpack.c.bf16 %v9713_v51, %v9712_v57 }
 0xac4   :  { %13179 = vmatprep.subr.bf16.mxu1 %v9726_v42 }
 0xac5   :  { %v9714_v23 = vpop.trf.xlu0  ;;  %13180 = vmatpush3.bf16.msra.mxu1 %v9726_v42 }
 0xac9   :  { %v9715_v44 = vpop.trf.xlu0 }
 0xaca   :  { %v9727_v50 = vpack.c.bf16 %v9715_v44, %v9714_v23 }
 0xacc   :  { %13181 = vmatprep.subr.bf16.mxu1 %v9727_v50 }
 0xacd   :  { %v9716_v26 = vpop.trf.xlu0  ;;  %13182 = vmatpush3.bf16.msra.mxu1 %v9727_v50 }
 0xad1   :  { %v9717_v9 = vpop.trf.xlu0 }
 0xad2   :  { %v9728_v37 = vpack.c.bf16 %v9717_v9, %v9716_v26 }
 0xad4   :  { %13183 = vmatprep.subr.bf16.mxu1 %v9728_v37 }
 0xad5   :  { %v9718_v30 = vpop.trf.xlu0  ;;  %13184 = vmatpush3.bf16.msra.mxu1 %v9728_v37 }
 0xad9   :  { %v9719_v61 = vpop.trf.xlu0 }
 0xada   :  { %v9729_v18 = vpack.c.bf16 %v9719_v61, %v9718_v30 }
 0xadc   :  { %13185 = vmatprep.subr.bf16.mxu1 %v9729_v18 }
 0xadd   :  { %v9720_v49 = vpop.trf.xlu0  ;;  %13186 = vmatpush3.bf16.msra.mxu1 %v9729_v18 }
 0xae1   :  { %v9721_v38 = vpop.trf.xlu0 }
 0xae2   :  { %v9730_v2 = vpack.c.bf16 %v9721_v38, %v9720_v49 }
 0xae4   :  { %13187 = vmatprep.subr.bf16.mxu1 %v9730_v2 }
 0xae5   :  { %v9722_v4 = vpop.trf.xlu0  ;;  %13188 = vmatpush3.bf16.msra.mxu1 %v9730_v2 }
 0xae9   :  { %v9723_v41 = vpop.trf.xlu0 }
 0xaea   :  { %v9731_v8 = vpack.c.bf16 %v9723_v41, %v9722_v4 }
 0xaec   :  { %13189 = vmatprep.subr.bf16.mxu1 %v9731_v8 }
 0xaed   :  { %13190 = vmatpush3.bf16.msra.mxu1 %v9731_v8 }
 0xaf0   :  { %13192 = vmatmul.mubr.bf16.vlgmr.msra.gmra.mrb[92].mxu1 %v13555_v33 }
 0xaf1   :  { %13195 = vmatprep.mubr.bf16.mxu1 %v13556_v34 }
 0xaf8   :  { %13196 = vmatmul.mubr.bf16.gmra.mrb[96].mxu1 %v13557_v45 }
 0xaf9   :  { %13199 = vmatprep.mubr.bf16.mxu1 %v13558_v62 }
 0xb00   :  { %13200 = vmatmul.mubr.bf16.gmra.mrb[100].mxu1 %v13559_v46 }
 0xb01   :  { %13203 = vmatprep.mubr.bf16.mxu1 %v13560_v53 }
 0xb08   :  { %13204 = vmatmul.mubr.bf16.gmra.mrb[104].mxu1 %v13561_v55 }
 0xb09   :  { %13207 = vmatprep.mubr.bf16.mxu1 %v13562_v56 }
 0xb10   :  { %13208 = vmatmul.mubr.bf16.gmra.mrb[108].mxu1 %v13563_v60 }
 0xb11   :  { %13211 = vmatprep.mubr.bf16.mxu1 %v13564_v28 }
 0xb18   :  { %13212 = vmatmul.mubr.bf16.gmra.mrb[112].mxu1 %v13565_v7 }
 0xb19   :  { %13215 = vmatprep.mubr.bf16.mxu1 %v13566_v63 }
 0xb20   :  { %13216 = vmatmul.mubr.bf16.gmra.mrb[116].mxu1 %v13567_v35 }
 0xb21   :  { %13219 = vmatprep.mubr.bf16.mxu1 %v13568_v5 }
 0xb28   :  { %13220 = vmatmul.mubr.bf16.gmra.mrb[120].mxu1 %v13569_v31 }
 0xb29   :  { %13223 = vmatprep.mubr.bf16.mxu1 %v13570_v40 }
 0xb30   :  { %13224 = vmatmul.mubr.bf16.gmra.mrb[124].mxu1 %v13571_v36 }
 0xb31   :  { %13227 = vmatprep.mubr.bf16.mxu1 %v13572_v47 }
 0xb38   :  { %13228 = vmatmul.mubr.bf16.gmra.mrb[128].mxu1 %v13573_v59 }
 0xb39   :  { %13231 = vmatprep.mubr.bf16.mxu1 %v13574_v25 }
 0xb40   :  { %13232 = vmatmul.mubr.bf16.gmra.mrb[132].mxu1 %v13575_v15 }
 0xb41   :  { %13235 = vmatprep.mubr.bf16.mxu1 %v13576_v54 }
 0xb48   :  { %13236 = vmatmul.mubr.bf16.gmra.mrb[136].mxu1 %v13577_v39 }
 0xb49   :  { %13239 = vmatprep.mubr.bf16.mxu1 %v13578_v58 }
 0xb50   :  { %13240 = vmatmul.mubr.bf16.gmra.mrb[140].mxu1 %v13579_v14 }
 0xb51   :  { %13243 = vmatprep.mubr.bf16.mxu1 %v13580_v19 }
 0xb58   :  { %13244 = vmatmul.mubr.bf16.gmra.mrb[144].mxu1 %v13581_v24 }
 0xb59   :  { %13247 = vmatprep.mubr.bf16.mxu1 %v13582_v43 }
 0xb60   :  { %13248 = vmatmul.mubr.bf16.gmra.mrb[148].mxu1 %v13583_v11 }
 0xb61   :  { %13251 = vmatprep.mubr.bf16.mxu1 %v13584_v10 }
 0xb68   :  { %13252 = vmatmul.mubr.bf16.gmra.mrb[152].mxu1 %v13585_v12 }
 0xbc3   :  { %v13193_v13 = vpop.f32.mrb[92].mxu1 }
 0xbc4   :  { %v10022_v21 = vpop.f32.mrb[93].mxu1 }
 0xbc5   :  { %v13194_v16 = vpop.f32.mrb[94].mxu1 }
 0xbc6   :  { %v14461_v52 = vpack.c.bf16 %v13194_v16, %v13193_v13  ;;  %v10025_v3 = vpop.f32.mrb[95].mxu1 }
 0xbc7   :  { %v14463_v27 = vpack.c.bf16 %v10025_v3, %v10022_v21 }
 0xbcb   :  { %v13197_v1 = vpop.f32.mrb[96].mxu1 }
 0xbcc   :  { %v10038_v48 = vpop.f32.mrb[97].mxu1 }
 0xbcd   :  { %v13198_v17 = vpop.f32.mrb[98].mxu1 }
 0xbce   :  { %v14465_v6 = vpack.c.bf16 %v13198_v17, %v13197_v1  ;;  %v10041_v32 = vpop.f32.mrb[99].mxu1 }
 0xbcf   :  { %v14467_v20 = vpack.c.bf16 %v10041_v32, %v10038_v48 }
 0xbd3   :  { %v13201_v22 = vpop.f32.mrb[100].mxu1 }
 0xbd4   :  { %v10054_v29 = vpop.f32.mrb[101].mxu1 }
 0xbd5   :  { %v13202_v57 = vpop.f32.mrb[102].mxu1 }
 0xbd6   :  { %v14469_v51 = vpack.c.bf16 %v13202_v57, %v13201_v22  ;;  %v10057_v42 = vpop.f32.mrb[103].mxu1 }
 0xbd7   :  { %v14471_v23 = vpack.c.bf16 %v10057_v42, %v10054_v29 }
 0xbdb   :  { %v13205_v44 = vpop.f32.mrb[104].mxu1 }
 0xbdc   :  { %v10070_v50 = vpop.f32.mrb[105].mxu1 }
 0xbdd   :  { %v13206_v26 = vpop.f32.mrb[106].mxu1 }
 0xbde   :  { %v14473_v9 = vpack.c.bf16 %v13206_v26, %v13205_v44  ;;  %v10073_v37 = vpop.f32.mrb[107].mxu1 }
 0xbdf   :  { %v14475_v30 = vpack.c.bf16 %v10073_v37, %v10070_v50 }
 0xbe3   :  { %v13209_v61 = vpop.f32.mrb[108].mxu1 }
 0xbe4   :  { %v10086_v18 = vpop.f32.mrb[109].mxu1 }
 0xbe5   :  { %v13210_v49 = vpop.f32.mrb[110].mxu1 }
 0xbe6   :  { %v14477_v38 = vpack.c.bf16 %v13210_v49, %v13209_v61  ;;  %v10089_v2 = vpop.f32.mrb[111].mxu1 }
 0xbe7   :  { %v14479_v4 = vpack.c.bf16 %v10089_v2, %v10086_v18 }
 0xbeb   :  { %v13213_v41 = vpop.f32.mrb[112].mxu1 }
 0xbec   :  { %v10102_v8 = vpop.f32.mrb[113].mxu1 }
 0xbed   :  { %v13214_v33 = vpop.f32.mrb[114].mxu1 }
 0xbee   :  { %v14481_v34 = vpack.c.bf16 %v13214_v33, %v13213_v41  ;;  %v10105_v45 = vpop.f32.mrb[115].mxu1 }
 0xbef   :  { %v14483_v62 = vpack.c.bf16 %v10105_v45, %v10102_v8 }
 0xbf3   :  { %v13217_v46 = vpop.f32.mrb[116].mxu1 }
 0xbf4   :  { %v10118_v53 = vpop.f32.mrb[117].mxu1 }
 0xbf5   :  { %v13218_v55 = vpop.f32.mrb[118].mxu1 }
 0xbf6   :  { %v14485_v56 = vpack.c.bf16 %v13218_v55, %v13217_v46  ;;  %v10121_v60 = vpop.f32.mrb[119].mxu1 }
 0xbf7   :  { %v14487_v28 = vpack.c.bf16 %v10121_v60, %v10118_v53 }
 0xbfb   :  { %v13221_v7 = vpop.f32.mrb[120].mxu1 }
 0xbfc   :  { %v10134_v63 = vpop.f32.mrb[121].mxu1 }
 0xbfd   :  { %v13222_v35 = vpop.f32.mrb[122].mxu1 }
 0xbfe   :  { %v14489_v5 = vpack.c.bf16 %v13222_v35, %v13221_v7  ;;  %v10137_v31 = vpop.f32.mrb[123].mxu1 }
 0xbff   :  { %v14491_v40 = vpack.c.bf16 %v10137_v31, %v10134_v63 }
 0xc03   :  { %v13225_v36 = vpop.f32.mrb[124].mxu1 }
 0xc04   :  { %v10150_v47 = vpop.f32.mrb[125].mxu1 }
 0xc05   :  { %v13226_v59 = vpop.f32.mrb[126].mxu1 }
 0xc06   :  { %v14493_v25 = vpack.c.bf16 %v13226_v59, %v13225_v36  ;;  %v10153_v15 = vpop.f32.mrb[127].mxu1 }
 0xc07   :  { %v14495_v54 = vpack.c.bf16 %v10153_v15, %v10150_v47 }
 0xc0b   :  { %v13229_v39 = vpop.f32.mrb[128].mxu1 }
 0xc0c   :  { %v10166_v58 = vpop.f32.mrb[129].mxu1 }
 0xc0d   :  { %v13230_v14 = vpop.f32.mrb[130].mxu1 }
 0xc0e   :  { %v14497_v19 = vpack.c.bf16 %v13230_v14, %v13229_v39  ;;  %v10169_v24 = vpop.f32.mrb[131].mxu1 }
 0xc0f   :  { %v14499_v43 = vpack.c.bf16 %v10169_v24, %v10166_v58 }
 0xc13   :  { %v13233_v11 = vpop.f32.mrb[132].mxu1 }
 0xc14   :  { %v10182_v10 = vpop.f32.mrb[133].mxu1 }
 0xc15   :  { %v13234_v12 = vpop.f32.mrb[134].mxu1 }
 0xc16   :  { %v14501_v13 = vpack.c.bf16 %v13234_v12, %v13233_v11  ;;  %v10185_v21 = vpop.f32.mrb[135].mxu1 }
 0xc17   :  { %v14503_v16 = vpack.c.bf16 %v10185_v21, %v10182_v10 }
 0xc1b   :  { %v13237_v3 = vpop.f32.mrb[136].mxu1 }
 0xc1c   :  { %v10198_v1 = vpop.f32.mrb[137].mxu1 }
 0xc1d   :  { %v13238_v48 = vpop.f32.mrb[138].mxu1 }
 0xc1e   :  { %v14505_v17 = vpack.c.bf16 %v13238_v48, %v13237_v3  ;;  %v10201_v32 = vpop.f32.mrb[139].mxu1 }
 0xc1f   :  { %v14507_v22 = vpack.c.bf16 %v10201_v32, %v10198_v1 }
 0xc23   :  { %v13241_v29 = vpop.f32.mrb[140].mxu1 }
 0xc24   :  { %v10214_v57 = vpop.f32.mrb[141].mxu1 }
 0xc25   :  { %v13242_v42 = vpop.f32.mrb[142].mxu1 }
 0xc26   :  { %v14509_v44 = vpack.c.bf16 %v13242_v42, %v13241_v29  ;;  %v10217_v50 = vpop.f32.mrb[143].mxu1 }
 0xc27   :  { %v14511_v26 = vpack.c.bf16 %v10217_v50, %v10214_v57 }
 0xc2b   :  { %v13245_v37 = vpop.f32.mrb[144].mxu1 }
 0xc2c   :  { %v10230_v61 = vpop.f32.mrb[145].mxu1 }
 0xc2d   :  { %v13246_v18 = vpop.f32.mrb[146].mxu1 }
 0xc2e   :  { %v14513_v49 = vpack.c.bf16 %v13246_v18, %v13245_v37  ;;  %v10233_v2 = vpop.f32.mrb[147].mxu1 }
 0xc2f   :  { %v14515_v41 = vpack.c.bf16 %v10233_v2, %v10230_v61 }
 0xc33   :  { %v13249_v8 = vpop.f32.mrb[148].mxu1 }
 0xc34   :  { %v10246_v33 = vpop.f32.mrb[149].mxu1 }
 0xc35   :  { %v13250_v45 = vpop.f32.mrb[150].mxu1 }
 0xc36   :  { %v14517_v46 = vpack.c.bf16 %v13250_v45, %v13249_v8  ;;  %v10249_v53 = vpop.f32.mrb[151].mxu1 }
 0xc37   :  { %v14519_v55 = vpack.c.bf16 %v10249_v53, %v10246_v33 }
 0xc3b   :  { %v13253_v60 = vpop.f32.mrb[152].mxu1 }
 0xc3c   :  { %v10262_v7 = vpop.f32.mrb[153].mxu1 }
 0xc3d   :  { %v13254_v63 = vpop.f32.mrb[154].mxu1 }
 0xc3e   :  { %v14521_v35 = vpack.c.bf16 %v13254_v63, %v13253_v60  ;;  %v10265_v31 = vpop.f32.mrb[155].mxu1 }
 0xc3f   :  { %v14523_v36 = vpack.c.bf16 %v10265_v31, %v10262_v7 }
 0xc40   :  { %13806 = dma.done.wait [#allocation4 + $0x1], 65536 }
 0xc41   :  { %13807 = vsyncadd [#allocation4 + $0x1], 4294901760  ;;  %10881 = vmatprep.mubr.bf16.mxu0 %v14467_v20  ;;  %11305 = vmatprep.mubr.bf16.mxu1 %v14467_v20  ;;  %v10314_v47 = vld [vmem:[#allocation3 + $0x8] sm:$0xff]  ;;  %v10316_v59 = vld [vmem:[#allocation3 + $0x18] sm:$0xff]  ;;  %vm11722_vm5 = vcmask 261120  }
 0xc42   :  { %13586 = vset.pattern.permute.xlu0 %v13824_v0  ;;  %13587 = vset.pattern.permute.xlu1 %v13824_v0  ;;  %v10313_v15 = vld [vmem:[#allocation3] sm:$0xff]  ;;  %v10315_v39 = vld [vmem:[#allocation3 + $0x10] sm:$0xff]  ;;  %v10318_v58 = vld [vmem:[#allocation3 + $0x28] sm:$0xff] }
 0xc43   :  { %10849 = vmatprep.subr.bf16.mxu0 %v10314_v47  ;;  %11273 = vmatprep.subr.bf16.mxu1 %v10316_v59  ;;  %v10320_v14 = vld [vmem:[#allocation3 + $0x38] sm:$0xff]  ;;  %v10317_v24 = vld [vmem:[#allocation3 + $0x20] sm:$0xff]  ;;  %v10319_v11 = vld [vmem:[#allocation3 + $0x30] sm:$0xff] }
 0xc44   :  { %10850 = vmatpush1.bf16.msra.mxu0 %v10313_v15  ;;  %11274 = vmatpush1.bf16.msra.mxu1 %v10315_v39  ;;  %v10322_v10 = vld [vmem:[#allocation3 + $0x48] sm:$0xff]  ;;  %v10324_v20 = vld [vmem:[#allocation3 + $0x58] sm:$0xff]  ;;  %v10321_v12 = vld [vmem:[#allocation3 + $0x40] sm:$0xff] }
 0xc45   :  { %10851 = vmatprep.subr.bf16.mxu0 %v10318_v58  ;;  %11275 = vmatprep.subr.bf16.mxu1 %v10320_v14  ;;  %v10323_v21 = vld [vmem:[#allocation3 + $0x50] sm:$0xff]  ;;  %v10326_v3 = vld [vmem:[#allocation3 + $0x68] sm:$0xff]  ;;  %v10328_v1 = vld [vmem:[#allocation3 + $0x78] sm:$0xff] }
 0xc46   :  { %v10325_v48 = vld [vmem:[#allocation3 + $0x60] sm:$0xff]  ;;  %v10327_v32 = vld [vmem:[#allocation3 + $0x70] sm:$0xff]  ;;  %v10330_v29 = vld [vmem:[#allocation3 + $0x88] sm:$0xff] }
 0xc47   :  { %v10332_v57 = vld [vmem:[#allocation3 + $0x98] sm:$0xff]  ;;  %v10329_v42 = vld [vmem:[#allocation3 + $0x80] sm:$0xff]  ;;  %v10331_v50 = vld [vmem:[#allocation3 + $0x90] sm:$0xff] }
 0xc48   :  { %10852 = vmatpush1.bf16.msra.mxu0 %v10317_v24  ;;  %11276 = vmatpush1.bf16.msra.mxu1 %v10319_v11  ;;  %v10334_v37 = vld [vmem:[#allocation3 + $0xa8] sm:$0xff]  ;;  %v10336_v61 = vld [vmem:[#allocation3 + $0xb8] sm:$0xff]  ;;  %v10333_v18 = vld [vmem:[#allocation3 + $0xa0] sm:$0xff] }
 0xc49   :  { %10853 = vmatprep.subr.bf16.mxu0 %v10322_v10  ;;  %11277 = vmatprep.subr.bf16.mxu1 %v10324_v20  ;;  %v10335_v2 = vld [vmem:[#allocation3 + $0xb0] sm:$0xff]  ;;  %v10338_v8 = vld [vmem:[#allocation3 + $0xc8] sm:$0xff]  ;;  %v10340_v33 = vld [vmem:[#allocation3 + $0xd8] sm:$0xff] }
 0xc4a   :  { %v10337_v45 = vld [vmem:[#allocation3 + $0xc0] sm:$0xff]  ;;  %v10339_v53 = vld [vmem:[#allocation3 + $0xd0] sm:$0xff]  ;;  %v10342_v60 = vld [vmem:[#allocation3 + $0xe8] sm:$0xff] }
 0xc4b   :  { %v10344_v7 = vld [vmem:[#allocation3 + $0xf8] sm:$0xff]  ;;  %v10341_v63 = vld [vmem:[#allocation3 + $0xe0] sm:$0xff]  ;;  %v10343_v31 = vld [vmem:[#allocation3 + $0xf0] sm:$0xff] }
 0xc4c   :  { %10854 = vmatpush1.bf16.msra.mxu0 %v10321_v12  ;;  %11278 = vmatpush1.bf16.msra.mxu1 %v10323_v21  ;;  %v10346_v47 = vld [vmem:[#allocation3 + $0x108] sm:$0xff]  ;;  %v10348_v59 = vld [vmem:[#allocation3 + $0x118] sm:$0xff]  ;;  %v10345_v15 = vld [vmem:[#allocation3 + $0x100] sm:$0xff] }
 0xc4d   :  { %10855 = vmatprep.subr.bf16.mxu0 %v10326_v3  ;;  %11279 = vmatprep.subr.bf16.mxu1 %v10328_v1  ;;  %v10347_v39 = vld [vmem:[#allocation3 + $0x110] sm:$0xff]  ;;  %v10350_v58 = vld [vmem:[#allocation3 + $0x128] sm:$0xff]  ;;  %v10352_v14 = vld [vmem:[#allocation3 + $0x138] sm:$0xff] }
 0xc4e   :  { %v10349_v24 = vld [vmem:[#allocation3 + $0x120] sm:$0xff]  ;;  %v10351_v11 = vld [vmem:[#allocation3 + $0x130] sm:$0xff]  ;;  %v10354_v10 = vld [vmem:[#allocation3 + $0x148] sm:$0xff] }
 0xc4f   :  { %v10356_v20 = vld [vmem:[#allocation3 + $0x158] sm:$0xff]  ;;  %v10353_v12 = vld [vmem:[#allocation3 + $0x140] sm:$0xff]  ;;  %v10355_v21 = vld [vmem:[#allocation3 + $0x150] sm:$0xff] }
 0xc50   :  { %10856 = vmatpush1.bf16.msra.mxu0 %v10325_v48  ;;  %11280 = vmatpush1.bf16.msra.mxu1 %v10327_v32  ;;  %v10358_v3 = vld [vmem:[#allocation3 + $0x168] sm:$0xff]  ;;  %v10360_v1 = vld [vmem:[#allocation3 + $0x178] sm:$0xff]  ;;  %v10357_v48 = vld [vmem:[#allocation3 + $0x160] sm:$0xff] }
 0xc51   :  { %10857 = vmatprep.subr.bf16.mxu0 %v10330_v29  ;;  %11281 = vmatprep.subr.bf16.mxu1 %v10332_v57  ;;  %v10359_v32 = vld [vmem:[#allocation3 + $0x170] sm:$0xff]  ;;  %v10362_v29 = vld [vmem:[#allocation3 + $0x188] sm:$0xff]  ;;  %v10364_v57 = vld [vmem:[#allocation3 + $0x198] sm:$0xff] }
 0xc54   :  { %10858 = vmatpush1.bf16.msra.mxu0 %v10329_v42  ;;  %11282 = vmatpush1.bf16.msra.mxu1 %v10331_v50  ;;  %v10361_v42 = vld [vmem:[#allocation3 + $0x180] sm:$0xff]  ;;  %v10363_v50 = vld [vmem:[#allocation3 + $0x190] sm:$0xff] }
 0xc55   :  { %10859 = vmatprep.subr.bf16.mxu0 %v10334_v37  ;;  %11283 = vmatprep.subr.bf16.mxu1 %v10336_v61  ;;  %v10366_v37 = vld [vmem:[#allocation3 + $0x1a8] sm:$0xff]  ;;  %v10368_v61 = vld [vmem:[#allocation3 + $0x1b8] sm:$0xff] }
 0xc58   :  { %10860 = vmatpush1.bf16.msra.mxu0 %v10333_v18  ;;  %11284 = vmatpush1.bf16.msra.mxu1 %v10335_v2  ;;  %v10365_v18 = vld [vmem:[#allocation3 + $0x1a0] sm:$0xff]  ;;  %v10367_v2 = vld [vmem:[#allocation3 + $0x1b0] sm:$0xff] }
 0xc59   :  { %10861 = vmatprep.subr.bf16.mxu0 %v10338_v8  ;;  %11285 = vmatprep.subr.bf16.mxu1 %v10340_v33  ;;  %v10370_v8 = vld [vmem:[#allocation3 + $0x1c8] sm:$0xff]  ;;  %v10372_v33 = vld [vmem:[#allocation3 + $0x1d8] sm:$0xff] }
 0xc5c   :  { %10862 = vmatpush1.bf16.msra.mxu0 %v10337_v45  ;;  %11286 = vmatpush1.bf16.msra.mxu1 %v10339_v53  ;;  %v10369_v45 = vld [vmem:[#allocation3 + $0x1c0] sm:$0xff]  ;;  %v10371_v53 = vld [vmem:[#allocation3 + $0x1d0] sm:$0xff] }
 0xc5d   :  { %10863 = vmatprep.subr.bf16.mxu0 %v10342_v60  ;;  %11287 = vmatprep.subr.bf16.mxu1 %v10344_v7  ;;  %v10374_v60 = vld [vmem:[#allocation3 + $0x1e8] sm:$0xff]  ;;  %v10376_v7 = vld [vmem:[#allocation3 + $0x1f8] sm:$0xff] }
 0xc60   :  { %10864 = vmatpush1.bf16.msra.mxu0 %v10341_v63  ;;  %11288 = vmatpush1.bf16.msra.mxu1 %v10343_v31  ;;  %v10373_v63 = vld [vmem:[#allocation3 + $0x1e0] sm:$0xff]  ;;  %v10375_v31 = vld [vmem:[#allocation3 + $0x1f0] sm:$0xff] }
 0xc61   :  { %10865 = vmatprep.subr.bf16.mxu0 %v10346_v47  ;;  %11289 = vmatprep.subr.bf16.mxu1 %v10348_v59  ;;  %v10378_v47 = vld [vmem:[#allocation3 + $0x208] sm:$0xff]  ;;  %v10380_v59 = vld [vmem:[#allocation3 + $0x218] sm:$0xff] }
 0xc64   :  { %10866 = vmatpush1.bf16.msra.mxu0 %v10345_v15  ;;  %11290 = vmatpush1.bf16.msra.mxu1 %v10347_v39  ;;  %v10377_v15 = vld [vmem:[#allocation3 + $0x200] sm:$0xff]  ;;  %v10379_v39 = vld [vmem:[#allocation3 + $0x210] sm:$0xff] }
 0xc65   :  { %10867 = vmatprep.subr.bf16.mxu0 %v10350_v58  ;;  %11291 = vmatprep.subr.bf16.mxu1 %v10352_v14  ;;  %v10382_v58 = vld [vmem:[#allocation3 + $0x228] sm:$0xff]  ;;  %v10384_v14 = vld [vmem:[#allocation3 + $0x238] sm:$0xff] }
 0xc68   :  { %10868 = vmatpush1.bf16.msra.mxu0 %v10349_v24  ;;  %11292 = vmatpush1.bf16.msra.mxu1 %v10351_v11  ;;  %v10381_v24 = vld [vmem:[#allocation3 + $0x220] sm:$0xff]  ;;  %v10383_v11 = vld [vmem:[#allocation3 + $0x230] sm:$0xff] }
 0xc69   :  { %10869 = vmatprep.subr.bf16.mxu0 %v10354_v10  ;;  %11293 = vmatprep.subr.bf16.mxu1 %v10356_v20  ;;  %v10386_v10 = vld [vmem:[#allocation3 + $0x248] sm:$0xff]  ;;  %v10388_v20 = vld [vmem:[#allocation3 + $0x258] sm:$0xff] }
 0xc6c   :  { %10870 = vmatpush1.bf16.msra.mxu0 %v10353_v12  ;;  %11294 = vmatpush1.bf16.msra.mxu1 %v10355_v21  ;;  %v10385_v12 = vld [vmem:[#allocation3 + $0x240] sm:$0xff]  ;;  %v10387_v21 = vld [vmem:[#allocation3 + $0x250] sm:$0xff] }
 0xc6d   :  { %10871 = vmatprep.subr.bf16.mxu0 %v10358_v3  ;;  %11295 = vmatprep.subr.bf16.mxu1 %v10360_v1  ;;  %v10390_v3 = vld [vmem:[#allocation3 + $0x268] sm:$0xff]  ;;  %v10389_v1 = vld [vmem:[#allocation3 + $0x260] sm:$0xff] }
 0xc70   :  { %10872 = vmatpush1.bf16.msra.mxu0 %v10357_v48  ;;  %11296 = vmatpush1.bf16.msra.mxu1 %v10359_v32  ;;  %v10391_v48 = vld [vmem:[#allocation3 + $0x270] sm:$0xff]  ;;  %v10394_v32 = vld [vmem:[#allocation3 + $0x288] sm:$0xff] }
 0xc71   :  { %10873 = vmatprep.subr.bf16.mxu0 %v10362_v29  ;;  %11297 = vmatprep.subr.bf16.mxu1 %v10364_v57  ;;  %v10393_v29 = vld [vmem:[#allocation3 + $0x280] sm:$0xff]  ;;  %v10395_v57 = vld [vmem:[#allocation3 + $0x290] sm:$0xff] }
 0xc74   :  { %10874 = vmatpush1.bf16.msra.mxu0 %v10361_v42  ;;  %11298 = vmatpush1.bf16.msra.mxu1 %v10363_v50  ;;  %v10398_v42 = vld [vmem:[#allocation3 + $0x2a8] sm:$0xff]  ;;  %v10397_v50 = vld [vmem:[#allocation3 + $0x2a0] sm:$0xff] }
 0xc75   :  { %10875 = vmatprep.subr.bf16.mxu0 %v10366_v37  ;;  %11299 = vmatprep.subr.bf16.mxu1 %v10368_v61  ;;  %v10399_v37 = vld [vmem:[#allocation3 + $0x2b0] sm:$0xff]  ;;  %v10402_v61 = vld [vmem:[#allocation3 + $0x2c8] sm:$0xff] }
 0xc78   :  { %10876 = vmatpush1.bf16.msra.mxu0 %v10365_v18  ;;  %11300 = vmatpush1.bf16.msra.mxu1 %v10367_v2  ;;  %v10404_v18 = vld [vmem:[#allocation3 + $0x2d8] sm:$0xff]  ;;  %v10403_v2 = vld [vmem:[#allocation3 + $0x2d0] sm:$0xff] }
 0xc79   :  { %10877 = vmatprep.subr.bf16.mxu0 %v10370_v8  ;;  %11301 = vmatprep.subr.bf16.mxu1 %v10372_v33  ;;  %v10406_v8 = vld [vmem:[#allocation3 + $0x2e8] sm:$0xff]  ;;  %v10408_v33 = vld [vmem:[#allocation3 + $0x2f8] sm:$0xff] }
 0xc7c   :  { %10878 = vmatpush1.bf16.msra.mxu0 %v10369_v45  ;;  %11302 = vmatpush1.bf16.msra.mxu1 %v10371_v53  ;;  %v10405_v45 = vld [vmem:[#allocation3 + $0x2e0] sm:$0xff]  ;;  %v10407_v53 = vld [vmem:[#allocation3 + $0x2f0] sm:$0xff] }
 0xc7d   :  { %10879 = vmatprep.subr.bf16.mxu0 %v10374_v60  ;;  %11303 = vmatprep.subr.bf16.mxu1 %v10376_v7  ;;  %v10410_v60 = vld [vmem:[#allocation3 + $0x308] sm:$0xff]  ;;  %v10412_v7 = vld [vmem:[#allocation3 + $0x318] sm:$0xff] }
 0xc80   :  { %10880 = vmatpush1.bf16.msra.mxu0 %v10373_v63  ;;  %11304 = vmatpush1.bf16.msra.mxu1 %v10375_v31  ;;  %v10409_v63 = vld [vmem:[#allocation3 + $0x300] sm:$0xff]  ;;  %v10411_v31 = vld [vmem:[#allocation3 + $0x310] sm:$0xff] }
 0xc81   :  { %10902 = vmatprep.subr.bf16.mxu0 %v10378_v47  ;;  %11326 = vmatprep.subr.bf16.mxu1 %v10380_v59  ;;  %v10414_v47 = vld [vmem:[#allocation3 + $0x328] sm:$0xff]  ;;  %v10416_v59 = vld [vmem:[#allocation3 + $0x338] sm:$0xff] }
 0xc83   :  { %10882 = vmatmul.mubr.bf16.vlgmr.msra.gmra.mrb[140].mxu0 %v14463_v27  ;;  %11306 = vmatmul.mubr.bf16.vlgmr.msra.gmra.mrb[156].mxu1 %v14463_v27  ;;  %v10392_v27 = vld [vmem:[#allocation3 + $0x278] sm:$0xff] }
 0xc84   :  { %10903 = vmatpush1.bf16.msra.mxu0 %v10377_v15  ;;  %11327 = vmatpush1.bf16.msra.mxu1 %v10379_v39  ;;  %v10413_v15 = vld [vmem:[#allocation3 + $0x320] sm:$0xff]  ;;  %v10415_v39 = vld [vmem:[#allocation3 + $0x330] sm:$0xff] }
 0xc85   :  { %10904 = vmatprep.subr.bf16.mxu0 %v10382_v58  ;;  %11328 = vmatprep.subr.bf16.mxu1 %v10384_v14  ;;  %v10418_v58 = vld [vmem:[#allocation3 + $0x348] sm:$0xff]  ;;  %v10420_v14 = vld [vmem:[#allocation3 + $0x358] sm:$0xff] }
 0xc86   :  { %10891 = vmatprep.mubr.bf16.mxu0 %v14465_v6  ;;  %11315 = vmatprep.mubr.bf16.mxu1 %v14465_v6  ;;  %v10396_v6 = vld [vmem:[#allocation3 + $0x298] sm:$0xff] }
 0xc88   :  { %10905 = vmatpush1.bf16.msra.mxu0 %v10381_v24  ;;  %11329 = vmatpush1.bf16.msra.mxu1 %v10383_v11  ;;  %v10417_v24 = vld [vmem:[#allocation3 + $0x340] sm:$0xff]  ;;  %v10419_v11 = vld [vmem:[#allocation3 + $0x350] sm:$0xff] }
 0xc89   :  { %10906 = vmatprep.subr.bf16.mxu0 %v10386_v10  ;;  %11330 = vmatprep.subr.bf16.mxu1 %v10388_v20  ;;  %v10422_v10 = vld [vmem:[#allocation3 + $0x368] sm:$0xff]  ;;  %v10424_v20 = vld [vmem:[#allocation3 + $0x378] sm:$0xff] }
 0xc8b   :  { %10892 = vmatmul.mubr.bf16.gmra.mrb[144].mxu0 %v14461_v52  ;;  %11316 = vmatmul.mubr.bf16.gmra.mrb[160].mxu1 %v14461_v52  ;;  %v10400_v52 = vld [vmem:[#allocation3 + $0x2b8] sm:$0xff] }
 0xc8c   :  { %10907 = vmatpush1.bf16.msra.mxu0 %v10385_v12  ;;  %11331 = vmatpush1.bf16.msra.mxu1 %v10387_v21  ;;  %v10421_v12 = vld [vmem:[#allocation3 + $0x360] sm:$0xff]  ;;  %v10423_v21 = vld [vmem:[#allocation3 + $0x370] sm:$0xff] }
 0xc8d   :  { %10908 = vmatprep.subr.bf16.mxu0 %v10390_v3  ;;  %11332 = vmatprep.subr.bf16.mxu1 %v10392_v27  ;;  %v10426_v3 = vld [vmem:[#allocation3 + $0x388] sm:$0xff]  ;;  %v10428_v27 = vld [vmem:[#allocation3 + $0x398] sm:$0xff] }
 0xc8e   :  { %10934 = vmatprep.mubr.bf16.mxu0 %v14475_v30  ;;  %11358 = vmatprep.mubr.bf16.mxu1 %v14475_v30  ;;  %v10401_v30 = vld [vmem:[#allocation3 + $0x2c0] sm:$0xff] }
 0xc90   :  { %10909 = vmatpush1.bf16.msra.mxu0 %v10389_v1  ;;  %11333 = vmatpush1.bf16.msra.mxu1 %v10391_v48  ;;  %v10425_v1 = vld [vmem:[#allocation3 + $0x380] sm:$0xff]  ;;  %v10427_v48 = vld [vmem:[#allocation3 + $0x390] sm:$0xff] }
 0xc91   :  { %10910 = vmatprep.subr.bf16.mxu0 %v10394_v32  ;;  %11334 = vmatprep.subr.bf16.mxu1 %v10396_v6  ;;  %v10430_v32 = vld [vmem:[#allocation3 + $0x3a8] sm:$0xff]  ;;  %v10432_v6 = vld [vmem:[#allocation3 + $0x3b8] sm:$0xff] }
 0xc94   :  { %10911 = vmatpush1.bf16.msra.mxu0 %v10393_v29  ;;  %11335 = vmatpush1.bf16.msra.mxu1 %v10395_v57  ;;  %v10429_v29 = vld [vmem:[#allocation3 + $0x3a0] sm:$0xff]  ;;  %v10431_v57 = vld [vmem:[#allocation3 + $0x3b0] sm:$0xff] }
 0xc95   :  { %10912 = vmatprep.subr.bf16.mxu0 %v10398_v42  ;;  %11336 = vmatprep.subr.bf16.mxu1 %v10400_v52  ;;  %v10434_v42 = vld [vmem:[#allocation3 + $0x3c8] sm:$0xff]  ;;  %v10436_v52 = vld [vmem:[#allocation3 + $0x3d8] sm:$0xff] }
 0xc98   :  { %10913 = vmatpush1.bf16.msra.mxu0 %v10397_v50  ;;  %11337 = vmatpush1.bf16.msra.mxu1 %v10399_v37  ;;  %v10433_v50 = vld [vmem:[#allocation3 + $0x3c0] sm:$0xff]  ;;  %v10435_v37 = vld [vmem:[#allocation3 + $0x3d0] sm:$0xff] }
 0xc99   :  { %10914 = vmatprep.subr.bf16.mxu0 %v10402_v61  ;;  %11338 = vmatprep.subr.bf16.mxu1 %v10404_v18  ;;  %v10438_v61 = vld [vmem:[#allocation3 + $0x3e8] sm:$0xff]  ;;  %v10440_v18 = vld [vmem:[#allocation3 + $0x3f8] sm:$0xff] }
 0xc9c   :  { %10915 = vmatpush1.bf16.msra.mxu0 %v10401_v30  ;;  %11339 = vmatpush1.bf16.msra.mxu1 %v10403_v2  ;;  %v10437_v30 = vld [vmem:[#allocation3 + $0x3e0] sm:$0xff]  ;;  %v10439_v2 = vld [vmem:[#allocation3 + $0x3f0] sm:$0xff] }
 0xc9d   :  { %10916 = vmatprep.subr.bf16.mxu0 %v10406_v8  ;;  %11340 = vmatprep.subr.bf16.mxu1 %v10408_v33  ;;  %v10442_v8 = vld [vmem:[#allocation3 + $0x408] sm:$0xff]  ;;  %v10444_v33 = vld [vmem:[#allocation3 + $0x418] sm:$0xff] }
 0xca0   :  { %10917 = vmatpush1.bf16.msra.mxu0 %v10405_v45  ;;  %11341 = vmatpush1.bf16.msra.mxu1 %v10407_v53  ;;  %v10441_v45 = vld [vmem:[#allocation3 + $0x400] sm:$0xff]  ;;  %v10443_v53 = vld [vmem:[#allocation3 + $0x410] sm:$0xff] }
 0xca1   :  { %10918 = vmatprep.subr.bf16.mxu0 %v10410_v60  ;;  %11342 = vmatprep.subr.bf16.mxu1 %v10412_v7  ;;  %v10446_v60 = vld [vmem:[#allocation3 + $0x428] sm:$0xff]  ;;  %v10448_v7 = vld [vmem:[#allocation3 + $0x438] sm:$0xff] }
 0xca4   :  { %10919 = vmatpush1.bf16.msra.mxu0 %v10409_v63  ;;  %11343 = vmatpush1.bf16.msra.mxu1 %v10411_v31  ;;  %v10445_v63 = vld [vmem:[#allocation3 + $0x420] sm:$0xff]  ;;  %v10447_v31 = vld [vmem:[#allocation3 + $0x430] sm:$0xff] }
 0xca5   :  { %10920 = vmatprep.subr.bf16.mxu0 %v10414_v47  ;;  %11344 = vmatprep.subr.bf16.mxu1 %v10416_v59  ;;  %v10450_v47 = vld [vmem:[#allocation3 + $0x448] sm:$0xff]  ;;  %v10452_v59 = vld [vmem:[#allocation3 + $0x458] sm:$0xff] }
 0xca8   :  { %10921 = vmatpush1.bf16.msra.mxu0 %v10413_v15  ;;  %11345 = vmatpush1.bf16.msra.mxu1 %v10415_v39  ;;  %v10449_v15 = vld [vmem:[#allocation3 + $0x440] sm:$0xff]  ;;  %v10451_v39 = vld [vmem:[#allocation3 + $0x450] sm:$0xff] }
 0xca9   :  { %10922 = vmatprep.subr.bf16.mxu0 %v10418_v58  ;;  %11346 = vmatprep.subr.bf16.mxu1 %v10420_v14  ;;  %v10454_v58 = vld [vmem:[#allocation3 + $0x468] sm:$0xff]  ;;  %v10453_v14 = vld [vmem:[#allocation3 + $0x460] sm:$0xff] }
 0xcac   :  { %10923 = vmatpush1.bf16.msra.mxu0 %v10417_v24  ;;  %11347 = vmatpush1.bf16.msra.mxu1 %v10419_v11  ;;  %v10455_v24 = vld [vmem:[#allocation3 + $0x470] sm:$0xff]  ;;  %v10458_v11 = vld [vmem:[#allocation3 + $0x488] sm:$0xff] }
 0xcad   :  { %10924 = vmatprep.subr.bf16.mxu0 %v10422_v10  ;;  %11348 = vmatprep.subr.bf16.mxu1 %v10424_v20  ;;  %v10457_v10 = vld [vmem:[#allocation3 + $0x480] sm:$0xff]  ;;  %v10459_v20 = vld [vmem:[#allocation3 + $0x490] sm:$0xff] }
 0xcb0   :  { %10925 = vmatpush1.bf16.msra.mxu0 %v10421_v12  ;;  %11349 = vmatpush1.bf16.msra.mxu1 %v10423_v21  ;;  %v10462_v12 = vld [vmem:[#allocation3 + $0x4a8] sm:$0xff]  ;;  %v10461_v21 = vld [vmem:[#allocation3 + $0x4a0] sm:$0xff] }
 0xcb1   :  { %10926 = vmatprep.subr.bf16.mxu0 %v10426_v3  ;;  %11350 = vmatprep.subr.bf16.mxu1 %v10428_v27  ;;  %v10463_v3 = vld [vmem:[#allocation3 + $0x4b0] sm:$0xff]  ;;  %v10466_v27 = vld [vmem:[#allocation3 + $0x4c8] sm:$0xff] }
 0xcb4   :  { %10927 = vmatpush1.bf16.msra.mxu0 %v10425_v1  ;;  %11351 = vmatpush1.bf16.msra.mxu1 %v10427_v48  ;;  %v10468_v1 = vld [vmem:[#allocation3 + $0x4d8] sm:$0xff]  ;;  %v10467_v48 = vld [vmem:[#allocation3 + $0x4d0] sm:$0xff] }
 0xcb5   :  { %10928 = vmatprep.subr.bf16.mxu0 %v10430_v32  ;;  %11352 = vmatprep.subr.bf16.mxu1 %v10432_v6  ;;  %v10470_v32 = vld [vmem:[#allocation3 + $0x4e8] sm:$0xff]  ;;  %v10472_v6 = vld [vmem:[#allocation3 + $0x4f8] sm:$0xff] }
 0xcb8   :  { %10929 = vmatpush1.bf16.msra.mxu0 %v10429_v29  ;;  %11353 = vmatpush1.bf16.msra.mxu1 %v10431_v57  ;;  %v10469_v29 = vld [vmem:[#allocation3 + $0x4e0] sm:$0xff]  ;;  %v10471_v57 = vld [vmem:[#allocation3 + $0x4f0] sm:$0xff] }
 0xcb9   :  { %10930 = vmatprep.subr.bf16.mxu0 %v10434_v42  ;;  %11354 = vmatprep.subr.bf16.mxu1 %v10436_v52  ;;  %v10474_v42 = vld [vmem:[#allocation3 + $0x508] sm:$0xff]  ;;  %v10476_v52 = vld [vmem:[#allocation3 + $0x518] sm:$0xff] }
 0xcbc   :  { %10931 = vmatpush1.bf16.msra.mxu0 %v10433_v50  ;;  %11355 = vmatpush1.bf16.msra.mxu1 %v10435_v37  ;;  %v10473_v50 = vld [vmem:[#allocation3 + $0x500] sm:$0xff]  ;;  %v10475_v37 = vld [vmem:[#allocation3 + $0x510] sm:$0xff] }
 0xcbd   :  { %10932 = vmatprep.subr.bf16.mxu0 %v10438_v61  ;;  %11356 = vmatprep.subr.bf16.mxu1 %v10440_v18  ;;  %v10478_v61 = vld [vmem:[#allocation3 + $0x528] sm:$0xff]  ;;  %v10480_v18 = vld [vmem:[#allocation3 + $0x538] sm:$0xff] }
 0xcc0   :  { %10933 = vmatpush1.bf16.msra.mxu0 %v10437_v30  ;;  %11357 = vmatpush1.bf16.msra.mxu1 %v10439_v2  ;;  %v10477_v30 = vld [vmem:[#allocation3 + $0x520] sm:$0xff]  ;;  %v10479_v2 = vld [vmem:[#allocation3 + $0x530] sm:$0xff] }
 0xcc1   :  { %10955 = vmatprep.subr.bf16.mxu0 %v10442_v8  ;;  %11379 = vmatprep.subr.bf16.mxu1 %v10444_v33  ;;  %v10482_v8 = vld [vmem:[#allocation3 + $0x548] sm:$0xff]  ;;  %v10484_v33 = vld [vmem:[#allocation3 + $0x558] sm:$0xff] }
 0xcc3   :  { %10935 = vmatmul.mubr.bf16.vlgmr.msra.gmra.mrb[140].mxu0 %v14471_v23  ;;  %11359 = vmatmul.mubr.bf16.vlgmr.msra.gmra.mrb[156].mxu1 %v14471_v23  ;;  %v10456_v23 = vld [vmem:[#allocation3 + $0x478] sm:$0xff] }
 0xcc4   :  { %10956 = vmatpush1.bf16.msra.mxu0 %v10441_v45  ;;  %11380 = vmatpush1.bf16.msra.mxu1 %v10443_v53  ;;  %v10481_v45 = vld [vmem:[#allocation3 + $0x540] sm:$0xff]  ;;  %v10483_v53 = vld [vmem:[#allocation3 + $0x550] sm:$0xff] }
 0xcc5   :  { %10957 = vmatprep.subr.bf16.mxu0 %v10446_v60  ;;  %11381 = vmatprep.subr.bf16.mxu1 %v10448_v7  ;;  %v10486_v60 = vld [vmem:[#allocation3 + $0x568] sm:$0xff]  ;;  %v10488_v7 = vld [vmem:[#allocation3 + $0x578] sm:$0xff] }
 0xcc6   :  { %10944 = vmatprep.mubr.bf16.mxu0 %v14473_v9  ;;  %11368 = vmatprep.mubr.bf16.mxu1 %v14473_v9  ;;  %v10460_v9 = vld [vmem:[#allocation3 + $0x498] sm:$0xff] }
 0xcc8   :  { %10958 = vmatpush1.bf16.msra.mxu0 %v10445_v63  ;;  %11382 = vmatpush1.bf16.msra.mxu1 %v10447_v31  ;;  %v10485_v63 = vld [vmem:[#allocation3 + $0x560] sm:$0xff]  ;;  %v10487_v31 = vld [vmem:[#allocation3 + $0x570] sm:$0xff] }
 0xcc9   :  { %10959 = vmatprep.subr.bf16.mxu0 %v10450_v47  ;;  %11383 = vmatprep.subr.bf16.mxu1 %v10452_v59  ;;  %v10490_v47 = vld [vmem:[#allocation3 + $0x588] sm:$0xff]  ;;  %v10492_v59 = vld [vmem:[#allocation3 + $0x598] sm:$0xff] }
 0xccb   :  { %10945 = vmatmul.mubr.bf16.gmra.mrb[144].mxu0 %v14469_v51  ;;  %11369 = vmatmul.mubr.bf16.gmra.mrb[160].mxu1 %v14469_v51  ;;  %v10464_v51 = vld [vmem:[#allocation3 + $0x4b8] sm:$0xff] }
 0xccc   :  { %10960 = vmatpush1.bf16.msra.mxu0 %v10449_v15  ;;  %11384 = vmatpush1.bf16.msra.mxu1 %v10451_v39  ;;  %v10489_v15 = vld [vmem:[#allocation3 + $0x580] sm:$0xff]  ;;  %v10491_v39 = vld [vmem:[#allocation3 + $0x590] sm:$0xff] }
 0xccd   :  { %10961 = vmatprep.subr.bf16.mxu0 %v10454_v58  ;;  %11385 = vmatprep.subr.bf16.mxu1 %v10456_v23  ;;  %v10494_v58 = vld [vmem:[#allocation3 + $0x5a8] sm:$0xff]  ;;  %v10496_v23 = vld [vmem:[#allocation3 + $0x5b8] sm:$0xff] }
 0xcce   :  { %10987 = vmatprep.mubr.bf16.mxu0 %v14483_v62  ;;  %11411 = vmatprep.mubr.bf16.mxu1 %v14483_v62  ;;  %v10465_v62 = vld [vmem:[#allocation3 + $0x4c0] sm:$0xff] }
 0xcd0   :  { %10962 = vmatpush1.bf16.msra.mxu0 %v10453_v14  ;;  %11386 = vmatpush1.bf16.msra.mxu1 %v10455_v24  ;;  %v10493_v14 = vld [vmem:[#allocation3 + $0x5a0] sm:$0xff]  ;;  %v10495_v24 = vld [vmem:[#allocation3 + $0x5b0] sm:$0xff] }
 0xcd1   :  { %10963 = vmatprep.subr.bf16.mxu0 %v10458_v11  ;;  %11387 = vmatprep.subr.bf16.mxu1 %v10460_v9  ;;  %v10498_v11 = vld [vmem:[#allocation3 + $0x5c8] sm:$0xff]  ;;  %v10500_v9 = vld [vmem:[#allocation3 + $0x5d8] sm:$0xff] }
 0xcd4   :  { %10964 = vmatpush1.bf16.msra.mxu0 %v10457_v10  ;;  %11388 = vmatpush1.bf16.msra.mxu1 %v10459_v20  ;;  %v10497_v10 = vld [vmem:[#allocation3 + $0x5c0] sm:$0xff]  ;;  %v10499_v20 = vld [vmem:[#allocation3 + $0x5d0] sm:$0xff] }
 0xcd5   :  { %10965 = vmatprep.subr.bf16.mxu0 %v10462_v12  ;;  %11389 = vmatprep.subr.bf16.mxu1 %v10464_v51  ;;  %v10502_v12 = vld [vmem:[#allocation3 + $0x5e8] sm:$0xff]  ;;  %v10504_v51 = vld [vmem:[#allocation3 + $0x5f8] sm:$0xff] }
 0xcd8   :  { %10966 = vmatpush1.bf16.msra.mxu0 %v10461_v21  ;;  %11390 = vmatpush1.bf16.msra.mxu1 %v10463_v3  ;;  %v10501_v21 = vld [vmem:[#allocation3 + $0x5e0] sm:$0xff]  ;;  %v10503_v3 = vld [vmem:[#allocation3 + $0x5f0] sm:$0xff] }
 0xcd9   :  { %10967 = vmatprep.subr.bf16.mxu0 %v10466_v27  ;;  %11391 = vmatprep.subr.bf16.mxu1 %v10468_v1  ;;  %v10506_v27 = vld [vmem:[#allocation3 + $0x608] sm:$0xff]  ;;  %v10508_v1 = vld [vmem:[#allocation3 + $0x618] sm:$0xff] }
 0xcdc   :  { %10968 = vmatpush1.bf16.msra.mxu0 %v10465_v62  ;;  %11392 = vmatpush1.bf16.msra.mxu1 %v10467_v48  ;;  %v10505_v62 = vld [vmem:[#allocation3 + $0x600] sm:$0xff]  ;;  %v10507_v48 = vld [vmem:[#allocation3 + $0x610] sm:$0xff] }
 0xcdd   :  { %10969 = vmatprep.subr.bf16.mxu0 %v10470_v32  ;;  %11393 = vmatprep.subr.bf16.mxu1 %v10472_v6  ;;  %v10510_v32 = vld [vmem:[#allocation3 + $0x628] sm:$0xff]  ;;  %v10512_v6 = vld [vmem:[#allocation3 + $0x638] sm:$0xff] }
 0xce0   :  { %10970 = vmatpush1.bf16.msra.mxu0 %v10469_v29  ;;  %11394 = vmatpush1.bf16.msra.mxu1 %v10471_v57  ;;  %v10509_v29 = vld [vmem:[#allocation3 + $0x620] sm:$0xff]  ;;  %v10511_v57 = vld [vmem:[#allocation3 + $0x630] sm:$0xff] }
 0xce1   :  { %10971 = vmatprep.subr.bf16.mxu0 %v10474_v42  ;;  %11395 = vmatprep.subr.bf16.mxu1 %v10476_v52  ;;  %v10514_v42 = vld [vmem:[#allocation3 + $0x648] sm:$0xff]  ;;  %v10516_v52 = vld [vmem:[#allocation3 + $0x658] sm:$0xff] }
 0xce4   :  { %10972 = vmatpush1.bf16.msra.mxu0 %v10473_v50  ;;  %11396 = vmatpush1.bf16.msra.mxu1 %v10475_v37  ;;  %v10513_v50 = vld [vmem:[#allocation3 + $0x640] sm:$0xff]  ;;  %v10515_v37 = vld [vmem:[#allocation3 + $0x650] sm:$0xff] }
 0xce5   :  { %10973 = vmatprep.subr.bf16.mxu0 %v10478_v61  ;;  %11397 = vmatprep.subr.bf16.mxu1 %v10480_v18  ;;  %v10518_v61 = vld [vmem:[#allocation3 + $0x668] sm:$0xff]  ;;  %v10517_v18 = vld [vmem:[#allocation3 + $0x660] sm:$0xff] }
 0xce8   :  { %10974 = vmatpush1.bf16.msra.mxu0 %v10477_v30  ;;  %11398 = vmatpush1.bf16.msra.mxu1 %v10479_v2  ;;  %v10519_v30 = vld [vmem:[#allocation3 + $0x670] sm:$0xff]  ;;  %v10522_v2 = vld [vmem:[#allocation3 + $0x688] sm:$0xff] }
 0xce9   :  { %10975 = vmatprep.subr.bf16.mxu0 %v10482_v8  ;;  %11399 = vmatprep.subr.bf16.mxu1 %v10484_v33  ;;  %v10521_v8 = vld [vmem:[#allocation3 + $0x680] sm:$0xff]  ;;  %v10523_v33 = vld [vmem:[#allocation3 + $0x690] sm:$0xff] }
 0xcec   :  { %10976 = vmatpush1.bf16.msra.mxu0 %v10481_v45  ;;  %11400 = vmatpush1.bf16.msra.mxu1 %v10483_v53  ;;  %v10526_v45 = vld [vmem:[#allocation3 + $0x6a8] sm:$0xff]  ;;  %v10525_v53 = vld [vmem:[#allocation3 + $0x6a0] sm:$0xff] }
 0xced   :  { %10977 = vmatprep.subr.bf16.mxu0 %v10486_v60  ;;  %11401 = vmatprep.subr.bf16.mxu1 %v10488_v7  ;;  %v10527_v60 = vld [vmem:[#allocation3 + $0x6b0] sm:$0xff]  ;;  %v10530_v7 = vld [vmem:[#allocation3 + $0x6c8] sm:$0xff] }
 0xcf0   :  { %10978 = vmatpush1.bf16.msra.mxu0 %v10485_v63  ;;  %11402 = vmatpush1.bf16.msra.mxu1 %v10487_v31  ;;  %v10532_v63 = vld [vmem:[#allocation3 + $0x6d8] sm:$0xff]  ;;  %v10531_v31 = vld [vmem:[#allocation3 + $0x6d0] sm:$0xff] }
 0xcf1   :  { %10979 = vmatprep.subr.bf16.mxu0 %v10490_v47  ;;  %11403 = vmatprep.subr.bf16.mxu1 %v10492_v59  ;;  %v10534_v47 = vld [vmem:[#allocation3 + $0x6e8] sm:$0xff]  ;;  %v10536_v59 = vld [vmem:[#allocation3 + $0x6f8] sm:$0xff] }
 0xcf4   :  { %10980 = vmatpush1.bf16.msra.mxu0 %v10489_v15  ;;  %11404 = vmatpush1.bf16.msra.mxu1 %v10491_v39  ;;  %v10533_v15 = vld [vmem:[#allocation3 + $0x6e0] sm:$0xff]  ;;  %v10535_v39 = vld [vmem:[#allocation3 + $0x6f0] sm:$0xff] }
 0xcf5   :  { %10981 = vmatprep.subr.bf16.mxu0 %v10494_v58  ;;  %11405 = vmatprep.subr.bf16.mxu1 %v10496_v23  ;;  %v10538_v58 = vld [vmem:[#allocation3 + $0x708] sm:$0xff]  ;;  %v10540_v23 = vld [vmem:[#allocation3 + $0x718] sm:$0xff] }
 0xcf8   :  { %10982 = vmatpush1.bf16.msra.mxu0 %v10493_v14  ;;  %11406 = vmatpush1.bf16.msra.mxu1 %v10495_v24  ;;  %v10537_v14 = vld [vmem:[#allocation3 + $0x700] sm:$0xff]  ;;  %v10539_v24 = vld [vmem:[#allocation3 + $0x710] sm:$0xff] }
 0xcf9   :  { %10983 = vmatprep.subr.bf16.mxu0 %v10498_v11  ;;  %11407 = vmatprep.subr.bf16.mxu1 %v10500_v9  ;;  %v10542_v11 = vld [vmem:[#allocation3 + $0x728] sm:$0xff]  ;;  %v10544_v9 = vld [vmem:[#allocation3 + $0x738] sm:$0xff] }
 0xcfc   :  { %10984 = vmatpush1.bf16.msra.mxu0 %v10497_v10  ;;  %11408 = vmatpush1.bf16.msra.mxu1 %v10499_v20  ;;  %v10541_v10 = vld [vmem:[#allocation3 + $0x720] sm:$0xff]  ;;  %v10543_v20 = vld [vmem:[#allocation3 + $0x730] sm:$0xff] }
 0xcfd   :  { %10985 = vmatprep.subr.bf16.mxu0 %v10502_v12  ;;  %11409 = vmatprep.subr.bf16.mxu1 %v10504_v51  ;;  %v10546_v12 = vld [vmem:[#allocation3 + $0x748] sm:$0xff]  ;;  %v10548_v51 = vld [vmem:[#allocation3 + $0x758] sm:$0xff] }
 0xd00   :  { %10986 = vmatpush1.bf16.msra.mxu0 %v10501_v21  ;;  %11410 = vmatpush1.bf16.msra.mxu1 %v10503_v3  ;;  %v10545_v21 = vld [vmem:[#allocation3 + $0x740] sm:$0xff]  ;;  %v10547_v3 = vld [vmem:[#allocation3 + $0x750] sm:$0xff] }
 0xd01   :  { %11008 = vmatprep.subr.bf16.mxu0 %v10506_v27  ;;  %11432 = vmatprep.subr.bf16.mxu1 %v10508_v1  ;;  %v10550_v27 = vld [vmem:[#allocation3 + $0x768] sm:$0xff]  ;;  %v10552_v1 = vld [vmem:[#allocation3 + $0x778] sm:$0xff] }
 0xd03   :  { %10988 = vmatmul.mubr.bf16.vlgmr.msra.gmra.mrb[140].mxu0 %v14479_v4  ;;  %11412 = vmatmul.mubr.bf16.vlgmr.msra.gmra.mrb[156].mxu1 %v14479_v4  ;;  %v10520_v4 = vld [vmem:[#allocation3 + $0x678] sm:$0xff] }
 0xd04   :  { %11009 = vmatpush1.bf16.msra.mxu0 %v10505_v62  ;;  %11433 = vmatpush1.bf16.msra.mxu1 %v10507_v48  ;;  %v10549_v62 = vld [vmem:[#allocation3 + $0x760] sm:$0xff]  ;;  %v10551_v48 = vld [vmem:[#allocation3 + $0x770] sm:$0xff] }
 0xd05   :  { %11010 = vmatprep.subr.bf16.mxu0 %v10510_v32  ;;  %11434 = vmatprep.subr.bf16.mxu1 %v10512_v6  ;;  %v10554_v32 = vld [vmem:[#allocation3 + $0x788] sm:$0xff]  ;;  %v10556_v6 = vld [vmem:[#allocation3 + $0x798] sm:$0xff] }
 0xd06   :  { %10997 = vmatprep.mubr.bf16.mxu0 %v14481_v34  ;;  %11421 = vmatprep.mubr.bf16.mxu1 %v14481_v34  ;;  %v10524_v34 = vld [vmem:[#allocation3 + $0x698] sm:$0xff] }
 0xd08   :  { %11011 = vmatpush1.bf16.msra.mxu0 %v10509_v29  ;;  %11435 = vmatpush1.bf16.msra.mxu1 %v10511_v57  ;;  %v10553_v29 = vld [vmem:[#allocation3 + $0x780] sm:$0xff]  ;;  %v10555_v57 = vld [vmem:[#allocation3 + $0x790] sm:$0xff] }
 0xd09   :  { %11012 = vmatprep.subr.bf16.mxu0 %v10514_v42  ;;  %11436 = vmatprep.subr.bf16.mxu1 %v10516_v52  ;;  %v10558_v42 = vld [vmem:[#allocation3 + $0x7a8] sm:$0xff]  ;;  %v10560_v52 = vld [vmem:[#allocation3 + $0x7b8] sm:$0xff] }
 0xd0b   :  { %10998 = vmatmul.mubr.bf16.gmra.mrb[144].mxu0 %v14477_v38  ;;  %11422 = vmatmul.mubr.bf16.gmra.mrb[160].mxu1 %v14477_v38  ;;  %v10528_v38 = vld [vmem:[#allocation3 + $0x6b8] sm:$0xff] }
 0xd0c   :  { %11013 = vmatpush1.bf16.msra.mxu0 %v10513_v50  ;;  %11437 = vmatpush1.bf16.msra.mxu1 %v10515_v37  ;;  %v10557_v50 = vld [vmem:[#allocation3 + $0x7a0] sm:$0xff]  ;;  %v10559_v37 = vld [vmem:[#allocation3 + $0x7b0] sm:$0xff] }
 0xd0d   :  { %11014 = vmatprep.subr.bf16.mxu0 %v10518_v61  ;;  %11438 = vmatprep.subr.bf16.mxu1 %v10520_v4  ;;  %v10562_v61 = vld [vmem:[#allocation3 + $0x7c8] sm:$0xff]  ;;  %v10564_v4 = vld [vmem:[#allocation3 + $0x7d8] sm:$0xff] }
 0xd0e   :  { %11040 = vmatprep.mubr.bf16.mxu0 %v14491_v40  ;;  %11464 = vmatprep.mubr.bf16.mxu1 %v14491_v40  ;;  %v10529_v40 = vld [vmem:[#allocation3 + $0x6c0] sm:$0xff] }
 0xd10   :  { %11015 = vmatpush1.bf16.msra.mxu0 %v10517_v18  ;;  %11439 = vmatpush1.bf16.msra.mxu1 %v10519_v30  ;;  %v10561_v18 = vld [vmem:[#allocation3 + $0x7c0] sm:$0xff]  ;;  %v10563_v30 = vld [vmem:[#allocation3 + $0x7d0] sm:$0xff] }
 0xd11   :  { %11016 = vmatprep.subr.bf16.mxu0 %v10522_v2  ;;  %11440 = vmatprep.subr.bf16.mxu1 %v10524_v34  ;;  %v10566_v2 = vld [vmem:[#allocation3 + $0x7e8] sm:$0xff]  ;;  %v10568_v34 = vld [vmem:[#allocation3 + $0x7f8] sm:$0xff] }
 0xd14   :  { %11017 = vmatpush1.bf16.msra.mxu0 %v10521_v8  ;;  %11441 = vmatpush1.bf16.msra.mxu1 %v10523_v33  ;;  %v10565_v8 = vld [vmem:[#allocation3 + $0x7e0] sm:$0xff]  ;;  %v10567_v33 = vld [vmem:[#allocation3 + $0x7f0] sm:$0xff] }
 0xd15   :  { %11018 = vmatprep.subr.bf16.mxu0 %v10526_v45  ;;  %11442 = vmatprep.subr.bf16.mxu1 %v10528_v38  ;;  %v10570_v45 = vld [vmem:[#allocation3 + $0x808] sm:$0xff]  ;;  %v10572_v38 = vld [vmem:[#allocation3 + $0x818] sm:$0xff] }
 0xd18   :  { %11019 = vmatpush1.bf16.msra.mxu0 %v10525_v53  ;;  %11443 = vmatpush1.bf16.msra.mxu1 %v10527_v60  ;;  %v10569_v53 = vld [vmem:[#allocation3 + $0x800] sm:$0xff]  ;;  %v10571_v60 = vld [vmem:[#allocation3 + $0x810] sm:$0xff] }
 0xd19   :  { %11020 = vmatprep.subr.bf16.mxu0 %v10530_v7  ;;  %11444 = vmatprep.subr.bf16.mxu1 %v10532_v63  ;;  %v10574_v7 = vld [vmem:[#allocation3 + $0x828] sm:$0xff]  ;;  %v10576_v63 = vld [vmem:[#allocation3 + $0x838] sm:$0xff] }
 0xd1c   :  { %11021 = vmatpush1.bf16.msra.mxu0 %v10529_v40  ;;  %11445 = vmatpush1.bf16.msra.mxu1 %v10531_v31  ;;  %v10573_v40 = vld [vmem:[#allocation3 + $0x820] sm:$0xff]  ;;  %v10575_v31 = vld [vmem:[#allocation3 + $0x830] sm:$0xff] }
 0xd1d   :  { %11022 = vmatprep.subr.bf16.mxu0 %v10534_v47  ;;  %11446 = vmatprep.subr.bf16.mxu1 %v10536_v59  ;;  %v10578_v47 = vld [vmem:[#allocation3 + $0x848] sm:$0xff]  ;;  %v10580_v59 = vld [vmem:[#allocation3 + $0x858] sm:$0xff] }
 0xd20   :  { %11023 = vmatpush1.bf16.msra.mxu0 %v10533_v15  ;;  %11447 = vmatpush1.bf16.msra.mxu1 %v10535_v39  ;;  %v10577_v15 = vld [vmem:[#allocation3 + $0x840] sm:$0xff]  ;;  %v10579_v39 = vld [vmem:[#allocation3 + $0x850] sm:$0xff] }
 0xd21   :  { %11024 = vmatprep.subr.bf16.mxu0 %v10538_v58  ;;  %11448 = vmatprep.subr.bf16.mxu1 %v10540_v23  ;;  %v10582_v58 = vld [vmem:[#allocation3 + $0x868] sm:$0xff]  ;;  %v10581_v23 = vld [vmem:[#allocation3 + $0x860] sm:$0xff] }
 0xd24   :  { %11025 = vmatpush1.bf16.msra.mxu0 %v10537_v14  ;;  %11449 = vmatpush1.bf16.msra.mxu1 %v10539_v24  ;;  %v10583_v14 = vld [vmem:[#allocation3 + $0x870] sm:$0xff]  ;;  %v10586_v24 = vld [vmem:[#allocation3 + $0x888] sm:$0xff] }
 0xd25   :  { %11026 = vmatprep.subr.bf16.mxu0 %v10542_v11  ;;  %11450 = vmatprep.subr.bf16.mxu1 %v10544_v9  ;;  %v10585_v11 = vld [vmem:[#allocation3 + $0x880] sm:$0xff]  ;;  %v10587_v9 = vld [vmem:[#allocation3 + $0x890] sm:$0xff] }
 0xd28   :  { %11027 = vmatpush1.bf16.msra.mxu0 %v10541_v10  ;;  %11451 = vmatpush1.bf16.msra.mxu1 %v10543_v20  ;;  %v10590_v10 = vld [vmem:[#allocation3 + $0x8a8] sm:$0xff]  ;;  %v10589_v20 = vld [vmem:[#allocation3 + $0x8a0] sm:$0xff] }
 0xd29   :  { %11028 = vmatprep.subr.bf16.mxu0 %v10546_v12  ;;  %11452 = vmatprep.subr.bf16.mxu1 %v10548_v51  ;;  %v10591_v12 = vld [vmem:[#allocation3 + $0x8b0] sm:$0xff]  ;;  %v10594_v51 = vld [vmem:[#allocation3 + $0x8c8] sm:$0xff] }
 0xd2c   :  { %11029 = vmatpush1.bf16.msra.mxu0 %v10545_v21  ;;  %11453 = vmatpush1.bf16.msra.mxu1 %v10547_v3  ;;  %v10596_v21 = vld [vmem:[#allocation3 + $0x8d8] sm:$0xff]  ;;  %v10595_v3 = vld [vmem:[#allocation3 + $0x8d0] sm:$0xff] }
 0xd2d   :  { %11030 = vmatprep.subr.bf16.mxu0 %v10550_v27  ;;  %11454 = vmatprep.subr.bf16.mxu1 %v10552_v1  ;;  %v10598_v27 = vld [vmem:[#allocation3 + $0x8e8] sm:$0xff]  ;;  %v10600_v1 = vld [vmem:[#allocation3 + $0x8f8] sm:$0xff] }
 0xd30   :  { %11031 = vmatpush1.bf16.msra.mxu0 %v10549_v62  ;;  %11455 = vmatpush1.bf16.msra.mxu1 %v10551_v48  ;;  %v10597_v62 = vld [vmem:[#allocation3 + $0x8e0] sm:$0xff]  ;;  %v10599_v48 = vld [vmem:[#allocation3 + $0x8f0] sm:$0xff] }
 0xd31   :  { %11032 = vmatprep.subr.bf16.mxu0 %v10554_v32  ;;  %11456 = vmatprep.subr.bf16.mxu1 %v10556_v6  ;;  %v10602_v32 = vld [vmem:[#allocation3 + $0x908] sm:$0xff]  ;;  %v10604_v6 = vld [vmem:[#allocation3 + $0x918] sm:$0xff] }
 0xd34   :  { %11033 = vmatpush1.bf16.msra.mxu0 %v10553_v29  ;;  %11457 = vmatpush1.bf16.msra.mxu1 %v10555_v57  ;;  %v10601_v29 = vld [vmem:[#allocation3 + $0x900] sm:$0xff]  ;;  %v10603_v57 = vld [vmem:[#allocation3 + $0x910] sm:$0xff] }
 0xd35   :  { %11034 = vmatprep.subr.bf16.mxu0 %v10558_v42  ;;  %11458 = vmatprep.subr.bf16.mxu1 %v10560_v52  ;;  %v10606_v42 = vld [vmem:[#allocation3 + $0x928] sm:$0xff]  ;;  %v10608_v52 = vld [vmem:[#allocation3 + $0x938] sm:$0xff] }
 0xd38   :  { %11035 = vmatpush1.bf16.msra.mxu0 %v10557_v50  ;;  %11459 = vmatpush1.bf16.msra.mxu1 %v10559_v37  ;;  %v10605_v50 = vld [vmem:[#allocation3 + $0x920] sm:$0xff]  ;;  %v10607_v37 = vld [vmem:[#allocation3 + $0x930] sm:$0xff] }
 0xd39   :  { %11036 = vmatprep.subr.bf16.mxu0 %v10562_v61  ;;  %11460 = vmatprep.subr.bf16.mxu1 %v10564_v4  ;;  %v10610_v61 = vld [vmem:[#allocation3 + $0x948] sm:$0xff]  ;;  %v10612_v4 = vld [vmem:[#allocation3 + $0x958] sm:$0xff] }
 0xd3c   :  { %11037 = vmatpush1.bf16.msra.mxu0 %v10561_v18  ;;  %11461 = vmatpush1.bf16.msra.mxu1 %v10563_v30  ;;  %v10609_v18 = vld [vmem:[#allocation3 + $0x940] sm:$0xff]  ;;  %v10611_v30 = vld [vmem:[#allocation3 + $0x950] sm:$0xff] }
 0xd3d   :  { %11038 = vmatprep.subr.bf16.mxu0 %v10566_v2  ;;  %11462 = vmatprep.subr.bf16.mxu1 %v10568_v34  ;;  %v10614_v2 = vld [vmem:[#allocation3 + $0x968] sm:$0xff]  ;;  %v10616_v34 = vld [vmem:[#allocation3 + $0x978] sm:$0xff] }
 0xd40   :  { %11039 = vmatpush1.bf16.msra.mxu0 %v10565_v8  ;;  %11463 = vmatpush1.bf16.msra.mxu1 %v10567_v33  ;;  %v10613_v8 = vld [vmem:[#allocation3 + $0x960] sm:$0xff]  ;;  %v10615_v33 = vld [vmem:[#allocation3 + $0x970] sm:$0xff] }
 0xd41   :  { %11061 = vmatprep.subr.bf16.mxu0 %v10570_v45  ;;  %11485 = vmatprep.subr.bf16.mxu1 %v10572_v38  ;;  %v10618_v45 = vld [vmem:[#allocation3 + $0x988] sm:$0xff]  ;;  %v10620_v38 = vld [vmem:[#allocation3 + $0x998] sm:$0xff] }
 0xd43   :  { %11041 = vmatmul.mubr.bf16.vlgmr.msra.gmra.mrb[140].mxu0 %v14487_v28  ;;  %11465 = vmatmul.mubr.bf16.vlgmr.msra.gmra.mrb[156].mxu1 %v14487_v28  ;;  %v10584_v28 = vld [vmem:[#allocation3 + $0x878] sm:$0xff] }
 0xd44   :  { %11062 = vmatpush1.bf16.msra.mxu0 %v10569_v53  ;;  %11486 = vmatpush1.bf16.msra.mxu1 %v10571_v60  ;;  %v10617_v53 = vld [vmem:[#allocation3 + $0x980] sm:$0xff]  ;;  %v10619_v60 = vld [vmem:[#allocation3 + $0x990] sm:$0xff] }
 0xd45   :  { %11063 = vmatprep.subr.bf16.mxu0 %v10574_v7  ;;  %11487 = vmatprep.subr.bf16.mxu1 %v10576_v63  ;;  %v10622_v7 = vld [vmem:[#allocation3 + $0x9a8] sm:$0xff]  ;;  %v10624_v63 = vld [vmem:[#allocation3 + $0x9b8] sm:$0xff] }
 0xd46   :  { %11050 = vmatprep.mubr.bf16.mxu0 %v14489_v5  ;;  %11474 = vmatprep.mubr.bf16.mxu1 %v14489_v5  ;;  %v10588_v5 = vld [vmem:[#allocation3 + $0x898] sm:$0xff] }
 0xd48   :  { %11064 = vmatpush1.bf16.msra.mxu0 %v10573_v40  ;;  %11488 = vmatpush1.bf16.msra.mxu1 %v10575_v31  ;;  %v10621_v40 = vld [vmem:[#allocation3 + $0x9a0] sm:$0xff]  ;;  %v10623_v31 = vld [vmem:[#allocation3 + $0x9b0] sm:$0xff] }
 0xd49   :  { %11065 = vmatprep.subr.bf16.mxu0 %v10578_v47  ;;  %11489 = vmatprep.subr.bf16.mxu1 %v10580_v59  ;;  %v10626_v47 = vld [vmem:[#allocation3 + $0x9c8] sm:$0xff]  ;;  %v10628_v59 = vld [vmem:[#allocation3 + $0x9d8] sm:$0xff] }
 0xd4b   :  { %11051 = vmatmul.mubr.bf16.gmra.mrb[144].mxu0 %v14485_v56  ;;  %11475 = vmatmul.mubr.bf16.gmra.mrb[160].mxu1 %v14485_v56  ;;  %v10592_v56 = vld [vmem:[#allocation3 + $0x8b8] sm:$0xff] }
 0xd4c   :  { %11066 = vmatpush1.bf16.msra.mxu0 %v10577_v15  ;;  %11490 = vmatpush1.bf16.msra.mxu1 %v10579_v39  ;;  %v10625_v15 = vld [vmem:[#allocation3 + $0x9c0] sm:$0xff]  ;;  %v10627_v39 = vld [vmem:[#allocation3 + $0x9d0] sm:$0xff] }
 0xd4d   :  { %11067 = vmatprep.subr.bf16.mxu0 %v10582_v58  ;;  %11491 = vmatprep.subr.bf16.mxu1 %v10584_v28  ;;  %v10630_v58 = vld [vmem:[#allocation3 + $0x9e8] sm:$0xff]  ;;  %v10632_v28 = vld [vmem:[#allocation3 + $0x9f8] sm:$0xff] }
 0xd4e   :  { %11093 = vmatprep.mubr.bf16.mxu0 %v14499_v43  ;;  %11517 = vmatprep.mubr.bf16.mxu1 %v14499_v43  ;;  %v10593_v43 = vld [vmem:[#allocation3 + $0x8c0] sm:$0xff] }
 0xd50   :  { %11068 = vmatpush1.bf16.msra.mxu0 %v10581_v23  ;;  %11492 = vmatpush1.bf16.msra.mxu1 %v10583_v14  ;;  %v10629_v23 = vld [vmem:[#allocation3 + $0x9e0] sm:$0xff]  ;;  %v10631_v14 = vld [vmem:[#allocation3 + $0x9f0] sm:$0xff] }
 0xd51   :  { %11069 = vmatprep.subr.bf16.mxu0 %v10586_v24  ;;  %11493 = vmatprep.subr.bf16.mxu1 %v10588_v5  ;;  %v10634_v24 = vld [vmem:[#allocation3 + $0xa08] sm:$0xff]  ;;  %v10636_v5 = vld [vmem:[#allocation3 + $0xa18] sm:$0xff] }
 0xd54   :  { %11070 = vmatpush1.bf16.msra.mxu0 %v10585_v11  ;;  %11494 = vmatpush1.bf16.msra.mxu1 %v10587_v9  ;;  %v10633_v11 = vld [vmem:[#allocation3 + $0xa00] sm:$0xff]  ;;  %v10635_v9 = vld [vmem:[#allocation3 + $0xa10] sm:$0xff] }
 0xd55   :  { %11071 = vmatprep.subr.bf16.mxu0 %v10590_v10  ;;  %11495 = vmatprep.subr.bf16.mxu1 %v10592_v56  ;;  %v10638_v10 = vld [vmem:[#allocation3 + $0xa28] sm:$0xff]  ;;  %v10640_v56 = vld [vmem:[#allocation3 + $0xa38] sm:$0xff] }
 0xd58   :  { %11072 = vmatpush1.bf16.msra.mxu0 %v10589_v20  ;;  %11496 = vmatpush1.bf16.msra.mxu1 %v10591_v12  ;;  %v10637_v20 = vld [vmem:[#allocation3 + $0xa20] sm:$0xff]  ;;  %v10639_v12 = vld [vmem:[#allocation3 + $0xa30] sm:$0xff] }
 0xd59   :  { %11073 = vmatprep.subr.bf16.mxu0 %v10594_v51  ;;  %11497 = vmatprep.subr.bf16.mxu1 %v10596_v21  ;;  %v10642_v51 = vld [vmem:[#allocation3 + $0xa48] sm:$0xff]  ;;  %v10644_v21 = vld [vmem:[#allocation3 + $0xa58] sm:$0xff] }
 0xd5c   :  { %11074 = vmatpush1.bf16.msra.mxu0 %v10593_v43  ;;  %11498 = vmatpush1.bf16.msra.mxu1 %v10595_v3  ;;  %v10641_v43 = vld [vmem:[#allocation3 + $0xa40] sm:$0xff]  ;;  %v10643_v3 = vld [vmem:[#allocation3 + $0xa50] sm:$0xff] }
 0xd5d   :  { %11075 = vmatprep.subr.bf16.mxu0 %v10598_v27  ;;  %11499 = vmatprep.subr.bf16.mxu1 %v10600_v1  ;;  %v10646_v27 = vld [vmem:[#allocation3 + $0xa68] sm:$0xff]  ;;  %v10645_v1 = vld [vmem:[#allocation3 + $0xa60] sm:$0xff] }
 0xd60   :  { %11076 = vmatpush1.bf16.msra.mxu0 %v10597_v62  ;;  %11500 = vmatpush1.bf16.msra.mxu1 %v10599_v48  ;;  %v10647_v62 = vld [vmem:[#allocation3 + $0xa70] sm:$0xff]  ;;  %v10650_v48 = vld [vmem:[#allocation3 + $0xa88] sm:$0xff] }
 0xd61   :  { %11077 = vmatprep.subr.bf16.mxu0 %v10602_v32  ;;  %11501 = vmatprep.subr.bf16.mxu1 %v10604_v6  ;;  %v10649_v32 = vld [vmem:[#allocation3 + $0xa80] sm:$0xff]  ;;  %v10651_v6 = vld [vmem:[#allocation3 + $0xa90] sm:$0xff] }
 0xd64   :  { %11078 = vmatpush1.bf16.msra.mxu0 %v10601_v29  ;;  %11502 = vmatpush1.bf16.msra.mxu1 %v10603_v57  ;;  %v10654_v29 = vld [vmem:[#allocation3 + $0xaa8] sm:$0xff]  ;;  %v10653_v57 = vld [vmem:[#allocation3 + $0xaa0] sm:$0xff] }
 0xd65   :  { %11079 = vmatprep.subr.bf16.mxu0 %v10606_v42  ;;  %11503 = vmatprep.subr.bf16.mxu1 %v10608_v52  ;;  %v10655_v42 = vld [vmem:[#allocation3 + $0xab0] sm:$0xff]  ;;  %v10658_v52 = vld [vmem:[#allocation3 + $0xac8] sm:$0xff] }
 0xd68   :  { %11080 = vmatpush1.bf16.msra.mxu0 %v10605_v50  ;;  %11504 = vmatpush1.bf16.msra.mxu1 %v10607_v37  ;;  %v10660_v50 = vld [vmem:[#allocation3 + $0xad8] sm:$0xff]  ;;  %v10659_v37 = vld [vmem:[#allocation3 + $0xad0] sm:$0xff] }
 0xd69   :  { %11081 = vmatprep.subr.bf16.mxu0 %v10610_v61  ;;  %11505 = vmatprep.subr.bf16.mxu1 %v10612_v4  ;;  %v10662_v61 = vld [vmem:[#allocation3 + $0xae8] sm:$0xff]  ;;  %v10664_v4 = vld [vmem:[#allocation3 + $0xaf8] sm:$0xff] }
 0xd6c   :  { %11082 = vmatpush1.bf16.msra.mxu0 %v10609_v18  ;;  %11506 = vmatpush1.bf16.msra.mxu1 %v10611_v30  ;;  %v10661_v18 = vld [vmem:[#allocation3 + $0xae0] sm:$0xff]  ;;  %v10663_v30 = vld [vmem:[#allocation3 + $0xaf0] sm:$0xff] }
 0xd6d   :  { %11083 = vmatprep.subr.bf16.mxu0 %v10614_v2  ;;  %11507 = vmatprep.subr.bf16.mxu1 %v10616_v34  ;;  %v10666_v2 = vld [vmem:[#allocation3 + $0xb08] sm:$0xff]  ;;  %v10668_v34 = vld [vmem:[#allocation3 + $0xb18] sm:$0xff] }
 0xd70   :  { %11084 = vmatpush1.bf16.msra.mxu0 %v10613_v8  ;;  %11508 = vmatpush1.bf16.msra.mxu1 %v10615_v33  ;;  %v10665_v8 = vld [vmem:[#allocation3 + $0xb00] sm:$0xff]  ;;  %v10667_v33 = vld [vmem:[#allocation3 + $0xb10] sm:$0xff] }
 0xd71   :  { %11085 = vmatprep.subr.bf16.mxu0 %v10618_v45  ;;  %11509 = vmatprep.subr.bf16.mxu1 %v10620_v38  ;;  %v10670_v45 = vld [vmem:[#allocation3 + $0xb28] sm:$0xff]  ;;  %v10672_v38 = vld [vmem:[#allocation3 + $0xb38] sm:$0xff] }
 0xd74   :  { %11086 = vmatpush1.bf16.msra.mxu0 %v10617_v53  ;;  %11510 = vmatpush1.bf16.msra.mxu1 %v10619_v60  ;;  %v10669_v53 = vld [vmem:[#allocation3 + $0xb20] sm:$0xff]  ;;  %v10671_v60 = vld [vmem:[#allocation3 + $0xb30] sm:$0xff] }
 0xd75   :  { %11087 = vmatprep.subr.bf16.mxu0 %v10622_v7  ;;  %11511 = vmatprep.subr.bf16.mxu1 %v10624_v63  ;;  %v10674_v7 = vld [vmem:[#allocation3 + $0xb48] sm:$0xff]  ;;  %v10676_v63 = vld [vmem:[#allocation3 + $0xb58] sm:$0xff] }
 0xd78   :  { %11088 = vmatpush1.bf16.msra.mxu0 %v10621_v40  ;;  %11512 = vmatpush1.bf16.msra.mxu1 %v10623_v31  ;;  %v10673_v40 = vld [vmem:[#allocation3 + $0xb40] sm:$0xff]  ;;  %v10675_v31 = vld [vmem:[#allocation3 + $0xb50] sm:$0xff] }
 0xd79   :  { %11089 = vmatprep.subr.bf16.mxu0 %v10626_v47  ;;  %11513 = vmatprep.subr.bf16.mxu1 %v10628_v59  ;;  %v10678_v47 = vld [vmem:[#allocation3 + $0xb68] sm:$0xff]  ;;  %v10680_v59 = vld [vmem:[#allocation3 + $0xb78] sm:$0xff] }
 0xd7c   :  { %11090 = vmatpush1.bf16.msra.mxu0 %v10625_v15  ;;  %11514 = vmatpush1.bf16.msra.mxu1 %v10627_v39  ;;  %v10677_v15 = vld [vmem:[#allocation3 + $0xb60] sm:$0xff]  ;;  %v10679_v39 = vld [vmem:[#allocation3 + $0xb70] sm:$0xff] }
 0xd7d   :  { %11091 = vmatprep.subr.bf16.mxu0 %v10630_v58  ;;  %11515 = vmatprep.subr.bf16.mxu1 %v10632_v28  ;;  %v10682_v58 = vld [vmem:[#allocation3 + $0xb88] sm:$0xff]  ;;  %v10684_v28 = vld [vmem:[#allocation3 + $0xb98] sm:$0xff] }
 0xd80   :  { %11092 = vmatpush1.bf16.msra.mxu0 %v10629_v23  ;;  %11516 = vmatpush1.bf16.msra.mxu1 %v10631_v14  ;;  %v10681_v23 = vld [vmem:[#allocation3 + $0xb80] sm:$0xff]  ;;  %v10683_v14 = vld [vmem:[#allocation3 + $0xb90] sm:$0xff] }
 0xd81   :  { %11114 = vmatprep.subr.bf16.mxu0 %v10634_v24  ;;  %11538 = vmatprep.subr.bf16.mxu1 %v10636_v5  ;;  %v10686_v24 = vld [vmem:[#allocation3 + $0xba8] sm:$0xff]  ;;  %v10688_v5 = vld [vmem:[#allocation3 + $0xbb8] sm:$0xff] }
 0xd83   :  { %11094 = vmatmul.mubr.bf16.vlgmr.msra.gmra.mrb[140].mxu0 %v14495_v54  ;;  %11518 = vmatmul.mubr.bf16.vlgmr.msra.gmra.mrb[156].mxu1 %v14495_v54  ;;  %v10648_v54 = vld [vmem:[#allocation3 + $0xa78] sm:$0xff] }
 0xd84   :  { %11115 = vmatpush1.bf16.msra.mxu0 %v10633_v11  ;;  %11539 = vmatpush1.bf16.msra.mxu1 %v10635_v9  ;;  %v10685_v11 = vld [vmem:[#allocation3 + $0xba0] sm:$0xff]  ;;  %v10687_v9 = vld [vmem:[#allocation3 + $0xbb0] sm:$0xff] }
 0xd85   :  { %11116 = vmatprep.subr.bf16.mxu0 %v10638_v10  ;;  %11540 = vmatprep.subr.bf16.mxu1 %v10640_v56  ;;  %v10690_v10 = vld [vmem:[#allocation3 + $0xbc8] sm:$0xff]  ;;  %v10692_v56 = vld [vmem:[#allocation3 + $0xbd8] sm:$0xff] }
 0xd86   :  { %11103 = vmatprep.mubr.bf16.mxu0 %v14497_v19  ;;  %11527 = vmatprep.mubr.bf16.mxu1 %v14497_v19  ;;  %v10652_v19 = vld [vmem:[#allocation3 + $0xa98] sm:$0xff] }
 0xd88   :  { %11117 = vmatpush1.bf16.msra.mxu0 %v10637_v20  ;;  %11541 = vmatpush1.bf16.msra.mxu1 %v10639_v12  ;;  %v10689_v20 = vld [vmem:[#allocation3 + $0xbc0] sm:$0xff]  ;;  %v10691_v12 = vld [vmem:[#allocation3 + $0xbd0] sm:$0xff] }
 0xd89   :  { %11118 = vmatprep.subr.bf16.mxu0 %v10642_v51  ;;  %11542 = vmatprep.subr.bf16.mxu1 %v10644_v21  ;;  %v10694_v51 = vld [vmem:[#allocation3 + $0xbe8] sm:$0xff]  ;;  %v10696_v21 = vld [vmem:[#allocation3 + $0xbf8] sm:$0xff] }
 0xd8b   :  { %11104 = vmatmul.mubr.bf16.gmra.mrb[144].mxu0 %v14493_v25  ;;  %11528 = vmatmul.mubr.bf16.gmra.mrb[160].mxu1 %v14493_v25  ;;  %v10656_v25 = vld [vmem:[#allocation3 + $0xab8] sm:$0xff] }
 0xd8c   :  { %11119 = vmatpush1.bf16.msra.mxu0 %v10641_v43  ;;  %11543 = vmatpush1.bf16.msra.mxu1 %v10643_v3  ;;  %v10693_v43 = vld [vmem:[#allocation3 + $0xbe0] sm:$0xff]  ;;  %v10695_v3 = vld [vmem:[#allocation3 + $0xbf0] sm:$0xff] }
 0xd8d   :  { %11120 = vmatprep.subr.bf16.mxu0 %v10646_v27  ;;  %11544 = vmatprep.subr.bf16.mxu1 %v10648_v54  ;;  %v10698_v27 = vld [vmem:[#allocation3 + $0xc08] sm:$0xff]  ;;  %v10700_v54 = vld [vmem:[#allocation3 + $0xc18] sm:$0xff] }
 0xd8e   :  { %11146 = vmatprep.mubr.bf16.mxu0 %v14507_v22  ;;  %11570 = vmatprep.mubr.bf16.mxu1 %v14507_v22  ;;  %v10657_v22 = vld [vmem:[#allocation3 + $0xac0] sm:$0xff] }
 0xd90   :  { %11121 = vmatpush1.bf16.msra.mxu0 %v10645_v1  ;;  %11545 = vmatpush1.bf16.msra.mxu1 %v10647_v62  ;;  %v10697_v1 = vld [vmem:[#allocation3 + $0xc00] sm:$0xff]  ;;  %v10699_v62 = vld [vmem:[#allocation3 + $0xc10] sm:$0xff] }
 0xd91   :  { %11122 = vmatprep.subr.bf16.mxu0 %v10650_v48  ;;  %11546 = vmatprep.subr.bf16.mxu1 %v10652_v19  ;;  %v10702_v48 = vld [vmem:[#allocation3 + $0xc28] sm:$0xff]  ;;  %v10704_v19 = vld [vmem:[#allocation3 + $0xc38] sm:$0xff] }
 0xd94   :  { %11123 = vmatpush1.bf16.msra.mxu0 %v10649_v32  ;;  %11547 = vmatpush1.bf16.msra.mxu1 %v10651_v6  ;;  %v10701_v32 = vld [vmem:[#allocation3 + $0xc20] sm:$0xff]  ;;  %v10703_v6 = vld [vmem:[#allocation3 + $0xc30] sm:$0xff] }
 0xd95   :  { %11124 = vmatprep.subr.bf16.mxu0 %v10654_v29  ;;  %11548 = vmatprep.subr.bf16.mxu1 %v10656_v25  ;;  %v10706_v29 = vld [vmem:[#allocation3 + $0xc48] sm:$0xff]  ;;  %v10708_v25 = vld [vmem:[#allocation3 + $0xc58] sm:$0xff] }
 0xd98   :  { %11125 = vmatpush1.bf16.msra.mxu0 %v10653_v57  ;;  %11549 = vmatpush1.bf16.msra.mxu1 %v10655_v42  ;;  %v10705_v57 = vld [vmem:[#allocation3 + $0xc40] sm:$0xff]  ;;  %v10707_v42 = vld [vmem:[#allocation3 + $0xc50] sm:$0xff] }
 0xd99   :  { %11126 = vmatprep.subr.bf16.mxu0 %v10658_v52  ;;  %11550 = vmatprep.subr.bf16.mxu1 %v10660_v50  ;;  %v10710_v52 = vld [vmem:[#allocation3 + $0xc68] sm:$0xff]  ;;  %v10825_v50 = vld [vmem:[%s14622_s11] sm:$0xff] }
 0xd9a   :  { %10831 = vperm.xlu0 %13586, %v10825_v50   ;;  %v10761_v50 = vld [vmem:[#allocation3 + $0xe00] sm:$0xff] }
 0xd9c   :  { %11127 = vmatpush1.bf16.msra.mxu0 %v10657_v22  ;;  %11551 = vmatpush1.bf16.msra.mxu1 %v10659_v37  ;;  %v10709_v22 = vld [vmem:[#allocation3 + $0xc60] sm:$0xff]  ;;  %v10711_v37 = vld [vmem:[#allocation3 + $0xc70] sm:$0xff] }
 0xd9d   :  { %11128 = vmatprep.subr.bf16.mxu0 %v10662_v61  ;;  %11552 = vmatprep.subr.bf16.mxu1 %v10664_v4  ;;  %v10714_v61 = vld [vmem:[#allocation3 + $0xc88] sm:$0xff]  ;;  %v10716_v4 = vld [vmem:[#allocation3 + $0xc98] sm:$0xff] }
 0xda0   :  { %11129 = vmatpush1.bf16.msra.mxu0 %v10661_v18  ;;  %11553 = vmatpush1.bf16.msra.mxu1 %v10663_v30  ;;  %v10828_v18 = vld [vmem:[%s14622_s11 + $0x18] sm:$0xff]  ;;  %v10713_v30 = vld [vmem:[#allocation3 + $0xc80] sm:$0xff] }
 0xda1   :  { %11130 = vmatprep.subr.bf16.mxu0 %v10666_v2  ;;  %11554 = vmatprep.subr.bf16.mxu1 %v10668_v34  ;;  %v10715_v2 = vld [vmem:[#allocation3 + $0xc90] sm:$0xff]  ;;  %v10718_v34 = vld [vmem:[#allocation3 + $0xca8] sm:$0xff] }
 0xda4   :  { %11131 = vmatpush1.bf16.msra.mxu0 %v10665_v8  ;;  %11555 = vmatpush1.bf16.msra.mxu1 %v10667_v33  ;;  %v10720_v8 = vld [vmem:[#allocation3 + $0xcb8] sm:$0xff]  ;;  %v10719_v33 = vld [vmem:[#allocation3 + $0xcb0] sm:$0xff] }
 0xda5   :  { %11132 = vmatprep.subr.bf16.mxu0 %v10670_v45  ;;  %11556 = vmatprep.subr.bf16.mxu1 %v10672_v38  ;;  %v10722_v45 = vld [vmem:[#allocation3 + $0xcc8] sm:$0xff]  ;;  %v10724_v38 = vld [vmem:[#allocation3 + $0xcd8] sm:$0xff] }
 0xda8   :  { %11133 = vmatpush1.bf16.msra.mxu0 %v10669_v53  ;;  %11557 = vmatpush1.bf16.msra.mxu1 %v10671_v60  ;;  %v10721_v53 = vld [vmem:[#allocation3 + $0xcc0] sm:$0xff]  ;;  %v10723_v60 = vld [vmem:[#allocation3 + $0xcd0] sm:$0xff] }
 0xda9   :  { %11134 = vmatprep.subr.bf16.mxu0 %v10674_v7  ;;  %11558 = vmatprep.subr.bf16.mxu1 %v10676_v63  ;;  %v10726_v7 = vld [vmem:[#allocation3 + $0xce8] sm:$0xff]  ;;  %v10728_v63 = vld [vmem:[#allocation3 + $0xcf8] sm:$0xff] }
 0xdac   :  { %11135 = vmatpush1.bf16.msra.mxu0 %v10673_v40  ;;  %11559 = vmatpush1.bf16.msra.mxu1 %v10675_v31  ;;  %v10725_v40 = vld [vmem:[#allocation3 + $0xce0] sm:$0xff]  ;;  %v10727_v31 = vld [vmem:[#allocation3 + $0xcf0] sm:$0xff] }
 0xdad   :  { %11136 = vmatprep.subr.bf16.mxu0 %v10678_v47  ;;  %11560 = vmatprep.subr.bf16.mxu1 %v10680_v59  ;;  %v10730_v47 = vld [vmem:[#allocation3 + $0xd08] sm:$0xff]  ;;  %v10732_v59 = vld [vmem:[#allocation3 + $0xd18] sm:$0xff] }
 0xdb0   :  { %11137 = vmatpush1.bf16.msra.mxu0 %v10677_v15  ;;  %11561 = vmatpush1.bf16.msra.mxu1 %v10679_v39  ;;  %v10729_v15 = vld [vmem:[#allocation3 + $0xd00] sm:$0xff]  ;;  %v10731_v39 = vld [vmem:[#allocation3 + $0xd10] sm:$0xff] }
 0xdb1   :  { %11138 = vmatprep.subr.bf16.mxu0 %v10682_v58  ;;  %11562 = vmatprep.subr.bf16.mxu1 %v10684_v28  ;;  %v10734_v58 = vld [vmem:[#allocation3 + $0xd28] sm:$0xff]  ;;  %v10736_v28 = vld [vmem:[#allocation3 + $0xd38] sm:$0xff] }
 0xdb4   :  { %11139 = vmatpush1.bf16.msra.mxu0 %v10681_v23  ;;  %11563 = vmatpush1.bf16.msra.mxu1 %v10683_v14  ;;  %v10733_v23 = vld [vmem:[#allocation3 + $0xd20] sm:$0xff]  ;;  %v10735_v14 = vld [vmem:[#allocation3 + $0xd30] sm:$0xff] }
 0xdb5   :  { %11140 = vmatprep.subr.bf16.mxu0 %v10686_v24  ;;  %11564 = vmatprep.subr.bf16.mxu1 %v10688_v5  ;;  %v10738_v24 = vld [vmem:[#allocation3 + $0xd48] sm:$0xff]  ;;  %v10740_v5 = vld [vmem:[#allocation3 + $0xd58] sm:$0xff] }
 0xdb8   :  { %11141 = vmatpush1.bf16.msra.mxu0 %v10685_v11  ;;  %11565 = vmatpush1.bf16.msra.mxu1 %v10687_v9  ;;  %v10737_v11 = vld [vmem:[#allocation3 + $0xd40] sm:$0xff]  ;;  %v10739_v9 = vld [vmem:[#allocation3 + $0xd50] sm:$0xff] }
 0xdb9   :  { %11142 = vmatprep.subr.bf16.mxu0 %v10690_v10  ;;  %11566 = vmatprep.subr.bf16.mxu1 %v10692_v56  ;;  %v10742_v10 = vld [vmem:[#allocation3 + $0xd68] sm:$0xff]  ;;  %v10744_v56 = vld [vmem:[#allocation3 + $0xd78] sm:$0xff] }
 0xdbc   :  { %11143 = vmatpush1.bf16.msra.mxu0 %v10689_v20  ;;  %11567 = vmatpush1.bf16.msra.mxu1 %v10691_v12  ;;  %v10741_v20 = vld [vmem:[#allocation3 + $0xd60] sm:$0xff]  ;;  %v10743_v12 = vld [vmem:[#allocation3 + $0xd70] sm:$0xff] }
 0xdbd   :  { %11144 = vmatprep.subr.bf16.mxu0 %v10694_v51  ;;  %11568 = vmatprep.subr.bf16.mxu1 %v10696_v21  ;;  %v10746_v51 = vld [vmem:[#allocation3 + $0xd88] sm:$0xff]  ;;  %v10748_v21 = vld [vmem:[#allocation3 + $0xd98] sm:$0xff] }
 0xdc0   :  { %11145 = vmatpush1.bf16.msra.mxu0 %v10693_v43  ;;  %11569 = vmatpush1.bf16.msra.mxu1 %v10695_v3  ;;  %v10745_v43 = vld [vmem:[#allocation3 + $0xd80] sm:$0xff]  ;;  %v10747_v3 = vld [vmem:[#allocation3 + $0xd90] sm:$0xff] }
 0xdc1   :  { %11167 = vmatprep.subr.bf16.mxu0 %v10698_v27  ;;  %11591 = vmatprep.subr.bf16.mxu1 %v10700_v54  ;;  %v10750_v27 = vld [vmem:[#allocation3 + $0xda8] sm:$0xff]  ;;  %v10752_v54 = vld [vmem:[#allocation3 + $0xdb8] sm:$0xff] }
 0xdc3   :  { %11147 = vmatmul.mubr.bf16.vlgmr.msra.gmra.mrb[140].mxu0 %v14503_v16  ;;  %11571 = vmatmul.mubr.bf16.vlgmr.msra.gmra.mrb[156].mxu1 %v14503_v16  ;;  %v10712_v16 = vld [vmem:[#allocation3 + $0xc78] sm:$0xff] }
 0xdc4   :  { %11168 = vmatpush1.bf16.msra.mxu0 %v10697_v1  ;;  %11592 = vmatpush1.bf16.msra.mxu1 %v10699_v62  ;;  %v10749_v1 = vld [vmem:[#allocation3 + $0xda0] sm:$0xff]  ;;  %v10751_v62 = vld [vmem:[#allocation3 + $0xdb0] sm:$0xff] }
 0xdc5   :  { %11169 = vmatprep.subr.bf16.mxu0 %v10702_v48  ;;  %11593 = vmatprep.subr.bf16.mxu1 %v10704_v19  ;;  %v10754_v48 = vld [vmem:[#allocation3 + $0xdc8] sm:$0xff]  ;;  %v10756_v19 = vld [vmem:[#allocation3 + $0xdd8] sm:$0xff] }
 0xdc6   :  { %11156 = vmatprep.mubr.bf16.mxu0 %v14505_v17  ;;  %11580 = vmatprep.mubr.bf16.mxu1 %v14505_v17  ;;  %v10827_v17 = vld [vmem:[%s14622_s11 + $0x10] sm:$0xff] }
 0xdc7   :  { %10841 = vperm.xlu1 %13587, %v10827_v17   ;;  %v10763_v17 = vld [vmem:[#allocation3 + $0xe10] sm:$0xff] }
 0xdc8   :  { %11170 = vmatpush1.bf16.msra.mxu0 %v10701_v32  ;;  %11594 = vmatpush1.bf16.msra.mxu1 %v10703_v6  ;;  %v10753_v32 = vld [vmem:[#allocation3 + $0xdc0] sm:$0xff]  ;;  %v10755_v6 = vld [vmem:[#allocation3 + $0xdd0] sm:$0xff] }
 0xdc9   :  { %11171 = vmatprep.subr.bf16.mxu0 %v10706_v29  ;;  %11595 = vmatprep.subr.bf16.mxu1 %v10708_v25  ;;  %v10758_v29 = vld [vmem:[#allocation3 + $0xde8] sm:$0xff]  ;;  %v10760_v25 = vld [vmem:[#allocation3 + $0xdf8] sm:$0xff] }
 0xdcb   :  { %11157 = vmatmul.mubr.bf16.gmra.mrb[144].mxu0 %v14501_v13  ;;  %11581 = vmatmul.mubr.bf16.gmra.mrb[160].mxu1 %v14501_v13  ;;  %v10826_v13 = vld [vmem:[%s14622_s11 + $0x8] sm:$0xff] }
 0xdcc   :  { %11172 = vmatpush1.bf16.msra.mxu0 %v10705_v57  ;;  %11596 = vmatpush1.bf16.msra.mxu1 %v10707_v42  ;;  %v10757_v57 = vld [vmem:[#allocation3 + $0xde0] sm:$0xff]  ;;  %v10759_v42 = vld [vmem:[#allocation3 + $0xdf0] sm:$0xff] }
 0xdcd   :  { %11173 = vmatprep.subr.bf16.mxu0 %v10710_v52  ;;  %11597 = vmatprep.subr.bf16.mxu1 %v10712_v16  ;;  %v10762_v52 = vld [vmem:[#allocation3 + $0xe08] sm:$0xff]  ;;  %v10764_v16 = vld [vmem:[#allocation3 + $0xe18] sm:$0xff] }
 0xdce   :  { %11199 = vmatprep.mubr.bf16.mxu0 %v14515_v41  ;;  %11623 = vmatprep.mubr.bf16.mxu1 %v14515_v41  ;;  %v10717_v41 = vld [vmem:[#allocation3 + $0xca0] sm:$0xff] }
 0xdcf   :  { %10836 = vperm.xlu0 %13586, %v10826_v13   ;;  %10846 = vperm.xlu1 %13587, %v10828_v18   ;;  %v10770_v13 = vld [vmem:[#allocation3 + $0xe48] sm:$0xff]  ;;  %v10772_v18 = vld [vmem:[#allocation3 + $0xe58] sm:$0xff] }
 0xdd0   :  { %11174 = vmatpush1.bf16.msra.mxu0 %v10709_v22  ;;  %11598 = vmatpush1.bf16.msra.mxu1 %v10711_v37  ;;  %v10766_v22 = vld [vmem:[#allocation3 + $0xe28] sm:$0xff]  ;;  %v10768_v37 = vld [vmem:[#allocation3 + $0xe38] sm:$0xff] }
 0xdd1   :  { %11175 = vmatprep.subr.bf16.mxu0 %v10714_v61  ;;  %11599 = vmatprep.subr.bf16.mxu1 %v10716_v4  ;;  %v10765_v61 = vld [vmem:[#allocation3 + $0xe20] sm:$0xff]  ;;  %v10767_v4 = vld [vmem:[#allocation3 + $0xe30] sm:$0xff] }
 0xdd4   :  { %11176 = vmatpush1.bf16.msra.mxu0 %v10713_v30  ;;  %11600 = vmatpush1.bf16.msra.mxu1 %v10715_v2  ;;  %v10769_v30 = vld [vmem:[#allocation3 + $0xe40] sm:$0xff]  ;;  %v10771_v2 = vld [vmem:[#allocation3 + $0xe50] sm:$0xff] }
 0xdd5   :  { %11177 = vmatprep.subr.bf16.mxu0 %v10718_v34  ;;  %11601 = vmatprep.subr.bf16.mxu1 %v10720_v8  ;;  %v10774_v34 = vld [vmem:[#allocation3 + $0xe68] sm:$0xff]  ;;  %v10773_v8 = vld [vmem:[#allocation3 + $0xe60] sm:$0xff] }
 0xdd8   :  { %11178 = vmatpush1.bf16.msra.mxu0 %v10717_v41  ;;  %11602 = vmatpush1.bf16.msra.mxu1 %v10719_v33  ;;  %v10775_v41 = vld [vmem:[#allocation3 + $0xe70] sm:$0xff]  ;;  %v10778_v33 = vld [vmem:[#allocation3 + $0xe88] sm:$0xff] }
 0xdd9   :  { %11179 = vmatprep.subr.bf16.mxu0 %v10722_v45  ;;  %11603 = vmatprep.subr.bf16.mxu1 %v10724_v38  ;;  %v10777_v45 = vld [vmem:[#allocation3 + $0xe80] sm:$0xff]  ;;  %v10779_v38 = vld [vmem:[#allocation3 + $0xe90] sm:$0xff] }
 0xddc   :  { %11180 = vmatpush1.bf16.msra.mxu0 %v10721_v53  ;;  %11604 = vmatpush1.bf16.msra.mxu1 %v10723_v60  ;;  %v10782_v53 = vld [vmem:[#allocation3 + $0xea8] sm:$0xff]  ;;  %v10781_v60 = vld [vmem:[#allocation3 + $0xea0] sm:$0xff] }
 0xddd   :  { %11181 = vmatprep.subr.bf16.mxu0 %v10726_v7  ;;  %11605 = vmatprep.subr.bf16.mxu1 %v10728_v63  ;;  %v10783_v7 = vld [vmem:[#allocation3 + $0xeb0] sm:$0xff]  ;;  %v10786_v63 = vld [vmem:[#allocation3 + $0xec8] sm:$0xff] }
 0xde0   :  { %11182 = vmatpush1.bf16.msra.mxu0 %v10725_v40  ;;  %11606 = vmatpush1.bf16.msra.mxu1 %v10727_v31  ;;  %v10788_v40 = vld [vmem:[#allocation3 + $0xed8] sm:$0xff]  ;;  %v10787_v31 = vld [vmem:[#allocation3 + $0xed0] sm:$0xff] }
 0xde1   :  { %11183 = vmatprep.subr.bf16.mxu0 %v10730_v47  ;;  %11607 = vmatprep.subr.bf16.mxu1 %v10732_v59  ;;  %v10790_v47 = vld [vmem:[#allocation3 + $0xee8] sm:$0xff]  ;;  %v10792_v59 = vld [vmem:[#allocation3 + $0xef8] sm:$0xff] }
 0xde4   :  { %11184 = vmatpush1.bf16.msra.mxu0 %v10729_v15  ;;  %11608 = vmatpush1.bf16.msra.mxu1 %v10731_v39  ;;  %v10789_v15 = vld [vmem:[#allocation3 + $0xee0] sm:$0xff]  ;;  %v10791_v39 = vld [vmem:[#allocation3 + $0xef0] sm:$0xff] }
 0xde5   :  { %11185 = vmatprep.subr.bf16.mxu0 %v10734_v58  ;;  %11609 = vmatprep.subr.bf16.mxu1 %v10736_v28  ;;  %v10794_v58 = vld [vmem:[#allocation3 + $0xf08] sm:$0xff]  ;;  %v10796_v28 = vld [vmem:[#allocation3 + $0xf18] sm:$0xff] }
 0xde8   :  { %11186 = vmatpush1.bf16.msra.mxu0 %v10733_v23  ;;  %11610 = vmatpush1.bf16.msra.mxu1 %v10735_v14  ;;  %v10793_v23 = vld [vmem:[#allocation3 + $0xf00] sm:$0xff]  ;;  %v10795_v14 = vld [vmem:[#allocation3 + $0xf10] sm:$0xff] }
 0xde9   :  { %11187 = vmatprep.subr.bf16.mxu0 %v10738_v24  ;;  %11611 = vmatprep.subr.bf16.mxu1 %v10740_v5  ;;  %v10798_v24 = vld [vmem:[#allocation3 + $0xf28] sm:$0xff]  ;;  %v10800_v5 = vld [vmem:[#allocation3 + $0xf38] sm:$0xff] }
 0xdec   :  { %11188 = vmatpush1.bf16.msra.mxu0 %v10737_v11  ;;  %11612 = vmatpush1.bf16.msra.mxu1 %v10739_v9  ;;  %v10797_v11 = vld [vmem:[#allocation3 + $0xf20] sm:$0xff]  ;;  %v10799_v9 = vld [vmem:[#allocation3 + $0xf30] sm:$0xff] }
 0xded   :  { %11189 = vmatprep.subr.bf16.mxu0 %v10742_v10  ;;  %11613 = vmatprep.subr.bf16.mxu1 %v10744_v56  ;;  %v10802_v10 = vld [vmem:[#allocation3 + $0xf48] sm:$0xff]  ;;  %v10804_v56 = vld [vmem:[#allocation3 + $0xf58] sm:$0xff] }
 0xdf0   :  { %11190 = vmatpush1.bf16.msra.mxu0 %v10741_v20  ;;  %11614 = vmatpush1.bf16.msra.mxu1 %v10743_v12  ;;  %v10801_v20 = vld [vmem:[#allocation3 + $0xf40] sm:$0xff]  ;;  %v10803_v12 = vld [vmem:[#allocation3 + $0xf50] sm:$0xff] }
 0xdf1   :  { %11191 = vmatprep.subr.bf16.mxu0 %v10746_v51  ;;  %11615 = vmatprep.subr.bf16.mxu1 %v10748_v21  ;;  %v10806_v51 = vld [vmem:[#allocation3 + $0xf68] sm:$0xff]  ;;  %v10808_v21 = vld [vmem:[#allocation3 + $0xf78] sm:$0xff] }
 0xdf4   :  { %11192 = vmatpush1.bf16.msra.mxu0 %v10745_v43  ;;  %11616 = vmatpush1.bf16.msra.mxu1 %v10747_v3  ;;  %v10805_v43 = vld [vmem:[#allocation3 + $0xf60] sm:$0xff]  ;;  %v10807_v3 = vld [vmem:[#allocation3 + $0xf70] sm:$0xff] }
 0xdf5   :  { %11193 = vmatprep.subr.bf16.mxu0 %v10750_v27  ;;  %11617 = vmatprep.subr.bf16.mxu1 %v10752_v54  ;;  %v10810_v27 = vld [vmem:[#allocation3 + $0xf88] sm:$0xff]  ;;  %v10812_v54 = vld [vmem:[#allocation3 + $0xf98] sm:$0xff] }
 0xdf8   :  { %11194 = vmatpush1.bf16.msra.mxu0 %v10749_v1  ;;  %11618 = vmatpush1.bf16.msra.mxu1 %v10751_v62  ;;  %v10809_v1 = vld [vmem:[#allocation3 + $0xf80] sm:$0xff]  ;;  %v10811_v62 = vld [vmem:[#allocation3 + $0xf90] sm:$0xff] }
 0xdf9   :  { %11195 = vmatprep.subr.bf16.mxu0 %v10754_v48  ;;  %11619 = vmatprep.subr.bf16.mxu1 %v10756_v19  ;;  %v10814_v48 = vld [vmem:[#allocation3 + $0xfa8] sm:$0xff]  ;;  %v10816_v19 = vld [vmem:[#allocation3 + $0xfb8] sm:$0xff] }
 0xdfc   :  { %11196 = vmatpush1.bf16.msra.mxu0 %v10753_v32  ;;  %11620 = vmatpush1.bf16.msra.mxu1 %v10755_v6  ;;  %v10813_v32 = vld [vmem:[#allocation3 + $0xfa0] sm:$0xff]  ;;  %v10815_v6 = vld [vmem:[#allocation3 + $0xfb0] sm:$0xff] }
 0xdfd   :  { %11197 = vmatprep.subr.bf16.mxu0 %v10758_v29  ;;  %11621 = vmatprep.subr.bf16.mxu1 %v10760_v25  ;;  %v10818_v29 = vld [vmem:[#allocation3 + $0xfc8] sm:$0xff]  ;;  %v10820_v25 = vld [vmem:[#allocation3 + $0xfd8] sm:$0xff] }
 0xe00   :  { %11198 = vmatpush1.bf16.msra.mxu0 %v10757_v57  ;;  %11622 = vmatpush1.bf16.msra.mxu1 %v10759_v42  ;;  %v10817_v57 = vld [vmem:[#allocation3 + $0xfc0] sm:$0xff]  ;;  %v10819_v42 = vld [vmem:[#allocation3 + $0xfd0] sm:$0xff] }
 0xe01   :  { %11220 = vmatprep.subr.bf16.mxu0 %v10762_v52  ;;  %11644 = vmatprep.subr.bf16.mxu1 %v10764_v16  ;;  %v10822_v52 = vld [vmem:[#allocation3 + $0xfe8] sm:$0xff]  ;;  %v10824_v16 = vld [vmem:[#allocation3 + $0xff8] sm:$0xff] }
 0xe03   :  { %11200 = vmatmul.mubr.bf16.vlgmr.msra.gmra.mrb[140].mxu0 %v14511_v26  ;;  %11624 = vmatmul.mubr.bf16.vlgmr.msra.gmra.mrb[156].mxu1 %v14511_v26  ;;  %v10776_v26 = vld [vmem:[#allocation3 + $0xe78] sm:$0xff] }
 0xe04   :  { %11221 = vmatpush1.bf16.msra.mxu0 %v10761_v50  ;;  %11645 = vmatpush1.bf16.msra.mxu1 %v10763_v17  ;;  %v10821_v50 = vld [vmem:[#allocation3 + $0xfe0] sm:$0xff]  ;;  %v10823_v17 = vld [vmem:[#allocation3 + $0xff0] sm:$0xff] }
 0xe05   :  { %11222 = vmatprep.subr.bf16.mxu0 %v10766_v22  ;;  %11646 = vmatprep.subr.bf16.mxu1 %v10768_v37 }
 0xe06   :  { %11209 = vmatprep.mubr.bf16.mxu0 %v14513_v49  ;;  %11633 = vmatprep.mubr.bf16.mxu1 %v14513_v49  ;;  %v10780_v49 = vld [vmem:[#allocation3 + $0xe98] sm:$0xff] }
 0xe08   :  { %11223 = vmatpush1.bf16.msra.mxu0 %v10765_v61  ;;  %11647 = vmatpush1.bf16.msra.mxu1 %v10767_v4 }
 0xe09   :  { %11224 = vmatprep.subr.bf16.mxu0 %v10770_v13  ;;  %11648 = vmatprep.subr.bf16.mxu1 %v10772_v18 }
 0xe0b   :  { %11210 = vmatmul.mubr.bf16.gmra.mrb[144].mxu0 %v14509_v44  ;;  %11634 = vmatmul.mubr.bf16.gmra.mrb[160].mxu1 %v14509_v44  ;;  %v10784_v44 = vld [vmem:[#allocation3 + $0xeb8] sm:$0xff] }
 0xe0c   :  { %11225 = vmatpush1.bf16.msra.mxu0 %v10769_v30  ;;  %11649 = vmatpush1.bf16.msra.mxu1 %v10771_v2 }
 0xe0d   :  { %11226 = vmatprep.subr.bf16.mxu0 %v10774_v34  ;;  %11650 = vmatprep.subr.bf16.mxu1 %v10776_v26 }
 0xe0e   :  { %11252 = vmatprep.mubr.bf16.mxu0 %v14523_v36  ;;  %11676 = vmatprep.mubr.bf16.mxu1 %v14523_v36  ;;  %v10785_v36 = vld [vmem:[#allocation3 + $0xec0] sm:$0xff] }
 0xe10   :  { %11227 = vmatpush1.bf16.msra.mxu0 %v10773_v8  ;;  %11651 = vmatpush1.bf16.msra.mxu1 %v10775_v41 }
 0xe11   :  { %11228 = vmatprep.subr.bf16.mxu0 %v10778_v33  ;;  %11652 = vmatprep.subr.bf16.mxu1 %v10780_v49 }
 0xe14   :  { %11229 = vmatpush1.bf16.msra.mxu0 %v10777_v45  ;;  %11653 = vmatpush1.bf16.msra.mxu1 %v10779_v38 }
 0xe15   :  { %11230 = vmatprep.subr.bf16.mxu0 %v10782_v53  ;;  %11654 = vmatprep.subr.bf16.mxu1 %v10784_v44 }
 0xe18   :  { %11231 = vmatpush1.bf16.msra.mxu0 %v10781_v60  ;;  %11655 = vmatpush1.bf16.msra.mxu1 %v10783_v7 }
 0xe19   :  { %11232 = vmatprep.subr.bf16.mxu0 %v10786_v63  ;;  %11656 = vmatprep.subr.bf16.mxu1 %v10788_v40  ;;  %v10832_v22 = vpop.permute.xlu0 %10831 }
 0xe1c   :  { %11233 = vmatpush1.bf16.msra.mxu0 %v10785_v36  ;;  %11657 = vmatpush1.bf16.msra.mxu1 %v10787_v31 }
 0xe1d   :  { %11234 = vmatprep.subr.bf16.mxu0 %v10790_v47  ;;  %11658 = vmatprep.subr.bf16.mxu1 %v10792_v59 }
 0xe20   :  { %11235 = vmatpush1.bf16.msra.mxu0 %v10789_v15  ;;  %11659 = vmatpush1.bf16.msra.mxu1 %v10791_v39 }
 0xe21   :  { %11236 = vmatprep.subr.bf16.mxu0 %v10794_v58  ;;  %11660 = vmatprep.subr.bf16.mxu1 %v10796_v28 }
 0xe24   :  { %11237 = vmatpush1.bf16.msra.mxu0 %v10793_v23  ;;  %11661 = vmatpush1.bf16.msra.mxu1 %v10795_v14 }
 0xe25   :  { %11238 = vmatprep.subr.bf16.mxu0 %v10798_v24  ;;  %11662 = vmatprep.subr.bf16.mxu1 %v10800_v5 }
 0xe28   :  { %11239 = vmatpush1.bf16.msra.mxu0 %v10797_v11  ;;  %11663 = vmatpush1.bf16.msra.mxu1 %v10799_v9 }
 0xe29   :  { %11240 = vmatprep.subr.bf16.mxu0 %v10802_v10  ;;  %11664 = vmatprep.subr.bf16.mxu1 %v10804_v56 }
 0xe2c   :  { %11241 = vmatpush1.bf16.msra.mxu0 %v10801_v20  ;;  %11665 = vmatpush1.bf16.msra.mxu1 %v10803_v12 }
 0xe2d   :  { %11242 = vmatprep.subr.bf16.mxu0 %v10806_v51  ;;  %11666 = vmatprep.subr.bf16.mxu1 %v10808_v21 }
 0xe30   :  { %11243 = vmatpush1.bf16.msra.mxu0 %v10805_v43  ;;  %11667 = vmatpush1.bf16.msra.mxu1 %v10807_v3 }
 0xe31   :  { %11244 = vmatprep.subr.bf16.mxu0 %v10810_v27  ;;  %11668 = vmatprep.subr.bf16.mxu1 %v10812_v54 }
 0xe34   :  { %11245 = vmatpush1.bf16.msra.mxu0 %v10809_v1  ;;  %11669 = vmatpush1.bf16.msra.mxu1 %v10811_v62 }
 0xe35   :  { %11246 = vmatprep.subr.bf16.mxu0 %v10814_v48  ;;  %11670 = vmatprep.subr.bf16.mxu1 %v10816_v19 }
 0xe38   :  { %11247 = vmatpush1.bf16.msra.mxu0 %v10813_v32  ;;  %11671 = vmatpush1.bf16.msra.mxu1 %v10815_v6 }
 0xe39   :  { %11248 = vmatprep.subr.bf16.mxu0 %v10818_v29  ;;  %11672 = vmatprep.subr.bf16.mxu1 %v10820_v25 }
 0xe3c   :  { %11249 = vmatpush1.bf16.msra.mxu0 %v10817_v57  ;;  %11673 = vmatpush1.bf16.msra.mxu1 %v10819_v42 }
 0xe3d   :  { %11250 = vmatprep.subr.bf16.mxu0 %v10822_v52  ;;  %11674 = vmatprep.subr.bf16.mxu1 %v10824_v16  ;;  %v11721_v16 = vld [vmem:[#allocation18] sm:$0x3] }
 0xe40   :  { %11251 = vmatpush1.bf16.msra.mxu0 %v10821_v50  ;;  %11675 = vmatpush1.bf16.msra.mxu1 %v10823_v17 }
 0xe43   :  { %11253 = vmatmul.mubr.bf16.vlgmr.msra.gmra.mrb[140].mxu0 %v14519_v55  ;;  %11677 = vmatmul.mubr.bf16.vlgmr.msra.gmra.mrb[156].mxu1 %v14519_v55 }
 0xe44   :  { %11262 = vmatprep.mubr.bf16.mxu0 %v14521_v35  ;;  %11686 = vmatprep.mubr.bf16.mxu1 %v14521_v35 }
 0xe46   :  { %v10842_v61 = vpop.permute.xlu1 %10841 }
 0xe4b   :  { %11263 = vmatmul.mubr.bf16.gmra.mrb[144].mxu0 %v14517_v46  ;;  %11687 = vmatmul.mubr.bf16.gmra.mrb[160].mxu1 %v14517_v46 }
 0xe4c   :  { %11758 = vmatprep.mubr.bf16.mxu0 %v13824_v0 }
 0xe4e   :  { %v10837_v37 = vpop.permute.xlu0 %10836  ;;  %v10847_v15 = vpop.permute.xlu1 %10846 }
 0xf16   :  { %v11254_v4 = vpop.f32.mrb[140].mxu0  ;;  %v11678_v13 = vpop.f32.mrb[156].mxu1 }
 0xf17   :  { %v13271_v18 = vadd.f32 %v11254_v4, %v10832_v22  ;;  %v13279_v30 = vadd.f32 %v11678_v13, %v10832_v22  ;;  %v11256_v2 = vpop.f32.mrb[141].mxu0  ;;  %v11680_v34 = vpop.f32.mrb[157].mxu1 }
 0xf18   :  { %v13272_v55 = vadd.f32 %v11256_v2, %v10832_v22  ;;  %v13280_v26 = vadd.f32 %v11680_v34, %v10832_v22  ;;  %v11258_v8 = vpop.f32.mrb[142].mxu0  ;;  %v11682_v41 = vpop.f32.mrb[158].mxu1 }
 0xf19   :  { %v13273_v35 = vadd.f32 %v11258_v8, %v10837_v37  ;;  %v13281_v33 = vadd.f32 %v11682_v41, %v10837_v37  ;;  %v11260_v49 = vpop.f32.mrb[143].mxu0  ;;  %v11684_v45 = vpop.f32.mrb[159].mxu1  ;;  %v11697_v53 = vmax.f32 %v13271_v18, 0.0  ;;  %v11699_v44 = vmax.f32 %v13279_v30, 0.0 }
 0xf1a   :  { %v13274_v46 = vadd.f32 %v11260_v49, %v10837_v37  ;;  %v13282_v38 = vadd.f32 %v11684_v45, %v10837_v37  ;;  %v11698_v63 = vmax.f32 %v13272_v55, 0.0  ;;  %v11700_v40 = vmax.f32 %v13280_v26, 0.0 }
 0xf1b   :  { %v11701_v60 = vmax.f32 %v13273_v35, 0.0  ;;  %v11703_v7 = vmax.f32 %v13281_v33, 0.0 }
 0xf1c   :  { %v11702_v36 = vmax.f32 %v13274_v46, 0.0  ;;  %v11704_v31 = vmax.f32 %v13282_v38, 0.0 }
 0xf1d   :  { %v11713_v47 = vpack.c.bf16 %v11701_v60, %v11697_v53  ;;  %v11715_v59 = vpack.c.bf16 %v11703_v7, %v11699_v44 }
 0xf1e   :  { %v11714_v39 = vpack.c.bf16 %v11702_v36, %v11698_v63  ;;  %v11716_v58 = vpack.c.bf16 %v11704_v31, %v11700_v40  ;;  %v11264_v28 = vpop.f32.mrb[144].mxu0  ;;  %v11688_v23 = vpop.f32.mrb[160].mxu1 }
 0xf1f   :  { %v13275_v14 = vadd.f32 %v11264_v28, %v10842_v61  ;;  %v13283_v24 = vadd.f32 %v11688_v23, %v10842_v61  ;;  %v11266_v5 = vpop.f32.mrb[145].mxu0  ;;  %v11690_v11 = vpop.f32.mrb[161].mxu1 }
 0xf20   :  { %v13276_v9 = vadd.f32 %v11266_v5, %v10842_v61  ;;  %v13284_v10 = vadd.f32 %v11690_v11, %v10842_v61  ;;  %v11268_v56 = vpop.f32.mrb[146].mxu0  ;;  %v11692_v20 = vpop.f32.mrb[162].mxu1  ;;  %11726 = vmatprep.subr.bf16.mxu0 %v11714_v39 }
 0xf21   :  { %v13277_v12 = vadd.f32 %v11268_v56, %v10847_v15  ;;  %v13285_v51 = vadd.f32 %v11692_v20, %v10847_v15  ;;  %v11270_v21 = vpop.f32.mrb[147].mxu0  ;;  %v11694_v43 = vpop.f32.mrb[163].mxu1  ;;  %11727 = vmatpush1.bf16.msra.mxu0 %v11713_v47  ;;  %v11705_v54 = vmax.f32 %v13275_v14, 0.0  ;;  %v11707_v1 = vmax.f32 %v13283_v24, 0.0 }
 0xf22   :  { %v13278_v3 = vadd.f32 %v11270_v21, %v10847_v15  ;;  %v13286_v27 = vadd.f32 %v11694_v43, %v10847_v15  ;;  %v11706_v19 = vmax.f32 %v13276_v9, 0.0  ;;  %v11708_v32 = vmax.f32 %v13284_v10, 0.0 }
 0xf23   :  { %v11709_v62 = vmax.f32 %v13277_v12, 0.0  ;;  %v11711_v48 = vmax.f32 %v13285_v51, 0.0 }
 0xf24   :  { %v11710_v6 = vmax.f32 %v13278_v3, 0.0  ;;  %v11712_v29 = vmax.f32 %v13286_v27, 0.0 }
 0xf25   :  { %v11717_v25 = vpack.c.bf16 %v11709_v62, %v11705_v54  ;;  %v11719_v57 = vpack.c.bf16 %v11711_v48, %v11707_v1 }
 0xf26   :  { %v11718_v42 = vpack.c.bf16 %v11710_v6, %v11706_v19  ;;  %v11720_v52 = vpack.c.bf16 %v11712_v29, %v11708_v32 }
 0xf28   :  { %11728 = vmatprep.subr.bf16.mxu0 %v11718_v42 }
 0xf29   :  { %11729 = vmatpush1.bf16.msra.mxu0 %v11717_v25 }
 0xf2a   :  { %11767 = vmatprep.subr.bf16.mxu0 %v11716_v58 }
 0xf2c   :  { %13003 = vmatmul.mubr.msk.bf16.vlgmr.msra.gmra.mrb[148].mxu0 %vm11722_vm5, %v11721_v16 }
 0xf2d   :  { %11768 = vmatpush1.bf16.msra.mxu0 %v11715_v59  ;;  %11799 = vmatprep.mubr.bf16.mxu0 %v13824_v0 }
 0xf2e   :  { %11769 = vmatprep.subr.bf16.mxu0 %v11720_v52 }
 0xf31   :  { %11770 = vmatpush1.bf16.msra.mxu0 %v11719_v57 }
 0xf34   :  { %13004 = vmatmul.mubr.msk.bf16.vlgmr.msra.gmra.mrb[152].mxu0 %vm11722_vm5, %v11721_v16 }
 0xfff   :  { %v11760_v50 = vpop.f32.mrb[148].mxu0 }
0x1000   :  { %13588 = vtanh.f32 %v11760_v50  ;;  %v11762_v17 = vpop.f32.mrb[149].mxu0 }
0x1001   :  { %13590 = vtanh.f32 %v11762_v17  ;;  %v11764_v22 = vpop.f32.mrb[150].mxu0 }
0x1002   :  { %v11765_v37 = vpop.f32.mrb[151].mxu0 }
0x1007   :  { %v11801_v61 = vpop.f32.mrb[152].mxu0 }
0x1008   :  { %13592 = vtanh.f32 %v11801_v61  ;;  %v11803_v4 = vpop.f32.mrb[153].mxu0 }
0x1009   :  { %13594 = vtanh.f32 %v11803_v4  ;;  %v11805_v13 = vpop.f32.mrb[154].mxu0 }
0x100a   :  { %v13589_v18 = vpop.eup %13588  ;;  %v11806_v30 = vpop.f32.mrb[155].mxu0 }
0x100b   :  { %v13591_v2 = vpop.eup %13590 }
0x100c   :  { %v11816_v34 = vcombine.low %v13589_v18, %v13591_v2 }
0x100e   :  { %11820 = vst [vmem:[%s14624_s13] sm:$0xff] %v11816_v34 }
0x1012   :  { %v13593_v0 = vpop.eup %13592 }
0x1013   :  { %v13595_v55 = vpop.eup %13594 }
0x1014   :  { %v11817_v26 = vcombine.low %v13593_v0, %v13595_v55 }
0x1016   :  { %11821 = vst [vmem:[%s14624_s13 + $0x8] sm:$0xff] %v11817_v26 }
0x1017   :  { %11826 = vsyncpa [#allocation6], 1 }
0x1018   :  { %11827 = vsyncpa [#allocation8], 1 }
0x1019   :  { %11828 = vsyncpa [#allocation11], 1 }
0x101a   :  { %11829 = vsyncpa [#allocation14], 1 }
0x101b   :  { %11830 = vsyncpa [#allocation17], 1 }
0x101c   :  { %11831 = vsyncmov [#allocation4] }
0x101f   :  { %s11832_s12 = vpop.sfrf %11831 }
0x1020   :  { %p13005_p2 = scmp.ne.s32.totalorder %s11832_s12, 0 }
0x1022   :  { %11836 = shalt.err (%p13005_p2)  }
0x1023   :  { %11838 = vsyncmov [#allocation4 + $0x1] }
0x1026   :  { %s11839_s27 = vpop.sfrf %11838 }
0x1027   :  { %p13006_p3 = scmp.ne.s32.totalorder %s11839_s27, 0 }
0x1029   :  { %11843 = shalt.err (%p13006_p3)  }

</bundles_post_ra>
